<compile_context>
chip_gen: v5e
topology: v5e:2x2
jax: 0.10.0
libtpu: 0.0.40
codegen_flags: <defaults>
</compile_context>

<pallas_src>
import math
import numpy as np

import jax
import jax.numpy as jnp
from jax import lax
from jax.experimental import pallas as pl
from jax.experimental.pallas import tpu as pltpu  # noqa: F401  (kept for TPU-specific tweaks)

# ----------------------------- module configuration --------------------------------
FRAMES = 180
IN_DIM = 4
X_EMBED_DIM = 48
C1 = X_EMBED_DIM // 2          # 24 (first conv channels)
C2 = X_EMBED_DIM               # 48 (second conv channels)
T_EMBED_DIM = 16
EMBED_DIM = 256
NUM_HEADS = 4
HEAD_DIM = EMBED_DIM // NUM_HEADS
NUM_LAYERS = 2
FF_DIM = 128
OUT_DIM = 4 * FRAMES           # 720
POOL1_LEN = FRAMES // 3        # 60
POOL2_LEN = FRAMES // 9        # 20
FLAT_IN = FRAMES * IN_DIM      # 720
PROJ_DIM = POOL2_LEN * X_EMBED_DIM   # 960
BATCH = 2
LN_EPS = 1e-5
BN_EPS = 1e-5

# HIGHEST precision is used only OUTSIDE the kernel (reference + one-time fold).
HI = jax.lax.Precision.HIGHEST


def get_positional_encoding(seq_len, d_model):
    position = np.arange(0, seq_len, dtype=np.float32)[:, None]
    div_term = np.exp(np.arange(0, d_model, 2, dtype=np.float32)
                      * -(math.log(10000.0) / d_model))
    pe = np.zeros((seq_len, d_model), dtype=np.float32)
    pe[:, 0::2] = np.sin(position * div_term)
    pe[:, 1::2] = np.cos(position * div_term)
    return jnp.asarray(pe)


# ----------------------------------- the kernel -------------------------------------
def _basemodel_kernel(
    # data
    x_ref, t_ref,
    # folded front end
    wf_ref, bf_ref,
    # small embeddings / projections
    embt_w_ref, embt_b_ref,
    proj2_wT_ref, proj2_b_ref,
    # transformer params (stacked over NUM_LAYERS)
    qkv_wT_ref, qkv_b_ref, attn_out_wT_ref, attn_out_b_ref,
    ff1_wT_ref, ff1_b_ref, ff2_wT_ref, ff2_b_ref, ln_ref,
    # head params
    norm_ref, mlp2_wT_ref, mlp2_b_ref,
    # output
    out_ref,
):
    f32 = jnp.float32
    bf16 = jnp.bfloat16

    def mm(a, w):
        # native single-pass bf16 x bf16 -> f32 MXU matmul
        return jnp.dot(a.astype(bf16), w.astype(bf16), preferred_element_type=f32)

    def gelu(v):
        # exact (erf-based) GELU as nn.GELU default; erf via A&S 7.1.26 (|err|<1.5e-7)
        z = v * (1.0 / math.sqrt(2.0))
        az = jnp.abs(z)
        tt = 1.0 / (1.0 + 0.3275911 * az)
        poly = ((((1.061405429 * tt - 1.453152027) * tt + 1.421413741) * tt
                 - 0.284496736) * tt + 0.254829592) * tt
        erf_abs = 1.0 - poly * jnp.exp(-az * az)
        erf_z = jnp.where(z >= 0.0, erf_abs, -erf_abs)
        return 0.5 * v * (1.0 + erf_z)

    def layer_norm(v, w, b):
        mu = jnp.mean(v, axis=-1, keepdims=True)
        var = jnp.mean(jnp.square(v - mu), axis=-1, keepdims=True)
        return (v - mu) * lax.rsqrt(var + LN_EPS) * w + b

    # -------------- front end: folded affine map + GELU, whole batch ----------------
    p1 = gelu(mm(x_ref[...], wf_ref[...]) + bf_ref[...])                  # (B, 256)
    te = gelu(t_ref[...] * embt_w_ref[...] + embt_b_ref[...])             # (B, 16)
    # proj2 = Linear(256+16, 256) + GELU; concat avoided by splitting the weight
    z = gelu(mm(p1, proj2_wT_ref[0:EMBED_DIM, :])
             + mm(te, proj2_wT_ref[EMBED_DIM:EMBED_DIM + T_EMBED_DIM, :])
             + proj2_b_ref[...])                                          # (B, 256)

    # ------- TransformerEncoderLayer x NUM_LAYERS (post-norm, eval; seq == batch) ---
    scale = 1.0 / math.sqrt(HEAD_DIM)
    for l in range(NUM_LAYERS):
        qkv = mm(z, qkv_wT_ref[l]) + qkv_b_ref[l]                         # (B, 768)
        q = qkv[:, 0:EMBED_DIM]
        k = qkv[:, EMBED_DIM:2 * EMBED_DIM]
        v = qkv[:, 2 * EMBED_DIM:3 * EMBED_DIM]

        ctx = []
        for hd in range(NUM_HEADS):
            lo = hd * HEAD_DIM
            qh = q[:, lo:lo + HEAD_DIM]
            kh = k[:, lo:lo + HEAD_DIM]
            vh = v[:, lo:lo + HEAD_DIM]
            s = lax.dot_general(qh.astype(bf16), kh.astype(bf16),
                                (((1,), (1,)), ((), ())),
                                preferred_element_type=f32) * scale       # (B, B)
            s = s - jnp.max(s, axis=-1, keepdims=True)
            p = jnp.exp(s)
            p = p / jnp.sum(p, axis=-1, keepdims=True)    # exact divide (no approx)
            ctx.append(mm(p, vh))                                         # (B, 64)
        ctx = jnp.concatenate(ctx, axis=-1)                               # (B, 256)
        attn = mm(ctx, attn_out_wT_ref[l]) + attn_out_b_ref[l]            # (B, 256)

        lnp = ln_ref[l]                                                   # (4, 256)
        z = layer_norm(z + attn, lnp[0:1, :], lnp[1:2, :])
        hff = jnp.maximum(mm(z, ff1_wT_ref[l]) + ff1_b_ref[l], 0.0)       # (B, 128)
        ff = mm(hff, ff2_wT_ref[l]) + ff2_b_ref[l]                        # (B, 256)
        z = layer_norm(z + ff, lnp[2:3, :], lnp[3:4, :])

    # ------------------------- final LayerNorm + mlp2 (ReLU) ------------------------
    z = layer_norm(z, norm_ref[0:1, :], norm_ref[1:2, :])
    out_ref[...] = jnp.maximum(mm(z, mlp2_wT_ref[...]) + mlp2_b_ref[...], 0.0)
    # lane-dense (B, 720) store; reshape to (B, 180, 4) outside


# ------------------------------------ wrapper ---------------------------------------
@jax.jit
def basemodel_forward(packed, x, t):
    b = x.shape[0]
    x2d = x.astype(jnp.float32).reshape(b, FLAT_IN)
    t2 = t.astype(jnp.float32).reshape(b, 1)
    out = pl.pallas_call(
        _basemodel_kernel,
        out_shape=jax.ShapeDtypeStruct((b, OUT_DIM), jnp.float32),
    )(
        x2d, t2,
        packed["w_front"], packed["b_front"],
        packed["embt_w"], packed["embt_b"],
        packed["proj2_wT"], packed["proj2_b"],
        packed["qkv_wT"], packed["qkv_b"],
        packed["attn_out_wT"], packed["attn_out_b"],
        packed["ff1_wT"], packed["ff1_b"],
        packed["ff2_wT"], packed["ff2_b"],
        packed["ln"], packed["norm"],
        packed["mlp2_wT"], packed["mlp2_b"],
    )
    # module does x.view(B, T, -1)
    return out.reshape(b, FRAMES, OUT_DIM // FRAMES)


# -------------------- front-end chain (reference + one-time affine fold) -------------
def _conv1d(h, wT, b):                   # h: (N, L, Cin); wT: (3, Cin, Cout)
    L = h.shape[1]
    hp = jnp.pad(h, ((0, 0), (1, 1), (0, 0)))
    return (jnp.dot(hp[:, 0:L], wT[0], precision=HI)
            + jnp.dot(hp[:, 1:L + 1], wT[1], precision=HI)
            + jnp.dot(hp[:, 2:L + 2], wT[2], precision=HI) + b)


def _bn_eval(h, bn):                     # bn: (4, C) = gamma, beta, mean, var
    return (h - bn[2]) / jnp.sqrt(bn[3] + BN_EPS) * bn[0] + bn[1]


def _pool3(h):                           # adaptive avg pool (evenly divisible by 3)
    n, L, c = h.shape
    return h.reshape(n, L // 3, 3, c).mean(axis=2)


def front_end_pre_gelu(params, x):
    """Conv1d->BN->pool->Conv1d->BN->pool->+pos->flatten->Linear(960,256). Affine in x."""
    n = x.shape[0]
    h = _pool3(_bn_eval(_conv1d(x, params["conv1_wT"], params["conv1_b"]), params["bn1"]))
    h = _pool3(_bn_eval(_conv1d(h, params["conv2_wT"], params["conv2_b"]), params["bn2"]))
    h = h + get_positional_encoding(POOL2_LEN, X_EMBED_DIM)[None]
    return (jnp.dot(h.reshape(n, PROJ_DIM),
                    params["proj1_wT"].reshape(PROJ_DIM, EMBED_DIM), precision=HI)
            + params["proj1_b"])


def fold_front_end(params):
    """Exact fold of the affine front end into (W_front, b_front) via linearity."""
    zero = jnp.zeros((1, FRAMES, IN_DIM), jnp.float32)
    b_front = front_end_pre_gelu(params, zero)                            # (1, 256)
    basis = jnp.eye(FLAT_IN, dtype=jnp.float32).reshape(FLAT_IN, FRAMES, IN_DIM)
    w_front = front_end_pre_gelu(params, basis) - b_front                 # (720, 256)
    return w_front, b_front


def pack_params(params):
    """Kernel-ready parameters: folded front end + bf16 matmul weights, f32 biases."""
    w_front, b_front = fold_front_end(params)
    bf16 = jnp.bfloat16
    return dict(
        w_front=w_front.astype(bf16), b_front=b_front,
        embt_w=params["embt_w"], embt_b=params["embt_b"],
        proj2_wT=params["proj2_wT"].astype(bf16), proj2_b=params["proj2_b"],
        qkv_wT=params["qkv_wT"].astype(bf16), qkv_b=params["qkv_b"],
        attn_out_wT=params["attn_out_wT"].astype(bf16), attn_out_b=params["attn_out_b"],
        ff1_wT=params["ff1_wT"].astype(bf16), ff1_b=params["ff1_b"],
        ff2_wT=params["ff2_wT"].astype(bf16), ff2_b=params["ff2_b"],
        ln=params["ln"], norm=params["norm"],
        mlp2_wT=params["mlp2_wT"].astype(bf16), mlp2_b=params["mlp2_b"],
    )


# -------------------------- parameters (pre-packed / transposed) --------------------
def init_params(key):
    it = iter(jax.random.split(key, 64))

    def nrm(shape, scale):
        w = scale * jax.random.normal(next(it), shape, jnp.float32)
        # make weights bf16-representable so the bf16 kernel weights equal the
        # f32 reference weights exactly (removes weight rounding from the check)
        return w.astype(jnp.bfloat16).astype(jnp.float32)

    def bn_pack(c):
        gamma = 1.0 + 0.1 * jax.random.normal(next(it), (c,), jnp.float32)
        beta = 0.1 * jax.random.normal(next(it), (c,), jnp.float32)
        mean = 0.1 * jax.random.normal(next(it), (c,), jnp.float32)
        var = 0.5 + jax.random.uniform(next(it), (c,), jnp.float32)
        return jnp.stack([gamma, beta, mean, var])

    def ln_pack():
        return jnp.stack([
            1.0 + 0.1 * jax.random.normal(next(it), (EMBED_DIM,), jnp.float32),
            0.1 * jax.random.normal(next(it), (EMBED_DIM,), jnp.float32),
            1.0 + 0.1 * jax.random.normal(next(it), (EMBED_DIM,), jnp.float32),
            0.1 * jax.random.normal(next(it), (EMBED_DIM,), jnp.float32),
        ])

    return dict(
        conv1_wT=nrm((3, IN_DIM, C1), 0.2),              # per-tap transposed conv weight
        conv1_b=nrm((1, C1), 0.1),
        bn1=bn_pack(C1),
        conv2_wT=nrm((3, C1, C2), 0.1),
        conv2_b=nrm((1, C2), 0.1),
        bn2=bn_pack(C2),
        embt_w=nrm((1, T_EMBED_DIM), 0.3),
        embt_b=nrm((1, T_EMBED_DIM), 0.1),
        proj1_wT=nrm((POOL2_LEN, C2, EMBED_DIM), 0.04),  # = W1^T reshaped (20,48,256)
        proj1_b=nrm((1, EMBED_DIM), 0.05),
        proj2_wT=nrm((EMBED_DIM + T_EMBED_DIM, EMBED_DIM), 0.06),
        proj2_b=nrm((1, EMBED_DIM), 0.05),
        qkv_wT=nrm((NUM_LAYERS, EMBED_DIM, 3 * EMBED_DIM), 0.06),
        qkv_b=nrm((NUM_LAYERS, 1, 3 * EMBED_DIM), 0.05),
        attn_out_wT=nrm((NUM_LAYERS, EMBED_DIM, EMBED_DIM), 0.06),
        attn_out_b=nrm((NUM_LAYERS, 1, EMBED_DIM), 0.05),
        ff1_wT=nrm((NUM_LAYERS, EMBED_DIM, FF_DIM), 0.06),
        ff1_b=nrm((NUM_LAYERS, 1, FF_DIM), 0.05),
        ff2_wT=nrm((NUM_LAYERS, FF_DIM, EMBED_DIM), 0.06),
        ff2_b=nrm((NUM_LAYERS, 1, EMBED_DIM), 0.05),
        ln=jnp.stack([ln_pack() for _ in range(NUM_LAYERS)]),
        norm=jnp.stack([
            1.0 + 0.1 * jax.random.normal(next(it), (EMBED_DIM,), jnp.float32),
            0.1 * jax.random.normal(next(it), (EMBED_DIM,), jnp.float32),
        ]),
        mlp2_wT=nrm((EMBED_DIM, OUT_DIM), 0.06),
        mlp2_b=nrm((1, OUT_DIM), 0.05),
    )


# -------------------------------- pure-JAX reference --------------------------------
def reference_forward(params, x, t):
    """Faithful f32 / HIGHEST-precision re-implementation of BaseModel.forward (eval)."""
    def gelu(v):
        return jax.nn.gelu(v, approximate=False)

    def ln(v, w, b):
        mu = v.mean(-1, keepdims=True)
        var = ((v - mu) ** 2).mean(-1, keepdims=True)
        return (v - mu) / jnp.sqrt(var + LN_EPS) * w + b

    bsz = x.shape[0]
    p1 = gelu(front_end_pre_gelu(params, x))                              # (B, 256)
    te = gelu(t.reshape(bsz, 1) @ params["embt_w"] + params["embt_b"])    # (B, 16)
    z = gelu(jnp.dot(jnp.concatenate([p1, te], axis=1), params["proj2_wT"],
                     precision=HI) + params["proj2_b"])                   # (B, 256)

    for l in range(NUM_LAYERS):
        qkv = jnp.dot(z, params["qkv_wT"][l], precision=HI) + params["qkv_b"][l]
        q = qkv[:, :EMBED_DIM].reshape(bsz, NUM_HEADS, HEAD_DIM)
        k = qkv[:, EMBED_DIM:2 * EMBED_DIM].reshape(bsz, NUM_HEADS, HEAD_DIM)
        v = qkv[:, 2 * EMBED_DIM:].reshape(bsz, NUM_HEADS, HEAD_DIM)
        s = jnp.einsum("qhd,khd->hqk", q, k, precision=HI) / math.sqrt(HEAD_DIM)
        p = jax.nn.softmax(s, axis=-1)
        o = jnp.einsum("hqk,khd->qhd", p, v, precision=HI).reshape(bsz, EMBED_DIM)
        attn = (jnp.dot(o, params["attn_out_wT"][l], precision=HI)
                + params["attn_out_b"][l])
        lnp = params["ln"][l]
        z = ln(z + attn, lnp[0], lnp[1])
        hff = jax.nn.relu(jnp.dot(z, params["ff1_wT"][l], precision=HI)
                          + params["ff1_b"][l])
        ff = jnp.dot(hff, params["ff2_wT"][l], precision=HI) + params["ff2_b"][l]
        z = ln(z + ff, lnp[2], lnp[3])

    z = ln(z, params["norm"][0], params["norm"][1])
    out = jax.nn.relu(jnp.dot(z, params["mlp2_wT"], precision=HI) + params["mlp2_b"])
    return out.reshape(bsz, FRAMES, OUT_DIM // FRAMES)


# -------------------------------------- main -----------------------------------------
if __name__ == "__main__":
    key = jax.random.PRNGKey(0)
    kp, kx, kt = jax.random.split(key, 3)
    params = init_params(kp)
    packed = pack_params(params)            # one-time: affine fold + bf16 weight cast

    x = jax.random.normal(kx, (BATCH, FRAMES, IN_DIM), jnp.float32)   # (B, T=180, C=4)
    t = jax.random.uniform(kt, (BATCH,), jnp.float32)                 # (B,)

    out = basemodel_forward(packed, x, t)
    out = jax.block_until_ready(out)
    assert out.shape == (BATCH, FRAMES, OUT_DIM // FRAMES)

    ref = reference_forward(params, x, t)
    err = float(jnp.max(jnp.abs(out - ref)))
    # Tolerance sized for native bf16 MXU matmuls (f32 accumulation) in the kernel
    # compared against a full-f32 HIGHEST-precision reference through 2 transformer
    # layers + LayerNorms (expected max deviation ~1e-2 on O(1) outputs).
    if not jnp.allclose(out, ref, atol=5e-2, rtol=5e-2):
        raise AssertionError(f"Pallas/reference mismatch, max err {err}")
    print("KERNEL_OK")
</pallas_src>

<mosaic_0001>
module attributes {stable_mosaic.version = 11 : i64} {
  func.func @_basemodel_kernel(%arg0: memref<2x720xf32, #tpu.memory_space<vmem>>, %arg1: memref<2x1xf32, #tpu.memory_space<vmem>>, %arg2: memref<720x256xbf16, #tpu.memory_space<vmem>>, %arg3: memref<1x256xf32, #tpu.memory_space<vmem>>, %arg4: memref<1x16xf32, #tpu.memory_space<vmem>>, %arg5: memref<1x16xf32, #tpu.memory_space<vmem>>, %arg6: memref<272x256xbf16, #tpu.memory_space<vmem>>, %arg7: memref<1x256xf32, #tpu.memory_space<vmem>>, %arg8: memref<2x256x768xbf16, #tpu.memory_space<vmem>>, %arg9: memref<2x1x768xf32, #tpu.memory_space<vmem>>, %arg10: memref<2x256x256xbf16, #tpu.memory_space<vmem>>, %arg11: memref<2x1x256xf32, #tpu.memory_space<vmem>>, %arg12: memref<2x256x128xbf16, #tpu.memory_space<vmem>>, %arg13: memref<2x1x128xf32, #tpu.memory_space<vmem>>, %arg14: memref<2x128x256xbf16, #tpu.memory_space<vmem>>, %arg15: memref<2x1x256xf32, #tpu.memory_space<vmem>>, %arg16: memref<2x4x256xf32, #tpu.memory_space<vmem>>, %arg17: memref<2x256xf32, #tpu.memory_space<vmem>>, %arg18: memref<256x720xbf16, #tpu.memory_space<vmem>>, %arg19: memref<1x720xf32, #tpu.memory_space<vmem>>, %arg20: memref<2x720xf32, #tpu.memory_space<vmem>>) attributes {dimension_semantics = [], scalar_prefetch = 0 : i64, scratch_operands = 0 : i64, tpu.core_type = #tpu.core_type<tc>} {
    %c0 = arith.constant 0 : index
    %c0_0 = arith.constant 0 : index
    %0 = vector.load %arg0[%c0, %c0_0] : memref<2x720xf32, #tpu.memory_space<vmem>>, vector<2x720xf32>
    %c0_1 = arith.constant 0 : index
    %c0_2 = arith.constant 0 : index
    %1 = vector.load %arg2[%c0_1, %c0_2] : memref<720x256xbf16, #tpu.memory_space<vmem>>, vector<720x256xbf16>
    %2 = arith.truncf %0 : vector<2x720xf32> to vector<2x720xbf16>
    %cst = arith.constant dense<0.000000e+00> : vector<2x256xf32>
    %3 = tpu.matmul %2, %1, %cst {dimension_numbers = #tpu.dot_dimension_numbers<[1], [0], [0], [1], [0, 0, 1, 1], [], []>} : vector<2x720xbf16>, vector<720x256xbf16>, vector<2x256xf32> -> vector<2x256xf32>
    %c0_3 = arith.constant 0 : index
    %c0_4 = arith.constant 0 : index
    %4 = vector.load %arg3[%c0_3, %c0_4] : memref<1x256xf32, #tpu.memory_space<vmem>>, vector<1x256xf32>
    %5 = vector.broadcast %4 : vector<1x256xf32> to vector<2x256xf32>
    %6 = arith.addf %3, %5 : vector<2x256xf32>
    %cst_5 = arith.constant 0.707106769 : f32
    %7 = vector.broadcast %cst_5 : f32 to vector<2x256xf32>
    %8 = arith.mulf %6, %7 : vector<2x256xf32>
    %9 = math.absf %8 : vector<2x256xf32>
    %cst_6 = arith.constant 0.327591091 : f32
    %10 = vector.broadcast %cst_6 : f32 to vector<2x256xf32>
    %11 = arith.mulf %10, %9 : vector<2x256xf32>
    %cst_7 = arith.constant 1.000000e+00 : f32
    %12 = vector.broadcast %cst_7 : f32 to vector<2x256xf32>
    %13 = arith.addf %12, %11 : vector<2x256xf32>
    %cst_8 = arith.constant 1.000000e+00 : f32
    %14 = vector.broadcast %cst_8 : f32 to vector<2x256xf32>
    %15 = arith.divf %14, %13 : vector<2x256xf32>
    %cst_9 = arith.constant 1.06140542 : f32
    %16 = vector.broadcast %cst_9 : f32 to vector<2x256xf32>
    %17 = arith.mulf %16, %15 : vector<2x256xf32>
    %cst_10 = arith.constant 1.45315206 : f32
    %18 = vector.broadcast %cst_10 : f32 to vector<2x256xf32>
    %19 = arith.subf %17, %18 : vector<2x256xf32>
    %20 = arith.mulf %19, %15 : vector<2x256xf32>
    %cst_11 = arith.constant 1.42141378 : f32
    %21 = vector.broadcast %cst_11 : f32 to vector<2x256xf32>
    %22 = arith.addf %20, %21 : vector<2x256xf32>
    %23 = arith.mulf %22, %15 : vector<2x256xf32>
    %cst_12 = arith.constant 0.284496725 : f32
    %24 = vector.broadcast %cst_12 : f32 to vector<2x256xf32>
    %25 = arith.subf %23, %24 : vector<2x256xf32>
    %26 = arith.mulf %25, %15 : vector<2x256xf32>
    %cst_13 = arith.constant 0.254829586 : f32
    %27 = vector.broadcast %cst_13 : f32 to vector<2x256xf32>
    %28 = arith.addf %26, %27 : vector<2x256xf32>
    %29 = arith.mulf %28, %15 : vector<2x256xf32>
    %cst_14 = arith.constant 0.000000e+00 : f32
    %30 = vector.broadcast %cst_14 : f32 to vector<2x256xf32>
    %31 = arith.subf %30, %9 : vector<2x256xf32>
    %32 = arith.mulf %31, %9 : vector<2x256xf32>
    %33 = math.exp %32 : vector<2x256xf32>
    %34 = arith.mulf %29, %33 : vector<2x256xf32>
    %cst_15 = arith.constant 1.000000e+00 : f32
    %35 = vector.broadcast %cst_15 : f32 to vector<2x256xf32>
    %36 = arith.subf %35, %34 : vector<2x256xf32>
    %cst_16 = arith.constant 0.000000e+00 : f32
    %37 = vector.broadcast %cst_16 : f32 to vector<2x256xf32>
    %38 = arith.cmpf oge, %8, %37 : vector<2x256xf32>
    %cst_17 = arith.constant 0.000000e+00 : f32
    %39 = vector.broadcast %cst_17 : f32 to vector<2x256xf32>
    %40 = arith.subf %39, %36 : vector<2x256xf32>
    %41 = arith.select %38, %36, %40 : vector<2x256xi1>, vector<2x256xf32>
    %cst_18 = arith.constant 5.000000e-01 : f32
    %42 = vector.broadcast %cst_18 : f32 to vector<2x256xf32>
    %43 = arith.mulf %42, %6 : vector<2x256xf32>
    %cst_19 = arith.constant 1.000000e+00 : f32
    %44 = vector.broadcast %cst_19 : f32 to vector<2x256xf32>
    %45 = arith.addf %44, %41 : vector<2x256xf32>
    %46 = arith.mulf %43, %45 : vector<2x256xf32>
    %c0_20 = arith.constant 0 : index
    %c0_21 = arith.constant 0 : index
    %47 = vector.load %arg1[%c0_20, %c0_21] : memref<2x1xf32, #tpu.memory_space<vmem>>, vector<2x1xf32>
    %c0_22 = arith.constant 0 : index
    %c0_23 = arith.constant 0 : index
    %48 = vector.load %arg4[%c0_22, %c0_23] : memref<1x16xf32, #tpu.memory_space<vmem>>, vector<1x16xf32>
    %49 = vector.broadcast %47 : vector<2x1xf32> to vector<2x16xf32>
    %50 = vector.broadcast %48 : vector<1x16xf32> to vector<2x16xf32>
    %51 = arith.mulf %49, %50 : vector<2x16xf32>
    %c0_24 = arith.constant 0 : index
    %c0_25 = arith.constant 0 : index
    %52 = vector.load %arg5[%c0_24, %c0_25] : memref<1x16xf32, #tpu.memory_space<vmem>>, vector<1x16xf32>
    %53 = vector.broadcast %52 : vector<1x16xf32> to vector<2x16xf32>
    %54 = arith.addf %51, %53 : vector<2x16xf32>
    %cst_26 = arith.constant 0.707106769 : f32
    %55 = vector.broadcast %cst_26 : f32 to vector<2x16xf32>
    %56 = arith.mulf %54, %55 : vector<2x16xf32>
    %57 = math.absf %56 : vector<2x16xf32>
    %cst_27 = arith.constant 0.327591091 : f32
    %58 = vector.broadcast %cst_27 : f32 to vector<2x16xf32>
    %59 = arith.mulf %58, %57 : vector<2x16xf32>
    %cst_28 = arith.constant 1.000000e+00 : f32
    %60 = vector.broadcast %cst_28 : f32 to vector<2x16xf32>
    %61 = arith.addf %60, %59 : vector<2x16xf32>
    %cst_29 = arith.constant 1.000000e+00 : f32
    %62 = vector.broadcast %cst_29 : f32 to vector<2x16xf32>
    %63 = arith.divf %62, %61 : vector<2x16xf32>
    %cst_30 = arith.constant 1.06140542 : f32
    %64 = vector.broadcast %cst_30 : f32 to vector<2x16xf32>
    %65 = arith.mulf %64, %63 : vector<2x16xf32>
    %cst_31 = arith.constant 1.45315206 : f32
    %66 = vector.broadcast %cst_31 : f32 to vector<2x16xf32>
    %67 = arith.subf %65, %66 : vector<2x16xf32>
    %68 = arith.mulf %67, %63 : vector<2x16xf32>
    %cst_32 = arith.constant 1.42141378 : f32
    %69 = vector.broadcast %cst_32 : f32 to vector<2x16xf32>
    %70 = arith.addf %68, %69 : vector<2x16xf32>
    %71 = arith.mulf %70, %63 : vector<2x16xf32>
    %cst_33 = arith.constant 0.284496725 : f32
    %72 = vector.broadcast %cst_33 : f32 to vector<2x16xf32>
    %73 = arith.subf %71, %72 : vector<2x16xf32>
    %74 = arith.mulf %73, %63 : vector<2x16xf32>
    %cst_34 = arith.constant 0.254829586 : f32
    %75 = vector.broadcast %cst_34 : f32 to vector<2x16xf32>
    %76 = arith.addf %74, %75 : vector<2x16xf32>
    %77 = arith.mulf %76, %63 : vector<2x16xf32>
    %cst_35 = arith.constant 0.000000e+00 : f32
    %78 = vector.broadcast %cst_35 : f32 to vector<2x16xf32>
    %79 = arith.subf %78, %57 : vector<2x16xf32>
    %80 = arith.mulf %79, %57 : vector<2x16xf32>
    %81 = math.exp %80 : vector<2x16xf32>
    %82 = arith.mulf %77, %81 : vector<2x16xf32>
    %cst_36 = arith.constant 1.000000e+00 : f32
    %83 = vector.broadcast %cst_36 : f32 to vector<2x16xf32>
    %84 = arith.subf %83, %82 : vector<2x16xf32>
    %cst_37 = arith.constant 0.000000e+00 : f32
    %85 = vector.broadcast %cst_37 : f32 to vector<2x16xf32>
    %86 = arith.cmpf oge, %56, %85 : vector<2x16xf32>
    %cst_38 = arith.constant 0.000000e+00 : f32
    %87 = vector.broadcast %cst_38 : f32 to vector<2x16xf32>
    %88 = arith.subf %87, %84 : vector<2x16xf32>
    %89 = arith.select %86, %84, %88 : vector<2x16xi1>, vector<2x16xf32>
    %cst_39 = arith.constant 5.000000e-01 : f32
    %90 = vector.broadcast %cst_39 : f32 to vector<2x16xf32>
    %91 = arith.mulf %90, %54 : vector<2x16xf32>
    %cst_40 = arith.constant 1.000000e+00 : f32
    %92 = vector.broadcast %cst_40 : f32 to vector<2x16xf32>
    %93 = arith.addf %92, %89 : vector<2x16xf32>
    %94 = arith.mulf %91, %93 : vector<2x16xf32>
    %c0_41 = arith.constant 0 : index
    %c0_42 = arith.constant 0 : index
    %95 = vector.load %arg6[%c0_41, %c0_42] : memref<272x256xbf16, #tpu.memory_space<vmem>>, vector<256x256xbf16>
    %96 = arith.truncf %46 : vector<2x256xf32> to vector<2x256xbf16>
    %cst_43 = arith.constant dense<0.000000e+00> : vector<2x256xf32>
    %97 = tpu.matmul %96, %95, %cst_43 {dimension_numbers = #tpu.dot_dimension_numbers<[1], [0], [0], [1], [0, 0, 1, 1], [], []>} : vector<2x256xbf16>, vector<256x256xbf16>, vector<2x256xf32> -> vector<2x256xf32>
    %c256 = arith.constant 256 : index
    %c0_44 = arith.constant 0 : index
    %98 = vector.load %arg6[%c256, %c0_44] : memref<272x256xbf16, #tpu.memory_space<vmem>>, vector<16x256xbf16>
    %99 = arith.truncf %94 : vector<2x16xf32> to vector<2x16xbf16>
    %cst_45 = arith.constant dense<0.000000e+00> : vector<2x256xf32>
    %100 = tpu.matmul %99, %98, %cst_45 {dimension_numbers = #tpu.dot_dimension_numbers<[1], [0], [0], [1], [0, 0, 1, 1], [], []>} : vector<2x16xbf16>, vector<16x256xbf16>, vector<2x256xf32> -> vector<2x256xf32>
    %101 = arith.addf %97, %100 : vector<2x256xf32>
    %c0_46 = arith.constant 0 : index
    %c0_47 = arith.constant 0 : index
    %102 = vector.load %arg7[%c0_46, %c0_47] : memref<1x256xf32, #tpu.memory_space<vmem>>, vector<1x256xf32>
    %103 = vector.broadcast %102 : vector<1x256xf32> to vector<2x256xf32>
    %104 = arith.addf %101, %103 : vector<2x256xf32>
    %cst_48 = arith.constant 0.707106769 : f32
    %105 = vector.broadcast %cst_48 : f32 to vector<2x256xf32>
    %106 = arith.mulf %104, %105 : vector<2x256xf32>
    %107 = math.absf %106 : vector<2x256xf32>
    %cst_49 = arith.constant 0.327591091 : f32
    %108 = vector.broadcast %cst_49 : f32 to vector<2x256xf32>
    %109 = arith.mulf %108, %107 : vector<2x256xf32>
    %cst_50 = arith.constant 1.000000e+00 : f32
    %110 = vector.broadcast %cst_50 : f32 to vector<2x256xf32>
    %111 = arith.addf %110, %109 : vector<2x256xf32>
    %cst_51 = arith.constant 1.000000e+00 : f32
    %112 = vector.broadcast %cst_51 : f32 to vector<2x256xf32>
    %113 = arith.divf %112, %111 : vector<2x256xf32>
    %cst_52 = arith.constant 1.06140542 : f32
    %114 = vector.broadcast %cst_52 : f32 to vector<2x256xf32>
    %115 = arith.mulf %114, %113 : vector<2x256xf32>
    %cst_53 = arith.constant 1.45315206 : f32
    %116 = vector.broadcast %cst_53 : f32 to vector<2x256xf32>
    %117 = arith.subf %115, %116 : vector<2x256xf32>
    %118 = arith.mulf %117, %113 : vector<2x256xf32>
    %cst_54 = arith.constant 1.42141378 : f32
    %119 = vector.broadcast %cst_54 : f32 to vector<2x256xf32>
    %120 = arith.addf %118, %119 : vector<2x256xf32>
    %121 = arith.mulf %120, %113 : vector<2x256xf32>
    %cst_55 = arith.constant 0.284496725 : f32
    %122 = vector.broadcast %cst_55 : f32 to vector<2x256xf32>
    %123 = arith.subf %121, %122 : vector<2x256xf32>
    %124 = arith.mulf %123, %113 : vector<2x256xf32>
    %cst_56 = arith.constant 0.254829586 : f32
    %125 = vector.broadcast %cst_56 : f32 to vector<2x256xf32>
    %126 = arith.addf %124, %125 : vector<2x256xf32>
    %127 = arith.mulf %126, %113 : vector<2x256xf32>
    %cst_57 = arith.constant 0.000000e+00 : f32
    %128 = vector.broadcast %cst_57 : f32 to vector<2x256xf32>
    %129 = arith.subf %128, %107 : vector<2x256xf32>
    %130 = arith.mulf %129, %107 : vector<2x256xf32>
    %131 = math.exp %130 : vector<2x256xf32>
    %132 = arith.mulf %127, %131 : vector<2x256xf32>
    %cst_58 = arith.constant 1.000000e+00 : f32
    %133 = vector.broadcast %cst_58 : f32 to vector<2x256xf32>
    %134 = arith.subf %133, %132 : vector<2x256xf32>
    %cst_59 = arith.constant 0.000000e+00 : f32
    %135 = vector.broadcast %cst_59 : f32 to vector<2x256xf32>
    %136 = arith.cmpf oge, %106, %135 : vector<2x256xf32>
    %cst_60 = arith.constant 0.000000e+00 : f32
    %137 = vector.broadcast %cst_60 : f32 to vector<2x256xf32>
    %138 = arith.subf %137, %134 : vector<2x256xf32>
    %139 = arith.select %136, %134, %138 : vector<2x256xi1>, vector<2x256xf32>
    %cst_61 = arith.constant 5.000000e-01 : f32
    %140 = vector.broadcast %cst_61 : f32 to vector<2x256xf32>
    %141 = arith.mulf %140, %104 : vector<2x256xf32>
    %cst_62 = arith.constant 1.000000e+00 : f32
    %142 = vector.broadcast %cst_62 : f32 to vector<2x256xf32>
    %143 = arith.addf %142, %139 : vector<2x256xf32>
    %144 = arith.mulf %141, %143 : vector<2x256xf32>
    %c0_63 = arith.constant 0 : index
    %c0_64 = arith.constant 0 : index
    %c0_65 = arith.constant 0 : index
    %145 = vector.load %arg8[%c0_63, %c0_64, %c0_65] : memref<2x256x768xbf16, #tpu.memory_space<vmem>>, vector<1x256x768xbf16>
    %146 = vector.shape_cast %145 : vector<1x256x768xbf16> to vector<256x768xbf16>
    %147 = arith.truncf %144 : vector<2x256xf32> to vector<2x256xbf16>
    %cst_66 = arith.constant dense<0.000000e+00> : vector<2x768xf32>
    %148 = tpu.matmul %147, %146, %cst_66 {dimension_numbers = #tpu.dot_dimension_numbers<[1], [0], [0], [1], [0, 0, 1, 1], [], []>} : vector<2x256xbf16>, vector<256x768xbf16>, vector<2x768xf32> -> vector<2x768xf32>
    %c0_67 = arith.constant 0 : index
    %c0_68 = arith.constant 0 : index
    %c0_69 = arith.constant 0 : index
    %149 = vector.load %arg9[%c0_67, %c0_68, %c0_69] : memref<2x1x768xf32, #tpu.memory_space<vmem>>, vector<1x1x768xf32>
    %150 = vector.shape_cast %149 : vector<1x1x768xf32> to vector<1x768xf32>
    %151 = vector.broadcast %150 : vector<1x768xf32> to vector<2x768xf32>
    %152 = arith.addf %148, %151 : vector<2x768xf32>
    %153 = vector.extract_strided_slice %152 {offsets = [0, 0], sizes = [2, 256], strides = [1, 1]} : vector<2x768xf32> to vector<2x256xf32>
    %154 = vector.extract_strided_slice %152 {offsets = [0, 256], sizes = [2, 256], strides = [1, 1]} : vector<2x768xf32> to vector<2x256xf32>
    %155 = vector.extract_strided_slice %152 {offsets = [0, 512], sizes = [2, 256], strides = [1, 1]} : vector<2x768xf32> to vector<2x256xf32>
    %156 = vector.extract_strided_slice %153 {offsets = [0, 0], sizes = [2, 64], strides = [1, 1]} : vector<2x256xf32> to vector<2x64xf32>
    %157 = vector.extract_strided_slice %154 {offsets = [0, 0], sizes = [2, 64], strides = [1, 1]} : vector<2x256xf32> to vector<2x64xf32>
    %158 = vector.extract_strided_slice %155 {offsets = [0, 0], sizes = [2, 64], strides = [1, 1]} : vector<2x256xf32> to vector<2x64xf32>
    %159 = arith.truncf %156 : vector<2x64xf32> to vector<2x64xbf16>
    %160 = arith.truncf %157 : vector<2x64xf32> to vector<2x64xbf16>
    %cst_70 = arith.constant dense<0.000000e+00> : vector<2x2xf32>
    %161 = tpu.matmul %159, %160, %cst_70 {dimension_numbers = #tpu.dot_dimension_numbers<[1], [1], [0], [0], [0, 0, 1, 0], [], []>} : vector<2x64xbf16>, vector<2x64xbf16>, vector<2x2xf32> -> vector<2x2xf32>
    %cst_71 = arith.constant 1.250000e-01 : f32
    %162 = vector.broadcast %cst_71 : f32 to vector<2x2xf32>
    %163 = arith.mulf %161, %162 : vector<2x2xf32>
    %cst_72 = arith.constant dense<0xFF800000> : vector<2xf32>
    %164 = vector.multi_reduction <maximumf>, %163, %cst_72 [1] : vector<2x2xf32> to vector<2xf32>
    %165 = vector.shape_cast %164 : vector<2xf32> to vector<2x1xf32>
    %166 = vector.broadcast %165 : vector<2x1xf32> to vector<2x2xf32>
    %167 = arith.subf %163, %166 : vector<2x2xf32>
    %168 = math.exp %167 : vector<2x2xf32>
    %cst_73 = arith.constant dense<0.000000e+00> : vector<2xf32>
    %169 = vector.multi_reduction <add>, %168, %cst_73 [1] : vector<2x2xf32> to vector<2xf32>
    %170 = vector.shape_cast %169 : vector<2xf32> to vector<2x1xf32>
    %171 = vector.broadcast %170 : vector<2x1xf32> to vector<2x2xf32>
    %172 = arith.divf %168, %171 : vector<2x2xf32>
    %173 = arith.truncf %172 : vector<2x2xf32> to vector<2x2xbf16>
    %174 = arith.truncf %158 : vector<2x64xf32> to vector<2x64xbf16>
    %cst_74 = arith.constant dense<0.000000e+00> : vector<2x64xf32>
    %175 = tpu.matmul %173, %174, %cst_74 {dimension_numbers = #tpu.dot_dimension_numbers<[1], [0], [0], [1], [0, 0, 1, 1], [], []>} : vector<2x2xbf16>, vector<2x64xbf16>, vector<2x64xf32> -> vector<2x64xf32>
    %176 = vector.extract_strided_slice %153 {offsets = [0, 64], sizes = [2, 64], strides = [1, 1]} : vector<2x256xf32> to vector<2x64xf32>
    %177 = vector.extract_strided_slice %154 {offsets = [0, 64], sizes = [2, 64], strides = [1, 1]} : vector<2x256xf32> to vector<2x64xf32>
    %178 = vector.extract_strided_slice %155 {offsets = [0, 64], sizes = [2, 64], strides = [1, 1]} : vector<2x256xf32> to vector<2x64xf32>
    %179 = arith.truncf %176 : vector<2x64xf32> to vector<2x64xbf16>
    %180 = arith.truncf %177 : vector<2x64xf32> to vector<2x64xbf16>
    %cst_75 = arith.constant dense<0.000000e+00> : vector<2x2xf32>
    %181 = tpu.matmul %179, %180, %cst_75 {dimension_numbers = #tpu.dot_dimension_numbers<[1], [1], [0], [0], [0, 0, 1, 0], [], []>} : vector<2x64xbf16>, vector<2x64xbf16>, vector<2x2xf32> -> vector<2x2xf32>
    %cst_76 = arith.constant 1.250000e-01 : f32
    %182 = vector.broadcast %cst_76 : f32 to vector<2x2xf32>
    %183 = arith.mulf %181, %182 : vector<2x2xf32>
    %cst_77 = arith.constant dense<0xFF800000> : vector<2xf32>
    %184 = vector.multi_reduction <maximumf>, %183, %cst_77 [1] : vector<2x2xf32> to vector<2xf32>
    %185 = vector.shape_cast %184 : vector<2xf32> to vector<2x1xf32>
    %186 = vector.broadcast %185 : vector<2x1xf32> to vector<2x2xf32>
    %187 = arith.subf %183, %186 : vector<2x2xf32>
    %188 = math.exp %187 : vector<2x2xf32>
    %cst_78 = arith.constant dense<0.000000e+00> : vector<2xf32>
    %189 = vector.multi_reduction <add>, %188, %cst_78 [1] : vector<2x2xf32> to vector<2xf32>
    %190 = vector.shape_cast %189 : vector<2xf32> to vector<2x1xf32>
    %191 = vector.broadcast %190 : vector<2x1xf32> to vector<2x2xf32>
    %192 = arith.divf %188, %191 : vector<2x2xf32>
    %193 = arith.truncf %192 : vector<2x2xf32> to vector<2x2xbf16>
    %194 = arith.truncf %178 : vector<2x64xf32> to vector<2x64xbf16>
    %cst_79 = arith.constant dense<0.000000e+00> : vector<2x64xf32>
    %195 = tpu.matmul %193, %194, %cst_79 {dimension_numbers = #tpu.dot_dimension_numbers<[1], [0], [0], [1], [0, 0, 1, 1], [], []>} : vector<2x2xbf16>, vector<2x64xbf16>, vector<2x64xf32> -> vector<2x64xf32>
    %196 = vector.extract_strided_slice %153 {offsets = [0, 128], sizes = [2, 64], strides = [1, 1]} : vector<2x256xf32> to vector<2x64xf32>
    %197 = vector.extract_strided_slice %154 {offsets = [0, 128], sizes = [2, 64], strides = [1, 1]} : vector<2x256xf32> to vector<2x64xf32>
    %198 = vector.extract_strided_slice %155 {offsets = [0, 128], sizes = [2, 64], strides = [1, 1]} : vector<2x256xf32> to vector<2x64xf32>
    %199 = arith.truncf %196 : vector<2x64xf32> to vector<2x64xbf16>
    %200 = arith.truncf %197 : vector<2x64xf32> to vector<2x64xbf16>
    %cst_80 = arith.constant dense<0.000000e+00> : vector<2x2xf32>
    %201 = tpu.matmul %199, %200, %cst_80 {dimension_numbers = #tpu.dot_dimension_numbers<[1], [1], [0], [0], [0, 0, 1, 0], [], []>} : vector<2x64xbf16>, vector<2x64xbf16>, vector<2x2xf32> -> vector<2x2xf32>
    %cst_81 = arith.constant 1.250000e-01 : f32
    %202 = vector.broadcast %cst_81 : f32 to vector<2x2xf32>
    %203 = arith.mulf %201, %202 : vector<2x2xf32>
    %cst_82 = arith.constant dense<0xFF800000> : vector<2xf32>
    %204 = vector.multi_reduction <maximumf>, %203, %cst_82 [1] : vector<2x2xf32> to vector<2xf32>
    %205 = vector.shape_cast %204 : vector<2xf32> to vector<2x1xf32>
    %206 = vector.broadcast %205 : vector<2x1xf32> to vector<2x2xf32>
    %207 = arith.subf %203, %206 : vector<2x2xf32>
    %208 = math.exp %207 : vector<2x2xf32>
    %cst_83 = arith.constant dense<0.000000e+00> : vector<2xf32>
    %209 = vector.multi_reduction <add>, %208, %cst_83 [1] : vector<2x2xf32> to vector<2xf32>
    %210 = vector.shape_cast %209 : vector<2xf32> to vector<2x1xf32>
    %211 = vector.broadcast %210 : vector<2x1xf32> to vector<2x2xf32>
    %212 = arith.divf %208, %211 : vector<2x2xf32>
    %213 = arith.truncf %212 : vector<2x2xf32> to vector<2x2xbf16>
    %214 = arith.truncf %198 : vector<2x64xf32> to vector<2x64xbf16>
    %cst_84 = arith.constant dense<0.000000e+00> : vector<2x64xf32>
    %215 = tpu.matmul %213, %214, %cst_84 {dimension_numbers = #tpu.dot_dimension_numbers<[1], [0], [0], [1], [0, 0, 1, 1], [], []>} : vector<2x2xbf16>, vector<2x64xbf16>, vector<2x64xf32> -> vector<2x64xf32>
    %216 = vector.extract_strided_slice %153 {offsets = [0, 192], sizes = [2, 64], strides = [1, 1]} : vector<2x256xf32> to vector<2x64xf32>
    %217 = vector.extract_strided_slice %154 {offsets = [0, 192], sizes = [2, 64], strides = [1, 1]} : vector<2x256xf32> to vector<2x64xf32>
    %218 = vector.extract_strided_slice %155 {offsets = [0, 192], sizes = [2, 64], strides = [1, 1]} : vector<2x256xf32> to vector<2x64xf32>
    %219 = arith.truncf %216 : vector<2x64xf32> to vector<2x64xbf16>
    %220 = arith.truncf %217 : vector<2x64xf32> to vector<2x64xbf16>
    %cst_85 = arith.constant dense<0.000000e+00> : vector<2x2xf32>
    %221 = tpu.matmul %219, %220, %cst_85 {dimension_numbers = #tpu.dot_dimension_numbers<[1], [1], [0], [0], [0, 0, 1, 0], [], []>} : vector<2x64xbf16>, vector<2x64xbf16>, vector<2x2xf32> -> vector<2x2xf32>
    %cst_86 = arith.constant 1.250000e-01 : f32
    %222 = vector.broadcast %cst_86 : f32 to vector<2x2xf32>
    %223 = arith.mulf %221, %222 : vector<2x2xf32>
    %cst_87 = arith.constant dense<0xFF800000> : vector<2xf32>
    %224 = vector.multi_reduction <maximumf>, %223, %cst_87 [1] : vector<2x2xf32> to vector<2xf32>
    %225 = vector.shape_cast %224 : vector<2xf32> to vector<2x1xf32>
    %226 = vector.broadcast %225 : vector<2x1xf32> to vector<2x2xf32>
    %227 = arith.subf %223, %226 : vector<2x2xf32>
    %228 = math.exp %227 : vector<2x2xf32>
    %cst_88 = arith.constant dense<0.000000e+00> : vector<2xf32>
    %229 = vector.multi_reduction <add>, %228, %cst_88 [1] : vector<2x2xf32> to vector<2xf32>
    %230 = vector.shape_cast %229 : vector<2xf32> to vector<2x1xf32>
    %231 = vector.broadcast %230 : vector<2x1xf32> to vector<2x2xf32>
    %232 = arith.divf %228, %231 : vector<2x2xf32>
    %233 = arith.truncf %232 : vector<2x2xf32> to vector<2x2xbf16>
    %234 = arith.truncf %218 : vector<2x64xf32> to vector<2x64xbf16>
    %cst_89 = arith.constant dense<0.000000e+00> : vector<2x64xf32>
    %235 = tpu.matmul %233, %234, %cst_89 {dimension_numbers = #tpu.dot_dimension_numbers<[1], [0], [0], [1], [0, 0, 1, 1], [], []>} : vector<2x2xbf16>, vector<2x64xbf16>, vector<2x64xf32> -> vector<2x64xf32>
    %236 = tpu.concatenate %175, %195, %215, %235 in 1 : vector<2x64xf32>, vector<2x64xf32>, vector<2x64xf32>, vector<2x64xf32> -> vector<2x256xf32>
    %c0_90 = arith.constant 0 : index
    %c0_91 = arith.constant 0 : index
    %c0_92 = arith.constant 0 : index
    %237 = vector.load %arg10[%c0_90, %c0_91, %c0_92] : memref<2x256x256xbf16, #tpu.memory_space<vmem>>, vector<1x256x256xbf16>
    %238 = vector.shape_cast %237 : vector<1x256x256xbf16> to vector<256x256xbf16>
    %239 = arith.truncf %236 : vector<2x256xf32> to vector<2x256xbf16>
    %cst_93 = arith.constant dense<0.000000e+00> : vector<2x256xf32>
    %240 = tpu.matmul %239, %238, %cst_93 {dimension_numbers = #tpu.dot_dimension_numbers<[1], [0], [0], [1], [0, 0, 1, 1], [], []>} : vector<2x256xbf16>, vector<256x256xbf16>, vector<2x256xf32> -> vector<2x256xf32>
    %c0_94 = arith.constant 0 : index
    %c0_95 = arith.constant 0 : index
    %c0_96 = arith.constant 0 : index
    %241 = vector.load %arg11[%c0_94, %c0_95, %c0_96] : memref<2x1x256xf32, #tpu.memory_space<vmem>>, vector<1x1x256xf32>
    %242 = vector.shape_cast %241 : vector<1x1x256xf32> to vector<1x256xf32>
    %243 = vector.broadcast %242 : vector<1x256xf32> to vector<2x256xf32>
    %244 = arith.addf %240, %243 : vector<2x256xf32>
    %c0_97 = arith.constant 0 : index
    %c0_98 = arith.constant 0 : index
    %c0_99 = arith.constant 0 : index
    %245 = vector.load %arg16[%c0_97, %c0_98, %c0_99] : memref<2x4x256xf32, #tpu.memory_space<vmem>>, vector<1x4x256xf32>
    %246 = vector.shape_cast %245 : vector<1x4x256xf32> to vector<4x256xf32>
    %247 = arith.addf %144, %244 : vector<2x256xf32>
    %248 = vector.extract_strided_slice %246 {offsets = [0, 0], sizes = [1, 256], strides = [1, 1]} : vector<4x256xf32> to vector<1x256xf32>
    %249 = vector.extract_strided_slice %246 {offsets = [1, 0], sizes = [1, 256], strides = [1, 1]} : vector<4x256xf32> to vector<1x256xf32>
    %cst_100 = arith.constant dense<0.000000e+00> : vector<2xf32>
    %250 = vector.multi_reduction <add>, %247, %cst_100 [1] : vector<2x256xf32> to vector<2xf32>
    %251 = vector.shape_cast %250 : vector<2xf32> to vector<2x1xf32>
    %cst_101 = arith.constant 2.560000e+02 : f32
    %252 = vector.broadcast %cst_101 : f32 to vector<2x1xf32>
    %253 = arith.divf %251, %252 : vector<2x1xf32>
    %254 = vector.broadcast %253 : vector<2x1xf32> to vector<2x256xf32>
    %255 = arith.subf %247, %254 : vector<2x256xf32>
    %256 = arith.mulf %255, %255 : vector<2x256xf32>
    %cst_102 = arith.constant dense<0.000000e+00> : vector<2xf32>
    %257 = vector.multi_reduction <add>, %256, %cst_102 [1] : vector<2x256xf32> to vector<2xf32>
    %258 = vector.shape_cast %257 : vector<2xf32> to vector<2x1xf32>
    %cst_103 = arith.constant 2.560000e+02 : f32
    %259 = vector.broadcast %cst_103 : f32 to vector<2x1xf32>
    %260 = arith.divf %258, %259 : vector<2x1xf32>
    %261 = vector.broadcast %253 : vector<2x1xf32> to vector<2x256xf32>
    %262 = arith.subf %247, %261 : vector<2x256xf32>
    %cst_104 = arith.constant 9.99999974E-6 : f32
    %263 = vector.broadcast %cst_104 : f32 to vector<2x1xf32>
    %264 = arith.addf %260, %263 : vector<2x1xf32>
    %265 = math.rsqrt %264 : vector<2x1xf32>
    %266 = vector.broadcast %265 : vector<2x1xf32> to vector<2x256xf32>
    %267 = arith.mulf %262, %266 : vector<2x256xf32>
    %268 = vector.broadcast %248 : vector<1x256xf32> to vector<2x256xf32>
    %269 = arith.mulf %267, %268 : vector<2x256xf32>
    %270 = vector.broadcast %249 : vector<1x256xf32> to vector<2x256xf32>
    %271 = arith.addf %269, %270 : vector<2x256xf32>
    %c0_105 = arith.constant 0 : index
    %c0_106 = arith.constant 0 : index
    %c0_107 = arith.constant 0 : index
    %272 = vector.load %arg12[%c0_105, %c0_106, %c0_107] : memref<2x256x128xbf16, #tpu.memory_space<vmem>>, vector<1x256x128xbf16>
    %273 = vector.shape_cast %272 : vector<1x256x128xbf16> to vector<256x128xbf16>
    %274 = arith.truncf %271 : vector<2x256xf32> to vector<2x256xbf16>
    %cst_108 = arith.constant dense<0.000000e+00> : vector<2x128xf32>
    %275 = tpu.matmul %274, %273, %cst_108 {dimension_numbers = #tpu.dot_dimension_numbers<[1], [0], [0], [1], [0, 0, 1, 1], [], []>} : vector<2x256xbf16>, vector<256x128xbf16>, vector<2x128xf32> -> vector<2x128xf32>
    %c0_109 = arith.constant 0 : index
    %c0_110 = arith.constant 0 : index
    %c0_111 = arith.constant 0 : index
    %276 = vector.load %arg13[%c0_109, %c0_110, %c0_111] : memref<2x1x128xf32, #tpu.memory_space<vmem>>, vector<1x1x128xf32>
    %277 = vector.shape_cast %276 : vector<1x1x128xf32> to vector<1x128xf32>
    %278 = vector.broadcast %277 : vector<1x128xf32> to vector<2x128xf32>
    %279 = arith.addf %275, %278 : vector<2x128xf32>
    %cst_112 = arith.constant 0.000000e+00 : f32
    %280 = vector.broadcast %cst_112 : f32 to vector<2x128xf32>
    %281 = arith.maximumf %279, %280 : vector<2x128xf32>
    %c0_113 = arith.constant 0 : index
    %c0_114 = arith.constant 0 : index
    %c0_115 = arith.constant 0 : index
    %282 = vector.load %arg14[%c0_113, %c0_114, %c0_115] : memref<2x128x256xbf16, #tpu.memory_space<vmem>>, vector<1x128x256xbf16>
    %283 = vector.shape_cast %282 : vector<1x128x256xbf16> to vector<128x256xbf16>
    %284 = arith.truncf %281 : vector<2x128xf32> to vector<2x128xbf16>
    %cst_116 = arith.constant dense<0.000000e+00> : vector<2x256xf32>
    %285 = tpu.matmul %284, %283, %cst_116 {dimension_numbers = #tpu.dot_dimension_numbers<[1], [0], [0], [1], [0, 0, 1, 1], [], []>} : vector<2x128xbf16>, vector<128x256xbf16>, vector<2x256xf32> -> vector<2x256xf32>
    %c0_117 = arith.constant 0 : index
    %c0_118 = arith.constant 0 : index
    %c0_119 = arith.constant 0 : index
    %286 = vector.load %arg15[%c0_117, %c0_118, %c0_119] : memref<2x1x256xf32, #tpu.memory_space<vmem>>, vector<1x1x256xf32>
    %287 = vector.shape_cast %286 : vector<1x1x256xf32> to vector<1x256xf32>
    %288 = vector.broadcast %287 : vector<1x256xf32> to vector<2x256xf32>
    %289 = arith.addf %285, %288 : vector<2x256xf32>
    %290 = arith.addf %271, %289 : vector<2x256xf32>
    %291 = vector.extract_strided_slice %246 {offsets = [2, 0], sizes = [1, 256], strides = [1, 1]} : vector<4x256xf32> to vector<1x256xf32>
    %292 = vector.extract_strided_slice %246 {offsets = [3, 0], sizes = [1, 256], strides = [1, 1]} : vector<4x256xf32> to vector<1x256xf32>
    %cst_120 = arith.constant dense<0.000000e+00> : vector<2xf32>
    %293 = vector.multi_reduction <add>, %290, %cst_120 [1] : vector<2x256xf32> to vector<2xf32>
    %294 = vector.shape_cast %293 : vector<2xf32> to vector<2x1xf32>
    %cst_121 = arith.constant 2.560000e+02 : f32
    %295 = vector.broadcast %cst_121 : f32 to vector<2x1xf32>
    %296 = arith.divf %294, %295 : vector<2x1xf32>
    %297 = vector.broadcast %296 : vector<2x1xf32> to vector<2x256xf32>
    %298 = arith.subf %290, %297 : vector<2x256xf32>
    %299 = arith.mulf %298, %298 : vector<2x256xf32>
    %cst_122 = arith.constant dense<0.000000e+00> : vector<2xf32>
    %300 = vector.multi_reduction <add>, %299, %cst_122 [1] : vector<2x256xf32> to vector<2xf32>
    %301 = vector.shape_cast %300 : vector<2xf32> to vector<2x1xf32>
    %cst_123 = arith.constant 2.560000e+02 : f32
    %302 = vector.broadcast %cst_123 : f32 to vector<2x1xf32>
    %303 = arith.divf %301, %302 : vector<2x1xf32>
    %304 = vector.broadcast %296 : vector<2x1xf32> to vector<2x256xf32>
    %305 = arith.subf %290, %304 : vector<2x256xf32>
    %cst_124 = arith.constant 9.99999974E-6 : f32
    %306 = vector.broadcast %cst_124 : f32 to vector<2x1xf32>
    %307 = arith.addf %303, %306 : vector<2x1xf32>
    %308 = math.rsqrt %307 : vector<2x1xf32>
    %309 = vector.broadcast %308 : vector<2x1xf32> to vector<2x256xf32>
    %310 = arith.mulf %305, %309 : vector<2x256xf32>
    %311 = vector.broadcast %291 : vector<1x256xf32> to vector<2x256xf32>
    %312 = arith.mulf %310, %311 : vector<2x256xf32>
    %313 = vector.broadcast %292 : vector<1x256xf32> to vector<2x256xf32>
    %314 = arith.addf %312, %313 : vector<2x256xf32>
    %c1 = arith.constant 1 : index
    %c0_125 = arith.constant 0 : index
    %c0_126 = arith.constant 0 : index
    %315 = vector.load %arg8[%c1, %c0_125, %c0_126] : memref<2x256x768xbf16, #tpu.memory_space<vmem>>, vector<1x256x768xbf16>
    %316 = vector.shape_cast %315 : vector<1x256x768xbf16> to vector<256x768xbf16>
    %317 = arith.truncf %314 : vector<2x256xf32> to vector<2x256xbf16>
    %cst_127 = arith.constant dense<0.000000e+00> : vector<2x768xf32>
    %318 = tpu.matmul %317, %316, %cst_127 {dimension_numbers = #tpu.dot_dimension_numbers<[1], [0], [0], [1], [0, 0, 1, 1], [], []>} : vector<2x256xbf16>, vector<256x768xbf16>, vector<2x768xf32> -> vector<2x768xf32>
    %c1_128 = arith.constant 1 : index
    %c0_129 = arith.constant 0 : index
    %c0_130 = arith.constant 0 : index
    %319 = vector.load %arg9[%c1_128, %c0_129, %c0_130] : memref<2x1x768xf32, #tpu.memory_space<vmem>>, vector<1x1x768xf32>
    %320 = vector.shape_cast %319 : vector<1x1x768xf32> to vector<1x768xf32>
    %321 = vector.broadcast %320 : vector<1x768xf32> to vector<2x768xf32>
    %322 = arith.addf %318, %321 : vector<2x768xf32>
    %323 = vector.extract_strided_slice %322 {offsets = [0, 0], sizes = [2, 256], strides = [1, 1]} : vector<2x768xf32> to vector<2x256xf32>
    %324 = vector.extract_strided_slice %322 {offsets = [0, 256], sizes = [2, 256], strides = [1, 1]} : vector<2x768xf32> to vector<2x256xf32>
    %325 = vector.extract_strided_slice %322 {offsets = [0, 512], sizes = [2, 256], strides = [1, 1]} : vector<2x768xf32> to vector<2x256xf32>
    %326 = vector.extract_strided_slice %323 {offsets = [0, 0], sizes = [2, 64], strides = [1, 1]} : vector<2x256xf32> to vector<2x64xf32>
    %327 = vector.extract_strided_slice %324 {offsets = [0, 0], sizes = [2, 64], strides = [1, 1]} : vector<2x256xf32> to vector<2x64xf32>
    %328 = vector.extract_strided_slice %325 {offsets = [0, 0], sizes = [2, 64], strides = [1, 1]} : vector<2x256xf32> to vector<2x64xf32>
    %329 = arith.truncf %326 : vector<2x64xf32> to vector<2x64xbf16>
    %330 = arith.truncf %327 : vector<2x64xf32> to vector<2x64xbf16>
    %cst_131 = arith.constant dense<0.000000e+00> : vector<2x2xf32>
    %331 = tpu.matmul %329, %330, %cst_131 {dimension_numbers = #tpu.dot_dimension_numbers<[1], [1], [0], [0], [0, 0, 1, 0], [], []>} : vector<2x64xbf16>, vector<2x64xbf16>, vector<2x2xf32> -> vector<2x2xf32>
    %cst_132 = arith.constant 1.250000e-01 : f32
    %332 = vector.broadcast %cst_132 : f32 to vector<2x2xf32>
    %333 = arith.mulf %331, %332 : vector<2x2xf32>
    %cst_133 = arith.constant dense<0xFF800000> : vector<2xf32>
    %334 = vector.multi_reduction <maximumf>, %333, %cst_133 [1] : vector<2x2xf32> to vector<2xf32>
    %335 = vector.shape_cast %334 : vector<2xf32> to vector<2x1xf32>
    %336 = vector.broadcast %335 : vector<2x1xf32> to vector<2x2xf32>
    %337 = arith.subf %333, %336 : vector<2x2xf32>
    %338 = math.exp %337 : vector<2x2xf32>
    %cst_134 = arith.constant dense<0.000000e+00> : vector<2xf32>
    %339 = vector.multi_reduction <add>, %338, %cst_134 [1] : vector<2x2xf32> to vector<2xf32>
    %340 = vector.shape_cast %339 : vector<2xf32> to vector<2x1xf32>
    %341 = vector.broadcast %340 : vector<2x1xf32> to vector<2x2xf32>
    %342 = arith.divf %338, %341 : vector<2x2xf32>
    %343 = arith.truncf %342 : vector<2x2xf32> to vector<2x2xbf16>
    %344 = arith.truncf %328 : vector<2x64xf32> to vector<2x64xbf16>
    %cst_135 = arith.constant dense<0.000000e+00> : vector<2x64xf32>
    %345 = tpu.matmul %343, %344, %cst_135 {dimension_numbers = #tpu.dot_dimension_numbers<[1], [0], [0], [1], [0, 0, 1, 1], [], []>} : vector<2x2xbf16>, vector<2x64xbf16>, vector<2x64xf32> -> vector<2x64xf32>
    %346 = vector.extract_strided_slice %323 {offsets = [0, 64], sizes = [2, 64], strides = [1, 1]} : vector<2x256xf32> to vector<2x64xf32>
    %347 = vector.extract_strided_slice %324 {offsets = [0, 64], sizes = [2, 64], strides = [1, 1]} : vector<2x256xf32> to vector<2x64xf32>
    %348 = vector.extract_strided_slice %325 {offsets = [0, 64], sizes = [2, 64], strides = [1, 1]} : vector<2x256xf32> to vector<2x64xf32>
    %349 = arith.truncf %346 : vector<2x64xf32> to vector<2x64xbf16>
    %350 = arith.truncf %347 : vector<2x64xf32> to vector<2x64xbf16>
    %cst_136 = arith.constant dense<0.000000e+00> : vector<2x2xf32>
    %351 = tpu.matmul %349, %350, %cst_136 {dimension_numbers = #tpu.dot_dimension_numbers<[1], [1], [0], [0], [0, 0, 1, 0], [], []>} : vector<2x64xbf16>, vector<2x64xbf16>, vector<2x2xf32> -> vector<2x2xf32>
    %cst_137 = arith.constant 1.250000e-01 : f32
    %352 = vector.broadcast %cst_137 : f32 to vector<2x2xf32>
    %353 = arith.mulf %351, %352 : vector<2x2xf32>
    %cst_138 = arith.constant dense<0xFF800000> : vector<2xf32>
    %354 = vector.multi_reduction <maximumf>, %353, %cst_138 [1] : vector<2x2xf32> to vector<2xf32>
    %355 = vector.shape_cast %354 : vector<2xf32> to vector<2x1xf32>
    %356 = vector.broadcast %355 : vector<2x1xf32> to vector<2x2xf32>
    %357 = arith.subf %353, %356 : vector<2x2xf32>
    %358 = math.exp %357 : vector<2x2xf32>
    %cst_139 = arith.constant dense<0.000000e+00> : vector<2xf32>
    %359 = vector.multi_reduction <add>, %358, %cst_139 [1] : vector<2x2xf32> to vector<2xf32>
    %360 = vector.shape_cast %359 : vector<2xf32> to vector<2x1xf32>
    %361 = vector.broadcast %360 : vector<2x1xf32> to vector<2x2xf32>
    %362 = arith.divf %358, %361 : vector<2x2xf32>
    %363 = arith.truncf %362 : vector<2x2xf32> to vector<2x2xbf16>
    %364 = arith.truncf %348 : vector<2x64xf32> to vector<2x64xbf16>
    %cst_140 = arith.constant dense<0.000000e+00> : vector<2x64xf32>
    %365 = tpu.matmul %363, %364, %cst_140 {dimension_numbers = #tpu.dot_dimension_numbers<[1], [0], [0], [1], [0, 0, 1, 1], [], []>} : vector<2x2xbf16>, vector<2x64xbf16>, vector<2x64xf32> -> vector<2x64xf32>
    %366 = vector.extract_strided_slice %323 {offsets = [0, 128], sizes = [2, 64], strides = [1, 1]} : vector<2x256xf32> to vector<2x64xf32>
    %367 = vector.extract_strided_slice %324 {offsets = [0, 128], sizes = [2, 64], strides = [1, 1]} : vector<2x256xf32> to vector<2x64xf32>
    %368 = vector.extract_strided_slice %325 {offsets = [0, 128], sizes = [2, 64], strides = [1, 1]} : vector<2x256xf32> to vector<2x64xf32>
    %369 = arith.truncf %366 : vector<2x64xf32> to vector<2x64xbf16>
    %370 = arith.truncf %367 : vector<2x64xf32> to vector<2x64xbf16>
    %cst_141 = arith.constant dense<0.000000e+00> : vector<2x2xf32>
    %371 = tpu.matmul %369, %370, %cst_141 {dimension_numbers = #tpu.dot_dimension_numbers<[1], [1], [0], [0], [0, 0, 1, 0], [], []>} : vector<2x64xbf16>, vector<2x64xbf16>, vector<2x2xf32> -> vector<2x2xf32>
    %cst_142 = arith.constant 1.250000e-01 : f32
    %372 = vector.broadcast %cst_142 : f32 to vector<2x2xf32>
    %373 = arith.mulf %371, %372 : vector<2x2xf32>
    %cst_143 = arith.constant dense<0xFF800000> : vector<2xf32>
    %374 = vector.multi_reduction <maximumf>, %373, %cst_143 [1] : vector<2x2xf32> to vector<2xf32>
    %375 = vector.shape_cast %374 : vector<2xf32> to vector<2x1xf32>
    %376 = vector.broadcast %375 : vector<2x1xf32> to vector<2x2xf32>
    %377 = arith.subf %373, %376 : vector<2x2xf32>
    %378 = math.exp %377 : vector<2x2xf32>
    %cst_144 = arith.constant dense<0.000000e+00> : vector<2xf32>
    %379 = vector.multi_reduction <add>, %378, %cst_144 [1] : vector<2x2xf32> to vector<2xf32>
    %380 = vector.shape_cast %379 : vector<2xf32> to vector<2x1xf32>
    %381 = vector.broadcast %380 : vector<2x1xf32> to vector<2x2xf32>
    %382 = arith.divf %378, %381 : vector<2x2xf32>
    %383 = arith.truncf %382 : vector<2x2xf32> to vector<2x2xbf16>
    %384 = arith.truncf %368 : vector<2x64xf32> to vector<2x64xbf16>
    %cst_145 = arith.constant dense<0.000000e+00> : vector<2x64xf32>
    %385 = tpu.matmul %383, %384, %cst_145 {dimension_numbers = #tpu.dot_dimension_numbers<[1], [0], [0], [1], [0, 0, 1, 1], [], []>} : vector<2x2xbf16>, vector<2x64xbf16>, vector<2x64xf32> -> vector<2x64xf32>
    %386 = vector.extract_strided_slice %323 {offsets = [0, 192], sizes = [2, 64], strides = [1, 1]} : vector<2x256xf32> to vector<2x64xf32>
    %387 = vector.extract_strided_slice %324 {offsets = [0, 192], sizes = [2, 64], strides = [1, 1]} : vector<2x256xf32> to vector<2x64xf32>
    %388 = vector.extract_strided_slice %325 {offsets = [0, 192], sizes = [2, 64], strides = [1, 1]} : vector<2x256xf32> to vector<2x64xf32>
    %389 = arith.truncf %386 : vector<2x64xf32> to vector<2x64xbf16>
    %390 = arith.truncf %387 : vector<2x64xf32> to vector<2x64xbf16>
    %cst_146 = arith.constant dense<0.000000e+00> : vector<2x2xf32>
    %391 = tpu.matmul %389, %390, %cst_146 {dimension_numbers = #tpu.dot_dimension_numbers<[1], [1], [0], [0], [0, 0, 1, 0], [], []>} : vector<2x64xbf16>, vector<2x64xbf16>, vector<2x2xf32> -> vector<2x2xf32>
    %cst_147 = arith.constant 1.250000e-01 : f32
    %392 = vector.broadcast %cst_147 : f32 to vector<2x2xf32>
    %393 = arith.mulf %391, %392 : vector<2x2xf32>
    %cst_148 = arith.constant dense<0xFF800000> : vector<2xf32>
    %394 = vector.multi_reduction <maximumf>, %393, %cst_148 [1] : vector<2x2xf32> to vector<2xf32>
    %395 = vector.shape_cast %394 : vector<2xf32> to vector<2x1xf32>
    %396 = vector.broadcast %395 : vector<2x1xf32> to vector<2x2xf32>
    %397 = arith.subf %393, %396 : vector<2x2xf32>
    %398 = math.exp %397 : vector<2x2xf32>
    %cst_149 = arith.constant dense<0.000000e+00> : vector<2xf32>
    %399 = vector.multi_reduction <add>, %398, %cst_149 [1] : vector<2x2xf32> to vector<2xf32>
    %400 = vector.shape_cast %399 : vector<2xf32> to vector<2x1xf32>
    %401 = vector.broadcast %400 : vector<2x1xf32> to vector<2x2xf32>
    %402 = arith.divf %398, %401 : vector<2x2xf32>
    %403 = arith.truncf %402 : vector<2x2xf32> to vector<2x2xbf16>
    %404 = arith.truncf %388 : vector<2x64xf32> to vector<2x64xbf16>
    %cst_150 = arith.constant dense<0.000000e+00> : vector<2x64xf32>
    %405 = tpu.matmul %403, %404, %cst_150 {dimension_numbers = #tpu.dot_dimension_numbers<[1], [0], [0], [1], [0, 0, 1, 1], [], []>} : vector<2x2xbf16>, vector<2x64xbf16>, vector<2x64xf32> -> vector<2x64xf32>
    %406 = tpu.concatenate %345, %365, %385, %405 in 1 : vector<2x64xf32>, vector<2x64xf32>, vector<2x64xf32>, vector<2x64xf32> -> vector<2x256xf32>
    %c1_151 = arith.constant 1 : index
    %c0_152 = arith.constant 0 : index
    %c0_153 = arith.constant 0 : index
    %407 = vector.load %arg10[%c1_151, %c0_152, %c0_153] : memref<2x256x256xbf16, #tpu.memory_space<vmem>>, vector<1x256x256xbf16>
    %408 = vector.shape_cast %407 : vector<1x256x256xbf16> to vector<256x256xbf16>
    %409 = arith.truncf %406 : vector<2x256xf32> to vector<2x256xbf16>
    %cst_154 = arith.constant dense<0.000000e+00> : vector<2x256xf32>
    %410 = tpu.matmul %409, %408, %cst_154 {dimension_numbers = #tpu.dot_dimension_numbers<[1], [0], [0], [1], [0, 0, 1, 1], [], []>} : vector<2x256xbf16>, vector<256x256xbf16>, vector<2x256xf32> -> vector<2x256xf32>
    %c1_155 = arith.constant 1 : index
    %c0_156 = arith.constant 0 : index
    %c0_157 = arith.constant 0 : index
    %411 = vector.load %arg11[%c1_155, %c0_156, %c0_157] : memref<2x1x256xf32, #tpu.memory_space<vmem>>, vector<1x1x256xf32>
    %412 = vector.shape_cast %411 : vector<1x1x256xf32> to vector<1x256xf32>
    %413 = vector.broadcast %412 : vector<1x256xf32> to vector<2x256xf32>
    %414 = arith.addf %410, %413 : vector<2x256xf32>
    %c1_158 = arith.constant 1 : index
    %c0_159 = arith.constant 0 : index
    %c0_160 = arith.constant 0 : index
    %415 = vector.load %arg16[%c1_158, %c0_159, %c0_160] : memref<2x4x256xf32, #tpu.memory_space<vmem>>, vector<1x4x256xf32>
    %416 = vector.shape_cast %415 : vector<1x4x256xf32> to vector<4x256xf32>
    %417 = arith.addf %314, %414 : vector<2x256xf32>
    %418 = vector.extract_strided_slice %416 {offsets = [0, 0], sizes = [1, 256], strides = [1, 1]} : vector<4x256xf32> to vector<1x256xf32>
    %419 = vector.extract_strided_slice %416 {offsets = [1, 0], sizes = [1, 256], strides = [1, 1]} : vector<4x256xf32> to vector<1x256xf32>
    %cst_161 = arith.constant dense<0.000000e+00> : vector<2xf32>
    %420 = vector.multi_reduction <add>, %417, %cst_161 [1] : vector<2x256xf32> to vector<2xf32>
    %421 = vector.shape_cast %420 : vector<2xf32> to vector<2x1xf32>
    %cst_162 = arith.constant 2.560000e+02 : f32
    %422 = vector.broadcast %cst_162 : f32 to vector<2x1xf32>
    %423 = arith.divf %421, %422 : vector<2x1xf32>
    %424 = vector.broadcast %423 : vector<2x1xf32> to vector<2x256xf32>
    %425 = arith.subf %417, %424 : vector<2x256xf32>
    %426 = arith.mulf %425, %425 : vector<2x256xf32>
    %cst_163 = arith.constant dense<0.000000e+00> : vector<2xf32>
    %427 = vector.multi_reduction <add>, %426, %cst_163 [1] : vector<2x256xf32> to vector<2xf32>
    %428 = vector.shape_cast %427 : vector<2xf32> to vector<2x1xf32>
    %cst_164 = arith.constant 2.560000e+02 : f32
    %429 = vector.broadcast %cst_164 : f32 to vector<2x1xf32>
    %430 = arith.divf %428, %429 : vector<2x1xf32>
    %431 = vector.broadcast %423 : vector<2x1xf32> to vector<2x256xf32>
    %432 = arith.subf %417, %431 : vector<2x256xf32>
    %cst_165 = arith.constant 9.99999974E-6 : f32
    %433 = vector.broadcast %cst_165 : f32 to vector<2x1xf32>
    %434 = arith.addf %430, %433 : vector<2x1xf32>
    %435 = math.rsqrt %434 : vector<2x1xf32>
    %436 = vector.broadcast %435 : vector<2x1xf32> to vector<2x256xf32>
    %437 = arith.mulf %432, %436 : vector<2x256xf32>
    %438 = vector.broadcast %418 : vector<1x256xf32> to vector<2x256xf32>
    %439 = arith.mulf %437, %438 : vector<2x256xf32>
    %440 = vector.broadcast %419 : vector<1x256xf32> to vector<2x256xf32>
    %441 = arith.addf %439, %440 : vector<2x256xf32>
    %c1_166 = arith.constant 1 : index
    %c0_167 = arith.constant 0 : index
    %c0_168 = arith.constant 0 : index
    %442 = vector.load %arg12[%c1_166, %c0_167, %c0_168] : memref<2x256x128xbf16, #tpu.memory_space<vmem>>, vector<1x256x128xbf16>
    %443 = vector.shape_cast %442 : vector<1x256x128xbf16> to vector<256x128xbf16>
    %444 = arith.truncf %441 : vector<2x256xf32> to vector<2x256xbf16>
    %cst_169 = arith.constant dense<0.000000e+00> : vector<2x128xf32>
    %445 = tpu.matmul %444, %443, %cst_169 {dimension_numbers = #tpu.dot_dimension_numbers<[1], [0], [0], [1], [0, 0, 1, 1], [], []>} : vector<2x256xbf16>, vector<256x128xbf16>, vector<2x128xf32> -> vector<2x128xf32>
    %c1_170 = arith.constant 1 : index
    %c0_171 = arith.constant 0 : index
    %c0_172 = arith.constant 0 : index
    %446 = vector.load %arg13[%c1_170, %c0_171, %c0_172] : memref<2x1x128xf32, #tpu.memory_space<vmem>>, vector<1x1x128xf32>
    %447 = vector.shape_cast %446 : vector<1x1x128xf32> to vector<1x128xf32>
    %448 = vector.broadcast %447 : vector<1x128xf32> to vector<2x128xf32>
    %449 = arith.addf %445, %448 : vector<2x128xf32>
    %cst_173 = arith.constant 0.000000e+00 : f32
    %450 = vector.broadcast %cst_173 : f32 to vector<2x128xf32>
    %451 = arith.maximumf %449, %450 : vector<2x128xf32>
    %c1_174 = arith.constant 1 : index
    %c0_175 = arith.constant 0 : index
    %c0_176 = arith.constant 0 : index
    %452 = vector.load %arg14[%c1_174, %c0_175, %c0_176] : memref<2x128x256xbf16, #tpu.memory_space<vmem>>, vector<1x128x256xbf16>
    %453 = vector.shape_cast %452 : vector<1x128x256xbf16> to vector<128x256xbf16>
    %454 = arith.truncf %451 : vector<2x128xf32> to vector<2x128xbf16>
    %cst_177 = arith.constant dense<0.000000e+00> : vector<2x256xf32>
    %455 = tpu.matmul %454, %453, %cst_177 {dimension_numbers = #tpu.dot_dimension_numbers<[1], [0], [0], [1], [0, 0, 1, 1], [], []>} : vector<2x128xbf16>, vector<128x256xbf16>, vector<2x256xf32> -> vector<2x256xf32>
    %c1_178 = arith.constant 1 : index
    %c0_179 = arith.constant 0 : index
    %c0_180 = arith.constant 0 : index
    %456 = vector.load %arg15[%c1_178, %c0_179, %c0_180] : memref<2x1x256xf32, #tpu.memory_space<vmem>>, vector<1x1x256xf32>
    %457 = vector.shape_cast %456 : vector<1x1x256xf32> to vector<1x256xf32>
    %458 = vector.broadcast %457 : vector<1x256xf32> to vector<2x256xf32>
    %459 = arith.addf %455, %458 : vector<2x256xf32>
    %460 = arith.addf %441, %459 : vector<2x256xf32>
    %461 = vector.extract_strided_slice %416 {offsets = [2, 0], sizes = [1, 256], strides = [1, 1]} : vector<4x256xf32> to vector<1x256xf32>
    %462 = vector.extract_strided_slice %416 {offsets = [3, 0], sizes = [1, 256], strides = [1, 1]} : vector<4x256xf32> to vector<1x256xf32>
    %cst_181 = arith.constant dense<0.000000e+00> : vector<2xf32>
    %463 = vector.multi_reduction <add>, %460, %cst_181 [1] : vector<2x256xf32> to vector<2xf32>
    %464 = vector.shape_cast %463 : vector<2xf32> to vector<2x1xf32>
    %cst_182 = arith.constant 2.560000e+02 : f32
    %465 = vector.broadcast %cst_182 : f32 to vector<2x1xf32>
    %466 = arith.divf %464, %465 : vector<2x1xf32>
    %467 = vector.broadcast %466 : vector<2x1xf32> to vector<2x256xf32>
    %468 = arith.subf %460, %467 : vector<2x256xf32>
    %469 = arith.mulf %468, %468 : vector<2x256xf32>
    %cst_183 = arith.constant dense<0.000000e+00> : vector<2xf32>
    %470 = vector.multi_reduction <add>, %469, %cst_183 [1] : vector<2x256xf32> to vector<2xf32>
    %471 = vector.shape_cast %470 : vector<2xf32> to vector<2x1xf32>
    %cst_184 = arith.constant 2.560000e+02 : f32
    %472 = vector.broadcast %cst_184 : f32 to vector<2x1xf32>
    %473 = arith.divf %471, %472 : vector<2x1xf32>
    %474 = vector.broadcast %466 : vector<2x1xf32> to vector<2x256xf32>
    %475 = arith.subf %460, %474 : vector<2x256xf32>
    %cst_185 = arith.constant 9.99999974E-6 : f32
    %476 = vector.broadcast %cst_185 : f32 to vector<2x1xf32>
    %477 = arith.addf %473, %476 : vector<2x1xf32>
    %478 = math.rsqrt %477 : vector<2x1xf32>
    %479 = vector.broadcast %478 : vector<2x1xf32> to vector<2x256xf32>
    %480 = arith.mulf %475, %479 : vector<2x256xf32>
    %481 = vector.broadcast %461 : vector<1x256xf32> to vector<2x256xf32>
    %482 = arith.mulf %480, %481 : vector<2x256xf32>
    %483 = vector.broadcast %462 : vector<1x256xf32> to vector<2x256xf32>
    %484 = arith.addf %482, %483 : vector<2x256xf32>
    %c0_186 = arith.constant 0 : index
    %c0_187 = arith.constant 0 : index
    %485 = vector.load %arg17[%c0_186, %c0_187] : memref<2x256xf32, #tpu.memory_space<vmem>>, vector<1x256xf32>
    %c1_188 = arith.constant 1 : index
    %c0_189 = arith.constant 0 : index
    %486 = vector.load %arg17[%c1_188, %c0_189] : memref<2x256xf32, #tpu.memory_space<vmem>>, vector<1x256xf32>
    %cst_190 = arith.constant dense<0.000000e+00> : vector<2xf32>
    %487 = vector.multi_reduction <add>, %484, %cst_190 [1] : vector<2x256xf32> to vector<2xf32>
    %488 = vector.shape_cast %487 : vector<2xf32> to vector<2x1xf32>
    %cst_191 = arith.constant 2.560000e+02 : f32
    %489 = vector.broadcast %cst_191 : f32 to vector<2x1xf32>
    %490 = arith.divf %488, %489 : vector<2x1xf32>
    %491 = vector.broadcast %490 : vector<2x1xf32> to vector<2x256xf32>
    %492 = arith.subf %484, %491 : vector<2x256xf32>
    %493 = arith.mulf %492, %492 : vector<2x256xf32>
    %cst_192 = arith.constant dense<0.000000e+00> : vector<2xf32>
    %494 = vector.multi_reduction <add>, %493, %cst_192 [1] : vector<2x256xf32> to vector<2xf32>
    %495 = vector.shape_cast %494 : vector<2xf32> to vector<2x1xf32>
    %cst_193 = arith.constant 2.560000e+02 : f32
    %496 = vector.broadcast %cst_193 : f32 to vector<2x1xf32>
    %497 = arith.divf %495, %496 : vector<2x1xf32>
    %498 = vector.broadcast %490 : vector<2x1xf32> to vector<2x256xf32>
    %499 = arith.subf %484, %498 : vector<2x256xf32>
    %cst_194 = arith.constant 9.99999974E-6 : f32
    %500 = vector.broadcast %cst_194 : f32 to vector<2x1xf32>
    %501 = arith.addf %497, %500 : vector<2x1xf32>
    %502 = math.rsqrt %501 : vector<2x1xf32>
    %503 = vector.broadcast %502 : vector<2x1xf32> to vector<2x256xf32>
    %504 = arith.mulf %499, %503 : vector<2x256xf32>
    %505 = vector.broadcast %485 : vector<1x256xf32> to vector<2x256xf32>
    %506 = arith.mulf %504, %505 : vector<2x256xf32>
    %507 = vector.broadcast %486 : vector<1x256xf32> to vector<2x256xf32>
    %508 = arith.addf %506, %507 : vector<2x256xf32>
    %c0_195 = arith.constant 0 : index
    %c0_196 = arith.constant 0 : index
    %509 = vector.load %arg18[%c0_195, %c0_196] : memref<256x720xbf16, #tpu.memory_space<vmem>>, vector<256x720xbf16>
    %510 = arith.truncf %508 : vector<2x256xf32> to vector<2x256xbf16>
    %cst_197 = arith.constant dense<0.000000e+00> : vector<2x720xf32>
    %511 = tpu.matmul %510, %509, %cst_197 {dimension_numbers = #tpu.dot_dimension_numbers<[1], [0], [0], [1], [0, 0, 1, 1], [], []>} : vector<2x256xbf16>, vector<256x720xbf16>, vector<2x720xf32> -> vector<2x720xf32>
    %c0_198 = arith.constant 0 : index
    %c0_199 = arith.constant 0 : index
    %512 = vector.load %arg19[%c0_198, %c0_199] : memref<1x720xf32, #tpu.memory_space<vmem>>, vector<1x720xf32>
    %513 = vector.broadcast %512 : vector<1x720xf32> to vector<2x720xf32>
    %514 = arith.addf %511, %513 : vector<2x720xf32>
    %cst_200 = arith.constant 0.000000e+00 : f32
    %515 = vector.broadcast %cst_200 : f32 to vector<2x720xf32>
    %516 = arith.maximumf %514, %515 : vector<2x720xf32>
    %c0_201 = arith.constant 0 : index
    %c0_202 = arith.constant 0 : index
    %517 = vector.load %arg20[%c0_201, %c0_202] : memref<2x720xf32, #tpu.memory_space<vmem>>, vector<2x720xf32>
    tpu.vector_store %arg20[%c0_201, %c0_202], %516 {strides = array<i32>} : memref<2x720xf32, #tpu.memory_space<vmem>>, vector<2x720xf32>,
    return
  }
}

</mosaic_0001>

<bundles_post_ra>
// kernel: basemodel_forward.1
= control target key start
LH: loop header
LB: loop body
LE: loop exit
PB: predicated region body
PF: predicated region fallthrough
CT: control target
= control target key end

     0   :  { %s11457_s0 = inlined_call_operand.vmem [shape: f32[2,720], index: 0, kind: input, shape index: {}]   ;;  %s11458_s1 = inlined_call_operand.vmem [shape: f32[2,1], index: 1, kind: input, shape index: {}]   ;;  %s11459_s2 = inlined_call_operand.hbm [shape: bf16[720,256], index: 2, kind: input, shape index: {}]   ;;  %s11460_s3 = inlined_call_operand.hbm [shape: f32[1,256], index: 3, kind: input, shape index: {}]   ;;  %s11461_s4 = inlined_call_operand.hbm [shape: f32[1,16], index: 4, kind: input, shape index: {}]   ;;  %s11462_s5 = inlined_call_operand.hbm [shape: f32[1,16], index: 5, kind: input, shape index: {}]   ;;  %s11463_s6 = inlined_call_operand.hbm [shape: bf16[272,256], index: 6, kind: input, shape index: {}]   ;;  %s11464_s7 = inlined_call_operand.hbm [shape: f32[1,256], index: 7, kind: input, shape index: {}]   ;;  %s11465_s8 = inlined_call_operand.vmem [shape: bf16[2,256,768], index: 8, kind: input, shape index: {}]   ;;  %s11466_s9 = inlined_call_operand.hbm [shape: f32[2,1,768], index: 9, kind: input, shape index: {}]   ;;  %s11467_s10 = inlined_call_operand.hbm [shape: bf16[2,256,256], index: 10, kind: input, shape index: {}]   ;;  %s11468_s11 = inlined_call_operand.hbm [shape: f32[2,1,256], index: 11, kind: input, shape index: {}]   ;;  %s11469_s12 = inlined_call_operand.hbm [shape: bf16[2,256,128], index: 12, kind: input, shape index: {}]   ;;  %s11470_s13 = inlined_call_operand.hbm [shape: f32[2,1,128], index: 13, kind: input, shape index: {}]   ;;  %s11471_s14 = inlined_call_operand.hbm [shape: bf16[2,128,256], index: 14, kind: input, shape index: {}]   ;;  %s11472_s15 = inlined_call_operand.hbm [shape: f32[2,1,256], index: 15, kind: input, shape index: {}]   ;;  %s11473_s16 = inlined_call_operand.hbm [shape: f32[2,4,256], index: 16, kind: input, shape index: {}]   ;;  %s11474_s17 = inlined_call_operand.hbm [shape: f32[2,256], index: 17, kind: input, shape index: {}]   ;;  %s11475_s18 = inlined_call_operand.vmem [shape: bf16[256,720], index: 18, kind: input, shape index: {}]   ;;  %s11476_s19 = inlined_call_operand.hbm [shape: f32[1,720], index: 19, kind: input, shape index: {}]   ;;  %s11477_s20 = inlined_call_operand.vmem [shape: f32[2,720], index: 20, kind: output, shape index: {}]  }
   0x1   :  { %11479 = sst [smem:[#allocation36_spill]] %s11457_s0 }
   0x2   :  { %11480 = sst [smem:[#allocation37_spill]] %s11458_s1 }
   0x3   :  { %11481 = sst [smem:[#allocation38_spill]] %s11459_s2 }
   0x4   :  { %11482 = sst [smem:[#allocation39_spill]] %s11460_s3 }
   0x5   :  { %11483 = sst [smem:[#allocation40_spill]] %s11461_s4 }
   0x6   :  { %25 = vsyncpa [#allocation3], 0 }
   0x7   :  { %26 = vsyncpa [#allocation5], 0 }
   0x8   :  { %27 = vsyncpa [#allocation8], 0 }
   0x9   :  { %28 = vsyncpa [#allocation11], 0 }
   0xa   :  { %29 = vsyncpa [#allocation14], 0 }
   0xb   :  { %30 = vsyncpa [#allocation17], 0 }
   0xc   :  { %31 = vsyncpa [#allocation20], 0 }
   0xd   :  { %32 = vsyncpa [#allocation23], 0  ;;  %s11484_s23 = sld [smem:[#allocation39_spill]] }
  0x13   :  { %s56_s24 = sshll.u32 %s11484_s23, 4  ;;  %s57_s24 = int_to_ptr.hbm [resolvable:$true] %s56_s24 }
  0x14   :  { %33 = vsyncpa [#allocation26], 0  ;;  %s9080_s2 = smov [#allocation4]   ;;  %s78_s27 = sshll.u32 %s11462_s5, 4  ;;  %s79_s27 = int_to_ptr.hbm [resolvable:$true] %s78_s27 }
  0x15   :  { %s58_s25 = sshll.u32 %s9080_s2, 4  ;;  %s9081_s28 = smov [#allocation7]   ;;  %s59_s25 = int_to_ptr.vmem [resolvable:$true] %s58_s25 }
  0x16   :  { %61 = dma.hbm_to_vmem [thread:$0]  %s57_s24, 32, %s59_s25, [#allocation5]  }
  0x17   :  { %s80_s4 = sshll.u32 %s9081_s28, 4  ;;  %s102_s0 = sshll.u32 %s11464_s7, 4  ;;  %s81_s4 = int_to_ptr.vmem [resolvable:$true] %s80_s4  ;;  %s103_s0 = int_to_ptr.hbm [resolvable:$true] %s102_s0 }
  0x18   :  { %83 = dma.hbm_to_vmem [thread:$0]  %s79_s27, 16, %s81_s4, [#allocation8]  }
  0x19   :  { %s9082_s21 = smov [#allocation10]   ;;  %s127_s2 = sshll.u32 %s11467_s10, 4  ;;  %s128_s2 = int_to_ptr.hbm [resolvable:$true] %s127_s2 }
  0x1a   :  { %s104_s1 = sshll.u32 %s9082_s21, 4  ;;  %s9083_s5 = smov [#allocation13]   ;;  %s105_s1 = int_to_ptr.vmem [resolvable:$true] %s104_s1 }
  0x1b   :  { %107 = dma.hbm_to_vmem [thread:$0]  %s103_s0, 32, %s105_s1, [#allocation11]  }
  0x1c   :  { %s129_s24 = sshll.u32 %s9083_s5, 4  ;;  %s153_s26 = sshll.u32 %s11469_s12, 4  ;;  %s130_s24 = int_to_ptr.vmem [resolvable:$true] %s129_s24  ;;  %s154_s26 = int_to_ptr.hbm [resolvable:$true] %s153_s26 }
  0x1d   :  { %s9084_s7 = smov 128   ;;  %s9085_s28 = smov 8  }
  0x1e   :  { %135 = dma.hbm_to_vmem [thread:$0]  %s128_s2, 8192, %s130_s24, [#allocation14], %s9084_s7, %s9084_s7, %s9085_s28  }
  0x1f   :  { %s9086_s27 = smov [#allocation16]   ;;  %s179_s30 = sshll.u32 %s11471_s14, 4  ;;  %s180_s30 = int_to_ptr.hbm [resolvable:$true] %s179_s30 }
  0x20   :  { %s155_s4 = sshll.u32 %s9086_s27, 4  ;;  %s9087_s0 = smov 64   ;;  %s156_s4 = int_to_ptr.vmem [resolvable:$true] %s155_s4 }
  0x21   :  { %s9088_s21 = smov 4   ;;  %s9089_s12 = smov [#allocation19]  }
  0x22   :  { %161 = dma.hbm_to_vmem [thread:$0]  %s154_s26, 4096, %s156_s4, [#allocation17], %s9087_s0, %s9087_s0, %s9088_s21  }
  0x23   :  { %s181_s1 = sshll.u32 %s9089_s12, 4  ;;  %s205_s5 = sshll.u32 %s11473_s16, 4  ;;  %s182_s1 = int_to_ptr.vmem [resolvable:$true] %s181_s1  ;;  %s206_s5 = int_to_ptr.hbm [resolvable:$true] %s205_s5 }
  0x24   :  { %187 = dma.hbm_to_vmem [thread:$0]  %s180_s30, 4096, %s182_s1, [#allocation20], %s9084_s7, %s9084_s7, %s9085_s28  }
  0x25   :  { %s11485_s24 = sld [smem:[#allocation38_spill]]  ;;  %s9090_s3 = smov [#allocation22]  }
  0x26   :  { %s207_s27 = sshll.u32 %s9090_s3, 4  ;;  %s9091_s26 = smov [#allocation2]   ;;  %s208_s27 = int_to_ptr.vmem [resolvable:$true] %s207_s27 }
  0x27   :  { %213 = dma.hbm_to_vmem [thread:$0]  %s206_s5, 256, %s208_s27, [#allocation23], %s9084_s7, %s9084_s7, %s9085_s28  }
  0x28   :  { %s44_s16 = sshll.u32 %s9091_s26, 4  ;;  %s11486_s29 = sld [smem:[#allocation40_spill]]  ;;  %s45_s16 = int_to_ptr.vmem [resolvable:$true] %s44_s16 }
  0x29   :  { %s88_s1 = sshll.u32 %s11463_s6, 4  ;;  %s9092_s22 = smov [#allocation6]   ;;  %s89_s1 = int_to_ptr.hbm [resolvable:$true] %s88_s1 }
  0x2a   :  { %s69_s23 = sshll.u32 %s9092_s22, 4  ;;  %s9093_s5 = smov [#allocation9]   ;;  %s70_s23 = int_to_ptr.vmem [resolvable:$true] %s69_s23 }
  0x2b   :  { %s42_s25 = sshll.u32 %s11485_s24, 4  ;;  %s90_s2 = sshll.u32 %s9093_s5, 4  ;;  %s43_s25 = int_to_ptr.hbm [resolvable:$true] %s42_s25  ;;  %s91_s2 = int_to_ptr.vmem [resolvable:$true] %s90_s2 }
  0x2c   :  { %50 = dma.hbm_to_vmem [thread:$0]  %s43_s25, 11520, %s45_s16, [#allocation3], %s9084_s7, %s9084_s7, %s9085_s28  }
  0x2d   :  { %s114_s3 = sshll.u32 %s11466_s9, 4  ;;  %s9094_s25 = smov [#allocation12]   ;;  %s115_s3 = int_to_ptr.hbm [resolvable:$true] %s114_s3 }
  0x2e   :  { %s67_s21 = sshll.u32 %s11486_s29, 4  ;;  %s116_s27 = sshll.u32 %s9094_s25, 4  ;;  %s68_s21 = int_to_ptr.hbm [resolvable:$true] %s67_s21  ;;  %s117_s27 = int_to_ptr.vmem [resolvable:$true] %s116_s27 }
  0x2f   :  { %72 = dma.hbm_to_vmem [thread:$0]  %s68_s21, 16, %s70_s23, [#allocation5]  }
  0x30   :  { %96 = dma.hbm_to_vmem [thread:$0]  %s89_s1, 4352, %s91_s2, [#allocation8], %s9084_s7, %s9084_s7, %s9085_s28  }
  0x31   :  { %s140_s16 = sshll.u32 %s11468_s11, 4  ;;  %s9095_s4 = smov 96   ;;  %s141_s16 = int_to_ptr.hbm [resolvable:$true] %s140_s16 }
  0x32   :  { %s9096_s10 = smov 6   ;;  %s9097_s29 = smov [#allocation15]  }
  0x33   :  { %122 = dma.hbm_to_vmem [thread:$0]  %s115_s3, 192, %s117_s27, [#allocation11], %s9095_s4, %s9095_s4, %s9096_s10  }
  0x34   :  { %s142_s21 = sshll.u32 %s9097_s29, 4  ;;  %s9098_s9 = smov 32   ;;  %s143_s21 = int_to_ptr.vmem [resolvable:$true] %s142_s21 }
  0x35   :  { %s9099_s30 = smov 2   ;;  %s166_s7 = sshll.u32 %s11470_s13, 4  ;;  %s167_s7 = int_to_ptr.hbm [resolvable:$true] %s166_s7 }
  0x36   :  { %148 = dma.hbm_to_vmem [thread:$0]  %s141_s16, 64, %s143_s21, [#allocation14], %s9098_s9, %s9098_s9, %s9099_s30  }
  0x37   :  { %s9100_s28 = smov [#allocation18]   ;;  %s192_s5 = sshll.u32 %s11472_s15, 4  ;;  %s193_s5 = int_to_ptr.hbm [resolvable:$true] %s192_s5 }
  0x38   :  { %s168_s1 = sshll.u32 %s9100_s28, 4  ;;  %s9101_s2 = smov 16   ;;  %s169_s1 = int_to_ptr.vmem [resolvable:$true] %s168_s1 }
  0x39   :  { %s9102_s14 = smov 1   ;;  %s9103_s24 = smov [#allocation21]  }
  0x3a   :  { %174 = dma.hbm_to_vmem [thread:$0]  %s167_s7, 32, %s169_s1, [#allocation17], %s9101_s2, %s9101_s2, %s9102_s14  }
  0x3b   :  { %s194_s3 = sshll.u32 %s9103_s24, 4  ;;  %s219_s6 = sshll.u32 %s11474_s17, 4  ;;  %s195_s3 = int_to_ptr.vmem [resolvable:$true] %s194_s3  ;;  %s220_s6 = int_to_ptr.hbm [resolvable:$true] %s219_s6 }
  0x3c   :  { %200 = dma.hbm_to_vmem [thread:$0]  %s193_s5, 64, %s195_s3, [#allocation20], %s9098_s9, %s9098_s9, %s9099_s30  }
  0x3d   :  { %s232_s16 = sshll.u32 %s11476_s19, 4  ;;  %s9104_s4 = smov [#allocation24]   ;;  %s233_s16 = int_to_ptr.hbm [resolvable:$true] %s232_s16 }
  0x3e   :  { %s221_s10 = sshll.u32 %s9104_s4, 4  ;;  %s9105_s15 = smov [#allocation25]   ;;  %s222_s10 = int_to_ptr.vmem [resolvable:$true] %s221_s10 }
  0x3f   :  { %224 = dma.hbm_to_vmem [thread:$0]  %s220_s6, 64, %s222_s10, [#allocation23]  }
  0x40   :  { %s234_s29 = sshll.u32 %s9105_s15, 4  ;;  %s235_s29 = int_to_ptr.vmem [resolvable:$true] %s234_s29 }
  0x41   :  { %237 = dma.hbm_to_vmem [thread:$0]  %s233_s16, 96, %s235_s29, [#allocation26]  }
  0x42   :  { %9062 = dma.done.wait [#allocation3], 11520  }
  0x43   :  { %9063 = vsyncadd [#allocation3], 4294955776 }
  0x44   :  { %9064 = dma.done.wait [#allocation5], 48  }
  0x45   :  { %9065 = vsyncadd [#allocation5], 4294967248 }
  0x46   :  { %9066 = dma.done.wait [#allocation8], 4368  }
  0x47   :  { %9067 = vsyncadd [#allocation8], 4294962928 }
  0x48   :  { %9068 = dma.done.wait [#allocation11], 224  }
  0x49   :  { %9069 = vsyncadd [#allocation11], 4294967072 }
  0x4a   :  { %9070 = dma.done.wait [#allocation14], 8256  }
  0x4b   :  { %9071 = vsyncadd [#allocation14], 4294959040 }
  0x4c   :  { %9072 = dma.done.wait [#allocation17], 4128  }
  0x4d   :  { %9073 = vsyncadd [#allocation17], 4294963168 }
  0x4e   :  { %9074 = dma.done.wait [#allocation20], 4160  }
  0x4f   :  { %9075 = vsyncadd [#allocation20], 4294963136 }
  0x50   :  { %9076 = dma.done.wait [#allocation23], 320  }
  0x51   :  { %9077 = vsyncadd [#allocation23], 4294966976 }
  0x52   :  { %9078 = dma.done.wait [#allocation26], 96  }
  0x53   :  { %9079 = vsyncadd [#allocation26], 4294967200  ;;  %v5813_v0 = vld [vmem:[#allocation2 + $0x70] sm:$0xf]  ;;  %v8056_v1 = vld [vmem:[#allocation2 + $0x74] sm:$0xf0] }
  0x54   :  { %v5941_v2 = vld [vmem:[#allocation2 + $0x170] sm:$0xf]  ;;  %v5814_v3 = vor.u32 %v8056_v1, %v5813_v0  ;;  %v8088_v4 = vld [vmem:[#allocation2 + $0x174] sm:$0xf0]  ;;  %v5805_v5 = vld [vmem:[#allocation2 + $0x60] sm:$0xf] }
  0x55   :  { %v8054_v6 = vld [vmem:[#allocation2 + $0x64] sm:$0xf0]  ;;  %v5942_v7 = vor.u32 %v8088_v4, %v5941_v2  ;;  %v5933_v8 = vld [vmem:[#allocation2 + $0x160] sm:$0xf]  ;;  %v5877_v10 = vld [vmem:[#allocation2 + $0xf0] sm:$0xf] }
  0x56   :  { %v8086_v9 = vld [vmem:[#allocation2 + $0x164] sm:$0xf0]  ;;  %878 = vmatpush.bf16.msra.mxu0 %v5814_v3  ;;  %v5806_v11 = vor.u32 %v8054_v6, %v5805_v5  ;;  %v8072_v12 = vld [vmem:[#allocation2 + $0xf4] sm:$0xf0]  ;;  %v6005_v13 = vld [vmem:[#allocation2 + $0x1f0] sm:$0xf] }
  0x57   :  { %v8104_v14 = vld [vmem:[#allocation2 + $0x1f4] sm:$0xf0]  ;;  %904 = vmatpush.bf16.msra.mxu2 %v5942_v7  ;;  %v5934_v15 = vor.u32 %v8086_v9, %v5933_v8  ;;  %v5878_v16 = vor.u32 %v8072_v12, %v5877_v10  ;;  %v5797_v18 = vld [vmem:[#allocation2 + $0x50] sm:$0xf]  ;;  %v5869_v22 = vld [vmem:[#allocation2 + $0xe0] sm:$0xf] }
  0x58   :  { %v6006_v17 = vor.u32 %v8104_v14, %v6005_v13  ;;  %v8052_v19 = vld [vmem:[#allocation2 + $0x54] sm:$0xf0]  ;;  %v5925_v20 = vld [vmem:[#allocation2 + $0x150] sm:$0xf]  ;;  %v8070_v23 = vld [vmem:[#allocation2 + $0xe4] sm:$0xf0] }
  0x59   :  { %v8084_v21 = vld [vmem:[#allocation2 + $0x154] sm:$0xf0]  ;;  %891 = vmatpush.bf16.msra.mxu1 %v5878_v16  ;;  %v5870_v24 = vor.u32 %v8070_v23, %v5869_v22  ;;  %v5997_v25 = vld [vmem:[#allocation2 + $0x1e0] sm:$0xf]  ;;  %v8102_v26 = vld [vmem:[#allocation2 + $0x1e4] sm:$0xf0]  ;;  %v5798_v27 = vor.u32 %v8052_v19, %v5797_v18 }
  0x5a   :  { %917 = vmatpush.bf16.msra.mxu3 %v6006_v17  ;;  %879 = vmatpush.bf16.msra.mxu0 %v5806_v11  ;;  %v5998_v28 = vor.u32 %v8102_v26, %v5997_v25  ;;  %v5789_v29 = vld [vmem:[#allocation2 + $0x40] sm:$0xf]  ;;  %v8050_v30 = vld [vmem:[#allocation2 + $0x44] sm:$0xf0]  ;;  %v5926_v31 = vor.u32 %v8084_v21, %v5925_v20  ;;  %v5861_v32 = vld [vmem:[#allocation2 + $0xd0] sm:$0xf] }
  0x5b   :  { %905 = vmatpush.bf16.msra.mxu2 %v5934_v15  ;;  %v8068_v33 = vld [vmem:[#allocation2 + $0xd4] sm:$0xf0]  ;;  %v5989_v34 = vld [vmem:[#allocation2 + $0x1d0] sm:$0xf]  ;;  %v5917_v35 = vld [vmem:[#allocation2 + $0x140] sm:$0xf]  ;;  %v5790_v41 = vor.u32 %v8050_v30, %v5789_v29 }
  0x5c   :  { %v8082_v36 = vld [vmem:[#allocation2 + $0x144] sm:$0xf0]  ;;  %v8100_v37 = vld [vmem:[#allocation2 + $0x1d4] sm:$0xf0]  ;;  %v5862_v38 = vor.u32 %v8068_v33, %v5861_v32  ;;  %v5853_v40 = vld [vmem:[#allocation2 + $0xc0] sm:$0xf] }
  0x5d   :  { %892 = vmatpush.bf16.msra.mxu1 %v5870_v24  ;;  %v5990_v39 = vor.u32 %v8100_v37, %v5989_v34  ;;  %v8066_v42 = vld [vmem:[#allocation2 + $0xc4] sm:$0xf0]  ;;  %v5981_v43 = vld [vmem:[#allocation2 + $0x1c0] sm:$0xf]  ;;  %v5918_v45 = vor.u32 %v8082_v36, %v5917_v35  ;;  %v5781_v46 = vld [vmem:[#allocation2 + $0x30] sm:$0xf] }
  0x5e   :  { %918 = vmatpush.bf16.msra.mxu3 %v5998_v28  ;;  %880 = vmatpush.bf16.msra.mxu0 %v5798_v27  ;;  %v8098_v44 = vld [vmem:[#allocation2 + $0x1c4] sm:$0xf0]  ;;  %v8048_v47 = vld [vmem:[#allocation2 + $0x34] sm:$0xf0]  ;;  %v5909_v48 = vld [vmem:[#allocation2 + $0x130] sm:$0xf]  ;;  %v5854_v50 = vor.u32 %v8066_v42, %v5853_v40 }
  0x5f   :  { %906 = vmatpush.bf16.msra.mxu2 %v5926_v31  ;;  %v8080_v49 = vld [vmem:[#allocation2 + $0x134] sm:$0xf0]  ;;  %v5982_v51 = vor.u32 %v8098_v44, %v5981_v43  ;;  %v5845_v52 = vld [vmem:[#allocation2 + $0xb0] sm:$0xf]  ;;  %v5782_v53 = vor.u32 %v8048_v47, %v5781_v46  ;;  %v5773_v58 = vld [vmem:[#allocation2 + $0x20] sm:$0xf] }
  0x60   :  { %v8064_v54 = vld [vmem:[#allocation2 + $0xb4] sm:$0xf0]  ;;  %v5973_v55 = vld [vmem:[#allocation2 + $0x1b0] sm:$0xf]  ;;  %v5910_v57 = vor.u32 %v8080_v49, %v5909_v48  ;;  %v8046_v59 = vld [vmem:[#allocation2 + $0x24] sm:$0xf0] }
  0x61   :  { %893 = vmatpush.bf16.msra.mxu1 %v5862_v38  ;;  %v8096_v56 = vld [vmem:[#allocation2 + $0x1b4] sm:$0xf0]  ;;  %v5901_v60 = vld [vmem:[#allocation2 + $0x120] sm:$0xf]  ;;  %v8078_v61 = vld [vmem:[#allocation2 + $0x124] sm:$0xf0]  ;;  %v5846_v62 = vor.u32 %v8064_v54, %v5845_v52  ;;  %v5774_v1 = vor.u32 %v8046_v59, %v5773_v58 }
  0x62   :  { %919 = vmatpush.bf16.msra.mxu3 %v5990_v39  ;;  %881 = vmatpush.bf16.msra.mxu0 %v5790_v41  ;;  %v5974_v63 = vor.u32 %v8096_v56, %v5973_v55  ;;  %v5837_v0 = vld [vmem:[#allocation2 + $0xa0] sm:$0xf]  ;;  %v8062_v2 = vld [vmem:[#allocation2 + $0xa4] sm:$0xf0]  ;;  %v5902_v5 = vor.u32 %v8078_v61, %v5901_v60  ;;  %v5765_v6 = vld [vmem:[#allocation2 + $0x10] sm:$0xf] }
  0x63   :  { %907 = vmatpush.bf16.msra.mxu2 %v5918_v45  ;;  %v5965_v3 = vld [vmem:[#allocation2 + $0x1a0] sm:$0xf]  ;;  %v8094_v4 = vld [vmem:[#allocation2 + $0x1a4] sm:$0xf0]  ;;  %v8044_v7 = vld [vmem:[#allocation2 + $0x14] sm:$0xf0]  ;;  %v5838_v11 = vor.u32 %v8062_v2, %v5837_v0 }
  0x64   :  { %v5893_v8 = vld [vmem:[#allocation2 + $0x110] sm:$0xf]  ;;  %v8076_v9 = vld [vmem:[#allocation2 + $0x114] sm:$0xf0]  ;;  %s11487_s21 = sld [smem:[#allocation37_spill]]  ;;  %v5966_v12 = vor.u32 %v8094_v4, %v5965_v3  ;;  %v5766_v16 = vor.u32 %v8044_v7, %v5765_v6  ;;  %v9106_v20 = vmov 0  }
  0x65   :  { %894 = vmatpush.bf16.msra.mxu1 %v5854_v50  ;;  %v5757_v13 = vld [vmem:[#allocation2] sm:$0xf]  ;;  %v8042_v14 = vld [vmem:[#allocation2 + $0x4] sm:$0xf0]  ;;  %v5829_v15 = vld [vmem:[#allocation2 + $0x90] sm:$0xf]  ;;  %8609 = vset.pattern.permute.xlu0 %v9106_v20  ;;  %v5894_v21 = vor.u32 %v8076_v9, %v5893_v8 }
  0x66   :  { %920 = vmatpush.bf16.msra.mxu3 %v5982_v51  ;;  %882 = vmatpush.bf16.msra.mxu0 %v5782_v53  ;;  %v8060_v17 = vld [vmem:[#allocation2 + $0x94] sm:$0xf0]  ;;  %v5957_v18 = vld [vmem:[#allocation2 + $0x190] sm:$0xf]  ;;  %v5885_v22 = vld [vmem:[#allocation2 + $0x100] sm:$0xf]  ;;  %v5758_v33 = vor.u32 %v8042_v14, %v5757_v13 }
  0x67   :  { %908 = vmatpush.bf16.msra.mxu2 %v5910_v57  ;;  %v8092_v19 = vld [vmem:[#allocation2 + $0x194] sm:$0xf0]  ;;  %v8074_v23 = vld [vmem:[#allocation2 + $0x104] sm:$0xf0]  ;;  %v6069_v24 = vld [vmem:[#allocation2 + $0x270] sm:$0xf]  ;;  %v5830_v28 = vor.u32 %v8060_v17, %v5829_v15 }
  0x68   :  { %v8120_v25 = vld [vmem:[#allocation2 + $0x274] sm:$0xf0]  ;;  %v8055_v26 = vld [vmem:[#allocation2 + $0x74] sm:$0xf]  ;;  %v5815_v27 = vld [vmem:[#allocation2 + $0x78] sm:$0xf0]  ;;  %v5958_v29 = vor.u32 %v8092_v19, %v5957_v18  ;;  %v5886_v37 = vor.u32 %v8074_v23, %v5885_v22 }
  0x69   :  { %895 = vmatpush.bf16.msra.mxu1 %v5846_v62  ;;  %v5821_v30 = vld [vmem:[#allocation2 + $0x80] sm:$0xf]  ;;  %v8058_v31 = vld [vmem:[#allocation2 + $0x84] sm:$0xf0]  ;;  %s11488_s12 = sld [smem:[#allocation36_spill]]  ;;  %v6070_v38 = vor.u32 %v8120_v25, %v6069_v24  ;;  %v5818_v42 = vor.u32 %v8055_v26, %v5815_v27  ;;  %vm874_vm0 = vcmask 654336  }
  0x6a   :  { %v1114_v10 = vld [vmem:[%s11487_s21] sm:$0x3]  ;;  %921 = vmatpush.bf16.msra.mxu3 %v5974_v63  ;;  %883 = vmatpush.bf16.msra.mxu0 %v5774_v1  ;;  %v5949_v34 = vld [vmem:[#allocation2 + $0x180] sm:$0xf]  ;;  %v8090_v35 = vld [vmem:[#allocation2 + $0x184] sm:$0xf0]  ;;  %v5822_v47 = vor.u32 %v8058_v31, %v5821_v30 }
  0x6b   :  { %909 = vmatpush.bf16.msra.mxu2 %v5902_v5  ;;  %1118 = vperm.xlu0 %8609, %v1114_v10   ;;  %v6109_v36 = vld [vmem:[#allocation2 + $0x2c0] sm:$0xf]  ;;  %v8130_v39 = vld [vmem:[#allocation2 + $0x2c4] sm:$0xf0]  ;;  %v8071_v40 = vld [vmem:[#allocation2 + $0xf4] sm:$0xf]  ;;  %v5950_v48 = vor.u32 %v8090_v35, %v5949_v34 }
  0x6c   :  { %v5879_v41 = vld [vmem:[#allocation2 + $0xf8] sm:$0xf0]  ;;  %v6061_v43 = vld [vmem:[#allocation2 + $0x260] sm:$0xf]  ;;  %v8118_v44 = vld [vmem:[#allocation2 + $0x264] sm:$0xf0]  ;;  %v6110_v49 = vor.u32 %v8130_v39, %v6109_v36 }
  0x6d   :  { %896 = vmatpush.bf16.msra.mxu1 %v5838_v11  ;;  %v8053_v45 = vld [vmem:[#allocation2 + $0x64] sm:$0xf]  ;;  %v5807_v46 = vld [vmem:[#allocation2 + $0x68] sm:$0xf0]  ;;  %v5882_v50 = vor.u32 %v8071_v40, %v5879_v41  ;;  %v6101_v51 = vld [vmem:[#allocation2 + $0x2b0] sm:$0xf]  ;;  %v6062_v52 = vor.u32 %v8118_v44, %v6061_v43 }
  0x6e   :  { %922 = vmatpush.bf16.msra.mxu3 %v5966_v12  ;;  %884 = vmatpush.bf16.msra.mxu0 %v5766_v16  ;;  %v8128_v53 = vld [vmem:[#allocation2 + $0x2b4] sm:$0xf0]  ;;  %v8069_v54 = vld [vmem:[#allocation2 + $0xe4] sm:$0xf]  ;;  %v5871_v55 = vld [vmem:[#allocation2 + $0xe8] sm:$0xf0]  ;;  %v5810_v56 = vor.u32 %v8053_v45, %v5807_v46 }
  0x6f   :  { %v303_v32 = vld [vmem:[%s11488_s12] sm:$0xff]  ;;  %910 = vmatpush.bf16.msra.mxu2 %v5894_v21  ;;  %v6053_v57 = vld [vmem:[#allocation2 + $0x250] sm:$0xf]  ;;  %v8051_v59 = vld [vmem:[#allocation2 + $0x54] sm:$0xf]  ;;  %v6102_v61 = vor.u32 %v8128_v53, %v6101_v51  ;;  %v5874_v62 = vor.u32 %v8069_v54, %v5871_v55  ;;  %vm1217_vm6 = vcmask 130048  }
  0x70   :  { %397 = vst [vmem:[#allocation1] ss:$4 sm:$0xff] %v303_v32  ;;  %v8116_v58 = vld [vmem:[#allocation2 + $0x254] sm:$0xf0]  ;;  %v5799_v60 = vld [vmem:[#allocation2 + $0x58] sm:$0xf0] }
  0x71   :  { %897 = vmatpush.bf16.msra.mxu1 %v5830_v28  ;;  %v6093_v63 = vld [vmem:[#allocation2 + $0x2a0] sm:$0xf]  ;;  %v8126_v0 = vld [vmem:[#allocation2 + $0x2a4] sm:$0xf0]  ;;  %v6054_v1 = vor.u32 %v8116_v58, %v6053_v57  ;;  %v8067_v3 = vld [vmem:[#allocation2 + $0xd4] sm:$0xf]  ;;  %v5802_v5 = vor.u32 %v8051_v59, %v5799_v60 }
  0x72   :  { %923 = vmatpush.bf16.msra.mxu3 %v5958_v29  ;;  %885 = vmatpush.bf16.msra.mxu0 %v5758_v33  ;;  %v6045_v2 = vld [vmem:[#allocation2 + $0x240] sm:$0xf]  ;;  %v5863_v4 = vld [vmem:[#allocation2 + $0xd8] sm:$0xf0]  ;;  %v8114_v6 = vld [vmem:[#allocation2 + $0x244] sm:$0xf0]  ;;  %v6094_v9 = vor.u32 %v8126_v0, %v6093_v63 }
  0x73   :  { %911 = vmatpush.bf16.msra.mxu2 %v5886_v37  ;;  %v8049_v7 = vld [vmem:[#allocation2 + $0x44] sm:$0xf]  ;;  %v5791_v8 = vld [vmem:[#allocation2 + $0x48] sm:$0xf0]  ;;  %v6085_v12 = vld [vmem:[#allocation2 + $0x290] sm:$0xf]  ;;  %v5866_v13 = vor.u32 %v8067_v3, %v5863_v4  ;;  %v6046_v18 = vor.u32 %v8114_v6, %v6045_v2 }
  0x74   :  { %v8124_v19 = vld [vmem:[#allocation2 + $0x294] sm:$0xf0]  ;;  %v8065_v20 = vld [vmem:[#allocation2 + $0xc4] sm:$0xf]  ;;  %v5855_v21 = vld [vmem:[#allocation2 + $0xc8] sm:$0xf0]  ;;  %v5794_v24 = vor.u32 %v8049_v7, %v5791_v8 }
  0x75   :  { %898 = vmatpush.bf16.msra.mxu1 %v5822_v47  ;;  %v6037_v25 = vld [vmem:[#allocation2 + $0x230] sm:$0xf]  ;;  %v8112_v26 = vld [vmem:[#allocation2 + $0x234] sm:$0xf0]  ;;  %v8047_v27 = vld [vmem:[#allocation2 + $0x34] sm:$0xf]  ;;  %v6086_v29 = vor.u32 %v8124_v19, %v6085_v12  ;;  %v5858_v30 = vor.u32 %v8065_v20, %v5855_v21 }
  0x76   :  { %930 = vmatpush.bf16.msrb.mxu0 %v6070_v38  ;;  %924 = vmatpush.bf16.msra.mxu3 %v5950_v48  ;;  %v5783_v28 = vld [vmem:[#allocation2 + $0x38] sm:$0xf0]  ;;  %v6029_v31 = vld [vmem:[#allocation2 + $0x220] sm:$0xf]  ;;  %v8110_v32 = vld [vmem:[#allocation2 + $0x224] sm:$0xf0]  ;;  %v6038_v34 = vor.u32 %v8112_v26, %v6037_v25 }
  0x77   :  { %956 = vmatpush.bf16.msrb.mxu2 %v5818_v42  ;;  %v400_v10 = vld.sshfl [vmem:[#allocation1] sm:$0xff pattern:$0x73625140]  ;;  %v401_v11 = vld.sshfl [vmem:[#allocation1 + $0x8] sm:$0xff pattern:$0x73625140]  ;;  %v5786_v38 = vor.u32 %v8047_v27, %v5783_v28  ;;  %v6030_v46 = vor.u32 %v8110_v32, %v6029_v31 }
  0x78   :  { %v9284_v14 = vpack.c.bf16 %v400_v10, %v400_v10  ;;  %v9286_v15 = vpack.c.bf16 %v401_v11, %v401_v11  ;;  %v402_v16 = vld.sshfl [vmem:[#allocation1 + $0x10] sm:$0xff pattern:$0x73625140]  ;;  %v403_v17 = vld.sshfl [vmem:[#allocation1 + $0x18] sm:$0xff pattern:$0x73625140] }
  0x79   :  { %946 = vmatpush.bf16.msrb.mxu1 %v6110_v49  ;;  %v9288_v22 = vpack.c.bf16 %v402_v16, %v402_v16  ;;  %v9290_v23 = vpack.c.bf16 %v403_v17, %v403_v17  ;;  %v6077_v33 = vld [vmem:[#allocation2 + $0x280] sm:$0xf]  ;;  %v8122_v35 = vld [vmem:[#allocation2 + $0x284] sm:$0xf0]  ;;  %v8063_v36 = vld [vmem:[#allocation2 + $0xb4] sm:$0xf] }
  0x7a   :  { %969 = vmatpush.bf16.msrb.mxu3 %v5882_v50  ;;  %931 = vmatpush.bf16.msrb.mxu0 %v6062_v52  ;;  %v5847_v37 = vld [vmem:[#allocation2 + $0xb8] sm:$0xf0]  ;;  %v8087_v39 = vld [vmem:[#allocation2 + $0x174] sm:$0xf]  ;;  %v304_v41 = vld [vmem:[%s11488_s12 + $0x8] sm:$0xf]  ;;  %v6078_v44 = vor.u32 %v8122_v35, %v6077_v33 }
  0x7b   :  { %957 = vmatpush.bf16.msrb.mxu2 %v5810_v56  ;;  %886 = vmatmul.bf16.vlgmr.msra.gmra.mxu0 %v9284_v14  ;;  %v5943_v40 = vld [vmem:[#allocation2 + $0x178] sm:$0xf0]  ;;  %v8045_v42 = vld [vmem:[#allocation2 + $0x24] sm:$0xf]  ;;  %v5775_v43 = vld [vmem:[#allocation2 + $0x28] sm:$0xf0]  ;;  %v5850_v45 = vor.u32 %v8063_v36, %v5847_v37 }
  0x7c   :  { %899 = vmatmul.bf16.vlgmr.msra.gmra.mxu1 %v9286_v15  ;;  %912 = vmatmul.bf16.vlgmr.msra.gmra.mxu2 %v9288_v22  ;;  %399 = vst [vmem:[#allocation1 + $0x20] ss:$4 sm:$0xff] %v304_v41  ;;  %v5946_v47 = vor.u32 %v8087_v39, %v5943_v40  ;;  %v6021_v48 = vld [vmem:[#allocation2 + $0x210] sm:$0xf]  ;;  %v8061_v49 = vld [vmem:[#allocation2 + $0xa4] sm:$0xf]  ;;  %v5778_v51 = vor.u32 %v8045_v42, %v5775_v43 }
  0x7d   :  { %947 = vmatpush.bf16.msrb.mxu1 %v6102_v61  ;;  %925 = vmatmul.bf16.vlgmr.msra.gmra.mxu3 %v9290_v23  ;;  %v5839_v50 = vld [vmem:[#allocation2 + $0xa8] sm:$0xf0]  ;;  %v8108_v52 = vld [vmem:[#allocation2 + $0x214] sm:$0xf0]  ;;  %v8085_v53 = vld [vmem:[#allocation2 + $0x164] sm:$0xf] }
  0x7e   :  { %970 = vmatpush.bf16.msrb.mxu3 %v5874_v62  ;;  %932 = vmatpush.bf16.msrb.mxu0 %v6054_v1  ;;  %v5935_v54 = vld [vmem:[#allocation2 + $0x168] sm:$0xf0]  ;;  %v8043_v55 = vld [vmem:[#allocation2 + $0x14] sm:$0xf]  ;;  %v5767_v56 = vld [vmem:[#allocation2 + $0x18] sm:$0xf0]  ;;  %v5842_v57 = vor.u32 %v8061_v49, %v5839_v50  ;;  %v6022_v60 = vor.u32 %v8108_v52, %v6021_v48 }
  0x7f   :  { %958 = vmatpush.bf16.msrb.mxu2 %v5802_v5  ;;  %v6013_v58 = vld [vmem:[#allocation2 + $0x200] sm:$0xf]  ;;  %v8106_v59 = vld [vmem:[#allocation2 + $0x204] sm:$0xf0]  ;;  %v5938_v61 = vor.u32 %v8085_v53, %v5935_v54  ;;  %v8041_v62 = vld [vmem:[#allocation2 + $0x4] sm:$0xf]  ;;  %v5770_v4 = vor.u32 %v8043_v55, %v5767_v56 }
  0x80   :  { %v5759_v63 = vld [vmem:[#allocation2 + $0x8] sm:$0xf0]  ;;  %v8103_v0 = vld [vmem:[#allocation2 + $0x1f4] sm:$0xf]  ;;  %v5831_v2 = vld [vmem:[#allocation2 + $0x98] sm:$0xf0]  ;;  %v6014_v16 = vor.u32 %v8106_v59, %v6013_v58 }
  0x81   :  { %948 = vmatpush.bf16.msrb.mxu1 %v6094_v9  ;;  %v8059_v1 = vld [vmem:[#allocation2 + $0x94] sm:$0xf]  ;;  %v5927_v5 = vld [vmem:[#allocation2 + $0x158] sm:$0xf0]  ;;  %v8057_v12 = vld [vmem:[#allocation2 + $0x84] sm:$0xf]  ;;  %v5762_v20 = vor.u32 %v8041_v62, %v5759_v63 }
  0x82   :  { %971 = vmatpush.bf16.msrb.mxu3 %v5866_v13  ;;  %933 = vmatpush.bf16.msrb.mxu0 %v6046_v18  ;;  %v8083_v3 = vld [vmem:[#allocation2 + $0x154] sm:$0xf]  ;;  %v6007_v7 = vld [vmem:[#allocation2 + $0x1f8] sm:$0xf0]  ;;  %v5834_v11 = vor.u32 %v8059_v1, %v5831_v2  ;;  %v5823_v13 = vld [vmem:[#allocation2 + $0x88] sm:$0xf0] }
  0x83   :  { %959 = vmatpush.bf16.msrb.mxu2 %v5794_v24  ;;  %v405_v6 = vld.sshfl [vmem:[#allocation1 + $0x28] sm:$0xff pattern:$0x73625140]  ;;  %v8119_v8 = vld [vmem:[#allocation2 + $0x274] sm:$0xf]  ;;  %v5930_v18 = vor.u32 %v8083_v3, %v5927_v5  ;;  %v6010_v21 = vor.u32 %v8103_v0, %v6007_v7  ;;  %v5826_v33 = vor.u32 %v8057_v12, %v5823_v13 }
  0x84   :  { %v6071_v9 = vld [vmem:[#allocation2 + $0x278] sm:$0xf0]  ;;  %v9299_v10 = vpack.c.bf16 %v405_v6, %v405_v6  ;;  %v8081_v19 = vld [vmem:[#allocation2 + $0x144] sm:$0xf]  ;;  %v5919_v24 = vld [vmem:[#allocation2 + $0x148] sm:$0xf0] }
  0x85   :  { %949 = vmatpush.bf16.msrb.mxu1 %v6086_v29  ;;  %v404_v17 = vld.sshfl [vmem:[#allocation1 + $0x20] sm:$0xff pattern:$0x73625140]  ;;  %v8129_v25 = vld [vmem:[#allocation2 + $0x2c4] sm:$0xf]  ;;  %v6074_v27 = vor.u32 %v8119_v8, %v6071_v9 }
  0x86   :  { %972 = vmatpush.bf16.msrb.mxu3 %v5858_v30  ;;  %934 = vmatpush.bf16.msrb.mxu0 %v6038_v34  ;;  %v6111_v26 = vld [vmem:[#allocation2 + $0x2c8] sm:$0xf0]  ;;  %v8101_v28 = vld [vmem:[#allocation2 + $0x1e4] sm:$0xf]  ;;  %v9303_v30 = vpack.c.bf16 %v404_v17, %v404_v17  ;;  %v5922_v34 = vor.u32 %v8081_v19, %v5919_v24  ;;  %v8079_v36 = vld [vmem:[#allocation2 + $0x134] sm:$0xf] }
  0x87   :  { %960 = vmatpush.bf16.msrb.mxu2 %v5786_v38  ;;  %v5999_v29 = vld [vmem:[#allocation2 + $0x1e8] sm:$0xf0]  ;;  %v8117_v31 = vld [vmem:[#allocation2 + $0x264] sm:$0xf]  ;;  %v6114_v35 = vor.u32 %v8129_v25, %v6111_v26  ;;  %v5911_v38 = vld [vmem:[#allocation2 + $0x138] sm:$0xf0] }
  0x88   :  { %v6063_v32 = vld [vmem:[#allocation2 + $0x268] sm:$0xf0]  ;;  %v6002_v37 = vor.u32 %v8101_v28, %v5999_v29  ;;  %v8127_v39 = vld [vmem:[#allocation2 + $0x2b4] sm:$0xf]  ;;  %v6103_v40 = vld [vmem:[#allocation2 + $0x2b8] sm:$0xf0] }
  0x89   :  { %950 = vmatpush.bf16.msrb.mxu1 %v6078_v44  ;;  %v6066_v41 = vor.u32 %v8117_v31, %v6063_v32  ;;  %v8099_v42 = vld [vmem:[#allocation2 + $0x1d4] sm:$0xf]  ;;  %v5991_v43 = vld [vmem:[#allocation2 + $0x1d8] sm:$0xf0]  ;;  %v8097_v48 = vld [vmem:[#allocation2 + $0x1c4] sm:$0xf] }
  0x8a   :  { %973 = vmatpush.bf16.msrb.mxu3 %v5850_v45  ;;  %935 = vmatpush.bf16.msrb.mxu0 %v6030_v46  ;;  %v8115_v44 = vld [vmem:[#allocation2 + $0x254] sm:$0xf]  ;;  %v6055_v45 = vld [vmem:[#allocation2 + $0x258] sm:$0xf0]  ;;  %v5914_v46 = vor.u32 %v8079_v36, %v5911_v38  ;;  %v8077_v49 = vld [vmem:[#allocation2 + $0x124] sm:$0xf]  ;;  %v5994_v52 = vor.u32 %v8099_v42, %v5991_v43 }
  0x8b   :  { %961 = vmatpush.bf16.msrb.mxu2 %v5778_v51  ;;  %v5903_v50 = vld [vmem:[#allocation2 + $0x128] sm:$0xf0]  ;;  %v8125_v51 = vld [vmem:[#allocation2 + $0x2a4] sm:$0xf]  ;;  %v6058_v54 = vor.u32 %v8115_v44, %v6055_v45  ;;  %v5895_v62 = vld [vmem:[#allocation2 + $0x118] sm:$0xf0] }
  0x8c   :  { %6115 = vmatmul.msk.bf16.vlgmr.msrb.gmra.mxu1 %vm874_vm0, %v9299_v10  ;;  %v6095_v53 = vld [vmem:[#allocation2 + $0x2a8] sm:$0xf0]  ;;  %v8113_v56 = vld [vmem:[#allocation2 + $0x244] sm:$0xf]  ;;  %v5906_v58 = vor.u32 %v8077_v49, %v5903_v50  ;;  %v8123_v63 = vld [vmem:[#allocation2 + $0x294] sm:$0xf] }
  0x8d   :  { %982 = vmatpush.bf16.msra.mxu1 %v5946_v47  ;;  %v6106_v47 = vor.u32 %v8127_v39, %v6103_v40  ;;  %v5983_v55 = vld [vmem:[#allocation2 + $0x1c8] sm:$0xf0]  ;;  %v6098_v59 = vor.u32 %v8125_v51, %v6095_v53  ;;  %v6087_v0 = vld [vmem:[#allocation2 + $0x298] sm:$0xf0]  ;;  %v8095_v1 = vld [vmem:[#allocation2 + $0x1b4] sm:$0xf] }
  0x8e   :  { %974 = vmatpush.bf16.msrb.mxu3 %v5842_v57  ;;  %936 = vmatpush.bf16.msrb.mxu0 %v6022_v60  ;;  %v6047_v57 = vld [vmem:[#allocation2 + $0x248] sm:$0xf0]  ;;  %v8075_v60 = vld [vmem:[#allocation2 + $0x114] sm:$0xf]  ;;  %v5975_v2 = vld [vmem:[#allocation2 + $0x1b8] sm:$0xf0]  ;;  %v6090_v5 = vor.u32 %v8123_v63, %v6087_v0 }
  0x8f   :  { %962 = vmatpush.bf16.msrb.mxu2 %v5770_v4  ;;  %v8111_v3 = vld [vmem:[#allocation2 + $0x234] sm:$0xf]  ;;  %v6039_v4 = vld [vmem:[#allocation2 + $0x238] sm:$0xf0]  ;;  %v8073_v6 = vld [vmem:[#allocation2 + $0x104] sm:$0xf]  ;;  %v5978_v7 = vor.u32 %v8095_v1, %v5975_v2 }
  0x90   :  { %v5887_v8 = vld [vmem:[#allocation2 + $0x108] sm:$0xf0]  ;;  %v8121_v9 = vld [vmem:[#allocation2 + $0x284] sm:$0xf]  ;;  %v6042_v12 = vor.u32 %v8111_v3, %v6039_v4  ;;  %v8091_v25 = vld [vmem:[#allocation2 + $0x194] sm:$0xf] }
  0x91   :  { %983 = vmatpush.bf16.msra.mxu1 %v5938_v61  ;;  %v5986_v61 = vor.u32 %v8097_v48, %v5983_v55  ;;  %v8093_v13 = vld [vmem:[#allocation2 + $0x1a4] sm:$0xf]  ;;  %v5890_v19 = vor.u32 %v8073_v6, %v5887_v8  ;;  %v5959_v26 = vld [vmem:[#allocation2 + $0x198] sm:$0xf0]  ;;  %v8610_v38 = vld [vmem:[#allocation6] ss:$0 sm:$0xff] }
  0x92   :  { %975 = vmatpush.bf16.msrb.mxu3 %v5834_v11  ;;  %937 = vmatpush.bf16.msrb.mxu0 %v6014_v16  ;;  %v6079_v11 = vld [vmem:[#allocation2 + $0x288] sm:$0xf0]  ;;  %v8109_v17 = vld [vmem:[#allocation2 + $0x224] sm:$0xf]  ;;  %v6023_v28 = vld [vmem:[#allocation2 + $0x218] sm:$0xf0]  ;;  %v5962_v29 = vor.u32 %v8091_v25, %v5959_v26 }
  0x93   :  { %963 = vmatpush.bf16.msrb.mxu2 %v5762_v20  ;;  %v5967_v16 = vld [vmem:[#allocation2 + $0x1a8] sm:$0xf0]  ;;  %v6082_v20 = vor.u32 %v8121_v9, %v6079_v11  ;;  %v8089_v32 = vld [vmem:[#allocation2 + $0x184] sm:$0xf]  ;;  %v8611_v39 = vld [vmem:[#allocation7] ss:$0 sm:$0xff] }
  0x94   :  { %v9319_v53 = vld [vmem:[#allocation4] sm:$0x3]  ;;  %v8164_v1 = vld [vmem:[#allocation9 + $0x104] sm:$0xf0]  ;;  %v8163_v2 = vld [vmem:[#allocation9 + $0x104] sm:$0xf] }
  0x95   :  { %984 = vmatpush.bf16.msra.mxu1 %v5930_v18  ;;  %938 = vmatmul.bf16.vlgmr.msrb.gmra.mxu0 %v9303_v30  ;;  %v6031_v18 = vld [vmem:[#allocation2 + $0x228] sm:$0xf0]  ;;  %v6191_v25 = vld [vmem:[#allocation9 + $0x70] sm:$0xf] }
  0x96   :  { %995 = vmatpush.bf16.msra.mxu0 %v6010_v21  ;;  %976 = vmatpush.bf16.msrb.mxu3 %v5826_v33  ;;  %v5970_v21 = vor.u32 %v8093_v13, %v5967_v16  ;;  %v6034_v24 = vor.u32 %v8109_v17, %v6031_v18  ;;  %v5951_v33 = vld [vmem:[#allocation2 + $0x188] sm:$0xf0] }
  0x97   :  { %1008 = vmatpush.bf16.msra.mxu2 %v6074_v27  ;;  %v8107_v27 = vld [vmem:[#allocation2 + $0x214] sm:$0xf]  ;;  %v5954_v36 = vor.u32 %v8089_v32, %v5951_v33  ;;  %v8146_v26 = vld [vmem:[#allocation9 + $0x74] sm:$0xf0] }
  0x98   :  { %964 = vmatmul.bf16.vlgmr.msrb.gmra.mxu2 %v9284_v14  ;;  %v6050_v14 = vor.u32 %v8113_v56, %v6047_v57  ;;  %v6026_v31 = vor.u32 %v8107_v27, %v6023_v28  ;;  %v8145_v27 = vld [vmem:[#allocation9 + $0x74] sm:$0xf] }
  0x99   :  { %985 = vmatpush.bf16.msra.mxu1 %v5922_v34  ;;  %977 = vmatmul.bf16.vlgmr.msrb.gmra.mxu3 %v9286_v15  ;;  %v5898_v15 = vor.u32 %v8075_v60, %v5895_v62  ;;  %v8105_v34 = vld [vmem:[#allocation2 + $0x204] sm:$0xf] }
  0x9a   :  { %1024 = vmatpush.bf16.msra.mxu3 %v6114_v35  ;;  %996 = vmatpush.bf16.msra.mxu0 %v6002_v37  ;;  %v6015_v35 = vld [vmem:[#allocation2 + $0x208] sm:$0xf0] }
  0x9b   :  { %1009 = vmatpush.bf16.msra.mxu2 %v6066_v41  ;;  %v6018_v37 = vor.u32 %v8105_v34, %v6015_v35 }
  0x9d   :  { %986 = vmatpush.bf16.msra.mxu1 %v5914_v46 }
  0x9e   :  { %1025 = vmatpush.bf16.msra.mxu3 %v6106_v47  ;;  %997 = vmatpush.bf16.msra.mxu0 %v5994_v52 }
  0x9f   :  { %1010 = vmatpush.bf16.msra.mxu2 %v6058_v54 }
  0xa1   :  { %987 = vmatpush.bf16.msra.mxu1 %v5906_v58 }
  0xa2   :  { %1026 = vmatpush.bf16.msra.mxu3 %v6098_v59  ;;  %998 = vmatpush.bf16.msra.mxu0 %v5986_v61  ;;  %v420_v59 = vperm.slane %v9319_v53, 0 }
  0xa3   :  { %1011 = vmatpush.bf16.msra.mxu2 %v6050_v14  ;;  %v6125_v14 = vld [vmem:[#allocation9 + $0x100] sm:$0xf] }
  0xa5   :  { %988 = vmatpush.bf16.msra.mxu1 %v5898_v15  ;;  %v6126_v15 = vor.u32 %v8164_v1, %v6125_v14 }
  0xa6   :  { %1027 = vmatpush.bf16.msra.mxu3 %v6090_v5  ;;  %999 = vmatpush.bf16.msra.mxu0 %v5978_v7  ;;  %v6127_v5 = vld [vmem:[#allocation9 + $0x108] sm:$0xf0] }
  0xa7   :  { %1012 = vmatpush.bf16.msra.mxu2 %v6042_v12  ;;  %v6130_v8 = vor.u32 %v8163_v2, %v6127_v5  ;;  %v6159_v2 = vld [vmem:[#allocation9 + $0x30] sm:$0xf]  ;;  %v6161_v5 = vld [vmem:[#allocation9 + $0x38] sm:$0xf0] }
  0xa9   :  { %989 = vmatpush.bf16.msra.mxu1 %v5890_v19 }
  0xaa   :  { %1028 = vmatpush.bf16.msra.mxu3 %v6082_v20  ;;  %1000 = vmatpush.bf16.msra.mxu0 %v5970_v21 }
  0xab   :  { %1013 = vmatpush.bf16.msra.mxu2 %v6034_v24 }
  0xac   :  { %990 = vmatmul.bf16.vlgmr.msra.gmra.mxu1 %v9288_v22 }
  0xad   :  { %6116 = vmatmul.msk.bf16.vlgmr.msra.gmra.mxu3 %vm874_vm0, %v9299_v10  ;;  %1228 = vmatpush.bf16.msrb.mxu1 %v6126_v15 }
  0xae   :  { %1001 = vmatpush.bf16.msra.mxu0 %v5962_v29  ;;  %1241 = vmatpush.bf16.msrb.mxu3 %v6130_v8  ;;  %v6192_v29 = vor.u32 %v8146_v26, %v6191_v25  ;;  %v8134_v25 = vld [vmem:[#allocation9 + $0x14] sm:$0xf0] }
  0xaf   :  { %1014 = vmatpush.bf16.msra.mxu2 %v6026_v31  ;;  %v6193_v31 = vld [vmem:[#allocation9 + $0x78] sm:$0xf0] }
  0xb0   :  { %v6196_v33 = vor.u32 %v8145_v27, %v6193_v31 }
  0xb2   :  { %1002 = vmatpush.bf16.msra.mxu0 %v5954_v36  ;;  %1433 = vmatpush.bf16.msra.mxu1 %v6196_v33  ;;  %v6183_v36 = vld [vmem:[#allocation9 + $0x60] sm:$0xf] }
  0xb3   :  { %1015 = vmatpush.bf16.msra.mxu2 %v6018_v37  ;;  %v8144_v37 = vld [vmem:[#allocation9 + $0x64] sm:$0xf0] }
  0xb5   :  { %1003 = vmatmul.bf16.vlgmr.msra.gmra.mxu0 %v9290_v23 }
  0xb6   :  { %1016 = vmatmul.bf16.vlgmr.msra.gmra.mxu2 %v9303_v30  ;;  %1407 = vmatpush.bf16.msrb.mxu0 %v6192_v29  ;;  %v6145_v29 = vld [vmem:[#allocation9 + $0x18] sm:$0xf0] }
  0xdd   :  { %v1119_v40 = vpop.permute.xlu0 %1118 }
  0xde   :  { %v1124_v41 = vmul.f32 %v8610_v38, %v1119_v40  ;;  %v8143_v40 = vld [vmem:[#allocation9 + $0x64] sm:$0xf] }
  0xe0   :  { %v9313_v22 = vadd.f32 %v8611_v39, %v1124_v41  ;;  %v6184_v39 = vor.u32 %v8144_v37, %v6183_v36  ;;  %v6185_v41 = vld [vmem:[#allocation9 + $0x68] sm:$0xf0]  ;;  %v6135_v36 = vld [vmem:[#allocation9] sm:$0xf]  ;;  %v8132_v37 = vld [vmem:[#allocation9 + $0x4] sm:$0xf0] }
  0xe2   :  { %v9316_v10 = vmul.f32 0.70710677, %v9313_v22  ;;  %1408 = vmatpush.bf16.msrb.mxu0 %v6184_v39 }
  0xe4   :  { %v1131_v42 = vand.u32 2147483647, %v9316_v10  ;;  %vm1164_vm5 = vcmp.ge.f32.partialorder %v9316_v10, 0.0  ;;  %v8142_v10 = vld [vmem:[#allocation9 + $0x54] sm:$0xf0] }
  0xe6   :  { %v1132_v43 = vmul.f32 0.3275911, %v1131_v42  ;;  %v1158_v51 = vsub.f32 0.0, %v1131_v42 }
  0xe8   :  { %v1133_v44 = vadd.f32 1.0, %v1132_v43  ;;  %v1159_v58 = vmul.f32 %v1158_v51, %v1131_v42  ;;  %v6188_v43 = vor.u32 %v8143_v40, %v6185_v41  ;;  %v6136_v40 = vor.u32 %v8132_v37, %v6135_v36  ;;  %v6137_v41 = vld [vmem:[#allocation9 + $0x8] sm:$0xf0] }
  0xea   :  { %8614 = vrcp.f32 %v1133_v44  ;;  %v1145_v47 = vand.u32 2147483648, %v1133_v44  ;;  %vm1139_vm1 = vweird.f32 %v1133_v44  ;;  %v1143_v30 = vand.u32 2147483647, %v1133_v44  ;;  %1434 = vmatpush.bf16.msra.mxu1 %v6188_v43 }
  0xeb   :  { %v1160_v62 = vmul.f32 1.442695, %v1159_v58 }
  0xec   :  { %v1146_v49 = vor.u32 1.1754944e-38, %v1145_v47  ;;  %vm1144_vm4 = vcmp.eq.f32.partialorder %v1143_v30, 8.507059e+37 }
  0xed   :  { %8616 = vpow2.f32 %v1160_v62  ;;  %v8139_v62 = vld [vmem:[#allocation9 + $0x44] sm:$0xf] }
  0xf0   :  { %v8615_v45 = vpop.eup %8614 }
  0xf1   :  { %v1135_v46 = vmul.f32 %v8615_v45, %v1133_v44  ;;  %vm1140_vm2 = vweird.f32 %v8615_v45  ;;  %v1167_v44 = vmul.f32 0.5, %v9313_v22 }
  0xf2   :  { %vm1141_vm3 = vmor %vm1139_vm1, %vm1140_vm2 }
  0xf3   :  { %v1136_v23 = vsub.f32 1.0, %v1135_v46  ;;  %v8617_v19 = vpop.eup %8616 }
  0xf5   :  { %v1137_v48 = vmul.f32 %v8615_v45, %v1136_v23 }
  0xf7   :  { %v1138_v50 = vadd.f32 %v8615_v45, %v1137_v48  ;;  %v6175_v48 = vld [vmem:[#allocation9 + $0x50] sm:$0xf] }
  0xf8   :  { %v887_v54 = vpop.f32.mrf.mxu0 }
  0xf9   :  { %v1142_v52 = vsel %vm1141_vm3, %v8615_v45, %v1138_v50  ;;  %v900_v56 = vpop.f32.mrf.mxu1  ;;  %v888_v63 = vadd.f32 %v887_v54, %v420_v59  ;;  %v6177_v50 = vld [vmem:[#allocation9 + $0x58] sm:$0xf0]  ;;  %v6176_v54 = vor.u32 %v8142_v10, %v6175_v48 }
  0xfa   :  { %v1147_v55 = vsel %vm1144_vm4, %v1146_v49, %v1142_v52  ;;  %v8141_v49 = vld [vmem:[#allocation9 + $0x54] sm:$0xf] }
  0xfb   :  { %v1149_v57 = vmul.f32 1.0614054, %v1147_v55  ;;  %v901_v11 = vadd.f32 %v900_v56, %v888_v63  ;;  %v6180_v56 = vor.u32 %v8141_v49, %v6177_v50  ;;  %1409 = vmatpush.bf16.msrb.mxu0 %v6176_v54  ;;  %v6169_v63 = vld [vmem:[#allocation9 + $0x48] sm:$0xf0]  ;;  %v8162_v54 = vld [vmem:[#allocation9 + $0xf4] sm:$0xf0] }
  0xfc   :  { %v6172_v1 = vor.u32 %v8139_v62, %v6169_v63 }
  0xfd   :  { %v6121_v60 = vadd.f32 -1.4531521, %v1149_v57  ;;  %1435 = vmatpush.bf16.msra.mxu1 %v6180_v56 }
  0xff   :  { %v1151_v61 = vmul.f32 %v6121_v60, %v1147_v55  ;;  %v913_v0 = vpop.f32.mrf.mxu2  ;;  %v6167_v60 = vld [vmem:[#allocation9 + $0x40] sm:$0xf] }
 0x100   :  { %v889_v4 = vpop.f32.mrf.mxu0  ;;  %v926_v7 = vpop.f32.mrf.mxu3  ;;  %v914_v16 = vadd.f32 %v913_v0, %v901_v11  ;;  %v8136_v11 = vld [vmem:[#allocation9 + $0x24] sm:$0xf0] }
 0x101   :  { %v1152_v3 = vadd.f32 1.4214138, %v1151_v61  ;;  %v902_v6 = vpop.f32.mrf.mxu1  ;;  %v8140_v61 = vld [vmem:[#allocation9 + $0x44] sm:$0xf0]  ;;  %1436 = vmatpush.bf16.msra.mxu1 %v6172_v1  ;;  %v8137_v4 = vld [vmem:[#allocation9 + $0x34] sm:$0xf] }
 0x102   :  { %v927_v28 = vadd.f32 %v926_v7, %v914_v16  ;;  %v6168_v14 = vor.u32 %v8140_v61, %v6167_v60  ;;  %v6164_v7 = vor.u32 %v8137_v4, %v6161_v5  ;;  %v6153_v16 = vld [vmem:[#allocation9 + $0x28] sm:$0xf0]  ;;  %v8160_v1 = vld [vmem:[#allocation9 + $0xe4] sm:$0xf0]  ;;  %v8159_v5 = vld [vmem:[#allocation9 + $0xe4] sm:$0xf] }
 0x103   :  { %v1153_v9 = vmul.f32 %v1152_v3, %v1147_v55  ;;  %v8138_v3 = vld [vmem:[#allocation9 + $0x34] sm:$0xf0] }
 0x104   :  { %1410 = vmatpush.bf16.msrb.mxu0 %v6168_v14  ;;  %v6160_v15 = vor.u32 %v8138_v3, %v6159_v2  ;;  %v6247_v14 = vld [vmem:[#allocation9 + $0xe0] sm:$0xf] }
 0x105   :  { %v6122_v12 = vadd.f32 -0.28449672, %v1153_v9  ;;  %v6151_v9 = vld [vmem:[#allocation9 + $0x20] sm:$0xf]  ;;  %1437 = vmatpush.bf16.msra.mxu1 %v6164_v7 }
 0x107   :  { %v1155_v13 = vmul.f32 %v6122_v12, %v1147_v55  ;;  %v915_v17 = vpop.f32.mrf.mxu2  ;;  %v8135_v12 = vld [vmem:[#allocation9 + $0x24] sm:$0xf] }
 0x108   :  { %v928_v21 = vpop.f32.mrf.mxu3  ;;  %1411 = vmatpush.bf16.msrb.mxu0 %v6160_v15  ;;  %v6248_v15 = vor.u32 %v8160_v1, %v6247_v14 }
 0x109   :  { %v1156_v18 = vadd.f32 0.2548296, %v1155_v13  ;;  %v952_v20 = vpop.f32.mrf.mxu1  ;;  %v6152_v13 = vor.u32 %v8136_v11, %v6151_v9  ;;  %v421_v21 = vperm.slane %v9319_v53, 1  ;;  %v6239_v11 = vld [vmem:[#allocation9 + $0xd0] sm:$0xf] }
 0x10b   :  { %v1157_v24 = vmul.f32 %v1156_v18, %v1147_v55  ;;  %v6156_v18 = vor.u32 %v8135_v12, %v6153_v16  ;;  %v8158_v12 = vld [vmem:[#allocation9 + $0xd4] sm:$0xf0] }
 0x10c   :  { %1412 = vmatpush.bf16.msrb.mxu0 %v6152_v13  ;;  %v6240_v16 = vor.u32 %v8158_v12, %v6239_v11 }
 0x10d   :  { %v1162_v32 = vmul.f32 %v8617_v19, %v1157_v24  ;;  %v6143_v24 = vld [vmem:[#allocation9 + $0x10] sm:$0xf]  ;;  %1438 = vmatpush.bf16.msra.mxu1 %v6156_v18 }
 0x10e   :  { %v6144_v27 = vor.u32 %v8134_v25, %v6143_v24 }
 0x10f   :  { %v1163_v34 = vsub.f32 1.0, %v1162_v32 }
 0x110   :  { %1413 = vmatpush.bf16.msrb.mxu0 %v6144_v27  ;;  %v8156_v27 = vld [vmem:[#allocation9 + $0xc4] sm:$0xf0] }
 0x111   :  { %v1165_v42 = vsub.f32 0.0, %v1163_v34  ;;  %v954_v46 = vpop.f32.mrf.mxu1 }
 0x112   :  { %v939_v35 = vpop.f32.mrf.mxu0 }
 0x113   :  { %v940_v38 = vadd.f32 %v939_v35, %v927_v28  ;;  %v1166_v47 = vsel %vm1164_vm5, %v1163_v34, %v1165_v42  ;;  %v8133_v28 = vld [vmem:[#allocation9 + $0x14] sm:$0xf] }
 0x114   :  { %v1168_v23 = vadd.f32 1.0, %v1166_v47  ;;  %v6148_v32 = vor.u32 %v8133_v28, %v6145_v29  ;;  %1414 = vmatpush.bf16.msrb.mxu0 %v6136_v40  ;;  %v6225_v40 = vld [vmem:[#allocation9 + $0xb8] sm:$0xf0] }
 0x115   :  { %v9324_v45 = vadd.f32 %v952_v20, %v940_v38  ;;  %v8131_v38 = vld [vmem:[#allocation9 + $0x4] sm:$0xf] }
 0x116   :  { %v1169_v51 = vmul.f32 %v1168_v23, %v1167_v44  ;;  %1439 = vmatpush.bf16.msra.mxu1 %v6148_v32  ;;  %v6140_v43 = vor.u32 %v8131_v38, %v6137_v41  ;;  %v6223_v38 = vld [vmem:[#allocation9 + $0xb0] sm:$0xf] }
 0x117   :  { %v9327_v30 = vmul.f32 0.70710677, %v9324_v45 }
 0x118   :  { %v1206_v57 = vpack.c.bf16 %v1169_v51, %v1169_v51  ;;  %v6255_v51 = vld [vmem:[#allocation9 + $0xf0] sm:$0xf] }
 0x119   :  { %v9330_v52 = vand.u32 2147483647, %v9327_v30  ;;  %v6256_v56 = vor.u32 %v8162_v54, %v6255_v51  ;;  %vm1102_vm11 = vcmp.ge.f32.partialorder %v9327_v30, 0.0  ;;  %v1108_v54 = vmul.f32 0.5, %v9324_v45  ;;  %v8148_v45 = vld [vmem:[#allocation9 + $0x84] sm:$0xf0] }
 0x11a   :  { %v941_v55 = vpop.f32.mrf.mxu0  ;;  %6131 = vmatmul.msk.bf16.vlgmr.msrb.gmra.mxu1 %vm1217_vm6, %v1206_v57  ;;  %6132 = vmatmul.msk.bf16.vlgmr.msrb.gmra.mxu3 %vm1217_vm6, %v1206_v57  ;;  %v8161_v57 = vld [vmem:[#allocation9 + $0xf4] sm:$0xf] }
 0x11b   :  { %v965_v22 = vpop.f32.mrf.mxu2  ;;  %v1038_v58 = vmul.f32 0.3275911, %v9330_v52  ;;  %v1090_v23 = vsub.f32 0.0, %v9330_v52  ;;  %1440 = vmatpush.bf16.msra.mxu1 %v6140_v43  ;;  %1420 = vmatpush.bf16.msrb.mxu2 %v6256_v56  ;;  %v6207_v56 = vld [vmem:[#allocation9 + $0x90] sm:$0xf] }
 0x11c   :  { %v9333_v59 = vpop.f32.mrf.mxu3  ;;  %v966_v35 = vadd.f32 %v965_v22, %v421_v21 }
 0x11d   :  { %v1040_v0 = vadd.f32 1.0, %v1038_v58  ;;  %v1092_v22 = vmul.f32 %v1090_v23, %v9330_v52  ;;  %v6257_v58 = vld [vmem:[#allocation9 + $0xf8] sm:$0xf0]  ;;  %v6249_v52 = vld [vmem:[#allocation9 + $0xe8] sm:$0xf0] }
 0x11e   :  { %v979_v48 = vadd.f32 %v9333_v59, %v966_v35  ;;  %v6260_v62 = vor.u32 %v8161_v57, %v6257_v58  ;;  %v6252_v7 = vor.u32 %v8159_v5, %v6249_v52  ;;  %v8152_v23 = vld [vmem:[#allocation9 + $0xa4] sm:$0xf0]  ;;  %v8150_v57 = vld [vmem:[#allocation9 + $0x94] sm:$0xf0]  ;;  %v8149_v58 = vld [vmem:[#allocation9 + $0x94] sm:$0xf] }
 0x11f   :  { %8618 = vrcp.f32 %v1040_v0  ;;  %v1053_v31 = vand.u32 2147483648, %v1040_v0  ;;  %v1051_v34 = vand.u32 2147483647, %v1040_v0  ;;  %vm1047_vm8 = vweird.f32 %v1040_v0  ;;  %1421 = vmatpush.bf16.msrb.mxu2 %v6248_v15  ;;  %v6201_v15 = vld [vmem:[#allocation9 + $0x88] sm:$0xf0] }
 0x120   :  { %1446 = vmatpush.bf16.msra.mxu3 %v6260_v62  ;;  %v1094_v2 = vmul.f32 1.442695, %v1092_v22  ;;  %v6209_v62 = vld [vmem:[#allocation9 + $0x98] sm:$0xf0] }
 0x121   :  { %v1054_v42 = vor.u32 1.1754944e-38, %v1053_v31  ;;  %vm1052_vm10 = vcmp.eq.f32.partialorder %v1051_v34, 8.507059e+37  ;;  %v8155_v31 = vld [vmem:[#allocation9 + $0xc4] sm:$0xf] }
 0x122   :  { %8620 = vpow2.f32 %v1094_v2  ;;  %v6199_v2 = vld [vmem:[#allocation9 + $0x80] sm:$0xf] }
 0x123   :  { %v967_v6 = vpop.f32.mrf.mxu2  ;;  %1422 = vmatpush.bf16.msrb.mxu2 %v6240_v16 }
 0x124   :  { %v980_v8 = vpop.f32.mrf.mxu3  ;;  %1447 = vmatpush.bf16.msra.mxu3 %v6252_v7 }
 0x125   :  { %v8619_v17 = vpop.eup %8618 }
 0x126   :  { %v1043_v19 = vmul.f32 %v8619_v17, %v1040_v0  ;;  %vm1048_vm7 = vweird.f32 %v8619_v17 }
 0x127   :  { %vm1049_vm9 = vmor %vm1047_vm8, %vm1048_vm7 }
 0x128   :  { %v1044_v26 = vsub.f32 1.0, %v1043_v19  ;;  %v6241_v19 = vld [vmem:[#allocation9 + $0xd8] sm:$0xf0]  ;;  %v8621_v34 = vpop.eup %8620 }
 0x129   :  { %v991_v20 = vpop.f32.mrf.mxu1 }
 0x12a   :  { %v1045_v33 = vmul.f32 %v8619_v17, %v1044_v26  ;;  %v992_v55 = vadd.f32 %v991_v20, %v979_v48  ;;  %v6231_v26 = vld [vmem:[#allocation9 + $0xc0] sm:$0xf]  ;;  %v8151_v48 = vld [vmem:[#allocation9 + $0xa4] sm:$0xf] }
 0x12b   :  { %v6232_v29 = vor.u32 %v8156_v27, %v6231_v26 }
 0x12c   :  { %v1046_v39 = vadd.f32 %v8619_v17, %v1045_v33  ;;  %v6233_v33 = vld [vmem:[#allocation9 + $0xc8] sm:$0xf0] }
 0x12d   :  { %1423 = vmatpush.bf16.msrb.mxu2 %v6232_v29  ;;  %v6236_v36 = vor.u32 %v8155_v31, %v6233_v33 }
 0x12e   :  { %v1050_v44 = vsel %vm1049_vm9, %v8619_v17, %v1046_v39  ;;  %v8157_v17 = vld [vmem:[#allocation9 + $0xd4] sm:$0xf]  ;;  %v8154_v39 = vld [vmem:[#allocation9 + $0xb4] sm:$0xf0] }
 0x12f   :  { %v1055_v47 = vsel %vm1052_vm10, %v1054_v42, %v1050_v44  ;;  %v6244_v21 = vor.u32 %v8157_v17, %v6241_v19  ;;  %v6224_v42 = vor.u32 %v8154_v39, %v6223_v38 }
 0x130   :  { %v1030_v53 = vpop.f32.mrf.mxu3  ;;  %v1072_v49 = vmul.f32 1.0614054, %v1055_v47 }
 0x131   :  { %v993_v46 = vpop.f32.mrf.mxu1  ;;  %1448 = vmatpush.bf16.msra.mxu3 %v6244_v21  ;;  %1424 = vmatpush.bf16.msrb.mxu2 %v6224_v42 }
 0x132   :  { %v1004_v10 = vpop.f32.mrf.mxu0  ;;  %v6117_v50 = vadd.f32 -1.4531521, %v1072_v49  ;;  %v6215_v46 = vld [vmem:[#allocation9 + $0xa0] sm:$0xf] }
 0x133   :  { %v1005_v63 = vadd.f32 %v1004_v10, %v992_v55  ;;  %v6217_v10 = vld [vmem:[#allocation9 + $0xa8] sm:$0xf0] }
 0x134   :  { %v1076_v60 = vmul.f32 %v6117_v50, %v1055_v47  ;;  %v6220_v50 = vor.u32 %v8151_v48, %v6217_v10  ;;  %v8207_v48 = vld [vmem:[%s11465_s8 + $0x154] sm:$0xf]  ;;  %v6437_v10 = vld [vmem:[%s11465_s8 + $0x168] sm:$0xf0] }
 0x135   :  { %1449 = vmatpush.bf16.msra.mxu3 %v6236_v36 }
 0x136   :  { %v1078_v0 = vadd.f32 1.4214138, %v1076_v60 }
 0x138   :  { %v1032_v61 = vpop.f32.mrf.mxu3  ;;  %v1080_v6 = vmul.f32 %v1078_v0, %v1055_v47 }
 0x139   :  { %v1017_v59 = vpop.f32.mrf.mxu2  ;;  %v6208_v61 = vor.u32 %v8150_v57, %v6207_v56  ;;  %v8204_v56 = vld [vmem:[%s11465_s8 + $0x134] sm:$0xf0]  ;;  %v6603_v57 = vld [vmem:[%s11465_s8 + $0x2a0] sm:$0xf] }
 0x13a   :  { %v1018_v3 = vadd.f32 %v1017_v59, %v1005_v63  ;;  %v1006_v4 = vpop.f32.mrf.mxu0  ;;  %v6119_v9 = vadd.f32 -0.28449672, %v1080_v6  ;;  %v6212_v63 = vor.u32 %v8149_v58, %v6209_v62  ;;  %v6413_v62 = vld [vmem:[%s11465_s8 + $0x138] sm:$0xf0] }
 0x13b   :  { %v6200_v4 = vor.u32 %v8148_v45, %v6199_v2  ;;  %v8198_v2 = vld [vmem:[%s11465_s8 + $0x104] sm:$0xf0]  ;;  %v6579_v45 = vld [vmem:[%s11465_s8 + $0x270] sm:$0xf] }
 0x13c   :  { %v9339_v8 = vadd.f32 %v1030_v53, %v1018_v3  ;;  %v1084_v18 = vmul.f32 %v6119_v9, %v1055_v47  ;;  %v8153_v53 = vld [vmem:[#allocation9 + $0xb4] sm:$0xf]  ;;  %v8147_v3 = vld [vmem:[#allocation9 + $0x84] sm:$0xf] }
 0x13d   :  { %v6228_v43 = vor.u32 %v8153_v53, %v6225_v40  ;;  %v6204_v52 = vor.u32 %v8147_v3, %v6201_v15  ;;  %v8195_v15 = vld [vmem:[%s11465_s8 + $0xf4] sm:$0xf] }
 0x13e   :  { %v9342_v13 = vmul.f32 0.70710677, %v9339_v8  ;;  %v1086_v24 = vadd.f32 0.2548296, %v1084_v18 }
 0x13f   :  { %1450 = vmatpush.bf16.msra.mxu3 %v6228_v43 }
 0x140   :  { %v9345_v20 = vand.u32 2147483647, %v9342_v13  ;;  %v1088_v32 = vmul.f32 %v1086_v24, %v1055_v47  ;;  %v6216_v47 = vor.u32 %v8152_v23, %v6215_v46  ;;  %vm1103_vm0 = vcmp.ge.f32.partialorder %v9342_v13, 0.0  ;;  %v6627_v46 = vld [vmem:[%s11465_s8 + $0x2d0] sm:$0xf] }
 0x141   :  { %v1019_v25 = vpop.f32.mrf.mxu2 }
 0x142   :  { %v1039_v28 = vmul.f32 0.3275911, %v9345_v20  ;;  %v1098_v37 = vmul.f32 %v8621_v34, %v1088_v32  ;;  %1425 = vmatpush.bf16.msrb.mxu2 %v6216_v47  ;;  %v1091_v11 = vsub.f32 0.0, %v9345_v20  ;;  %v8258_v47 = vld [vmem:[%s11465_s8 + $0x2e4] sm:$0xf0] }
 0x143   :  { %1451 = vmatpush.bf16.msra.mxu3 %v6220_v50  ;;  %v6440_v50 = vor.u32 %v8207_v48, %v6437_v10  ;;  %v8177_v48 = vld [vmem:[%s11465_s8 + $0x64] sm:$0xf]  ;;  %v6317_v10 = vld [vmem:[%s11465_s8 + $0x78] sm:$0xf0] }
 0x144   :  { %v1041_v35 = vadd.f32 1.0, %v1039_v28  ;;  %v1100_v41 = vsub.f32 1.0, %v1098_v37  ;;  %v1093_v17 = vmul.f32 %v1091_v11, %v9345_v20 }
 0x145   :  { %2165 = vmatpush.bf16.msrb.mxu1 %v6440_v50  ;;  %v6320_v50 = vor.u32 %v8177_v48, %v6317_v10 }
 0x146   :  { %8622 = vrcp.f32 %v1041_v35  ;;  %v1104_v44 = vsub.f32 0.0, %v1100_v41  ;;  %v1066_v59 = vand.u32 2147483647, %v1041_v35  ;;  %v1068_v14 = vand.u32 2147483648, %v1041_v35  ;;  %1426 = vmatpush.bf16.msrb.mxu2 %v6208_v61  ;;  %v8201_v61 = vld [vmem:[%s11465_s8 + $0x124] sm:$0xf] }
 0x147   :  { %vm1062_vm13 = vweird.f32 %v1041_v35  ;;  %1452 = vmatpush.bf16.msra.mxu3 %v6212_v63  ;;  %v1096_v21 = vmul.f32 1.442695, %v1093_v17  ;;  %v6416_v63 = vor.u32 %v8201_v61, %v6413_v62  ;;  %v6555_v17 = vld [vmem:[%s11465_s8 + $0x240] sm:$0xf]  ;;  %v8222_v61 = vld [vmem:[%s11465_s8 + $0x1c4] sm:$0xf0] }
 0x148   :  { %v1106_v49 = vsel %vm1102_vm11, %v1100_v41, %v1104_v44  ;;  %v1069_v6 = vor.u32 1.1754944e-38, %v1068_v14  ;;  %vm1067_vm15 = vcmp.eq.f32.partialorder %v1066_v59, 8.507059e+37  ;;  %v8210_v44 = vld [vmem:[%s11465_s8 + $0x164] sm:$0xf0]  ;;  %v6605_v59 = vld [vmem:[%s11465_s8 + $0x2b8] sm:$0xf0] }
 0x149   :  { %v1110_v22 = vadd.f32 1.0, %v1106_v49  ;;  %8624 = vpow2.f32 %v1096_v21  ;;  %v6628_v49 = vor.u32 %v8258_v47, %v6627_v46  ;;  %2166 = vmatpush.bf16.msrb.mxu1 %v6416_v63  ;;  %v8189_v21 = vld [vmem:[%s11465_s8 + $0xc4] sm:$0xf]  ;;  %v6507_v46 = vld [vmem:[%s11465_s8 + $0x1e0] sm:$0xf]  ;;  %vm2297_vm11 = vcmask 523264  }
 0x14a   :  { %1427 = vmatpush.bf16.msrb.mxu2 %v6200_v4  ;;  %v8246_v4 = vld [vmem:[%s11465_s8 + $0x284] sm:$0xf0]  ;;  %v8228_v47 = vld [vmem:[%s11465_s8 + $0x1f4] sm:$0xf0]  ;;  %v8171_v62 = vld [vmem:[%s11465_s8 + $0x34] sm:$0xf] }
 0x14b   :  { %v1112_v60 = vmul.f32 %v1110_v22, %v1108_v54  ;;  %1453 = vmatpush.bf16.msra.mxu3 %v6204_v52  ;;  %v6629_v54 = vld [vmem:[%s11465_s8 + $0x2e8] sm:$0xf0]  ;;  %v6580_v52 = vor.u32 %v8246_v4, %v6579_v45 }
 0x14c   :  { %v8623_v51 = vpop.eup %8622 }
 0x14d   :  { %v1058_v55 = vmul.f32 %v8623_v51, %v1041_v35  ;;  %v1202_v0 = vpack.c.bf16 %v1112_v60, %v1112_v60  ;;  %vm1063_vm12 = vweird.f32 %v8623_v51  ;;  %v1109_v35 = vmul.f32 0.5, %v9339_v8  ;;  %v6435_v8 = vld [vmem:[%s11465_s8 + $0x150] sm:$0xf]  ;;  %v8252_v60 = vld [vmem:[%s11465_s8 + $0x2b4] sm:$0xf0] }
 0x14e   :  { %vm1064_vm14 = vmor %vm1062_vm13, %vm1063_vm12  ;;  %v6436_v23 = vor.u32 %v8210_v44, %v6435_v8  ;;  %2152 = vmatpush.bf16.msra.mxu2 %v6628_v49  ;;  %v6315_v8 = vld [vmem:[%s11465_s8 + $0x60] sm:$0xf]  ;;  %v8180_v44 = vld [vmem:[%s11465_s8 + $0x74] sm:$0xf0]  ;;  %v6508_v49 = vor.u32 %v8228_v47, %v6507_v46  ;;  %vm2349_vm12 = vcmask 1040384   ;;  %vm2318_vm13 = vcmask 9216  }
 0x14f   :  { %v1059_v30 = vsub.f32 1.0, %v1058_v55  ;;  %1415 = vmatmul.bf16.vlgmr.msrb.gmra.mxu0 %v1202_v0  ;;  %1441 = vmatmul.bf16.vlgmr.msra.gmra.mxu1 %v1202_v0  ;;  %v8625_v29 = vpop.eup %8624  ;;  %v6411_v55 = vld [vmem:[%s11465_s8 + $0x120] sm:$0xf]  ;;  %v8249_v0 = vld [vmem:[%s11465_s8 + $0x2a4] sm:$0xf] }
 0x150   :  { %2139 = vmatpush.bf16.msra.mxu0 %v6436_v23  ;;  %v6412_v58 = vor.u32 %v8204_v56, %v6411_v55  ;;  %v6608_v14 = vor.u32 %v8249_v0, %v6605_v59  ;;  %v6316_v23 = vor.u32 %v8180_v44, %v6315_v8  ;;  %v6291_v56 = vld [vmem:[%s11465_s8 + $0x30] sm:$0xf]  ;;  %v8219_v59 = vld [vmem:[%s11465_s8 + $0x1b4] sm:$0xf]  ;;  %v6611_v8 = vld [vmem:[%s11465_s8 + $0x2a8] sm:$0xf] }
 0x151   :  { %v1060_v1 = vmul.f32 %v8623_v51, %v1059_v30  ;;  %v6604_v30 = vor.u32 %v8252_v60, %v6603_v57  ;;  %v8174_v57 = vld [vmem:[%s11465_s8 + $0x44] sm:$0xf0]  ;;  %v8253_v44 = vld [vmem:[%s11465_s8 + $0x2bc] sm:$0xf0]  ;;  %v8202_v47 = vld [vmem:[%s11465_s8 + $0x12c] sm:$0xf] }
 0x152   :  { %v6292_v60 = vor.u32 %v8174_v57, %v6291_v56 }
 0x153   :  { %v1061_v5 = vadd.f32 %v8623_v51, %v1060_v1  ;;  %2153 = vmatpush.bf16.msra.mxu2 %v6604_v30  ;;  %v6387_v1 = vld [vmem:[%s11465_s8 + $0xf0] sm:$0xf]  ;;  %v6293_v30 = vld [vmem:[%s11465_s8 + $0x48] sm:$0xf0] }
 0x154   :  { %2140 = vmatpush.bf16.msra.mxu0 %v6412_v58  ;;  %v6388_v3 = vor.u32 %v8198_v2, %v6387_v1  ;;  %v6483_v58 = vld [vmem:[%s11465_s8 + $0x1b0] sm:$0xf]  ;;  %v6296_v0 = vor.u32 %v8171_v62, %v6293_v30 }
 0x155   :  { %v1065_v7 = vsel %vm1064_vm14, %v8623_v51, %v1061_v5  ;;  %v8255_v51 = vld [vmem:[%s11465_s8 + $0x2d4] sm:$0xf]  ;;  %v6389_v5 = vld [vmem:[%s11465_s8 + $0x108] sm:$0xf0]  ;;  %v6484_v63 = vor.u32 %v8222_v61, %v6483_v58  ;;  %v6395_v58 = vld [vmem:[%s11465_s8 + $0xf8] sm:$0xf] }
 0x156   :  { %v1070_v9 = vsel %vm1067_vm15, %v1069_v6, %v1065_v7  ;;  %v6632_v22 = vor.u32 %v8255_v51, %v6629_v54  ;;  %v6392_v6 = vor.u32 %v8195_v15, %v6389_v5  ;;  %v8243_v7 = vld [vmem:[%s11465_s8 + $0x274] sm:$0xf]  ;;  %v8225_v51 = vld [vmem:[%s11465_s8 + $0x1e4] sm:$0xf]  ;;  %v6509_v54 = vld [vmem:[%s11465_s8 + $0x1f8] sm:$0xf0] }
 0x157   :  { %v1073_v12 = vmul.f32 1.0614054, %v1070_v9  ;;  %2154 = vmatpush.bf16.msra.mxu2 %v6580_v52  ;;  %v6512_v55 = vor.u32 %v8225_v51, %v6509_v54  ;;  %v6267_v15 = vld [vmem:[%s11465_s8] sm:$0xf]  ;;  %v8168_v5 = vld [vmem:[%s11465_s8 + $0x14] sm:$0xf0] }
 0x158   :  { %2178 = vmatpush.bf16.msrb.mxu3 %v6632_v22  ;;  %2141 = vmatpush.bf16.msra.mxu0 %v6388_v3  ;;  %v1459_v22 = vld [vmem:[#allocation10] sm:$0x3]  ;;  %v6459_v52 = vld [vmem:[%s11465_s8 + $0x180] sm:$0xf]  ;;  %v6613_v54 = vld [vmem:[%s11465_s8 + $0x2c0] sm:$0xf0] }
 0x159   :  { %v6118_v16 = vadd.f32 -1.4531521, %v1073_v12  ;;  %2167 = vmatpush.bf16.msrb.mxu1 %v6392_v6  ;;  %v6363_v12 = vld [vmem:[%s11465_s8 + $0xc0] sm:$0xf]  ;;  %v1461_v1 = vperm.slane %v1459_v22, 0  ;;  %v1462_v2 = vperm.slane %v1459_v22, 1 }
 0x15a   :  { %v8250_v51 = vld [vmem:[%s11465_s8 + $0x2ac] sm:$0xf]  ;;  %v6587_v61 = vld [vmem:[%s11465_s8 + $0x278] sm:$0xf] }
 0x15b   :  { %v1077_v18 = vmul.f32 %v6118_v16, %v1070_v9  ;;  %v8192_v16 = vld [vmem:[%s11465_s8 + $0xd4] sm:$0xf0]  ;;  %v6616_v57 = vor.u32 %v8250_v51, %v6613_v54 }
 0x15c   :  { %2179 = vmatpush.bf16.msrb.mxu3 %v6608_v14  ;;  %v6485_v14 = vld [vmem:[%s11465_s8 + $0x1c8] sm:$0xf0] }
 0x15d   :  { %v1079_v19 = vadd.f32 1.4214138, %v1077_v18  ;;  %v6364_v18 = vor.u32 %v8192_v16, %v6363_v12  ;;  %v6488_v45 = vor.u32 %v8219_v59, %v6485_v14  ;;  %v8196_v14 = vld [vmem:[%s11465_s8 + $0xfc] sm:$0xf] }
 0x15f   :  { %v1081_v24 = vmul.f32 %v1079_v19, %v1070_v9  ;;  %v8240_v19 = vld [vmem:[%s11465_s8 + $0x254] sm:$0xf0]  ;;  %2142 = vmatpush.bf16.msra.mxu0 %v6364_v18  ;;  %v6461_v18 = vld [vmem:[%s11465_s8 + $0x198] sm:$0xf0] }
 0x161   :  { %v6120_v25 = vadd.f32 -0.28449672, %v1081_v24  ;;  %v6365_v24 = vld [vmem:[%s11465_s8 + $0xd8] sm:$0xf0] }
 0x163   :  { %v1085_v26 = vmul.f32 %v6120_v25, %v1070_v9  ;;  %v6556_v25 = vor.u32 %v8240_v19, %v6555_v17  ;;  %v8213_v17 = vld [vmem:[%s11465_s8 + $0x184] sm:$0xf]  ;;  %v6443_v19 = vld [vmem:[%s11465_s8 + $0x158] sm:$0xf] }
 0x165   :  { %v1087_v27 = vadd.f32 0.2548296, %v1085_v26  ;;  %v6368_v26 = vor.u32 %v8189_v21, %v6365_v24  ;;  %2155 = vmatpush.bf16.msra.mxu2 %v6556_v25  ;;  %v6464_v21 = vor.u32 %v8213_v17, %v6461_v18  ;;  %v8211_v24 = vld [vmem:[%s11465_s8 + $0x16c] sm:$0xf0]  ;;  %v6635_v25 = vld [vmem:[%s11465_s8 + $0x2d8] sm:$0xf] }
 0x166   :  { %v6565_v17 = vld [vmem:[%s11465_s8 + $0x260] sm:$0xf0]  ;;  %v6347_v18 = vld [vmem:[%s11465_s8 + $0x98] sm:$0xf] }
 0x167   :  { %v1089_v28 = vmul.f32 %v1087_v27, %v1070_v9  ;;  %v6581_v9 = vld [vmem:[%s11465_s8 + $0x288] sm:$0xf0]  ;;  %v8237_v27 = vld [vmem:[%s11465_s8 + $0x244] sm:$0xf]  ;;  %2168 = vmatpush.bf16.msrb.mxu1 %v6368_v26  ;;  %v8259_v26 = vld [vmem:[%s11465_s8 + $0x2ec] sm:$0xf0] }
 0x168   :  { %v6584_v11 = vor.u32 %v8243_v7, %v6581_v9 }
 0x169   :  { %v1099_v31 = vmul.f32 %v8625_v29, %v1089_v28  ;;  %v6557_v28 = vld [vmem:[%s11465_s8 + $0x258] sm:$0xf0] }
 0x16a   :  { %2180 = vmatpush.bf16.msrb.mxu3 %v6584_v11  ;;  %v6560_v29 = vor.u32 %v8237_v27, %v6557_v28 }
 0x16b   :  { %v1101_v32 = vsub.f32 1.0, %v1099_v31  ;;  %v6339_v31 = vld [vmem:[%s11465_s8 + $0x90] sm:$0xf] }
 0x16d   :  { %v1105_v33 = vsub.f32 0.0, %v1101_v32 }
 0x16e   :  { %2181 = vmatpush.bf16.msrb.mxu3 %v6560_v29  ;;  %v6444_v29 = vor.u32 %v8211_v24, %v6443_v19  ;;  %v8187_v24 = vld [vmem:[%s11465_s8 + $0xac] sm:$0xf0] }
 0x16f   :  { %v1107_v34 = vsel %vm1103_vm0, %v1101_v32, %v1105_v33  ;;  %v8186_v32 = vld [vmem:[%s11465_s8 + $0xa4] sm:$0xf0]  ;;  %v6531_v33 = vld [vmem:[%s11465_s8 + $0x210] sm:$0xf] }
 0x170   :  { %v1111_v36 = vadd.f32 1.0, %v1107_v34  ;;  %v6340_v34 = vor.u32 %v8186_v32, %v6339_v31  ;;  %v8208_v31 = vld [vmem:[%s11465_s8 + $0x15c] sm:$0xf]  ;;  %v6445_v32 = vld [vmem:[%s11465_s8 + $0x170] sm:$0xf0] }
 0x172   :  { %v1113_v20 = vmul.f32 %v1111_v36, %v1109_v35  ;;  %v8234_v35 = vld [vmem:[%s11465_s8 + $0x224] sm:$0xf0]  ;;  %v8183_v36 = vld [vmem:[%s11465_s8 + $0x94] sm:$0xf]  ;;  %2143 = vmatpush.bf16.msra.mxu0 %v6340_v34  ;;  %v6636_v34 = vor.u32 %v8259_v26, %v6635_v25  ;;  %v6539_v25 = vld [vmem:[%s11465_s8 + $0x218] sm:$0xf] }
 0x173   :  { %v8235_v26 = vld [vmem:[%s11465_s8 + $0x22c] sm:$0xf0] }
 0x174   :  { %v1203_v37 = vpack.c.bf16 %v1113_v20, %v1113_v20  ;;  %v6341_v20 = vld [vmem:[%s11465_s8 + $0xa8] sm:$0xf0] }
 0x176   :  { %1428 = vmatmul.bf16.vlgmr.msrb.gmra.mxu2 %v1203_v37  ;;  %1454 = vmatmul.bf16.vlgmr.msra.gmra.mxu3 %v1203_v37  ;;  %v6532_v37 = vor.u32 %v8234_v35, %v6531_v33  ;;  %v8256_v33 = vld [vmem:[%s11465_s8 + $0x2dc] sm:$0xf]  ;;  %v6448_v35 = vor.u32 %v8208_v31, %v6445_v32  ;;  %v6348_v32 = vor.u32 %v8187_v24, %v6347_v18  ;;  %v8217_v24 = vld [vmem:[%s11465_s8 + $0x19c] sm:$0xf0] }
 0x177   :  { %2144 = vmatpush.bf16.msra.mxu0 %v6316_v23 }
 0x178   :  { %2156 = vmatpush.bf16.msra.mxu2 %v6532_v37  ;;  %v8205_v37 = vld [vmem:[%s11465_s8 + $0x13c] sm:$0xf0] }
 0x17b   :  { %2145 = vmatpush.bf16.msra.mxu0 %v6292_v60  ;;  %v8199_v60 = vld [vmem:[%s11465_s8 + $0x10c] sm:$0xf0] }
 0x17c   :  { %2157 = vmatpush.bf16.msra.mxu2 %v6508_v49  ;;  %v6612_v49 = vor.u32 %v8253_v44, %v6611_v8  ;;  %v6323_v8 = vld [vmem:[%s11465_s8 + $0x68] sm:$0xf] }
 0x180   :  { %2158 = vmatpush.bf16.msra.mxu2 %v6484_v63  ;;  %v8247_v63 = vld [vmem:[%s11465_s8 + $0x28c] sm:$0xf0] }
 0x181   :  { %v6588_v59 = vor.u32 %v8247_v63, %v6587_v61  ;;  %v6325_v61 = vld [vmem:[%s11465_s8 + $0x80] sm:$0xf0] }
 0x182   :  { %v6517_v63 = vld [vmem:[%s11465_s8 + $0x200] sm:$0xf0] }
 0x197   :  { %v9354_v38 = vpop.f32.mrf.mxu1 }
 0x19d   :  { %v9356_v39 = vpop.f32.mrf.mxu3 }
 0x19f   :  { %v1232_v53 = vpop.f32.mrf.mxu1 }
 0x1a0   :  { %v6344_v53 = vor.u32 %v8183_v36, %v6341_v20  ;;  %v6637_v36 = vld [vmem:[%s11465_s8 + $0x2f0] sm:$0xf0]  ;;  %v6419_v20 = vld [vmem:[%s11465_s8 + $0x128] sm:$0xf] }
 0x1a2   :  { %2169 = vmatpush.bf16.msrb.mxu1 %v6344_v53 }
 0x1a5   :  { %v1245_v40 = vpop.f32.mrf.mxu3 }
 0x1a6   :  { %v8231_v40 = vld [vmem:[%s11465_s8 + $0x214] sm:$0xf]  ;;  %2170 = vmatpush.bf16.msrb.mxu1 %v6320_v50  ;;  %v6421_v50 = vld [vmem:[%s11465_s8 + $0x140] sm:$0xf0] }
 0x1a7   :  { %v6424_v56 = vor.u32 %v8202_v47, %v6421_v50  ;;  %v6515_v50 = vld [vmem:[%s11465_s8 + $0x1e8] sm:$0xf] }
 0x1aa   :  { %2171 = vmatpush.bf16.msrb.mxu1 %v6296_v0  ;;  %v6396_v0 = vor.u32 %v8199_v60, %v6395_v58 }
 0x1cc   :  { %v9358_v41 = vpop.f32.mrf.mxu0  ;;  %v9360_v42 = vpop.f32.mrf.mxu1 }
 0x1cd   :  { %v1417_v3 = vadd.f32 %v9358_v41, %v9354_v38  ;;  %v1443_v4 = vadd.f32 %v9360_v42, %v9356_v39  ;;  %v6268_v38 = vor.u32 %v8168_v5, %v6267_v15  ;;  %v8216_v39 = vld [vmem:[%s11465_s8 + $0x194] sm:$0xf0]  ;;  %v8165_v41 = vld [vmem:[%s11465_s8 + $0x4] sm:$0xf]  ;;  %v6269_v42 = vld [vmem:[%s11465_s8 + $0x18] sm:$0xf0] }
 0x1ce   :  { %v6460_v12 = vor.u32 %v8216_v39, %v6459_v52  ;;  %v6272_v16 = vor.u32 %v8165_v41, %v6269_v42 }
 0x1cf   :  { %2146 = vmatpush.bf16.msra.mxu0 %v6268_v38  ;;  %v8241_v38 = vld [vmem:[%s11465_s8 + $0x25c] sm:$0xf0] }
 0x1d0   :  { %2159 = vmatpush.bf16.msra.mxu2 %v6460_v12  ;;  %2172 = vmatpush.bf16.msrb.mxu1 %v6272_v16  ;;  %v8238_v16 = vld [vmem:[%s11465_s8 + $0x24c] sm:$0xf] }
 0x1d3   :  { %2191 = vmatpush.bf16.msrb.mxu0 %v6444_v29 }
 0x1d4   :  { %v1418_v43 = vpop.f32.mrf.mxu0  ;;  %v1444_v13 = vpop.f32.mrf.mxu1  ;;  %2204 = vmatpush.bf16.msrb.mxu2 %v6636_v34  ;;  %2217 = vmatpush.bf16.msra.mxu1 %v6448_v35  ;;  %v8184_v34 = vld [vmem:[%s11465_s8 + $0x9c] sm:$0xf]  ;;  %v6349_v35 = vld [vmem:[%s11465_s8 + $0xb0] sm:$0xf0] }
 0x1d5   :  { %v6533_v43 = vld [vmem:[%s11465_s8 + $0x228] sm:$0xf0] }
 0x1d6   :  { %v6536_v13 = vor.u32 %v8231_v40, %v6533_v43  ;;  %v6640_v43 = vor.u32 %v8256_v33, %v6637_v36  ;;  %v6540_v33 = vor.u32 %v8235_v26, %v6539_v25  ;;  %v8232_v36 = vld [vmem:[%s11465_s8 + $0x21c] sm:$0xf] }
 0x1d8   :  { %2182 = vmatpush.bf16.msrb.mxu3 %v6536_v13  ;;  %v6420_v13 = vor.u32 %v8205_v37, %v6419_v20  ;;  %2205 = vmatpush.bf16.msrb.mxu2 %v6612_v49  ;;  %v8181_v49 = vld [vmem:[%s11465_s8 + $0x7c] sm:$0xf0] }
 0x1d9   :  { %2218 = vmatpush.bf16.msra.mxu1 %v6424_v56  ;;  %v8229_v56 = vld [vmem:[%s11465_s8 + $0x1fc] sm:$0xf0] }
 0x1da   :  { %2192 = vmatpush.bf16.msrb.mxu0 %v6420_v13  ;;  %v6541_v13 = vld [vmem:[%s11465_s8 + $0x230] sm:$0xf0]  ;;  %v6516_v60 = vor.u32 %v8229_v56, %v6515_v50 }
 0x1dc   :  { %2183 = vmatpush.bf16.msrb.mxu3 %v6512_v55  ;;  %2206 = vmatpush.bf16.msrb.mxu2 %v6588_v59  ;;  %v6299_v59 = vld [vmem:[%s11465_s8 + $0x38] sm:$0xf] }
 0x1de   :  { %2193 = vmatpush.bf16.msrb.mxu0 %v6396_v0 }
 0x1e0   :  { %2184 = vmatpush.bf16.msrb.mxu3 %v6488_v45  ;;  %v6589_v45 = vld [vmem:[%s11465_s8 + $0x290] sm:$0xf0] }
 0x1e4   :  { %2185 = vmatpush.bf16.msrb.mxu3 %v6464_v21  ;;  %v6568_v21 = vor.u32 %v8238_v16, %v6565_v17  ;;  %v8169_v16 = vld [vmem:[%s11465_s8 + $0x1c] sm:$0xf0]  ;;  %v6467_v17 = vld [vmem:[%s11465_s8 + $0x188] sm:$0xf] }
 0x1e8   :  { %2230 = vmatpush.bf16.msra.mxu3 %v6640_v43 }
 0x1ec   :  { %2231 = vmatpush.bf16.msra.mxu3 %v6616_v57  ;;  %v8178_v57 = vld [vmem:[%s11465_s8 + $0x6c] sm:$0xf] }
 0x1f9   :  { %v1429_v6 = vpop.f32.mrf.mxu2  ;;  %v1455_v7 = vpop.f32.mrf.mxu3 }
 0x1fa   :  { %v1430_v9 = vadd.f32 %v1429_v6, %v1417_v3  ;;  %v1456_v11 = vadd.f32 %v1455_v7, %v1443_v4  ;;  %v6371_v3 = vld [vmem:[%s11465_s8 + $0xc8] sm:$0xf]  ;;  %v8193_v4 = vld [vmem:[%s11465_s8 + $0xdc] sm:$0xf0] }
 0x1fb   :  { %v6563_v7 = vld [vmem:[%s11465_s8 + $0x248] sm:$0xf]  ;;  %v6372_v41 = vor.u32 %v8193_v4, %v6371_v3  ;;  %v6328_v4 = vor.u32 %v8178_v57, %v6325_v61 }
 0x1fc   :  { %v9570_v27 = vadd.f32 %v1461_v1, %v1430_v9  ;;  %v9572_v28 = vadd.f32 %v1462_v2, %v1456_v11  ;;  %v6397_v1 = vld [vmem:[%s11465_s8 + $0x110] sm:$0xf0]  ;;  %v8244_v2 = vld [vmem:[%s11465_s8 + $0x27c] sm:$0xf]  ;;  %v6564_v42 = vor.u32 %v8241_v38, %v6563_v7  ;;  %v8190_v9 = vld [vmem:[%s11465_s8 + $0xcc] sm:$0xf] }
 0x1fd   :  { %v6400_v52 = vor.u32 %v8196_v14, %v6397_v1  ;;  %v6592_v6 = vor.u32 %v8244_v2, %v6589_v45  ;;  %v6373_v11 = vld [vmem:[%s11465_s8 + $0xe0] sm:$0xf0]  ;;  %2194 = vmatpush.bf16.msrb.mxu0 %v6372_v41  ;;  %v8175_v14 = vld [vmem:[%s11465_s8 + $0x4c] sm:$0xf0]  ;;  %v6491_v1 = vld [vmem:[%s11465_s8 + $0x1b8] sm:$0xf] }
 0x1fe   :  { %v9593_v53 = vmul.f32 0.70710677, %v9570_v27  ;;  %v9596_v40 = vmul.f32 0.70710677, %v9572_v28  ;;  %v6376_v12 = vor.u32 %v8190_v9, %v6373_v11  ;;  %2207 = vmatpush.bf16.msrb.mxu2 %v6564_v42  ;;  %v6300_v7 = vor.u32 %v8175_v14, %v6299_v59  ;;  %v6301_v41 = vld [vmem:[%s11465_s8 + $0x50] sm:$0xf0] }
 0x1ff   :  { %2219 = vmatpush.bf16.msra.mxu1 %v6400_v52  ;;  %2232 = vmatpush.bf16.msra.mxu3 %v6592_v6  ;;  %v8172_v52 = vld [vmem:[%s11465_s8 + $0x3c] sm:$0xf]  ;;  %v6493_v9 = vld [vmem:[%s11465_s8 + $0x1d0] sm:$0xf0] }
 0x200   :  { %v9605_v46 = vand.u32 2147483647, %v9593_v53  ;;  %v9608_v23 = vand.u32 2147483647, %v9596_v40  ;;  %v8220_v42 = vld [vmem:[%s11465_s8 + $0x1bc] sm:$0xf] }
 0x201   :  { %v1431_v48 = vpop.f32.mrf.mxu2  ;;  %v1457_v10 = vpop.f32.mrf.mxu3  ;;  %2195 = vmatpush.bf16.msrb.mxu0 %v6348_v32  ;;  %v6496_v32 = vor.u32 %v8220_v42, %v6493_v9  ;;  %vm1535_vm9 = vcmp.ge.f32.partialorder %v9593_v53, 0.0  ;;  %vm1536_vm10 = vcmp.ge.f32.partialorder %v9596_v40, 0.0  ;;  %v6643_v53 = vld [vmem:[%s11465_s8 + $0x2e0] sm:$0xf]  ;;  %v8260_v40 = vld [vmem:[%s11465_s8 + $0x2f4] sm:$0xf0] }
 0x202   :  { %v1471_v22 = vmul.f32 0.3275911, %v9605_v46  ;;  %v1472_v55 = vmul.f32 0.3275911, %v9608_v23  ;;  %v1523_v37 = vsub.f32 0.0, %v9605_v46  ;;  %v6352_v48 = vor.u32 %v8184_v34, %v6349_v35  ;;  %2208 = vmatpush.bf16.msrb.mxu2 %v6540_v33 }
 0x203   :  { %2220 = vmatpush.bf16.msra.mxu1 %v6376_v12  ;;  %2233 = vmatpush.bf16.msra.mxu3 %v6568_v21  ;;  %v6544_v10 = vor.u32 %v8232_v36, %v6541_v13  ;;  %v6275_v12 = vld [vmem:[%s11465_s8 + $0x8] sm:$0xf]  ;;  %v8166_v33 = vld [vmem:[%s11465_s8 + $0xc] sm:$0xf]  ;;  %v6468_v34 = vor.u32 %v8217_v24, %v6467_v17  ;;  %v6469_v36 = vld [vmem:[%s11465_s8 + $0x1a0] sm:$0xf0]  ;;  %v6644_v17 = vor.u32 %v8260_v40, %v6643_v53 }
 0x204   :  { %v9633_v62 = vadd.f32 1.0, %v1471_v22  ;;  %v9635_v30 = vadd.f32 1.0, %v1472_v55  ;;  %v6324_v55 = vor.u32 %v8181_v49, %v6323_v8  ;;  %v8214_v35 = vld [vmem:[%s11465_s8 + $0x18c] sm:$0xf]  ;;  %v6453_v42 = vld [vmem:[%s11465_s8 + $0x178] sm:$0xf0] }
 0x205   :  { %v8257_v9 = vld [vmem:[%s11465_s8 + $0x2e4] sm:$0xf]  ;;  %v8230_v40 = vld [vmem:[%s11465_s8 + $0x204] sm:$0xf0] }
 0x206   :  { %8626 = vrcp.f32 %v9633_v62  ;;  %v1484_v15 = vand.u32 2147483647, %v9633_v62  ;;  %v1486_v5 = vand.u32 2147483648, %v9633_v62  ;;  %v1499_v39 = vand.u32 2147483647, %v9635_v30  ;;  %2196 = vmatpush.bf16.msrb.mxu0 %v6324_v55  ;;  %2209 = vmatpush.bf16.msrb.mxu2 %v6516_v60 }
 0x207   :  { %8628 = vrcp.f32 %v9635_v30  ;;  %vm1480_vm2 = vweird.f32 %v9633_v62  ;;  %v1501_v47 = vand.u32 2147483648, %v9635_v30  ;;  %vm1495_vm6 = vweird.f32 %v9635_v30  ;;  %2221 = vmatpush.bf16.msra.mxu1 %v6352_v48  ;;  %2234 = vmatpush.bf16.msra.mxu3 %v6544_v10 }
 0x208   :  { %vm9710_vm3 = vcmp.eq.f32.partialorder %v1484_v15, 8.507059e+37  ;;  %v1487_v54 = vor.u32 1.1754944e-38, %v1486_v5  ;;  %v8223_v5 = vld [vmem:[%s11465_s8 + $0x1cc] sm:$0xf0]  ;;  %vm1500_vm8 = vcmp.eq.f32.partialorder %v1499_v39, 8.507059e+37  ;;  %v6472_v48 = vor.u32 %v8214_v35, %v6469_v36 }
 0x209   :  { %v1502_v3 = vor.u32 1.1754944e-38, %v1501_v47  ;;  %v6492_v38 = vor.u32 %v8223_v5, %v6491_v1  ;;  %v6403_v35 = vld [vmem:[%s11465_s8 + $0x100] sm:$0xf]  ;;  %v8200_v36 = vld [vmem:[%s11465_s8 + $0x114] sm:$0xf0] }
 0x20a   :  { %2197 = vmatpush.bf16.msrb.mxu0 %v6300_v7  ;;  %v1542_v7 = vmul.f32 0.5, %v9572_v28  ;;  %v6645_v28 = vld [vmem:[%s11465_s8 + $0x2f8] sm:$0xf0] }
 0x20b   :  { %2222 = vmatpush.bf16.msra.mxu1 %v6328_v4  ;;  %2210 = vmatpush.bf16.msrb.mxu2 %v6492_v38  ;;  %v6451_v4 = vld [vmem:[%s11465_s8 + $0x160] sm:$0xf] }
 0x20c   :  { %v9684_v19 = vpop.eup %8626 }
 0x20d   :  { %v9695_v29 = vpop.eup %8628  ;;  %v1476_v31 = vmul.f32 %v9684_v19, %v9633_v62  ;;  %vm1481_vm1 = vweird.f32 %v9684_v19  ;;  %v8226_v62 = vld [vmem:[%s11465_s8 + $0x1ec] sm:$0xf] }
 0x20e   :  { %v1491_v43 = vmul.f32 %v9695_v29, %v9635_v30  ;;  %vm9732_vm4 = vmor %vm1480_vm2, %vm1481_vm1  ;;  %vm1496_vm5 = vweird.f32 %v9695_v29  ;;  %v6520_v15 = vor.u32 %v8226_v62, %v6517_v63  ;;  %v6277_v30 = vld [vmem:[%s11465_s8 + $0x20] sm:$0xf0]  ;;  %vm2345_vm2 = vcmask 15360  }
 0x20f   :  { %v1477_v44 = vsub.f32 1.0, %v1476_v31  ;;  %vm9767_vm7 = vmor %vm1495_vm6, %vm1496_vm5  ;;  %v6304_v31 = vor.u32 %v8172_v52, %v6301_v41  ;;  %v6280_v47 = vor.u32 %v8166_v33, %v6277_v30  ;;  %2211 = vmatpush.bf16.msrb.mxu2 %v6468_v34  ;;  %v6429_v33 = vld [vmem:[%s11465_s8 + $0x148] sm:$0xf0]  ;;  %v8251_v30 = vld [vmem:[%s11465_s8 + $0x2b4] sm:$0xf] }
 0x210   :  { %v1492_v22 = vsub.f32 1.0, %v1491_v43  ;;  %2235 = vmatpush.bf16.msra.mxu3 %v6520_v15  ;;  %v1525_v43 = vmul.f32 %v1523_v37, %v9605_v46  ;;  %v1541_v15 = vmul.f32 0.5, %v9570_v27  ;;  %v8209_v27 = vld [vmem:[%s11465_s8 + $0x164] sm:$0xf] }
 0x211   :  { %v1478_v58 = vmul.f32 %v9684_v19, %v1477_v44  ;;  %2223 = vmatpush.bf16.msra.mxu1 %v6304_v31  ;;  %v6456_v24 = vor.u32 %v8209_v27, %v6453_v42  ;;  %v8254_v31 = vld [vmem:[%s11465_s8 + $0x2c4] sm:$0xf0]  ;;  %v8179_v27 = vld [vmem:[%s11465_s8 + $0x74] sm:$0xf]  ;;  %v6333_v42 = vld [vmem:[%s11465_s8 + $0x88] sm:$0xf0] }
 0x212   :  { %v1493_v0 = vmul.f32 %v9695_v29, %v1492_v22  ;;  %v1527_v50 = vmul.f32 1.442695, %v1525_v43 }
 0x213   :  { %v1479_v2 = vadd.f32 %v9684_v19, %v1478_v58 }
 0x214   :  { %v1494_v6 = vadd.f32 %v9695_v29, %v1493_v0  ;;  %2236 = vmatpush.bf16.msra.mxu3 %v6496_v32  ;;  %8630 = vpow2.f32 %v1527_v50  ;;  %v8203_v32 = vld [vmem:[%s11465_s8 + $0x134] sm:$0xf] }
 0x215   :  { %v1483_v11 = vsel %vm9732_vm4, %v9684_v19, %v1479_v2  ;;  %v1524_v19 = vsub.f32 0.0, %v9608_v23  ;;  %2224 = vmatpush.bf16.msra.mxu1 %v6280_v47  ;;  %v6405_v47 = vld [vmem:[%s11465_s8 + $0x118] sm:$0xf0] }
 0x216   :  { %v1488_v18 = vsel %vm9710_vm3, %v1487_v54, %v1483_v11  ;;  %v1498_v21 = vsel %vm9767_vm7, %v9695_v29, %v1494_v6  ;;  %v6276_v29 = vor.u32 %v8169_v16, %v6275_v12  ;;  %v8212_v6 = vld [vmem:[%s11465_s8 + $0x174] sm:$0xf0] }
 0x217   :  { %v1505_v25 = vmul.f32 1.0614054, %v1488_v18  ;;  %v1503_v26 = vsel %vm1500_vm8, %v1502_v3, %v1498_v21  ;;  %v1526_v8 = vmul.f32 %v1524_v19, %v9608_v23  ;;  %v6452_v16 = vor.u32 %v8212_v6, %v6451_v4  ;;  %v8206_v21 = vld [vmem:[%s11465_s8 + $0x144] sm:$0xf0]  ;;  %v6549_v4 = vld [vmem:[%s11465_s8 + $0x238] sm:$0xf0] }
 0x218   :  { %v1506_v39 = vmul.f32 1.0614054, %v1503_v26  ;;  %2198 = vmatpush.bf16.msrb.mxu0 %v6276_v29  ;;  %2237 = vmatpush.bf16.msra.mxu3 %v6472_v48  ;;  %v8245_v48 = vld [vmem:[%s11465_s8 + $0x284] sm:$0xf]  ;;  %v8182_v6 = vld [vmem:[%s11465_s8 + $0x84] sm:$0xf0] }
 0x219   :  { %v6261_v20 = vadd.f32 -1.4531521, %v1505_v25  ;;  %v1529_v22 = vmul.f32 1.442695, %v1526_v8  ;;  %v6648_v25 = vor.u32 %v8257_v9, %v6645_v28  ;;  %v8248_v8 = vld [vmem:[%s11465_s8 + $0x294] sm:$0xf0] }
 0x21a   :  { %v6262_v13 = vadd.f32 -1.4531521, %v1506_v39  ;;  %v8631_v61 = vpop.eup %8630  ;;  %v6621_v39 = vld [vmem:[%s11465_s8 + $0x2c8] sm:$0xf0]  ;;  %v8227_v9 = vld [vmem:[%s11465_s8 + $0x1f4] sm:$0xf] }
 0x21b   :  { %v1509_v44 = vmul.f32 %v6261_v20, %v1488_v18  ;;  %8632 = vpow2.f32 %v1529_v22  ;;  %v6432_v20 = vor.u32 %v8203_v32, %v6429_v33  ;;  %v6624_v43 = vor.u32 %v8251_v30, %v6621_v39  ;;  %v6525_v28 = vld [vmem:[%s11465_s8 + $0x208] sm:$0xf0]  ;;  %v8173_v32 = vld [vmem:[%s11465_s8 + $0x44] sm:$0xf]  ;;  %v6309_v33 = vld [vmem:[%s11465_s8 + $0x58] sm:$0xf0] }
 0x21c   :  { %v1510_v10 = vmul.f32 %v6262_v13, %v1503_v26  ;;  %v6595_v13 = vld [vmem:[%s11465_s8 + $0x280] sm:$0xf]  ;;  %v8221_v30 = vld [vmem:[%s11465_s8 + $0x1c4] sm:$0xf]  ;;  %v6501_v39 = vld [vmem:[%s11465_s8 + $0x1d8] sm:$0xf0] }
 0x21d   :  { %v1511_v49 = vadd.f32 1.4214138, %v1509_v44  ;;  %v8197_v44 = vld [vmem:[%s11465_s8 + $0x104] sm:$0xf]  ;;  %v6596_v50 = vor.u32 %v8248_v8, %v6595_v13  ;;  %v6475_v13 = vld [vmem:[%s11465_s8 + $0x190] sm:$0xf] }
 0x21e   :  { %v1512_v51 = vadd.f32 1.4214138, %v1510_v10  ;;  %v6597_v10 = vld [vmem:[%s11465_s8 + $0x298] sm:$0xf0]  ;;  %v6408_v22 = vor.u32 %v8197_v44, %v6405_v47  ;;  %v8218_v8 = vld [vmem:[%s11465_s8 + $0x1a4] sm:$0xf0] }
 0x21f   :  { %v1513_v54 = vmul.f32 %v1511_v49, %v1488_v18  ;;  %v6404_v49 = vor.u32 %v8200_v36, %v6403_v35  ;;  %v6283_v35 = vld [vmem:[%s11465_s8 + $0x10] sm:$0xf]  ;;  %v8170_v36 = vld [vmem:[%s11465_s8 + $0x24] sm:$0xf0]  ;;  %v8167_v44 = vld [vmem:[%s11465_s8 + $0x14] sm:$0xf] }
 0x220   :  { %v1514_v55 = vmul.f32 %v1512_v51, %v1503_v26  ;;  %v6379_v51 = vld [vmem:[%s11465_s8 + $0xd0] sm:$0xf]  ;;  %v6285_v47 = vld [vmem:[%s11465_s8 + $0x28] sm:$0xf0] }
 0x221   :  { %v6263_v46 = vadd.f32 -0.28449672, %v1513_v54  ;;  %v8633_v63 = vpop.eup %8632  ;;  %v8194_v54 = vld [vmem:[%s11465_s8 + $0xe4] sm:$0xf0] }
 0x222   :  { %v6264_v37 = vadd.f32 -0.28449672, %v1514_v55  ;;  %v6600_v55 = vor.u32 %v8245_v48, %v6597_v10  ;;  %v8215_v48 = vld [vmem:[%s11465_s8 + $0x194] sm:$0xf]  ;;  %v6477_v10 = vld [vmem:[%s11465_s8 + $0x1a8] sm:$0xf0] }
 0x223   :  { %v1517_v23 = vmul.f32 %v6263_v46, %v1488_v18  ;;  %v6571_v46 = vld [vmem:[%s11465_s8 + $0x250] sm:$0xf] }
 0x224   :  { %v1518_v56 = vmul.f32 %v6264_v37, %v1503_v26  ;;  %v8242_v37 = vld [vmem:[%s11465_s8 + $0x264] sm:$0xf0] }
 0x225   :  { %v1519_v57 = vadd.f32 0.2548296, %v1517_v23  ;;  %v8191_v23 = vld [vmem:[%s11465_s8 + $0xd4] sm:$0xf] }
 0x226   :  { %v1520_v58 = vadd.f32 0.2548296, %v1518_v56  ;;  %v6381_v56 = vld [vmem:[%s11465_s8 + $0xe8] sm:$0xf0] }
 0x227   :  { %v1521_v60 = vmul.f32 %v1519_v57, %v1488_v18  ;;  %v6427_v18 = vld [vmem:[%s11465_s8 + $0x130] sm:$0xf]  ;;  %v8239_v57 = vld [vmem:[%s11465_s8 + $0x254] sm:$0xf] }
 0x228   :  { %v1522_v62 = vmul.f32 %v1520_v58, %v1503_v26  ;;  %v6619_v26 = vld [vmem:[%s11465_s8 + $0x2b0] sm:$0xf]  ;;  %v6428_v29 = vor.u32 %v8206_v21, %v6427_v18  ;;  %v6573_v58 = vld [vmem:[%s11465_s8 + $0x268] sm:$0xf0]  ;;  %v6307_v18 = vld [vmem:[%s11465_s8 + $0x40] sm:$0xf] }
 0x229   :  { %v1531_v0 = vmul.f32 %v8631_v61, %v1521_v60  ;;  %v6620_v34 = vor.u32 %v8254_v31, %v6619_v26  ;;  %v6380_v60 = vor.u32 %v8194_v54, %v6379_v51  ;;  %v6572_v61 = vor.u32 %v8242_v37, %v6571_v46  ;;  %v8176_v21 = vld [vmem:[%s11465_s8 + $0x54] sm:$0xf0]  ;;  %v6499_v26 = vld [vmem:[%s11465_s8 + $0x1c0] sm:$0xf] }
 0x22a   :  { %v1532_v59 = vmul.f32 %v8633_v63, %v1522_v62  ;;  %v6355_v62 = vld [vmem:[%s11465_s8 + $0xa0] sm:$0xf]  ;;  %v8188_v63 = vld [vmem:[%s11465_s8 + $0xb4] sm:$0xf0]  ;;  %v6288_v51 = vor.u32 %v8167_v44, %v6285_v47  ;;  %v6480_v54 = vor.u32 %v8215_v48, %v6477_v10 }
 0x22b   :  { %v1533_v14 = vsub.f32 1.0, %v1531_v0  ;;  %v6384_v0 = vor.u32 %v8191_v23, %v6381_v56  ;;  %v8224_v31 = vld [vmem:[%s11465_s8 + $0x1d4] sm:$0xf0] }
 0x22c   :  { %v1534_v1 = vsub.f32 1.0, %v1532_v59  ;;  %v6576_v59 = vor.u32 %v8239_v57, %v6573_v58 }
 0x22d   :  { %v1537_v2 = vsub.f32 0.0, %v1533_v14 }
 0x22e   :  { %v1538_v45 = vsub.f32 0.0, %v1534_v1 }
 0x22f   :  { %v1539_v3 = vsel %vm1535_vm9, %v1533_v14, %v1537_v2  ;;  %v6547_v14 = vld [vmem:[%s11465_s8 + $0x220] sm:$0xf]  ;;  %v8185_v2 = vld [vmem:[%s11465_s8 + $0xa4] sm:$0xf] }
 0x230   :  { %v1543_v5 = vadd.f32 1.0, %v1539_v3  ;;  %v1540_v52 = vsel %vm1536_vm10, %v1534_v1, %v1538_v45  ;;  %v8236_v1 = vld [vmem:[%s11465_s8 + $0x234] sm:$0xf0]  ;;  %v6357_v45 = vld [vmem:[%s11465_s8 + $0xb8] sm:$0xf0] }
 0x231   :  { %v1544_v38 = vadd.f32 1.0, %v1540_v52  ;;  %v8233_v3 = vld [vmem:[%s11465_s8 + $0x224] sm:$0xf]  ;;  %v6331_v52 = vld [vmem:[%s11465_s8 + $0x70] sm:$0xf]  ;;  %v6360_v53 = vor.u32 %v8185_v2, %v6357_v45 }
 0x232   :  { %v9845_v41 = vmul.f32 %v1543_v5, %v1541_v15  ;;  %v6356_v15 = vor.u32 %v8188_v63, %v6355_v62  ;;  %v6548_v5 = vor.u32 %v8236_v1, %v6547_v14 }
 0x233   :  { %v9856_v11 = vmul.f32 %v1544_v38, %v1542_v7  ;;  %v6552_v7 = vor.u32 %v8233_v3, %v6549_v4  ;;  %v6523_v38 = vld [vmem:[%s11465_s8 + $0x1f0] sm:$0xf] }
 0x234   :  { %v9860_v12 = vpack.c.bf16 %v9845_v41, %v9845_v41 }
 0x235   :  { %v9870_v19 = vpack.c.bf16 %v9856_v11, %v9856_v11 }
 0x236   :  { %2147 = vmatmul.bf16.vlgmr.msra.gmra.mxu0 %v9860_v12  ;;  %2173 = vmatmul.bf16.vlgmr.msrb.gmra.mxu1 %v9860_v12 }
 0x237   :  { %2160 = vmatmul.bf16.vlgmr.msra.gmra.mxu2 %v9870_v19  ;;  %2186 = vmatmul.bf16.vlgmr.msrb.gmra.mxu3 %v9870_v19 }
 0x238   :  { %2243 = vmatpush.bf16.msra.mxu0 %v6452_v16  ;;  %2256 = vmatpush.bf16.msra.mxu2 %v6644_v17  ;;  %v6332_v16 = vor.u32 %v8182_v6, %v6331_v52  ;;  %v6524_v17 = vor.u32 %v8230_v40, %v6523_v38 }
 0x239   :  { %2269 = vmatpush.bf16.msrb.mxu1 %v6456_v24  ;;  %2282 = vmatpush.bf16.msrb.mxu3 %v6648_v25  ;;  %v6336_v24 = vor.u32 %v8179_v27, %v6333_v42  ;;  %v6528_v25 = vor.u32 %v8227_v9, %v6525_v28 }
 0x23c   :  { %2244 = vmatpush.bf16.msra.mxu0 %v6428_v29  ;;  %2257 = vmatpush.bf16.msra.mxu2 %v6620_v34  ;;  %v6308_v29 = vor.u32 %v8176_v21, %v6307_v18  ;;  %v6500_v34 = vor.u32 %v8224_v31, %v6499_v26 }
 0x23d   :  { %2270 = vmatpush.bf16.msrb.mxu1 %v6432_v20  ;;  %2283 = vmatpush.bf16.msrb.mxu3 %v6624_v43  ;;  %v6312_v20 = vor.u32 %v8173_v32, %v6309_v33  ;;  %v6504_v43 = vor.u32 %v8221_v30, %v6501_v39 }
 0x240   :  { %2245 = vmatpush.bf16.msra.mxu0 %v6404_v49  ;;  %2258 = vmatpush.bf16.msra.mxu2 %v6596_v50  ;;  %v6284_v49 = vor.u32 %v8170_v36, %v6283_v35  ;;  %v6476_v50 = vor.u32 %v8218_v8, %v6475_v13 }
 0x241   :  { %2271 = vmatpush.bf16.msrb.mxu1 %v6408_v22  ;;  %2284 = vmatpush.bf16.msrb.mxu3 %v6600_v55  ;;  %v1645_v22 = vld [vmem:[#allocation12] sm:$0x3f] }
 0x242   :  { %v1647_v37 = vperm.slane %v1645_v22, 0  ;;  %v1648_v23 = vperm.slane %v1645_v22, 1  ;;  %v1649_v45 = vperm.slane %v1645_v22, 2  ;;  %v1650_v3 = vperm.slane %v1645_v22, 3 }
 0x243   :  { %v1651_v18 = vperm.slane %v1645_v22, 4 }
 0x244   :  { %2246 = vmatpush.bf16.msra.mxu0 %v6380_v60  ;;  %2259 = vmatpush.bf16.msra.mxu2 %v6572_v61 }
 0x245   :  { %2272 = vmatpush.bf16.msrb.mxu1 %v6384_v0  ;;  %2285 = vmatpush.bf16.msrb.mxu3 %v6576_v59 }
 0x246   :  { %2199 = vmatmul.bf16.vlgmr.msrb.gmra.mxu0 %v9860_v12  ;;  %2225 = vmatmul.bf16.vlgmr.msra.gmra.mxu1 %v9860_v12 }
 0x247   :  { %2212 = vmatmul.bf16.vlgmr.msrb.gmra.mxu2 %v9870_v19  ;;  %2238 = vmatmul.bf16.vlgmr.msra.gmra.mxu3 %v9870_v19 }
 0x248   :  { %2247 = vmatpush.bf16.msra.mxu0 %v6356_v15  ;;  %2260 = vmatpush.bf16.msra.mxu2 %v6548_v5 }
 0x249   :  { %2273 = vmatpush.bf16.msrb.mxu1 %v6360_v53  ;;  %2286 = vmatpush.bf16.msrb.mxu3 %v6552_v7 }
 0x24c   :  { %2248 = vmatpush.bf16.msra.mxu0 %v6332_v16  ;;  %2261 = vmatpush.bf16.msra.mxu2 %v6524_v17 }
 0x24d   :  { %2274 = vmatpush.bf16.msrb.mxu1 %v6336_v24  ;;  %2287 = vmatpush.bf16.msrb.mxu3 %v6528_v25  ;;  %v1652_v24 = vperm.slane %v1645_v22, 5 }
 0x250   :  { %2249 = vmatpush.bf16.msra.mxu0 %v6308_v29  ;;  %2262 = vmatpush.bf16.msra.mxu2 %v6500_v34 }
 0x251   :  { %2275 = vmatpush.bf16.msrb.mxu1 %v6312_v20  ;;  %2288 = vmatpush.bf16.msrb.mxu3 %v6504_v43 }
 0x254   :  { %2250 = vmatpush.bf16.msra.mxu0 %v6284_v49  ;;  %2263 = vmatpush.bf16.msra.mxu2 %v6476_v50 }
 0x255   :  { %2276 = vmatpush.bf16.msrb.mxu1 %v6288_v51  ;;  %2289 = vmatpush.bf16.msrb.mxu3 %v6480_v54 }
 0x257   :  { %2251 = vmatmul.bf16.vlgmr.msra.gmra.mxu0 %v9860_v12  ;;  %2264 = vmatmul.bf16.vlgmr.msra.gmra.mxu2 %v9870_v19 }
 0x258   :  { %2277 = vmatmul.bf16.vlgmr.msrb.gmra.mxu1 %v9860_v12  ;;  %2290 = vmatmul.bf16.vlgmr.msrb.gmra.mxu3 %v9870_v19 }
 0x2b3   :  { %v2148_v55 = vpop.f32.mrf.mxu0  ;;  %v2174_v46 = vpop.f32.mrf.mxu1 }
 0x2b4   :  { %v2149_v56 = vadd.f32 %v2148_v55, %v1647_v37  ;;  %v2175_v57 = vadd.f32 %v2174_v46, %v1648_v23 }
 0x2ba   :  { %v2161_v58 = vpop.f32.mrf.mxu2  ;;  %v2187_v60 = vpop.f32.mrf.mxu3 }
 0x2bb   :  { %v2162_v61 = vadd.f32 %v2161_v58, %v2149_v56  ;;  %v2188_v62 = vadd.f32 %v2187_v60, %v2175_v57  ;;  %v2150_v63 = vpop.f32.mrf.mxu0  ;;  %v2176_v0 = vpop.f32.mrf.mxu1 }
 0x2bd   :  { %v2295_v59 = vpack.c.bf16 %v2162_v61, %v2162_v61  ;;  %v2439_v14 = vpack.c.bf16 %v2188_v62, %v2188_v62 }
 0x2bf   :  { %2507 = vrot.lane.b32.xlu2 %v2439_v14, %s9087_s0  ;;  %2367 = vrot.lane.b32.xlu1 %v2295_v59, %s9087_s0 }
 0x2c2   :  { %v2163_v12 = vpop.f32.mrf.mxu2  ;;  %v2189_v19 = vpop.f32.mrf.mxu3 }
 0x2c3   :  { %v2200_v1 = vpop.f32.mrf.mxu0  ;;  %v2226_v2 = vpop.f32.mrf.mxu1 }
 0x2c4   :  { %v2201_v4 = vadd.f32 %v2200_v1, %v1649_v45  ;;  %v2227_v15 = vadd.f32 %v2226_v2, %v1650_v3 }
 0x2ca   :  { %v2213_v5 = vpop.f32.mrf.mxu2  ;;  %v2239_v52 = vpop.f32.mrf.mxu3 }
 0x2cb   :  { %v2214_v6 = vadd.f32 %v2213_v5, %v2201_v4  ;;  %v2240_v53 = vadd.f32 %v2239_v52, %v2227_v15  ;;  %v2202_v7 = vpop.f32.mrf.mxu0  ;;  %v2228_v38 = vpop.f32.mrf.mxu1 }
 0x2cd   :  { %v2296_v40 = vpack.c.bf16 %v2214_v6, %v2214_v6  ;;  %v2440_v27 = vpack.c.bf16 %v2240_v53, %v2240_v53 }
 0x2cf   :  { %v2302_v42 = vsel %vm2297_vm11, %v2296_v40, 0  ;;  %v2445_v9 = vsel %vm2297_vm11, %v2440_v27, 0  ;;  %2370 = vrot.lane.b32.xlu0 %v2296_v40, %s9087_s0  ;;  %2510 = vrot.lane.b32.xlu1 %v2440_v27, %s9087_s0 }
 0x2d0   :  { %2311 = vmatpush.bf16.xpose.msrb.mxu0 %v2302_v42 }
 0x2d2   :  { %v2215_v28 = vpop.f32.mrf.mxu2  ;;  %v2241_v16 = vpop.f32.mrf.mxu3 }
 0x2d4   :  { %v2252_v17 = vpop.f32.mrf.mxu0 }
 0x2d5   :  { %v2278_v21 = vpop.f32.mrf.mxu1  ;;  %v2253_v25 = vadd.f32 %v2252_v17, %v1651_v18 }
 0x2d6   :  { %v2279_v26 = vadd.f32 %v2278_v21, %v1652_v24 }
 0x2d7   :  { %6649 = vmatmul.msk.bf16.vlgmr.msrb.gmra.mxu0 %vm2297_vm11, %v2295_v59 }
 0x2d8   :  { %2454 = vmatpush.bf16.xpose.msra.mxu0 %v2445_v9 }
 0x2da   :  { %v2265_v31 = vpop.f32.mrf.mxu2 }
 0x2db   :  { %v2266_v32 = vadd.f32 %v2265_v31, %v2253_v25  ;;  %v2291_v33 = vpop.f32.mrf.mxu3 }
 0x2dc   :  { %v2292_v30 = vadd.f32 %v2291_v33, %v2279_v26  ;;  %v2254_v39 = vpop.f32.mrf.mxu0 }
 0x2dd   :  { %v2344_v29 = vpack.c.bf16 %v2266_v32, %v2266_v32  ;;  %v2280_v34 = vpop.f32.mrf.mxu1 }
 0x2de   :  { %v10053_v35 = vpack.c.bf16 %v2292_v30, %v2292_v30 }
 0x2df   :  { %v2351_v36 = vsel %vm2349_vm12, %v2344_v29, 0 }
 0x2e0   :  { %v2491_v20 = vsel %vm2349_vm12, %v10053_v35, 0  ;;  %2360 = vmatpush.bf16.msrb.mxu2 %v2351_v36 }
 0x2e2   :  { %v2267_v43 = vpop.f32.mrf.mxu2 }
 0x2e3   :  { %v2293_v13 = vpop.f32.mrf.mxu3 }
 0x2e4   :  { %2500 = vmatpush.bf16.msra.mxu2 %v2491_v20 }
 0x2e7   :  { %6653 = vmatmul.msk.bf16.vlgmr.msra.gmra.mxu0 %vm2297_vm11, %v2439_v14 }
 0x319   :  { %v2508_v54 = vpop.permute.xlu2 %2507 }
 0x331   :  { %v2368_v8 = vpop.permute.xlu1 %2367 }
 0x341   :  { %v2371_v44 = vpop.permute.xlu0 %2370  ;;  %v2511_v47 = vpop.permute.xlu1 %2510 }
 0x342   :  { %v2376_v48 = vsel %vm2297_vm11, %v2371_v44, 0  ;;  %v2516_v10 = vsel %vm2297_vm11, %v2511_v47, 0 }
 0x343   :  { %2385 = vmatpush.bf16.xpose.msra.mxu1 %v2376_v48 }
 0x34a   :  { %6651 = vmatmul.msk.bf16.vlgmr.msra.gmra.mxu1 %vm2297_vm11, %v2368_v8 }
 0x34b   :  { %2525 = vmatpush.bf16.xpose.msrb.mxu1 %v2516_v10 }
 0x354   :  { %v2313_v49 = vpop.f32.mrf.mxu0 }
 0x355   :  { %v2317_v50 = vmul.f32 0.125, %v2313_v49 }
 0x357   :  { %v2319_v51 = vsel %vm2318_vm13, %v2317_v50, -inf }
 0x358   :  { %2320 = vmax.xlane.f32.xlu1 %v2319_v51 }
 0x35a   :  { %6655 = vmatmul.msk.bf16.vlgmr.msrb.gmra.mxu1 %vm2297_vm11, %v2508_v54 }
 0x35c   :  { %v2315_v22 = vpop.f32.mrf.mxu0 }
 0x364   :  { %v2456_v55 = vpop.f32.mrf.mxu0 }
 0x365   :  { %v2460_v57 = vmul.f32 0.125, %v2456_v55 }
 0x367   :  { %v2461_v60 = vsel %vm2318_vm13, %v2460_v57, -inf }
 0x36c   :  { %v2458_v46 = vpop.f32.mrf.mxu0 }
 0x371   :  { %2418 = vrot.lane.b32.xlu1 %v2344_v29, %s9087_s0 }
 0x3c7   :  { %v2387_v37 = vpop.f32.mrf.mxu1 }
 0x3c8   :  { %v2391_v23 = vmul.f32 0.125, %v2387_v37 }
 0x3ca   :  { %v2392_v56 = vsel %vm2318_vm13, %v2391_v23, -inf }
 0x3cb   :  { %2393 = vmax.xlane.f32.xlu2 %v2392_v56  ;;  %v2321_v0 = vpop.xlane.xlu1 %2320 }
 0x3cc   :  { %v2322_v5 = vsub.f32 %v2317_v50, %v2321_v0 }
 0x3ce   :  { %v2323_v6 = vmul.f32 1.442695, %v2322_v5 }
 0x3cf   :  { %v2389_v58 = vpop.f32.mrf.mxu1 }
 0x3d3   :  { %2462 = vmax.xlane.f32.xlu2 %v2461_v60 }
 0x3d7   :  { %v2527_v61 = vpop.f32.mrf.mxu1 }
 0x3d8   :  { %v2531_v62 = vmul.f32 0.125, %v2527_v61 }
 0x3da   :  { %v2532_v63 = vsel %vm2318_vm13, %v2531_v62, -inf }
 0x3db   :  { %2533 = vmax.xlane.f32.xlu0 %v2532_v63 }
 0x3df   :  { %v2529_v59 = vpop.f32.mrf.mxu1 }
 0x3e3   :  { %v2419_v14 = vpop.permute.xlu1 %2418 }
 0x3e4   :  { %v2424_v12 = vsel %vm2349_vm12, %v2419_v14, 0 }
 0x3e5   :  { %2433 = vmatpush.bf16.msra.mxu3 %v2424_v12 }
 0x43e   :  { %v2394_v19 = vpop.xlane.xlu2 %2393 }
 0x43f   :  { %v2395_v1 = vsub.f32 %v2391_v23, %v2394_v19 }
 0x441   :  { %v2396_v2 = vmul.f32 1.442695, %v2395_v1 }
 0x443   :  { %8634 = vpow2.f32 %v2396_v2 }
 0x446   :  { %v2463_v53 = vpop.xlane.xlu2 %2462 }
 0x447   :  { %v2464_v38 = vsub.f32 %v2460_v57, %v2463_v53 }
 0x449   :  { %v8635_v45 = vpop.eup %8634  ;;  %v2465_v27 = vmul.f32 1.442695, %v2464_v38 }
 0x44a   :  { %v2398_v3 = vsel %vm2318_vm13, %v8635_v45, 0.0 }
 0x44b   :  { %2399 = vadd.xlane.f32.xlu2 %v2398_v3 }
 0x44e   :  { %v2534_v4 = vpop.xlane.xlu0 %2533 }
 0x44f   :  { %v2535_v15 = vsub.f32 %v2531_v62, %v2534_v4 }
 0x451   :  { %v2536_v52 = vmul.f32 1.442695, %v2535_v15 }
 0x453   :  { %8636 = vpow2.f32 %v2536_v52 }
 0x454   :  { %8638 = vpow2.f32 %v2323_v6 }
 0x455   :  { %8640 = vpow2.f32 %v2465_v27  ;;  %v6715_v27 = vld [vmem:[#allocation13 + $0x70] sm:$0xf] }
 0x459   :  { %v8637_v7 = vpop.eup %8636 }
 0x45a   :  { %v2538_v40 = vsel %vm2318_vm13, %v8637_v7, 0.0  ;;  %v10071_v42 = vpop.eup %8638 }
 0x45b   :  { %2539 = vadd.xlane.f32.xlu0 %v2538_v40  ;;  %v2325_v9 = vsel %vm2318_vm13, %v10071_v42, 0.0  ;;  %v10077_v28 = vpop.eup %8640 }
 0x45c   :  { %v2467_v16 = vsel %vm2318_vm13, %v10077_v28, 0.0 }
 0x463   :  { %2326 = vadd.xlane.f32.xlu0 %v2325_v9  ;;  %2558 = vrot.lane.b32.xlu2 %v10053_v35, %s9087_s0  ;;  %v8275_v9 = vld [vmem:[#allocation13 + $0x74] sm:$0xf] }
 0x46b   :  { %2468 = vadd.xlane.f32.xlu0 %v2467_v16 }
 0x4be   :  { %v2400_v17 = vpop.xlane.xlu2 %2399 }
 0x4bf   :  { %8642 = vrcp.f32 %v2400_v17  ;;  %v2412_v31 = vand.u32 2147483648, %v2400_v17  ;;  %v2410_v33 = vand.u32 2147483647, %v2400_v17  ;;  %vm2406_vm15 = vweird.f32 %v2400_v17 }
 0x4c1   :  { %v2413_v39 = vor.u32 1.1754944e-38, %v2412_v31  ;;  %vm2411_vm1 = vcmp.eq.f32.partialorder %v2410_v33, 8.507059e+37  ;;  %v8272_v33 = vld [vmem:[#allocation13 + $0x54] sm:$0xf0] }
 0x4c5   :  { %v8643_v18 = vpop.eup %8642 }
 0x4c6   :  { %v2402_v21 = vmul.f32 %v8643_v18, %v2400_v17  ;;  %v2559_v24 = vpop.permute.xlu2 %2558  ;;  %vm2407_vm14 = vweird.f32 %v8643_v18  ;;  %v6717_v17 = vld [vmem:[#allocation13 + $0x78] sm:$0xf0] }
 0x4c7   :  { %v2564_v25 = vsel %vm2349_vm12, %v2559_v24, 0  ;;  %vm2408_vm0 = vmor %vm2406_vm15, %vm2407_vm14  ;;  %v6720_v24 = vor.u32 %v8275_v9, %v6717_v17  ;;  %v8262_v17 = vld [vmem:[#allocation13 + $0x4] sm:$0xf0] }
 0x4c8   :  { %v2403_v26 = vsub.f32 1.0, %v2402_v21  ;;  %2573 = vmatpush.bf16.msrb.mxu3 %v2564_v25  ;;  %v8274_v21 = vld [vmem:[#allocation13 + $0x64] sm:$0xf0]  ;;  %v8273_v25 = vld [vmem:[#allocation13 + $0x64] sm:$0xf] }
 0x4c9   :  { %2815 = vmatpush.bf16.msra.mxu1 %v6720_v24  ;;  %v8286_v24 = vld [vmem:[#allocation13 + $0xc4] sm:$0xf0] }
 0x4ca   :  { %v2404_v32 = vmul.f32 %v8643_v18, %v2403_v26 }
 0x4cc   :  { %v2405_v30 = vadd.f32 %v8643_v18, %v2404_v32  ;;  %v6699_v32 = vld [vmem:[#allocation13 + $0x50] sm:$0xf] }
 0x4ce   :  { %v2409_v29 = vsel %vm2408_vm0, %v8643_v18, %v2405_v30  ;;  %v2540_v34 = vpop.xlane.xlu0 %2539  ;;  %v6707_v18 = vld [vmem:[#allocation13 + $0x60] sm:$0xf]  ;;  %v8271_v30 = vld [vmem:[#allocation13 + $0x54] sm:$0xf] }
 0x4cf   :  { %v2414_v35 = vsel %vm2411_vm1, %v2413_v39, %v2409_v29  ;;  %8644 = vrcp.f32 %v2540_v34  ;;  %v2552_v47 = vand.u32 2147483648, %v2540_v34  ;;  %v2550_v10 = vand.u32 2147483647, %v2540_v34  ;;  %v6701_v39 = vld [vmem:[#allocation13 + $0x58] sm:$0xf0] }
 0x4d0   :  { %v2415_v36 = vmul.f32 %v8635_v45, %v2414_v35  ;;  %vm2546_vm4 = vweird.f32 %v2540_v34  ;;  %v6708_v26 = vor.u32 %v8274_v21, %v6707_v18  ;;  %v6779_v29 = vld [vmem:[#allocation13 + $0xf0] sm:$0xf]  ;;  %v6700_v35 = vor.u32 %v8272_v33, %v6699_v32  ;;  %v6755_v18 = vld [vmem:[#allocation13 + $0xc0] sm:$0xf]  ;;  %v8285_v32 = vld [vmem:[#allocation13 + $0xc4] sm:$0xf] }
 0x4d1   :  { %v2553_v51 = vor.u32 1.1754944e-38, %v2552_v47  ;;  %vm2551_vm6 = vcmp.eq.f32.partialorder %v2550_v10, 8.507059e+37  ;;  %v6691_v47 = vld [vmem:[#allocation13 + $0x40] sm:$0xf]  ;;  %v6757_v33 = vld [vmem:[#allocation13 + $0xc8] sm:$0xf0] }
 0x4d2   :  { %v2416_v20 = vpack.c.bf16 %v2415_v36, %v2415_v36 }
 0x4d4   :  { %6652 = vmatmul.msk.bf16.vlgmr.msra.gmra.mxu3 %vm2345_vm2, %v2416_v20  ;;  %v8291_v20 = vld [vmem:[#allocation13 + $0xf4] sm:$0xf] }
 0x4d5   :  { %v8645_v43 = vpop.eup %8644 }
 0x4d6   :  { %v2542_v13 = vmul.f32 %v8645_v43, %v2540_v34  ;;  %v2327_v8 = vpop.xlane.xlu0 %2326  ;;  %vm2547_vm3 = vweird.f32 %v8645_v43  ;;  %v8292_v34 = vld [vmem:[#allocation13 + $0xf4] sm:$0xf0] }
 0x4d7   :  { %8646 = vrcp.f32 %v2327_v8  ;;  %vm2548_vm5 = vmor %vm2546_vm4, %vm2547_vm3  ;;  %v2339_v56 = vand.u32 2147483648, %v2327_v8  ;;  %v2337_v58 = vand.u32 2147483647, %v2327_v8  ;;  %vm2333_vm8 = vweird.f32 %v2327_v8 }
 0x4d8   :  { %v2543_v44 = vsub.f32 1.0, %v2542_v13  ;;  %v6780_v36 = vor.u32 %v8292_v34, %v6779_v29  ;;  %v8284_v29 = vld [vmem:[#allocation13 + $0xb4] sm:$0xf0]  ;;  %v8283_v34 = vld [vmem:[#allocation13 + $0xb4] sm:$0xf]  ;;  %vm2844_vm3 = vcmask 1041408  }
 0x4d9   :  { %v2340_v63 = vor.u32 1.1754944e-38, %v2339_v56  ;;  %vm2338_vm10 = vcmp.eq.f32.partialorder %v2337_v58, 8.507059e+37  ;;  %v6763_v56 = vld [vmem:[#allocation13 + $0xd0] sm:$0xf] }
 0x4da   :  { %v2544_v48 = vmul.f32 %v8645_v43, %v2543_v44  ;;  %v6704_v44 = vor.u32 %v8271_v30, %v6701_v39  ;;  %v6760_v30 = vor.u32 %v8285_v32, %v6757_v33  ;;  %v6747_v39 = vld [vmem:[#allocation13 + $0xb0] sm:$0xf] }
 0x4dc   :  { %v2545_v49 = vadd.f32 %v8645_v43, %v2544_v48  ;;  %v8270_v48 = vld [vmem:[#allocation13 + $0x44] sm:$0xf0] }
 0x4dd   :  { %v8647_v50 = vpop.eup %8646 }
 0x4de   :  { %v2549_v54 = vsel %vm2548_vm5, %v8645_v43, %v2545_v49  ;;  %v2329_v22 = vmul.f32 %v8647_v50, %v2327_v8  ;;  %v2469_v55 = vpop.xlane.xlu0 %2468  ;;  %vm2334_vm7 = vweird.f32 %v8647_v50  ;;  %v6781_v43 = vld [vmem:[#allocation13 + $0xf8] sm:$0xf0]  ;;  %v6771_v49 = vld [vmem:[#allocation13 + $0xe0] sm:$0xf] }
 0x4df   :  { %v2554_v46 = vsel %vm2551_vm6, %v2553_v51, %v2549_v54  ;;  %8648 = vrcp.f32 %v2469_v55  ;;  %vm2335_vm9 = vmor %vm2333_vm8, %vm2334_vm7  ;;  %v2481_v3 = vand.u32 2147483648, %v2469_v55  ;;  %vm2475_vm15 = vweird.f32 %v2469_v55  ;;  %v6693_v51 = vld [vmem:[#allocation13 + $0x48] sm:$0xf0]  ;;  %v8290_v54 = vld [vmem:[#allocation13 + $0xe4] sm:$0xf0] }
 0x4e0   :  { %v2555_v37 = vmul.f32 %v8637_v7, %v2554_v46  ;;  %v2330_v23 = vsub.f32 1.0, %v2329_v22  ;;  %v2479_v4 = vand.u32 2147483647, %v2469_v55  ;;  %v6784_v10 = vor.u32 %v8291_v20, %v6781_v43  ;;  %v6773_v46 = vld [vmem:[#allocation13 + $0xe8] sm:$0xf0] }
 0x4e1   :  { %v2482_v5 = vor.u32 1.1754944e-38, %v2481_v3  ;;  %v6772_v22 = vor.u32 %v8290_v54, %v6771_v49  ;;  %v8266_v3 = vld [vmem:[#allocation13 + $0x24] sm:$0xf0]  ;;  %v6739_v20 = vld [vmem:[#allocation13 + $0xa0] sm:$0xf] }
 0x4e2   :  { %v2331_v57 = vmul.f32 %v8647_v50, %v2330_v23  ;;  %v2556_v60 = vpack.c.bf16 %v2555_v37, %v2555_v37  ;;  %vm2480_vm1 = vcmp.eq.f32.partialorder %v2479_v4, 8.507059e+37  ;;  %2828 = vmatpush.bf16.msra.mxu3 %v6784_v10  ;;  %v6692_v37 = vor.u32 %v8270_v48, %v6691_v47  ;;  %v8265_v4 = vld [vmem:[#allocation13 + $0x24] sm:$0xf]  ;;  %v8282_v43 = vld [vmem:[#allocation13 + $0xa4] sm:$0xf0] }
 0x4e3   :  { %v6741_v47 = vld [vmem:[#allocation13 + $0xa8] sm:$0xf0]  ;;  %v6740_v48 = vor.u32 %v8282_v43, %v6739_v20  ;;  %v6731_v49 = vld [vmem:[#allocation13 + $0x90] sm:$0xf]  ;;  %v6733_v54 = vld [vmem:[#allocation13 + $0x98] sm:$0xf0] }
 0x4e4   :  { %v2332_v61 = vadd.f32 %v8647_v50, %v2331_v57  ;;  %6656 = vmatmul.msk.bf16.vlgmr.msrb.gmra.mxu3 %vm2345_vm2, %v2556_v60  ;;  %v8288_v57 = vld [vmem:[#allocation13 + $0xd4] sm:$0xf0]  ;;  %v6683_v60 = vld [vmem:[#allocation13 + $0x30] sm:$0xf] }
 0x4e5   :  { %v8649_v62 = vpop.eup %8648  ;;  %v8307_v20 = vld [vmem:[#allocation16 + $0x70] sm:$0xff]  ;;  %v8298_v43 = vld [vmem:[#allocation16 + $0x28] sm:$0xff] }
 0x4e6   :  { %v2336_v0 = vsel %vm2335_vm9, %v8647_v50, %v2332_v61  ;;  %v2471_v59 = vmul.f32 %v8649_v62, %v2469_v55  ;;  %vm2476_vm14 = vweird.f32 %v8649_v62  ;;  %v8269_v50 = vld [vmem:[#allocation13 + $0x44] sm:$0xf]  ;;  %v8268_v61 = vld [vmem:[#allocation13 + $0x34] sm:$0xf0] }
 0x4e7   :  { %v2341_v14 = vsel %vm2338_vm10, %v2340_v63, %v2336_v0  ;;  %vm2477_vm0 = vmor %vm2475_vm15, %vm2476_vm14  ;;  %v8289_v55 = vld [vmem:[#allocation13 + $0xe4] sm:$0xf]  ;;  %v6696_v58 = vor.u32 %v8269_v50, %v6693_v51  ;;  %v8267_v63 = vld [vmem:[#allocation13 + $0x34] sm:$0xf] }
 0x4e8   :  { %v2342_v12 = vmul.f32 %v10071_v42, %v2341_v14  ;;  %v2472_v19 = vsub.f32 1.0, %v2471_v59  ;;  %v8276_v42 = vld [vmem:[#allocation13 + $0x74] sm:$0xf0]  ;;  %v6776_v23 = vor.u32 %v8289_v55, %v6773_v46  ;;  %v6685_v0 = vld [vmem:[#allocation13 + $0x38] sm:$0xf0]  ;;  %v6764_v59 = vor.u32 %v8288_v57, %v6763_v56 }
 0x4e9   :  { %v6716_v16 = vor.u32 %v8276_v42, %v6715_v27  ;;  %v6765_v14 = vld [vmem:[#allocation13 + $0xd8] sm:$0xf0]  ;;  %v8280_v50 = vld [vmem:[#allocation13 + $0x94] sm:$0xf0]  ;;  %v8279_v51 = vld [vmem:[#allocation13 + $0x94] sm:$0xf] }
 0x4ea   :  { %v2473_v1 = vmul.f32 %v8649_v62, %v2472_v19  ;;  %v2343_v2 = vpack.c.bf16 %v2342_v12, %v2342_v12  ;;  %2829 = vmatpush.bf16.msra.mxu3 %v6776_v23  ;;  %v6684_v19 = vor.u32 %v8268_v61, %v6683_v60  ;;  %v6736_v55 = vor.u32 %v8279_v51, %v6733_v54  ;;  %v6723_v46 = vld [vmem:[#allocation13 + $0x80] sm:$0xf]  ;;  %v8277_v23 = vld [vmem:[#allocation13 + $0x84] sm:$0xf]  ;;  %v6725_v57 = vld [vmem:[#allocation13 + $0x88] sm:$0xf0] }
 0x4eb   :  { %2789 = vmatpush.bf16.msrb.mxu0 %v6716_v16  ;;  %v6659_v16 = vld [vmem:[#allocation13] sm:$0xf]  ;;  %v8294_v51 = vld [vmem:[#allocation16 + $0x8] sm:$0xff] }
 0x4ec   :  { %v2474_v45 = vadd.f32 %v8649_v62, %v2473_v1  ;;  %6650 = vmatmul.msk.bf16.vlgmr.msrb.gmra.mxu2 %vm2345_vm2, %v2343_v2  ;;  %v6688_v2 = vor.u32 %v8267_v63, %v6685_v0  ;;  %v6660_v21 = vor.u32 %v8262_v17, %v6659_v16  ;;  %v9107_v16 = vmov 256.0   ;;  %v8300_v17 = vld [vmem:[#allocation16 + $0x38] sm:$0xff]  ;;  %v8302_v54 = vld [vmem:[#allocation16 + $0x48] sm:$0xff] }
 0x4ed   :  { %2802 = vmatpush.bf16.msrb.mxu2 %v6780_v36  ;;  %v6749_v36 = vld [vmem:[#allocation13 + $0xb8] sm:$0xf0]  ;;  %8650 = vrcp.f32 %v9107_v16  ;;  %v6877_v16 = vld [vmem:[#allocation19 + $0x38] sm:$0xf0] }
 0x4ee   :  { %v2478_v15 = vsel %vm2477_vm0, %v8649_v62, %v2474_v45  ;;  %v8287_v62 = vld [vmem:[#allocation13 + $0xd4] sm:$0xf]  ;;  %v6675_v45 = vld [vmem:[#allocation13 + $0x20] sm:$0xf] }
 0x4ef   :  { %v2483_v52 = vsel %vm2480_vm1, %v2482_v5, %v2478_v15  ;;  %2790 = vmatpush.bf16.msrb.mxu0 %v6708_v26  ;;  %v6768_v12 = vor.u32 %v8287_v62, %v6765_v14  ;;  %v6677_v15 = vld [vmem:[#allocation13 + $0x28] sm:$0xf0]  ;;  %v6676_v5 = vor.u32 %v8266_v3, %v6675_v45  ;;  %v6756_v26 = vor.u32 %v8286_v24, %v6755_v18  ;;  %v8308_v18 = vld [vmem:[#allocation16 + $0x78] sm:$0xff] }
 0x4f0   :  { %v2484_v6 = vmul.f32 %v10077_v28, %v2483_v52  ;;  %v6709_v28 = vld [vmem:[#allocation13 + $0x68] sm:$0xf0]  ;;  %v6680_v52 = vor.u32 %v8265_v4, %v6677_v15 }
 0x4f1   :  { %v6712_v31 = vor.u32 %v8273_v25, %v6709_v28  ;;  %2803 = vmatpush.bf16.msrb.mxu2 %v6772_v22  ;;  %2830 = vmatpush.bf16.msra.mxu3 %v6768_v12  ;;  %v8261_v25 = vld [vmem:[#allocation13 + $0x4] sm:$0xf]  ;;  %v6661_v28 = vld [vmem:[#allocation13 + $0x8] sm:$0xf0]  ;;  %v6732_v22 = vor.u32 %v8280_v50, %v6731_v49  ;;  %v8295_v49 = vld [vmem:[#allocation16 + $0x10] sm:$0xff] }
 0x4f2   :  { %v2485_v53 = vpack.c.bf16 %v2484_v6, %v2484_v6  ;;  %v6667_v6 = vld [vmem:[#allocation13 + $0x10] sm:$0xf]  ;;  %v8303_v50 = vld [vmem:[#allocation16 + $0x50] sm:$0xff] }
 0x4f3   :  { %2816 = vmatpush.bf16.msra.mxu1 %v6712_v31  ;;  %2791 = vmatpush.bf16.msrb.mxu0 %v6700_v35  ;;  %v6664_v31 = vor.u32 %v8261_v25, %v6661_v28  ;;  %v6748_v35 = vor.u32 %v8284_v29, %v6747_v39 }
 0x4f5   :  { %2804 = vmatpush.bf16.msrb.mxu2 %v6764_v59  ;;  %2831 = vmatpush.bf16.msra.mxu3 %v6760_v30 }
 0x4f7   :  { %2817 = vmatpush.bf16.msra.mxu1 %v6704_v44  ;;  %2792 = vmatpush.bf16.msrb.mxu0 %v6692_v37  ;;  %v8281_v44 = vld [vmem:[#allocation13 + $0xa4] sm:$0xf]  ;;  %v8278_v37 = vld [vmem:[#allocation13 + $0x84] sm:$0xf0] }
 0x4f8   :  { %v6744_v10 = vor.u32 %v8281_v44, %v6741_v47  ;;  %v6724_v56 = vor.u32 %v8278_v37, %v6723_v46  ;;  %v8297_v44 = vld [vmem:[#allocation16 + $0x20] sm:$0xff]  ;;  %v6907_v46 = vld [vmem:[#allocation19 + $0x70] sm:$0xf]  ;;  %v8324_v37 = vld [vmem:[#allocation19 + $0x74] sm:$0xf0] }
 0x4f9   :  { %2805 = vmatpush.bf16.msrb.mxu2 %v6756_v26  ;;  %v8305_v47 = vld [vmem:[#allocation16 + $0x60] sm:$0xff] }
 0x4fb   :  { %2818 = vmatpush.bf16.msra.mxu1 %v6696_v58  ;;  %2793 = vmatpush.bf16.msrb.mxu0 %v6684_v19  ;;  %v6728_v58 = vor.u32 %v8277_v23, %v6725_v57  ;;  %v8323_v23 = vld [vmem:[#allocation19 + $0x74] sm:$0xf]  ;;  %v6908_v57 = vor.u32 %v8324_v37, %v6907_v46  ;;  %v6869_v46 = vld [vmem:[#allocation19 + $0x28] sm:$0xf0] }
 0x4fc   :  { %6654 = vmatmul.msk.bf16.vlgmr.msra.gmra.mxu2 %vm2345_vm2, %v2485_v53  ;;  %v8264_v53 = vld [vmem:[#allocation13 + $0x14] sm:$0xf0] }
 0x4fd   :  { %2806 = vmatpush.bf16.msrb.mxu2 %v6748_v35 }
 0x4ff   :  { %2819 = vmatpush.bf16.msra.mxu1 %v6688_v2  ;;  %2794 = vmatpush.bf16.msrb.mxu0 %v6676_v5  ;;  %v2623_v2 = vld [vmem:[#allocation15] sm:$0x3] }
 0x500   :  { %v2625_v45 = vperm.slane %v2623_v2, 0  ;;  %v2626_v3 = vperm.slane %v2623_v2, 1  ;;  %v8320_v2 = vld [vmem:[#allocation19 + $0x54] sm:$0xf0] }
 0x501   :  { %2807 = vmatpush.bf16.msrb.mxu2 %v6740_v48  ;;  %v8296_v48 = vld [vmem:[#allocation16 + $0x18] sm:$0xff] }
 0x503   :  { %2820 = vmatpush.bf16.msra.mxu1 %v6680_v52 }
 0x505   :  { %2808 = vmatpush.bf16.msrb.mxu2 %v6732_v22  ;;  %v8293_v22 = vld [vmem:[#allocation16] sm:$0xff] }
 0x509   :  { %2809 = vmatpush.bf16.msrb.mxu2 %v6724_v56 }
 0x50d   :  { %3045 = vmatpush.bf16.msra.mxu2 %v8308_v18  ;;  %v10113_v18 = vld [vmem:[#allocation22] sm:$0xff] }
 0x511   :  { %3046 = vmatpush.bf16.msra.mxu2 %v8307_v20 }
 0x557   :  { %v2435_v7 = vpop.f32.mrf.mxu3 }
 0x558   :  { %2580 = vrot.lane.b32.xlu1 %v2435_v7, %s9087_s0  ;;  %v8263_v7 = vld [vmem:[#allocation13 + $0x14] sm:$0xf] }
 0x55f   :  { %v2437_v38 = vpop.f32.mrf.mxu3 }
 0x560   :  { %v6669_v38 = vld [vmem:[#allocation13 + $0x18] sm:$0xf0] }
 0x561   :  { %v6672_v42 = vor.u32 %v8263_v7, %v6669_v38 }
 0x563   :  { %2821 = vmatpush.bf16.msra.mxu1 %v6672_v42 }
 0x567   :  { %v2575_v40 = vpop.f32.mrf.mxu3  ;;  %2822 = vmatpush.bf16.msra.mxu1 %v6664_v31 }
 0x568   :  { %2584 = vrot.lane.b32.xlu0 %v2575_v40, %s9087_s0  ;;  %v6668_v40 = vor.u32 %v8264_v53, %v6667_v6 }
 0x56a   :  { %2795 = vmatpush.bf16.msrb.mxu0 %v6668_v40 }
 0x56b   :  { %3162 = vmatpush.bf16.msrb.mxu1 %v6908_v57  ;;  %v6861_v57 = vld [vmem:[#allocation19 + $0x18] sm:$0xf0] }
 0x56e   :  { %2796 = vmatpush.bf16.msrb.mxu0 %v6660_v21  ;;  %v8651_v21 = vpop.eup %8650 }
 0x56f   :  { %v10090_v13 = vpop.f32.mrf.mxu2  ;;  %v2577_v8 = vpop.f32.mrf.mxu3  ;;  %v2851_v24 = vmul.f32 256.0, %v8651_v21  ;;  %vm2855_vm4 = vweird.f32 %v8651_v21 }
 0x570   :  { %v6752_v8 = vor.u32 %v8283_v34, %v6749_v36  ;;  %v8299_v36 = vld [vmem:[#allocation16 + $0x30] sm:$0xff] }
 0x571   :  { %v2852_v25 = vsub.f32 1.0, %v2851_v24 }
 0x572   :  { %2832 = vmatpush.bf16.msra.mxu3 %v6752_v8  ;;  %3032 = vmatpush.bf16.msra.mxu0 %v8300_v17  ;;  %v8306_v8 = vld [vmem:[#allocation16 + $0x68] sm:$0xff] }
 0x573   :  { %3047 = vmatpush.bf16.msra.mxu2 %v8306_v8 }
 0x576   :  { %2833 = vmatpush.bf16.msra.mxu3 %v6744_v10  ;;  %3033 = vmatpush.bf16.msra.mxu0 %v8299_v36  ;;  %v8304_v10 = vld [vmem:[#allocation16 + $0x58] sm:$0xff] }
 0x577   :  { %v2364_v1 = vpop.f32.mrf.mxu2  ;;  %3048 = vmatpush.bf16.msra.mxu2 %v8305_v47 }
 0x57a   :  { %2834 = vmatpush.bf16.msra.mxu3 %v6736_v55  ;;  %3034 = vmatpush.bf16.msra.mxu0 %v8298_v43  ;;  %v8301_v55 = vld [vmem:[#allocation16 + $0x40] sm:$0xff] }
 0x57b   :  { %3049 = vmatpush.bf16.msra.mxu2 %v8304_v10 }
 0x57e   :  { %2835 = vmatpush.bf16.msra.mxu3 %v6728_v58  ;;  %3035 = vmatpush.bf16.msra.mxu0 %v8297_v44  ;;  %v6909_v58 = vld [vmem:[#allocation19 + $0x78] sm:$0xf0] }
 0x57f   :  { %v2502_v27 = vpop.f32.mrf.mxu2  ;;  %3050 = vmatpush.bf16.msra.mxu2 %v8303_v50 }
 0x582   :  { %3036 = vmatpush.bf16.msra.mxu0 %v8296_v48 }
 0x583   :  { %3051 = vmatpush.bf16.msra.mxu2 %v8302_v54  ;;  %v8314_v54 = vld [vmem:[#allocation19 + $0x24] sm:$0xf0] }
 0x586   :  { %3037 = vmatpush.bf16.msra.mxu0 %v8295_v49 }
 0x587   :  { %v2504_v9 = vpop.f32.mrf.mxu2  ;;  %3052 = vmatpush.bf16.msra.mxu2 %v8301_v55 }
 0x58a   :  { %3038 = vmatpush.bf16.msra.mxu0 %v8294_v51  ;;  %v6867_v51 = vld [vmem:[#allocation19 + $0x20] sm:$0xf] }
 0x58b   :  { %v6868_v55 = vor.u32 %v8314_v54, %v6867_v51  ;;  %v7349_v54 = vld [vmem:[%s11465_s8 + $0x5b8] sm:$0xf0] }
 0x58e   :  { %3039 = vmatpush.bf16.msra.mxu0 %v8293_v22  ;;  %v8313_v22 = vld [vmem:[#allocation19 + $0x24] sm:$0xf] }
 0x58f   :  { %v6872_v37 = vor.u32 %v8313_v22, %v6869_v46  ;;  %v7131_v22 = vld [vmem:[%s11465_s8 + $0x3f0] sm:$0xf] }
 0x5ca   :  { %v2581_v60 = vpop.permute.xlu1 %2580 }
 0x5cb   :  { %v2587_v61 = vsel %vm2297_vm11, %v10090_v13, %v2581_v60  ;;  %v6899_v60 = vld [vmem:[#allocation19 + $0x60] sm:$0xf] }
 0x5cc   :  { %v2621_v62 = vpack.c.bf16 %v2587_v61, %v2587_v61  ;;  %v8322_v61 = vld [vmem:[#allocation19 + $0x64] sm:$0xf0] }
 0x5ce   :  { %2797 = vmatmul.bf16.vlgmr.msrb.gmra.mxu0 %v2621_v62  ;;  %2823 = vmatmul.bf16.vlgmr.msra.gmra.mxu1 %v2621_v62 }
 0x5da   :  { %v2585_v63 = vpop.permute.xlu0 %2584 }
 0x5db   :  { %v2588_v0 = vsel %vm2297_vm11, %v2502_v27, %v2585_v63  ;;  %v6912_v63 = vor.u32 %v8323_v23, %v6909_v58  ;;  %v8311_v23 = vld [vmem:[#allocation19 + $0x14] sm:$0xf] }
 0x5dc   :  { %v2622_v59 = vpack.c.bf16 %v2588_v0, %v2588_v0  ;;  %v8321_v0 = vld [vmem:[#allocation19 + $0x64] sm:$0xf]  ;;  %v6864_v58 = vor.u32 %v8311_v23, %v6861_v57  ;;  %v8403_v57 = vld [vmem:[%s11465_s8 + $0x574] sm:$0xf] }
 0x5dd   :  { %3175 = vmatpush.bf16.msrb.mxu3 %v6912_v63 }
 0x5de   :  { %2810 = vmatmul.bf16.vlgmr.msrb.gmra.mxu2 %v2622_v59  ;;  %2836 = vmatmul.bf16.vlgmr.msra.gmra.mxu3 %v2622_v59  ;;  %v6901_v59 = vld [vmem:[#allocation19 + $0x68] sm:$0xf0] }
 0x64b   :  { %v2798_v14 = vpop.f32.mrf.mxu0  ;;  %v2824_v12 = vpop.f32.mrf.mxu1 }
 0x64c   :  { %v2799_v4 = vadd.f32 %v2798_v14, %v2625_v45  ;;  %v2825_v15 = vadd.f32 %v2824_v12, %v2626_v3  ;;  %v6900_v14 = vor.u32 %v8322_v61, %v6899_v60  ;;  %v8319_v45 = vld [vmem:[#allocation19 + $0x54] sm:$0xf]  ;;  %v6893_v3 = vld [vmem:[#allocation19 + $0x58] sm:$0xf0]  ;;  %v6851_v60 = vld [vmem:[#allocation19] sm:$0xf] }
 0x64d   :  { %v8310_v61 = vld [vmem:[#allocation19 + $0x4] sm:$0xf0] }
 0x64e   :  { %3163 = vmatpush.bf16.msrb.mxu1 %v6900_v14  ;;  %v6852_v63 = vor.u32 %v8310_v61, %v6851_v60 }
 0x653   :  { %v2800_v19 = vpop.f32.mrf.mxu0  ;;  %v2826_v1 = vpop.f32.mrf.mxu1 }
 0x654   :  { %v6904_v19 = vor.u32 %v8321_v0, %v6901_v59  ;;  %v6891_v1 = vld [vmem:[#allocation19 + $0x50] sm:$0xf]  ;;  %v6853_v0 = vld [vmem:[#allocation19 + $0x8] sm:$0xf0] }
 0x656   :  { %3176 = vmatpush.bf16.msrb.mxu3 %v6904_v19 }
 0x661   :  { %v2811_v5 = vpop.f32.mrf.mxu2  ;;  %v2837_v13 = vpop.f32.mrf.mxu3 }
 0x662   :  { %v2812_v52 = vadd.f32 %v2811_v5, %v2799_v4  ;;  %v2838_v6 = vadd.f32 %v2837_v13, %v2825_v15  ;;  %v6892_v4 = vor.u32 %v8320_v2, %v6891_v1  ;;  %v6896_v15 = vor.u32 %v8319_v45, %v6893_v3  ;;  %v6883_v5 = vld [vmem:[#allocation19 + $0x40] sm:$0xf]  ;;  %v8318_v13 = vld [vmem:[#allocation19 + $0x44] sm:$0xf0] }
 0x664   :  { %v2842_v53 = vadd.f32 %v2812_v52, %v9845_v41  ;;  %v2843_v7 = vadd.f32 %v2838_v6, %v9856_v11  ;;  %v2853_v41 = vmul.f32 %v8651_v21, %v2852_v25  ;;  %v8317_v52 = vld [vmem:[#allocation19 + $0x44] sm:$0xf]  ;;  %v6885_v6 = vld [vmem:[#allocation19 + $0x48] sm:$0xf0]  ;;  %3164 = vmatpush.bf16.msrb.mxu1 %v6892_v4  ;;  %3177 = vmatpush.bf16.msrb.mxu3 %v6896_v15 }
 0x666   :  { %v2845_v38 = vsel %vm2844_vm3, %v2842_v53, 0.0  ;;  %v2846_v40 = vsel %vm2844_vm3, %v2843_v7, 0.0  ;;  %v2854_v28 = vadd.f32 %v8651_v21, %v2853_v41  ;;  %v2882_v41 = vperm.slane %v10113_v18, 0 }
 0x667   :  { %v2847_v27 = vadd.f32 %v2846_v40, %v2845_v38  ;;  %v6888_v38 = vor.u32 %v8317_v52, %v6885_v6  ;;  %v6875_v40 = vld [vmem:[#allocation19 + $0x30] sm:$0xf] }
 0x668   :  { %v10099_v11 = vsel %vm2855_vm4, %v8651_v21, %v2854_v28  ;;  %v2883_v28 = vperm.slane %v10113_v18, 4 }
 0x669   :  { %v2813_v42 = vpop.f32.mrf.mxu2  ;;  %v2839_v9 = vpop.f32.mrf.mxu3  ;;  %2848 = vadd.xlane.f32.xlu2 %v2847_v27  ;;  %v8316_v27 = vld [vmem:[#allocation19 + $0x34] sm:$0xf0]  ;;  %3178 = vmatpush.bf16.msrb.mxu3 %v6888_v38 }
 0x66a   :  { %v8315_v9 = vld [vmem:[#allocation19 + $0x34] sm:$0xf]  ;;  %v6876_v21 = vor.u32 %v8316_v27, %v6875_v40 }
 0x66b   :  { %v6880_v24 = vor.u32 %v8315_v9, %v6877_v16 }
 0x66d   :  { %3179 = vmatpush.bf16.msrb.mxu3 %v6880_v24  ;;  %v7179_v24 = vld [vmem:[%s11465_s8 + $0x450] sm:$0xf] }
 0x671   :  { %3180 = vmatpush.bf16.msrb.mxu3 %v6872_v37  ;;  %v7323_v37 = vld [vmem:[%s11465_s8 + $0x570] sm:$0xf] }
 0x675   :  { %3181 = vmatpush.bf16.msrb.mxu3 %v6864_v58  ;;  %v7325_v58 = vld [vmem:[%s11465_s8 + $0x588] sm:$0xf0] }
 0x6dc   :  { %v2849_v26 = vpop.xlane.xlu2 %2848 }
 0x6dd   :  { %v2857_v31 = vmul.f32 %v10099_v11, %v2849_v26 }
 0x6df   :  { %v10102_v32 = vsub.f32 %v2842_v53, %v2857_v31  ;;  %v10104_v33 = vsub.f32 %v2843_v7, %v2857_v31  ;;  %v6884_v53 = vor.u32 %v8318_v13, %v6883_v5  ;;  %v2890_v31 = vperm.slane %v10113_v18, 1  ;;  %v3076_v5 = vld [vmem:[#allocation21] sm:$0x3] }
 0x6e0   :  { %v3078_v13 = vperm.slane %v3076_v5, 0 }
 0x6e1   :  { %v2860_v30 = vmul.f32 %v10102_v32, %v10102_v32  ;;  %v2861_v39 = vmul.f32 %v10104_v33, %v10104_v33  ;;  %3165 = vmatpush.bf16.msrb.mxu1 %v6884_v53  ;;  %v2894_v43 = vperm.slane %v2890_v31, 1  ;;  %v3079_v53 = vperm.slane %v3076_v5, 1  ;;  %v8367_v31 = vld [vmem:[%s11465_s8 + $0x454] sm:$0xf]  ;;  %v8346_v5 = vld [vmem:[%s11465_s8 + $0x3a4] sm:$0xf0] }
 0x6e3   :  { %v2862_v29 = vsel %vm2844_vm3, %v2860_v30, 0.0  ;;  %v2863_v34 = vsel %vm2844_vm3, %v2861_v39, 0.0  ;;  %v2891_v30 = vperm.slane %v10113_v18, 5 }
 0x6e4   :  { %v2864_v35 = vadd.f32 %v2863_v34, %v2862_v29  ;;  %v2886_v29 = vperm.slane %v2882_v41, 0  ;;  %v2887_v34 = vperm.slane %v2883_v28, 0  ;;  %v7371_v41 = vld [vmem:[%s11465_s8 + $0x5d0] sm:$0xf] }
 0x6e5   :  { %3166 = vmatpush.bf16.msrb.mxu1 %v6876_v21  ;;  %v2895_v8 = vperm.slane %v2891_v30, 1  ;;  %v7181_v30 = vld [vmem:[%s11465_s8 + $0x468] sm:$0xf0] }
 0x6e6   :  { %2865 = vadd.xlane.f32.xlu1 %v2864_v35 }
 0x6e9   :  { %3167 = vmatpush.bf16.msrb.mxu1 %v6868_v55  ;;  %v8358_v55 = vld [vmem:[%s11465_s8 + $0x404] sm:$0xf0] }
 0x6ea   :  { %v7132_v23 = vor.u32 %v8358_v55, %v7131_v22 }
 0x759   :  { %v2866_v56 = vpop.xlane.xlu1 %2865 }
 0x75a   :  { %v2867_v62 = vmul.f32 %v2866_v56, %v10099_v11 }
 0x75c   :  { %v2868_v12 = vadd.f32 1e-05, %v2867_v62  ;;  %v8309_v62 = vld [vmem:[#allocation19 + $0x4] sm:$0xf] }
 0x75d   :  { %v6856_v59 = vor.u32 %v8309_v62, %v6853_v0  ;;  %v7107_v62 = vld [vmem:[%s11465_s8 + $0x3c0] sm:$0xf] }
 0x75e   :  { %8652 = vrsqrt.f32 %v2868_v12  ;;  %vm2875_vm6 = vweird.f32 %v2868_v12  ;;  %v7299_v0 = vld [vmem:[%s11465_s8 + $0x540] sm:$0xf] }
 0x75f   :  { %3182 = vmatpush.bf16.msrb.mxu3 %v6856_v59  ;;  %v7328_v59 = vor.u32 %v8403_v57, %v7325_v58  ;;  %v8328_v58 = vld [vmem:[%s11465_s8 + $0x314] sm:$0xf0] }
 0x764   :  { %v8653_v7 = vpop.eup %8652 }
 0x765   :  { %v2870_v42 = vmul.f32 %v8653_v7, %v2868_v12  ;;  %vm2876_vm5 = vweird.f32 %v8653_v7  ;;  %v8612_v12 = vld [vmem:[#allocation18] ss:$0 sm:$0xff] }
 0x766   :  { %vm2877_vm7 = vmor %vm2875_vm6, %vm2876_vm5 }
 0x767   :  { %v2871_v17 = vmul.f32 %v8653_v7, %v2870_v42 }
 0x769   :  { %v2872_v25 = vmul.f32 0.5, %v2871_v17 }
 0x76b   :  { %v2873_v26 = vsub.f32 1.5, %v2872_v25  ;;  %v8370_v25 = vld [vmem:[%s11465_s8 + $0x464] sm:$0xf0] }
 0x76c   :  { %v7180_v28 = vor.u32 %v8370_v25, %v7179_v24  ;;  %v8340_v24 = vld [vmem:[%s11465_s8 + $0x374] sm:$0xf0]  ;;  %v7251_v25 = vld [vmem:[%s11465_s8 + $0x4e0] sm:$0xf] }
 0x76d   :  { %v2874_v39 = vmul.f32 %v8653_v7, %v2873_v26  ;;  %v8418_v26 = vld [vmem:[%s11465_s8 + $0x5e4] sm:$0xf0] }
 0x76e   :  { %3829 = vmatpush.bf16.msrb.mxu0 %v7180_v28  ;;  %v8388_v28 = vld [vmem:[%s11465_s8 + $0x4f4] sm:$0xf0] }
 0x76f   :  { %v2878_v35 = vsel %vm2877_vm7, %v8653_v7, %v2874_v39  ;;  %v7372_v39 = vor.u32 %v8418_v26, %v7371_v41  ;;  %v8337_v26 = vld [vmem:[%s11465_s8 + $0x364] sm:$0xf] }
 0x770   :  { %v2879_v36 = vmul.f32 %v2878_v35, %v10102_v32  ;;  %v2880_v20 = vmul.f32 %v2878_v35, %v10104_v33  ;;  %v6859_v32 = vld [vmem:[#allocation19 + $0x10] sm:$0xf]  ;;  %v8312_v33 = vld [vmem:[#allocation19 + $0x14] sm:$0xf0]  ;;  %v7373_v35 = vld [vmem:[%s11465_s8 + $0x5e8] sm:$0xf0] }
 0x771   :  { %v6860_v56 = vor.u32 %v8312_v33, %v6859_v32  ;;  %3842 = vmatpush.bf16.msrb.mxu2 %v7372_v39  ;;  %v8406_v32 = vld [vmem:[%s11465_s8 + $0x584] sm:$0xf0]  ;;  %v8355_v33 = vld [vmem:[%s11465_s8 + $0x3f4] sm:$0xf]  ;;  %v7253_v39 = vld [vmem:[%s11465_s8 + $0x4f8] sm:$0xf0] }
 0x772   :  { %v2888_v44 = vmul.f32 %v2886_v29, %v2879_v36  ;;  %v2889_v47 = vmul.f32 %v2887_v34, %v2880_v20  ;;  %v7184_v29 = vor.u32 %v8367_v31, %v7181_v30  ;;  %v8415_v34 = vld [vmem:[%s11465_s8 + $0x5d4] sm:$0xf]  ;;  %v7155_v36 = vld [vmem:[%s11465_s8 + $0x420] sm:$0xf]  ;;  %v7324_v60 = vor.u32 %v8406_v32, %v7323_v37  ;;  %v7061_v31 = vld [vmem:[%s11465_s8 + $0x378] sm:$0xf0] }
 0x773   :  { %3168 = vmatpush.bf16.msrb.mxu1 %v6860_v56  ;;  %v7376_v20 = vor.u32 %v8415_v34, %v7373_v35  ;;  %v7133_v56 = vld [vmem:[%s11465_s8 + $0x408] sm:$0xf0]  ;;  %v8385_v30 = vld [vmem:[%s11465_s8 + $0x4e4] sm:$0xf]  ;;  %v7252_v34 = vor.u32 %v8388_v28, %v7251_v25  ;;  %v7064_v35 = vor.u32 %v8337_v26, %v7061_v31 }
 0x774   :  { %v2896_v48 = vadd.f32 %v2894_v43, %v2888_v44  ;;  %v2897_v10 = vadd.f32 %v2895_v8, %v2889_v47  ;;  %v8364_v43 = vld [vmem:[%s11465_s8 + $0x434] sm:$0xf0]  ;;  %v7347_v8 = vld [vmem:[%s11465_s8 + $0x5a0] sm:$0xf]  ;;  %v7136_v61 = vor.u32 %v8355_v33, %v7133_v56  ;;  %v8410_v28 = vld [vmem:[%s11465_s8 + $0x5ac] sm:$0xf] }
 0x775   :  { %v8412_v44 = vld [vmem:[%s11465_s8 + $0x5b4] sm:$0xf0]  ;;  %v7156_v47 = vor.u32 %v8364_v43, %v7155_v36  ;;  %3868 = vmatpush.bf16.msra.mxu3 %v7376_v20  ;;  %v7035_v36 = vld [vmem:[%s11465_s8 + $0x330] sm:$0xf]  ;;  %v8334_v20 = vld [vmem:[%s11465_s8 + $0x344] sm:$0xf0] }
 0x776   :  { %v2930_v49 = vpack.c.bf16 %v2896_v48, %v2896_v48  ;;  %v2931_v50 = vpack.c.bf16 %v2897_v10, %v2897_v10  ;;  %v7227_v43 = vld [vmem:[%s11465_s8 + $0x4b0] sm:$0xf]  ;;  %v7357_v26 = vld [vmem:[%s11465_s8 + $0x5c0] sm:$0xf0] }
 0x777   :  { %3169 = vmatpush.bf16.msrb.mxu1 %v6852_v63  ;;  %3830 = vmatpush.bf16.msrb.mxu0 %v7156_v47  ;;  %v8352_v63 = vld [vmem:[%s11465_s8 + $0x3d4] sm:$0xf0]  ;;  %v8331_v47 = vld [vmem:[%s11465_s8 + $0x334] sm:$0xf] }
 0x778   :  { %3040 = vmatmul.bf16.vlgmr.msra.gmra.mxu0 %v2930_v49  ;;  %3053 = vmatmul.bf16.vlgmr.msra.gmra.mxu2 %v2931_v50  ;;  %v7157_v49 = vld [vmem:[%s11465_s8 + $0x438] sm:$0xf0]  ;;  %v8409_v50 = vld [vmem:[%s11465_s8 + $0x5a4] sm:$0xf] }
 0x779   :  { %v7352_v46 = vor.u32 %v8409_v50, %v7349_v54  ;;  %v7229_v50 = vld [vmem:[%s11465_s8 + $0x4c8] sm:$0xf0]  ;;  %v7036_v54 = vor.u32 %v8334_v20, %v7035_v36  ;;  %v8407_v36 = vld [vmem:[%s11465_s8 + $0x58c] sm:$0xf0]  ;;  %v8356_v20 = vld [vmem:[%s11465_s8 + $0x3fc] sm:$0xf] }
 0x77b   :  { %3855 = vmatpush.bf16.msra.mxu1 %v7184_v29  ;;  %3869 = vmatpush.bf16.msra.mxu3 %v7352_v46 }
 0x77c   :  { %3831 = vmatpush.bf16.msrb.mxu0 %v7132_v23 }
 0x77f   :  { %3870 = vmatpush.bf16.msra.mxu3 %v7328_v59 }
 0x7f5   :  { %v3041_v14 = vpop.f32.mrf.mxu0 }
 0x7f6   :  { %v3042_v19 = vadd.f32 %v8612_v12, %v3041_v14  ;;  %v8400_v14 = vld [vmem:[%s11465_s8 + $0x554] sm:$0xf0]  ;;  %v8349_v12 = vld [vmem:[%s11465_s8 + $0x3c4] sm:$0xf] }
 0x7fb   :  { %v3054_v1 = vpop.f32.mrf.mxu2 }
 0x7fc   :  { %v3055_v2 = vadd.f32 %v3054_v1, %v3042_v19  ;;  %v7109_v19 = vld [vmem:[%s11465_s8 + $0x3d8] sm:$0xf0]  ;;  %v8397_v1 = vld [vmem:[%s11465_s8 + $0x544] sm:$0xf] }
 0x7fd   :  { %v3043_v45 = vpop.f32.mrf.mxu0 }
 0x7fe   :  { %v3058_v3 = vmax.f32 %v3055_v2, 0.0  ;;  %v7301_v2 = vld [vmem:[%s11465_s8 + $0x558] sm:$0xf0]  ;;  %v7108_v45 = vor.u32 %v8352_v63, %v7107_v62  ;;  %v8376_v62 = vld [vmem:[%s11465_s8 + $0x494] sm:$0xf0] }
 0x7ff   :  { %v8325_v63 = vld [vmem:[%s11465_s8 + $0x304] sm:$0xf] }
 0x800   :  { %v3075_v4 = vpack.c.bf16 %v3058_v3, %v3058_v3  ;;  %v7300_v3 = vor.u32 %v8400_v14, %v7299_v0  ;;  %3832 = vmatpush.bf16.msrb.mxu0 %v7108_v45  ;;  %v7013_v0 = vld [vmem:[%s11465_s8 + $0x318] sm:$0xf0]  ;;  %v8371_v45 = vld [vmem:[%s11465_s8 + $0x46c] sm:$0xf0] }
 0x801   :  { %v7016_v14 = vor.u32 %v8325_v63, %v7013_v0  ;;  %v8344_v63 = vld [vmem:[%s11465_s8 + $0x39c] sm:$0xf]  ;;  %v7093_v0 = vld [vmem:[%s11465_s8 + $0x3b0] sm:$0xf0] }
 0x802   :  { %3170 = vmatmul.bf16.vlgmr.msrb.gmra.mxu1 %v3075_v4  ;;  %3183 = vmatmul.bf16.vlgmr.msrb.gmra.mxu3 %v3075_v4  ;;  %v7112_v4 = vor.u32 %v8349_v12, %v7109_v19  ;;  %v8373_v12 = vld [vmem:[%s11465_s8 + $0x484] sm:$0xf]  ;;  %v7205_v19 = vld [vmem:[%s11465_s8 + $0x498] sm:$0xf0] }
 0x803   :  { %v3056_v15 = vpop.f32.mrf.mxu2 }
 0x804   :  { %v7083_v15 = vld [vmem:[%s11465_s8 + $0x390] sm:$0xf] }
 0x87f   :  { %v3171_v52 = vpop.f32.mrf.mxu1 }
 0x880   :  { %v3172_v6 = vadd.f32 %v3171_v52, %v3078_v13  ;;  %v7275_v13 = vld [vmem:[%s11465_s8 + $0x510] sm:$0xf]  ;;  %v7304_v52 = vor.u32 %v8397_v1, %v7301_v2  ;;  %v7187_v1 = vld [vmem:[%s11465_s8 + $0x458] sm:$0xf]  ;;  %v7208_v2 = vor.u32 %v8373_v12, %v7205_v19  ;;  %v8392_v12 = vld [vmem:[%s11465_s8 + $0x51c] sm:$0xf] }
 0x881   :  { %v7285_v19 = vld [vmem:[%s11465_s8 + $0x530] sm:$0xf0] }
 0x882   :  { %v10121_v38 = vadd.f32 %v3172_v6, %v2896_v48  ;;  %v7348_v48 = vor.u32 %v8412_v44, %v7347_v8  ;;  %v8394_v6 = vld [vmem:[%s11465_s8 + $0x524] sm:$0xf0]  ;;  %3871 = vmatpush.bf16.msra.mxu3 %v7304_v52  ;;  %v7256_v8 = vor.u32 %v8385_v30, %v7253_v39  ;;  %v7189_v52 = vld [vmem:[%s11465_s8 + $0x470] sm:$0xf0]  ;;  %v7360_v30 = vor.u32 %v8410_v28, %v7357_v26  ;;  %v7139_v39 = vld [vmem:[%s11465_s8 + $0x3f8] sm:$0xf] }
 0x883   :  { %v8382_v44 = vld [vmem:[%s11465_s8 + $0x4c4] sm:$0xf0]  ;;  %v8380_v26 = vld [vmem:[%s11465_s8 + $0x4bc] sm:$0xf] }
 0x884   :  { %v3190_v9 = vsel %vm2844_vm3, %v10121_v38, 0.0  ;;  %3843 = vmatpush.bf16.msrb.mxu2 %v7348_v48  ;;  %v7037_v48 = vld [vmem:[%s11465_s8 + $0x348] sm:$0xf0]  ;;  %v7228_v22 = vor.u32 %v8382_v44, %v7227_v43  ;;  %v7141_v43 = vld [vmem:[%s11465_s8 + $0x410] sm:$0xf0] }
 0x885   :  { %v3184_v7 = vpop.f32.mrf.mxu3  ;;  %v7040_v55 = vor.u32 %v8331_v47, %v7037_v48  ;;  %v7144_v44 = vor.u32 %v8356_v20, %v7141_v43  ;;  %v8404_v47 = vld [vmem:[%s11465_s8 + $0x57c] sm:$0xf]  ;;  %v7333_v48 = vld [vmem:[%s11465_s8 + $0x590] sm:$0xf0]  ;;  %v8326_v20 = vld [vmem:[%s11465_s8 + $0x30c] sm:$0xf] }
 0x886   :  { %v3185_v40 = vadd.f32 %v3184_v7, %v3079_v53  ;;  %v8343_v53 = vld [vmem:[%s11465_s8 + $0x394] sm:$0xf]  ;;  %v7085_v7 = vld [vmem:[%s11465_s8 + $0x3a8] sm:$0xf0]  ;;  %v7021_v43 = vld [vmem:[%s11465_s8 + $0x320] sm:$0xf0] }
 0x887   :  { %v3173_v27 = vpop.f32.mrf.mxu1 }
 0x888   :  { %v10123_v42 = vadd.f32 %v3185_v40, %v2897_v10  ;;  %v8361_v10 = vld [vmem:[%s11465_s8 + $0x424] sm:$0xf]  ;;  %3844 = vmatpush.bf16.msrb.mxu2 %v7324_v60  ;;  %v8391_v40 = vld [vmem:[%s11465_s8 + $0x514] sm:$0xf]  ;;  %v7277_v27 = vld [vmem:[%s11465_s8 + $0x528] sm:$0xf0] }
 0x889   :  { %v7160_v51 = vor.u32 %v8361_v10, %v7157_v49  ;;  %v7280_v41 = vor.u32 %v8391_v40, %v7277_v27  ;;  %v8379_v49 = vld [vmem:[%s11465_s8 + $0x4b4] sm:$0xf]  ;;  %v7203_v60 = vld [vmem:[%s11465_s8 + $0x480] sm:$0xf]  ;;  %v7163_v40 = vld [vmem:[%s11465_s8 + $0x428] sm:$0xf] }
 0x88a   :  { %v3191_v16 = vsel %vm2844_vm3, %v10123_v42, 0.0  ;;  %v7232_v32 = vor.u32 %v8379_v49, %v7229_v50  ;;  %v7204_v59 = vor.u32 %v8376_v62, %v7203_v60  ;;  %v8365_v27 = vld [vmem:[%s11465_s8 + $0x43c] sm:$0xf0]  ;;  %v7115_v49 = vld [vmem:[%s11465_s8 + $0x3c8] sm:$0xf] }
 0x88b   :  { %v3192_v17 = vadd.f32 %v3191_v16, %v3190_v9  ;;  %3856 = vmatpush.bf16.msra.mxu1 %v7160_v51  ;;  %v7084_v9 = vor.u32 %v8346_v5, %v7083_v15  ;;  %v7276_v16 = vor.u32 %v8394_v6, %v7275_v13  ;;  %3872 = vmatpush.bf16.msra.mxu3 %v7280_v41  ;;  %v8368_v13 = vld [vmem:[%s11465_s8 + $0x45c] sm:$0xf]  ;;  %v7165_v41 = vld [vmem:[%s11465_s8 + $0x440] sm:$0xf0]  ;;  %v8353_v50 = vld [vmem:[%s11465_s8 + $0x3dc] sm:$0xf0] }
 0x88c   :  { %3845 = vmatpush.bf16.msrb.mxu2 %v7300_v3  ;;  %v7379_v3 = vld [vmem:[%s11465_s8 + $0x5d8] sm:$0xf]  ;;  %v7188_v15 = vor.u32 %v8371_v45, %v7187_v1  ;;  %v8416_v6 = vld [vmem:[%s11465_s8 + $0x5dc] sm:$0xf]  ;;  %v8395_v62 = vld [vmem:[%s11465_s8 + $0x52c] sm:$0xf0]  ;;  %v7288_v1 = vor.u32 %v8392_v12, %v7285_v19 }
 0x88d   :  { %v3186_v21 = vpop.f32.mrf.mxu3  ;;  %3193 = vadd.xlane.f32.xlu0 %v3192_v17  ;;  %v7088_v17 = vor.u32 %v8343_v53, %v7085_v7  ;;  %3833 = vmatpush.bf16.msrb.mxu0 %v7084_v9  ;;  %v7192_v53 = vor.u32 %v8368_v13, %v7189_v52  ;;  %v7381_v7 = vld [vmem:[%s11465_s8 + $0x5f0] sm:$0xf0]  ;;  %v7283_v60 = vld [vmem:[%s11465_s8 + $0x518] sm:$0xf]  ;;  %v8341_v45 = vld [vmem:[%s11465_s8 + $0x37c] sm:$0xf0] }
 0x88e   :  { %v7059_v21 = vld [vmem:[%s11465_s8 + $0x360] sm:$0xf]  ;;  %v7384_v9 = vor.u32 %v8416_v6, %v7381_v7  ;;  %v7069_v13 = vld [vmem:[%s11465_s8 + $0x380] sm:$0xf0] }
 0x88f   :  { %3857 = vmatpush.bf16.msra.mxu1 %v7136_v61  ;;  %v7060_v29 = vor.u32 %v8340_v24, %v7059_v21  ;;  %3873 = vmatpush.bf16.msra.mxu3 %v7256_v8  ;;  %v8413_v21 = vld [vmem:[%s11465_s8 + $0x5bc] sm:$0xf0]  ;;  %v8362_v24 = vld [vmem:[%s11465_s8 + $0x42c] sm:$0xf]  ;;  %v7261_v7 = vld [vmem:[%s11465_s8 + $0x500] sm:$0xf0] }
 0x890   :  { %3846 = vmatpush.bf16.msrb.mxu2 %v7276_v16  ;;  %v7164_v16 = vor.u32 %v8365_v27, %v7163_v40  ;;  %v7168_v31 = vor.u32 %v8362_v24, %v7165_v41  ;;  %v7043_v27 = vld [vmem:[%s11465_s8 + $0x338] sm:$0xf]  ;;  %v8332_v24 = vld [vmem:[%s11465_s8 + $0x33c] sm:$0xf]  ;;  %v7195_v19 = vld [vmem:[%s11465_s8 + $0x460] sm:$0xf] }
 0x891   :  { %3834 = vmatpush.bf16.msrb.mxu0 %v7060_v29  ;;  %v8359_v29 = vld [vmem:[%s11465_s8 + $0x40c] sm:$0xf0] }
 0x893   :  { %3858 = vmatpush.bf16.msra.mxu1 %v7112_v4  ;;  %3874 = vmatpush.bf16.msra.mxu3 %v7232_v32  ;;  %v8419_v4 = vld [vmem:[%s11465_s8 + $0x5ec] sm:$0xf0]  ;;  %v7117_v32 = vld [vmem:[%s11465_s8 + $0x3e0] sm:$0xf0] }
 0x894   :  { %3847 = vmatpush.bf16.msrb.mxu2 %v7252_v34  ;;  %v7380_v5 = vor.u32 %v8419_v4, %v7379_v3  ;;  %v7331_v34 = vld [vmem:[%s11465_s8 + $0x578] sm:$0xf]  ;;  %v7259_v3 = vld [vmem:[%s11465_s8 + $0x4e8] sm:$0xf] }
 0x895   :  { %3835 = vmatpush.bf16.msrb.mxu0 %v7036_v54  ;;  %v7332_v8 = vor.u32 %v8407_v36, %v7331_v34  ;;  %v7116_v54 = vor.u32 %v8353_v50, %v7115_v49  ;;  %v7211_v34 = vld [vmem:[%s11465_s8 + $0x488] sm:$0xf]  ;;  %v8377_v36 = vld [vmem:[%s11465_s8 + $0x49c] sm:$0xf0] }
 0x897   :  { %3859 = vmatpush.bf16.msra.mxu1 %v7088_v17  ;;  %3875 = vmatpush.bf16.msra.mxu3 %v7208_v2  ;;  %v7355_v17 = vld [vmem:[%s11465_s8 + $0x5a8] sm:$0xf] }
 0x898   :  { %3848 = vmatpush.bf16.msrb.mxu2 %v7228_v22  ;;  %v7356_v25 = vor.u32 %v8413_v21, %v7355_v17  ;;  %v8401_v22 = vld [vmem:[%s11465_s8 + $0x55c] sm:$0xf0]  ;;  %v7067_v2 = vld [vmem:[%s11465_s8 + $0x368] sm:$0xf]  ;;  %v8383_v21 = vld [vmem:[%s11465_s8 + $0x4cc] sm:$0xf0] }
 0x899   :  { %v7068_v4 = vor.u32 %v8341_v45, %v7067_v2 }
 0x89b   :  { %3860 = vmatpush.bf16.msra.mxu1 %v7064_v35  ;;  %3920 = vmatpush.bf16.msrb.mxu3 %v7384_v9  ;;  %v7140_v35 = vor.u32 %v8359_v29, %v7139_v39  ;;  %v8335_v9 = vld [vmem:[%s11465_s8 + $0x34c] sm:$0xf0]  ;;  %v7019_v39 = vld [vmem:[%s11465_s8 + $0x308] sm:$0xf]  ;;  %v8329_v29 = vld [vmem:[%s11465_s8 + $0x31c] sm:$0xf0] }
 0x89c   :  { %3849 = vmatpush.bf16.msrb.mxu2 %v7204_v59  ;;  %v7284_v59 = vor.u32 %v8395_v62, %v7283_v60  ;;  %v7044_v17 = vor.u32 %v8335_v9, %v7043_v27  ;;  %v7363_v9 = vld [vmem:[%s11465_s8 + $0x5b0] sm:$0xf] }
 0x89f   :  { %3861 = vmatpush.bf16.msra.mxu1 %v7040_v55  ;;  %3921 = vmatpush.bf16.msrb.mxu3 %v7360_v30  ;;  %v8350_v55 = vld [vmem:[%s11465_s8 + $0x3cc] sm:$0xf] }
 0x8a0   :  { %3894 = vmatpush.bf16.msra.mxu2 %v7380_v5  ;;  %v8338_v5 = vld [vmem:[%s11465_s8 + $0x36c] sm:$0xf] }
 0x8a1   :  { %v7072_v6 = vor.u32 %v8338_v5, %v7069_v13 }
 0x8a3   :  { %3862 = vmatpush.bf16.msra.mxu1 %v7016_v14  ;;  %v7096_v14 = vor.u32 %v8344_v63, %v7093_v0 }
 0x8a4   :  { %3895 = vmatpush.bf16.msra.mxu2 %v7356_v25  ;;  %v7045_v25 = vld [vmem:[%s11465_s8 + $0x350] sm:$0xf0] }
 0x8a5   :  { %v7048_v28 = vor.u32 %v8332_v24, %v7045_v25  ;;  %v8411_v24 = vld [vmem:[%s11465_s8 + $0x5b4] sm:$0xf]  ;;  %v7365_v25 = vld [vmem:[%s11465_s8 + $0x5c8] sm:$0xf0] }
 0x8a7   :  { %3907 = vmatpush.bf16.msrb.mxu1 %v7192_v53  ;;  %v8386_v53 = vld [vmem:[%s11465_s8 + $0x4ec] sm:$0xf] }
 0x8a8   :  { %3896 = vmatpush.bf16.msra.mxu2 %v7332_v8  ;;  %v7264_v40 = vor.u32 %v8386_v53, %v7261_v7  ;;  %v7212_v8 = vor.u32 %v8377_v36, %v7211_v34  ;;  %v7171_v53 = vld [vmem:[%s11465_s8 + $0x430] sm:$0xf]  ;;  %v8366_v7 = vld [vmem:[%s11465_s8 + $0x444] sm:$0xf0]  ;;  %v8408_v34 = vld [vmem:[%s11465_s8 + $0x594] sm:$0xf0] }
 0x8a9   :  { %v7149_v36 = vld [vmem:[%s11465_s8 + $0x418] sm:$0xf0] }
 0x8ab   :  { %3908 = vmatpush.bf16.msrb.mxu1 %v7168_v31  ;;  %v7237_v31 = vld [vmem:[%s11465_s8 + $0x4d0] sm:$0xf0] }
 0x8ac   :  { %v7240_v30 = vor.u32 %v8380_v26, %v7237_v31  ;;  %v7147_v26 = vld [vmem:[%s11465_s8 + $0x400] sm:$0xf]  ;;  %v8360_v31 = vld [vmem:[%s11465_s8 + $0x414] sm:$0xf0] }
 0x8af   :  { %3909 = vmatpush.bf16.msrb.mxu1 %v7144_v44  ;;  %v7024_v44 = vor.u32 %v8326_v20, %v7021_v43  ;;  %v8405_v20 = vld [vmem:[%s11465_s8 + $0x584] sm:$0xf]  ;;  %v7341_v43 = vld [vmem:[%s11465_s8 + $0x598] sm:$0xf0] }
 0x900   :  { %v3194_v10 = vpop.xlane.xlu0 %3193 }
 0x901   :  { %v3195_v51 = vmul.f32 %v3194_v10, %v10099_v11  ;;  %v7336_v10 = vor.u32 %v8404_v47, %v7333_v48  ;;  %v8374_v47 = vld [vmem:[%s11465_s8 + $0x48c] sm:$0xf]  ;;  %v7213_v48 = vld [vmem:[%s11465_s8 + $0x4a0] sm:$0xf0] }
 0x902   :  { %v7216_v49 = vor.u32 %v8374_v47, %v7213_v48  ;;  %v7123_v47 = vld [vmem:[%s11465_s8 + $0x3d0] sm:$0xf]  ;;  %v8354_v48 = vld [vmem:[%s11465_s8 + $0x3e4] sm:$0xf0] }
 0x903   :  { %v10299_v46 = vsub.f32 %v10121_v38, %v3195_v51  ;;  %v10302_v37 = vsub.f32 %v10123_v42, %v3195_v51  ;;  %v7011_v42 = vld [vmem:[%s11465_s8 + $0x300] sm:$0xf]  ;;  %v7307_v51 = vld [vmem:[%s11465_s8 + $0x548] sm:$0xf]  ;;  %3922 = vmatpush.bf16.msrb.mxu3 %v7336_v10 }
 0x904   :  { %v7012_v61 = vor.u32 %v8328_v58, %v7011_v42  ;;  %v7091_v42 = vld [vmem:[%s11465_s8 + $0x398] sm:$0xf]  ;;  %v8347_v58 = vld [vmem:[%s11465_s8 + $0x3ac] sm:$0xf0] }
 0x905   :  { %v3198_v33 = vmul.f32 %v10299_v46, %v10299_v46  ;;  %v3199_v23 = vmul.f32 %v10302_v37, %v10302_v37 }
 0x906   :  { %3836 = vmatpush.bf16.msrb.mxu0 %v7012_v61  ;;  %v7092_v61 = vor.u32 %v8347_v58, %v7091_v42 }
 0x907   :  { %v3200_v56 = vsel %vm2844_vm3, %v3198_v33, 0.0  ;;  %v3201_v57 = vsel %vm2844_vm3, %v3199_v23, 0.0  ;;  %v7308_v33 = vor.u32 %v8401_v22, %v7307_v51  ;;  %v7120_v23 = vor.u32 %v8350_v55, %v7117_v32 }
 0x908   :  { %v3202_v38 = vadd.f32 %v3201_v57, %v3200_v56  ;;  %v8398_v56 = vld [vmem:[%s11465_s8 + $0x54c] sm:$0xf]  ;;  %v7309_v57 = vld [vmem:[%s11465_s8 + $0x560] sm:$0xf0] }
 0x909   :  { %3897 = vmatpush.bf16.msra.mxu2 %v7308_v33  ;;  %3910 = vmatpush.bf16.msrb.mxu1 %v7120_v23  ;;  %v3219_v33 = vperm.slane %v10113_v18, 2  ;;  %v3220_v23 = vperm.slane %v10113_v18, 6 }
 0x90a   :  { %3203 = vadd.xlane.f32.xlu2 %v3202_v38  ;;  %3881 = vmatpush.bf16.msra.mxu0 %v7188_v15  ;;  %v7312_v38 = vor.u32 %v8398_v56, %v7309_v57  ;;  %v8389_v15 = vld [vmem:[%s11465_s8 + $0x4fc] sm:$0xf0]  ;;  %v3227_v57 = vperm.slane %v10113_v18, 3 }
 0x90b   :  { %v7260_v52 = vor.u32 %v8389_v15, %v7259_v3  ;;  %v3223_v58 = vperm.slane %v3219_v33, 2  ;;  %v3224_v60 = vperm.slane %v3220_v23, 2  ;;  %v7197_v3 = vld [vmem:[%s11465_s8 + $0x478] sm:$0xf0]  ;;  %v7124_v33 = vor.u32 %v8354_v48, %v7123_v47 }
 0x90c   :  { %3923 = vmatpush.bf16.msrb.mxu3 %v7312_v38  ;;  %v3228_v38 = vperm.slane %v10113_v18, 7  ;;  %v3231_v62 = vperm.slane %v3227_v57, 3  ;;  %v8372_v18 = vld [vmem:[%s11465_s8 + $0x474] sm:$0xf0]  ;;  %v7389_v15 = vld [vmem:[%s11465_s8 + $0x5f8] sm:$0xf0] }
 0x90d   :  { %3898 = vmatpush.bf16.msra.mxu2 %v7284_v59  ;;  %3911 = vmatpush.bf16.msrb.mxu1 %v7096_v14  ;;  %v8348_v57 = vld [vmem:[%s11465_s8 + $0x3b4] sm:$0xf0] }
 0x90e   :  { %3882 = vmatpush.bf16.msra.mxu0 %v7164_v16  ;;  %v7235_v16 = vld [vmem:[%s11465_s8 + $0x4b8] sm:$0xf]  ;;  %v3232_v63 = vperm.slane %v3228_v38, 3 }
 0x90f   :  { %v7236_v41 = vor.u32 %v8383_v21, %v7235_v16  ;;  %v8414_v16 = vld [vmem:[%s11465_s8 + $0x5c4] sm:$0xf0]  ;;  %v7173_v21 = vld [vmem:[%s11465_s8 + $0x448] sm:$0xf0] }
 0x910   :  { %3924 = vmatpush.bf16.msrb.mxu3 %v7288_v1  ;;  %v7387_v1 = vld [vmem:[%s11465_s8 + $0x5e0] sm:$0xf] }
 0x911   :  { %3899 = vmatpush.bf16.msra.mxu2 %v7260_v52  ;;  %3912 = vmatpush.bf16.msrb.mxu1 %v7072_v6  ;;  %v7196_v52 = vor.u32 %v8372_v18, %v7195_v19  ;;  %v8342_v19 = vld [vmem:[%s11465_s8 + $0x384] sm:$0xf0] }
 0x912   :  { %3883 = vmatpush.bf16.msra.mxu0 %v7140_v35  ;;  %v7020_v35 = vor.u32 %v8329_v29, %v7019_v39  ;;  %v7368_v39 = vor.u32 %v8411_v24, %v7365_v25  ;;  %v7339_v29 = vld [vmem:[%s11465_s8 + $0x580] sm:$0xf]  ;;  %v7053_v24 = vld [vmem:[%s11465_s8 + $0x358] sm:$0xf0]  ;;  %v8381_v25 = vld [vmem:[%s11465_s8 + $0x4c4] sm:$0xf] }
 0x914   :  { %3925 = vmatpush.bf16.msrb.mxu3 %v7264_v40 }
 0x915   :  { %3900 = vmatpush.bf16.msra.mxu2 %v7236_v41  ;;  %3913 = vmatpush.bf16.msrb.mxu1 %v7048_v28  ;;  %v7172_v41 = vor.u32 %v8366_v7, %v7171_v53  ;;  %v7364_v28 = vor.u32 %v8414_v16, %v7363_v9  ;;  %v7051_v7 = vld [vmem:[%s11465_s8 + $0x340] sm:$0xf] }
 0x916   :  { %3884 = vmatpush.bf16.msra.mxu0 %v7116_v54  ;;  %v7243_v16 = vld [vmem:[%s11465_s8 + $0x4c0] sm:$0xf] }
 0x918   :  { %3926 = vmatpush.bf16.msrb.mxu3 %v7240_v30 }
 0x919   :  { %3901 = vmatpush.bf16.msra.mxu2 %v7212_v8  ;;  %3914 = vmatpush.bf16.msrb.mxu1 %v7024_v44  ;;  %v7148_v8 = vor.u32 %v8360_v31, %v7147_v26  ;;  %v7340_v44 = vor.u32 %v8408_v34, %v7339_v29  ;;  %v7027_v31 = vld [vmem:[%s11465_s8 + $0x310] sm:$0xf] }
 0x91a   :  { %3885 = vmatpush.bf16.msra.mxu0 %v7092_v61  ;;  %v7219_v34 = vld [vmem:[%s11465_s8 + $0x490] sm:$0xf] }
 0x91c   :  { %3927 = vmatpush.bf16.msrb.mxu3 %v7216_v49  ;;  %v7344_v49 = vor.u32 %v8405_v20, %v7341_v43  ;;  %v7029_v20 = vld [vmem:[%s11465_s8 + $0x328] sm:$0xf0]  ;;  %v8375_v43 = vld [vmem:[%s11465_s8 + $0x494] sm:$0xf] }
 0x91e   :  { %3886 = vmatpush.bf16.msra.mxu0 %v7068_v4  ;;  %v8417_v4 = vld [vmem:[%s11465_s8 + $0x5e4] sm:$0xf] }
 0x91f   :  { %v7392_v27 = vor.u32 %v8417_v4, %v7389_v15  ;;  %v7077_v4 = vld [vmem:[%s11465_s8 + $0x388] sm:$0xf0]  ;;  %v8387_v15 = vld [vmem:[%s11465_s8 + $0x4f4] sm:$0xf] }
 0x922   :  { %3887 = vmatpush.bf16.msra.mxu0 %v7044_v17  ;;  %v8363_v17 = vld [vmem:[%s11465_s8 + $0x434] sm:$0xf] }
 0x923   :  { %v7176_v30 = vor.u32 %v8363_v17, %v7173_v21  ;;  %v8384_v17 = vld [vmem:[%s11465_s8 + $0x4d4] sm:$0xf0]  ;;  %v8333_v21 = vld [vmem:[%s11465_s8 + $0x344] sm:$0xf] }
 0x924   :  { %v7244_v26 = vor.u32 %v8384_v17, %v7243_v16 }
 0x926   :  { %3888 = vmatpush.bf16.msra.mxu0 %v7020_v35  ;;  %v8357_v35 = vld [vmem:[%s11465_s8 + $0x404] sm:$0xf] }
 0x97d   :  { %v3204_v10 = vpop.xlane.xlu2 %3203 }
 0x97e   :  { %v3205_v50 = vmul.f32 %v3204_v10, %v10099_v11  ;;  %v7152_v10 = vor.u32 %v8357_v35, %v7149_v36  ;;  %v8378_v35 = vld [vmem:[%s11465_s8 + $0x4a4] sm:$0xf0]  ;;  %v8327_v36 = vld [vmem:[%s11465_s8 + $0x314] sm:$0xf] }
 0x97f   :  { %v7220_v47 = vor.u32 %v8378_v35, %v7219_v34  ;;  %v7032_v48 = vor.u32 %v8327_v36, %v7029_v20 }
 0x980   :  { %v3206_v51 = vadd.f32 1e-05, %v3205_v50  ;;  %v7315_v50 = vld [vmem:[%s11465_s8 + $0x550] sm:$0xf] }
 0x982   :  { %8654 = vrsqrt.f32 %v3206_v51  ;;  %vm3213_vm9 = vweird.f32 %v3206_v51 }
 0x988   :  { %v8655_v54 = vpop.eup %8654 }
 0x989   :  { %v3208_v22 = vmul.f32 %v8655_v54, %v3206_v51  ;;  %vm3214_vm8 = vweird.f32 %v8655_v54  ;;  %v8402_v51 = vld [vmem:[%s11465_s8 + $0x564] sm:$0xf0] }
 0x98a   :  { %vm3215_vm10 = vmor %vm3213_vm9, %vm3214_vm8  ;;  %v7316_v23 = vor.u32 %v8402_v51, %v7315_v50 }
 0x98b   :  { %v3209_v55 = vmul.f32 %v8655_v54, %v3208_v22  ;;  %v7125_v22 = vld [vmem:[%s11465_s8 + $0x3e8] sm:$0xf0] }
 0x98d   :  { %v3210_v32 = vmul.f32 0.5, %v3209_v55  ;;  %v8399_v55 = vld [vmem:[%s11465_s8 + $0x554] sm:$0xf] }
 0x98f   :  { %v3211_v56 = vsub.f32 1.5, %v3210_v32  ;;  %v7317_v32 = vld [vmem:[%s11465_s8 + $0x568] sm:$0xf0] }
 0x991   :  { %v3212_v42 = vmul.f32 %v8655_v54, %v3211_v56  ;;  %v7099_v56 = vld [vmem:[%s11465_s8 + $0x3a0] sm:$0xf] }
 0x993   :  { %v3216_v61 = vsel %vm3215_vm10, %v8655_v54, %v3212_v42  ;;  %v8351_v54 = vld [vmem:[%s11465_s8 + $0x3d4] sm:$0xf]  ;;  %v7320_v42 = vor.u32 %v8399_v55, %v7317_v32 }
 0x994   :  { %v3217_v0 = vmul.f32 %v3216_v61, %v10299_v46  ;;  %v3218_v59 = vmul.f32 %v3216_v61, %v10302_v37  ;;  %v8420_v46 = vld [vmem:[%s11465_s8 + $0x5f4] sm:$0xf0]  ;;  %v8369_v37 = vld [vmem:[%s11465_s8 + $0x464] sm:$0xf]  ;;  %v7128_v38 = vor.u32 %v8351_v54, %v7125_v22 }
 0x995   :  { %v7388_v6 = vor.u32 %v8420_v46, %v7387_v1  ;;  %v7200_v40 = vor.u32 %v8369_v37, %v7197_v3  ;;  %v8345_v61 = vld [vmem:[%s11465_s8 + $0x3a4] sm:$0xf]  ;;  %v7267_v46 = vld [vmem:[%s11465_s8 + $0x4f0] sm:$0xf]  ;;  %v8390_v37 = vld [vmem:[%s11465_s8 + $0x504] sm:$0xf0] }
 0x996   :  { %v3225_v14 = vmul.f32 %v3223_v58, %v3217_v0  ;;  %v3226_v12 = vmul.f32 %v3224_v60, %v3218_v59  ;;  %v7291_v58 = vld [vmem:[%s11465_s8 + $0x520] sm:$0xf]  ;;  %v8396_v60 = vld [vmem:[%s11465_s8 + $0x534] sm:$0xf0]  ;;  %v7293_v0 = vld [vmem:[%s11465_s8 + $0x538] sm:$0xf0]  ;;  %v7100_v59 = vor.u32 %v8348_v57, %v7099_v56  ;;  %v7268_v53 = vor.u32 %v8390_v37, %v7267_v46 }
 0x997   :  { %v8339_v3 = vld [vmem:[%s11465_s8 + $0x374] sm:$0xf] }
 0x998   :  { %v10548_v2 = vadd.f32 %v3231_v62, %v3225_v14  ;;  %v10550_v45 = vadd.f32 %v3232_v63, %v3226_v12  ;;  %v7101_v62 = vld [vmem:[%s11465_s8 + $0x3b8] sm:$0xf0]  ;;  %v8393_v63 = vld [vmem:[%s11465_s8 + $0x524] sm:$0xf]  ;;  %v7292_v14 = vor.u32 %v8396_v60, %v7291_v58  ;;  %v7075_v12 = vld [vmem:[%s11465_s8 + $0x370] sm:$0xf] }
 0x999   :  { %v7104_v18 = vor.u32 %v8345_v61, %v7101_v62  ;;  %v7296_v1 = vor.u32 %v8393_v63, %v7293_v0 }
 0x99a   :  { %v10563_v5 = vpack.c.bf16 %v10548_v2, %v10548_v2  ;;  %v10567_v13 = vpack.c.bf16 %v10550_v45, %v10550_v45 }
 0x99c   :  { %3837 = vmatmul.bf16.vlgmr.msrb.gmra.mxu0 %v10563_v5  ;;  %3850 = vmatmul.bf16.vlgmr.msrb.gmra.mxu2 %v10567_v13 }
 0x99d   :  { %3863 = vmatmul.bf16.vlgmr.msra.gmra.mxu1 %v10563_v5  ;;  %3876 = vmatmul.bf16.vlgmr.msra.gmra.mxu3 %v10567_v13 }
 0x99e   :  { %3933 = vmatpush.bf16.msrb.mxu0 %v7196_v52  ;;  %3946 = vmatpush.bf16.msrb.mxu2 %v7388_v6  ;;  %v7269_v52 = vld [vmem:[%s11465_s8 + $0x508] sm:$0xf0]  ;;  %v7076_v6 = vor.u32 %v8342_v19, %v7075_v12 }
 0x99f   :  { %3959 = vmatpush.bf16.msra.mxu1 %v7200_v40  ;;  %3972 = vmatpush.bf16.msra.mxu3 %v7392_v27  ;;  %v8336_v40 = vld [vmem:[%s11465_s8 + $0x354] sm:$0xf0]  ;;  %v7080_v27 = vor.u32 %v8339_v3, %v7077_v4  ;;  %v7272_v9 = vor.u32 %v8387_v15, %v7269_v52 }
 0x9a2   :  { %3934 = vmatpush.bf16.msrb.mxu0 %v7172_v41  ;;  %3947 = vmatpush.bf16.msrb.mxu2 %v7364_v28  ;;  %v7245_v41 = vld [vmem:[%s11465_s8 + $0x4d8] sm:$0xf0]  ;;  %v7052_v28 = vor.u32 %v8336_v40, %v7051_v7 }
 0x9a3   :  { %3960 = vmatpush.bf16.msra.mxu1 %v7176_v30  ;;  %3973 = vmatpush.bf16.msra.mxu3 %v7368_v39  ;;  %v8330_v30 = vld [vmem:[%s11465_s8 + $0x324] sm:$0xf0]  ;;  %v7056_v39 = vor.u32 %v8333_v21, %v7053_v24  ;;  %v7248_v29 = vor.u32 %v8381_v25, %v7245_v41 }
 0x9a6   :  { %3935 = vmatpush.bf16.msrb.mxu0 %v7148_v8  ;;  %3948 = vmatpush.bf16.msrb.mxu2 %v7340_v44  ;;  %v7221_v8 = vld [vmem:[%s11465_s8 + $0x4a8] sm:$0xf0]  ;;  %v7028_v44 = vor.u32 %v8330_v30, %v7027_v31 }
 0x9a7   :  { %3961 = vmatpush.bf16.msra.mxu1 %v7152_v10  ;;  %3974 = vmatpush.bf16.msra.mxu3 %v7344_v49  ;;  %v7224_v10 = vor.u32 %v8375_v43, %v7221_v8  ;;  %v3335_v49 = vld [vmem:[#allocation12 + $0x6] sm:$0x3f] }
 0x9a8   :  { %v3337_v51 = vperm.slane %v3335_v49, 0  ;;  %v3339_v60 = vperm.slane %v3335_v49, 2  ;;  %v3340_v61 = vperm.slane %v3335_v49, 3  ;;  %v3338_v0 = vperm.slane %v3335_v49, 1 }
 0x9a9   :  { %v3341_v40 = vperm.slane %v3335_v49, 4 }
 0x9aa   :  { %3936 = vmatpush.bf16.msrb.mxu0 %v7124_v33  ;;  %3949 = vmatpush.bf16.msrb.mxu2 %v7316_v23 }
 0x9ab   :  { %3962 = vmatpush.bf16.msra.mxu1 %v7128_v38  ;;  %3975 = vmatpush.bf16.msra.mxu3 %v7320_v42 }
 0x9ac   :  { %3889 = vmatmul.bf16.vlgmr.msra.gmra.mxu0 %v10563_v5  ;;  %3902 = vmatmul.bf16.vlgmr.msra.gmra.mxu2 %v10567_v13 }
 0x9ad   :  { %3915 = vmatmul.bf16.vlgmr.msrb.gmra.mxu1 %v10563_v5  ;;  %3928 = vmatmul.bf16.vlgmr.msrb.gmra.mxu3 %v10567_v13 }
 0x9ae   :  { %3937 = vmatpush.bf16.msrb.mxu0 %v7100_v59  ;;  %3950 = vmatpush.bf16.msrb.mxu2 %v7292_v14 }
 0x9af   :  { %3963 = vmatpush.bf16.msra.mxu1 %v7104_v18  ;;  %3976 = vmatpush.bf16.msra.mxu3 %v7296_v1 }
 0x9b2   :  { %3938 = vmatpush.bf16.msrb.mxu0 %v7076_v6  ;;  %3951 = vmatpush.bf16.msrb.mxu2 %v7268_v53 }
 0x9b3   :  { %3964 = vmatpush.bf16.msra.mxu1 %v7080_v27  ;;  %3977 = vmatpush.bf16.msra.mxu3 %v7272_v9  ;;  %v3342_v9 = vperm.slane %v3335_v49, 5 }
 0x9b6   :  { %3939 = vmatpush.bf16.msrb.mxu0 %v7052_v28  ;;  %3952 = vmatpush.bf16.msrb.mxu2 %v7244_v26 }
 0x9b7   :  { %3965 = vmatpush.bf16.msra.mxu1 %v7056_v39  ;;  %3978 = vmatpush.bf16.msra.mxu3 %v7248_v29 }
 0x9ba   :  { %3940 = vmatpush.bf16.msrb.mxu0 %v7028_v44  ;;  %3953 = vmatpush.bf16.msrb.mxu2 %v7220_v47 }
 0x9bb   :  { %3966 = vmatpush.bf16.msra.mxu1 %v7032_v48  ;;  %3979 = vmatpush.bf16.msra.mxu3 %v7224_v10 }
 0x9bd   :  { %3941 = vmatmul.bf16.vlgmr.msrb.gmra.mxu0 %v10563_v5  ;;  %3954 = vmatmul.bf16.vlgmr.msrb.gmra.mxu2 %v10567_v13 }
 0x9be   :  { %3967 = vmatmul.bf16.vlgmr.msra.gmra.mxu1 %v10563_v5  ;;  %3980 = vmatmul.bf16.vlgmr.msra.gmra.mxu3 %v10567_v13 }
 0xa19   :  { %v3838_v50 = vpop.f32.mrf.mxu0 }
 0xa1a   :  { %v3864_v54 = vpop.f32.mrf.mxu1  ;;  %v3839_v22 = vadd.f32 %v3838_v50, %v3337_v51 }
 0xa1b   :  { %v3865_v37 = vadd.f32 %v3864_v54, %v3338_v0 }
 0xa1f   :  { %v3851_v55 = vpop.f32.mrf.mxu2 }
 0xa20   :  { %v3852_v32 = vadd.f32 %v3851_v55, %v3839_v22  ;;  %v3877_v33 = vpop.f32.mrf.mxu3 }
 0xa21   :  { %v3840_v23 = vpop.f32.mrf.mxu0  ;;  %v3878_v15 = vadd.f32 %v3877_v33, %v3865_v37 }
 0xa22   :  { %v3985_v56 = vpack.c.bf16 %v3852_v32, %v3852_v32  ;;  %v3866_v57 = vpop.f32.mrf.mxu1 }
 0xa23   :  { %v4125_v53 = vpack.c.bf16 %v3878_v15, %v3878_v15 }
 0xa24   :  { %4053 = vrot.lane.b32.xlu2 %v3985_v56, %s9087_s0 }
 0xa27   :  { %v3853_v38 = vpop.f32.mrf.mxu2 }
 0xa28   :  { %v3879_v42 = vpop.f32.mrf.mxu3 }
 0xa29   :  { %v3890_v58 = vpop.f32.mrf.mxu0 }
 0xa2a   :  { %v3916_v5 = vpop.f32.mrf.mxu1  ;;  %v3891_v13 = vadd.f32 %v3890_v58, %v3339_v60 }
 0xa2b   :  { %v3917_v62 = vadd.f32 %v3916_v5, %v3340_v61 }
 0xa2f   :  { %v3903_v63 = vpop.f32.mrf.mxu2 }
 0xa30   :  { %v3904_v59 = vadd.f32 %v3903_v63, %v3891_v13  ;;  %v3929_v14 = vpop.f32.mrf.mxu3 }
 0xa31   :  { %v3930_v12 = vadd.f32 %v3929_v14, %v3917_v62  ;;  %v3892_v19 = vpop.f32.mrf.mxu0 }
 0xa32   :  { %v3986_v18 = vpack.c.bf16 %v3904_v59, %v3904_v59  ;;  %v3918_v1 = vpop.f32.mrf.mxu1 }
 0xa33   :  { %v4126_v46 = vpack.c.bf16 %v3930_v12, %v3930_v12 }
 0xa34   :  { %v3991_v3 = vsel %vm2297_vm11, %v3986_v18, 0  ;;  %4056 = vrot.lane.b32.xlu1 %v3986_v18, %s9087_s0 }
 0xa35   :  { %v4131_v4 = vsel %vm2297_vm11, %v4126_v46, 0  ;;  %4196 = vrot.lane.b32.xlu0 %v4126_v46, %s9087_s0  ;;  %4000 = vmatpush.bf16.xpose.msra.mxu0 %v3991_v3 }
 0xa37   :  { %v3905_v52 = vpop.f32.mrf.mxu2 }
 0xa38   :  { %v3931_v6 = vpop.f32.mrf.mxu3 }
 0xa3a   :  { %v3942_v7 = vpop.f32.mrf.mxu0 }
 0xa3b   :  { %v3968_v27 = vpop.f32.mrf.mxu1  ;;  %v3943_v16 = vadd.f32 %v3942_v7, %v3341_v40 }
 0xa3c   :  { %4193 = vrot.lane.b32.xlu1 %v4125_v53, %s9087_s0  ;;  %7393 = vmatmul.msk.bf16.vlgmr.msra.gmra.mxu0 %vm2297_vm11, %v3985_v56  ;;  %v3969_v17 = vadd.f32 %v3968_v27, %v3342_v9 }
 0xa3d   :  { %4140 = vmatpush.bf16.xpose.msrb.mxu0 %v4131_v4 }
 0xa40   :  { %v3955_v21 = vpop.f32.mrf.mxu2 }
 0xa41   :  { %v3956_v24 = vadd.f32 %v3955_v21, %v3943_v16  ;;  %v3981_v25 = vpop.f32.mrf.mxu3 }
 0xa42   :  { %v3982_v41 = vadd.f32 %v3981_v25, %v3969_v17  ;;  %v3944_v28 = vpop.f32.mrf.mxu0 }
 0xa43   :  { %v10756_v26 = vpack.c.bf16 %v3956_v24, %v3956_v24  ;;  %v3970_v31 = vpop.f32.mrf.mxu1 }
 0xa44   :  { %v4172_v30 = vpack.c.bf16 %v3982_v41, %v3982_v41 }
 0xa45   :  { %v4037_v39 = vsel %vm2349_vm12, %v10756_v26, 0 }
 0xa46   :  { %v4177_v29 = vsel %vm2349_vm12, %v4172_v30, 0  ;;  %4046 = vmatpush.bf16.msra.mxu2 %v4037_v39 }
 0xa48   :  { %v3957_v34 = vpop.f32.mrf.mxu2 }
 0xa49   :  { %v3983_v35 = vpop.f32.mrf.mxu3 }
 0xa4a   :  { %4186 = vmatpush.bf16.msrb.mxu2 %v4177_v29 }
 0xa4c   :  { %7397 = vmatmul.msk.bf16.vlgmr.msrb.gmra.mxu0 %vm2297_vm11, %v4125_v53 }
 0xa7e   :  { %v4054_v44 = vpop.permute.xlu2 %4053 }
 0xaa6   :  { %v4057_v36 = vpop.permute.xlu1 %4056 }
 0xaa7   :  { %v4197_v20 = vpop.permute.xlu0 %4196  ;;  %v4062_v43 = vsel %vm2297_vm11, %v4057_v36, 0 }
 0xaa8   :  { %v4202_v8 = vsel %vm2297_vm11, %v4197_v20, 0  ;;  %4071 = vmatpush.bf16.xpose.msrb.mxu1 %v4062_v43 }
 0xaae   :  { %v4194_v49 = vpop.permute.xlu1 %4193 }
 0xaaf   :  { %7395 = vmatmul.msk.bf16.vlgmr.msrb.gmra.mxu1 %vm2297_vm11, %v4054_v44 }
 0xab0   :  { %4211 = vmatpush.bf16.xpose.msra.mxu1 %v4202_v8 }
 0xab9   :  { %v4002_v47 = vpop.f32.mrf.mxu0 }
 0xaba   :  { %v4006_v48 = vmul.f32 0.125, %v4002_v47 }
 0xabc   :  { %v4007_v10 = vsel %vm2318_vm13, %v4006_v48, -inf }
 0xabd   :  { %4008 = vmax.xlane.f32.xlu1 %v4007_v10 }
 0xabf   :  { %7399 = vmatmul.msk.bf16.vlgmr.msra.gmra.mxu1 %vm2297_vm11, %v4194_v49 }
 0xac1   :  { %v4004_v50 = vpop.f32.mrf.mxu0 }
 0xac9   :  { %v4142_v51 = vpop.f32.mrf.mxu0 }
 0xaca   :  { %v4146_v38 = vmul.f32 0.125, %v4142_v51 }
 0xacc   :  { %v4147_v58 = vsel %vm2318_vm13, %v4146_v38, -inf }
 0xad1   :  { %v4144_v54 = vpop.f32.mrf.mxu0 }
 0xb2c   :  { %v4073_v22 = vpop.f32.mrf.mxu1 }
 0xb2d   :  { %v4077_v55 = vmul.f32 0.125, %v4073_v22 }
 0xb2f   :  { %v4078_v32 = vsel %vm2318_vm13, %v4077_v55, -inf }
 0xb30   :  { %4079 = vmax.xlane.f32.xlu2 %v4078_v32  ;;  %v4009_v63 = vpop.xlane.xlu1 %4008 }
 0xb31   :  { %v4010_v14 = vsub.f32 %v4006_v48, %v4009_v63 }
 0xb33   :  { %v4011_v19 = vmul.f32 1.442695, %v4010_v14 }
 0xb34   :  { %v4075_v33 = vpop.f32.mrf.mxu1 }
 0xb3c   :  { %v4213_v23 = vpop.f32.mrf.mxu1 }
 0xb3d   :  { %v4217_v56 = vmul.f32 0.125, %v4213_v23 }
 0xb3f   :  { %v4218_v57 = vsel %vm2318_vm13, %v4217_v56, -inf }
 0xb40   :  { %4219 = vmax.xlane.f32.xlu0 %v4218_v57 }
 0xb44   :  { %v4215_v42 = vpop.f32.mrf.mxu1 }
 0xb48   :  { %4148 = vmax.xlane.f32.xlu0 %v4147_v58 }
 0xb5c   :  { %4244 = vrot.lane.b32.xlu0 %v4172_v30, %s9087_s0 }
 0xba3   :  { %v4080_v60 = vpop.xlane.xlu2 %4079 }
 0xba4   :  { %v4081_v5 = vsub.f32 %v4077_v55, %v4080_v60 }
 0xba6   :  { %v4082_v61 = vmul.f32 1.442695, %v4081_v5 }
 0xba8   :  { %8656 = vpow2.f32 %v4082_v61 }
 0xbae   :  { %v8657_v13 = vpop.eup %8656 }
 0xbaf   :  { %v4084_v62 = vsel %vm2318_vm13, %v8657_v13, 0.0 }
 0xbb0   :  { %4085 = vadd.xlane.f32.xlu2 %v4084_v62 }
 0xbb3   :  { %v4220_v0 = vpop.xlane.xlu0 %4219 }
 0xbb4   :  { %v4221_v59 = vsub.f32 %v4217_v56, %v4220_v0 }
 0xbb6   :  { %v4222_v12 = vmul.f32 1.442695, %v4221_v59 }
 0xbb8   :  { %8658 = vpow2.f32 %v4222_v12 }
 0xbb9   :  { %8660 = vpow2.f32 %v4011_v19 }
 0xbbb   :  { %v4149_v18 = vpop.xlane.xlu0 %4148 }
 0xbbc   :  { %v4150_v46 = vsub.f32 %v4146_v38, %v4149_v18 }
 0xbbe   :  { %v8659_v1 = vpop.eup %8658  ;;  %v4151_v3 = vmul.f32 1.442695, %v4150_v46 }
 0xbbf   :  { %v4224_v37 = vsel %vm2318_vm13, %v8659_v1, 0.0  ;;  %v10773_v4 = vpop.eup %8660 }
 0xbc0   :  { %4225 = vadd.xlane.f32.xlu1 %v4224_v37  ;;  %8662 = vpow2.f32 %v4151_v3  ;;  %v4013_v15 = vsel %vm2318_vm13, %v10773_v4, 0.0 }
 0xbc6   :  { %v10779_v52 = vpop.eup %8662 }
 0xbc7   :  { %v4153_v6 = vsel %vm2318_vm13, %v10779_v52, 0.0 }
 0xbc8   :  { %4104 = vrot.lane.b32.xlu2 %v10756_v26, %s9087_s0  ;;  %4014 = vadd.xlane.f32.xlu1 %v4013_v15 }
 0xbce   :  { %v4245_v40 = vpop.permute.xlu0 %4244 }
 0xbcf   :  { %v4250_v17 = vsel %vm2349_vm12, %v4245_v40, 0 }
 0xbd0   :  { %4154 = vadd.xlane.f32.xlu1 %v4153_v6  ;;  %v7459_v6 = vld [vmem:[#allocation13 + $0x170] sm:$0xf] }
 0xc23   :  { %v4086_v53 = vpop.xlane.xlu2 %4085 }
 0xc24   :  { %8664 = vrcp.f32 %v4086_v53  ;;  %v4098_v24 = vand.u32 2147483648, %v4086_v53  ;;  %v4096_v41 = vand.u32 2147483647, %v4086_v53  ;;  %vm4092_vm13 = vweird.f32 %v4086_v53 }
 0xc26   :  { %v4099_v26 = vor.u32 1.1754944e-38, %v4098_v24  ;;  %vm4097_vm0 = vcmp.eq.f32.partialorder %v4096_v41, 8.507059e+37  ;;  %v7443_v41 = vld [vmem:[#allocation13 + $0x150] sm:$0xf] }
 0xc2a   :  { %v8665_v7 = vpop.eup %8664 }
 0xc2b   :  { %v4088_v27 = vmul.f32 %v8665_v7, %v4086_v53  ;;  %v4105_v9 = vpop.permute.xlu2 %4104  ;;  %vm4093_vm14 = vweird.f32 %v8665_v7  ;;  %v8436_v53 = vld [vmem:[#allocation13 + $0x174] sm:$0xf0] }
 0xc2c   :  { %v4110_v16 = vsel %vm2349_vm12, %v4105_v9, 0  ;;  %vm4094_vm15 = vmor %vm4092_vm13, %vm4093_vm14  ;;  %v7460_v40 = vor.u32 %v8436_v53, %v7459_v6  ;;  %v7451_v9 = vld [vmem:[#allocation13 + $0x160] sm:$0xf] }
 0xc2d   :  { %v4089_v21 = vsub.f32 1.0, %v4088_v27  ;;  %4119 = vmatpush.bf16.msrb.mxu3 %v4110_v16  ;;  %v7461_v27 = vld [vmem:[#allocation13 + $0x178] sm:$0xf0]  ;;  %v8434_v16 = vld [vmem:[#allocation13 + $0x164] sm:$0xf0] }
 0xc2e   :  { %4477 = vmatpush.bf16.msra.mxu0 %v7460_v40  ;;  %v7452_v24 = vor.u32 %v8434_v16, %v7451_v9  ;;  %v8422_v9 = vld [vmem:[#allocation13 + $0x104] sm:$0xf0]  ;;  %v7499_v16 = vld [vmem:[#allocation13 + $0x1c0] sm:$0xf] }
 0xc2f   :  { %v4090_v25 = vmul.f32 %v8665_v7, %v4089_v21  ;;  %v8433_v21 = vld [vmem:[#allocation13 + $0x164] sm:$0xf] }
 0xc31   :  { %4259 = vmatpush.bf16.msra.mxu3 %v4250_v17  ;;  %v4091_v28 = vadd.f32 %v8665_v7, %v4090_v25 }
 0xc32   :  { %4478 = vmatpush.bf16.msra.mxu0 %v7452_v24  ;;  %v7405_v24 = vld [vmem:[#allocation13 + $0x108] sm:$0xf0] }
 0xc33   :  { %v4095_v31 = vsel %vm4094_vm15, %v8665_v7, %v4091_v28  ;;  %v4226_v30 = vpop.xlane.xlu1 %4225  ;;  %v8435_v7 = vld [vmem:[#allocation13 + $0x174] sm:$0xf]  ;;  %v8432_v28 = vld [vmem:[#allocation13 + $0x154] sm:$0xf0] }
 0xc34   :  { %v4100_v39 = vsel %vm4097_vm0, %v4099_v26, %v4095_v31  ;;  %8666 = vrcp.f32 %v4226_v30  ;;  %v4238_v8 = vand.u32 2147483648, %v4226_v30  ;;  %v4236_v47 = vand.u32 2147483647, %v4226_v30  ;;  %v8431_v26 = vld [vmem:[#allocation13 + $0x154] sm:$0xf] }
 0xc35   :  { %v4101_v29 = vmul.f32 %v8657_v13, %v4100_v39  ;;  %vm4232_vm1 = vweird.f32 %v4226_v30  ;;  %v7464_v17 = vor.u32 %v8435_v7, %v7461_v27  ;;  %v7445_v31 = vld [vmem:[#allocation13 + $0x158] sm:$0xf0]  ;;  %v8452_v39 = vld [vmem:[#allocation13 + $0x1f4] sm:$0xf0]  ;;  %v7403_v27 = vld [vmem:[#allocation13 + $0x100] sm:$0xf] }
 0xc36   :  { %v4239_v49 = vor.u32 1.1754944e-38, %v4238_v8  ;;  %vm4237_vm5 = vcmp.eq.f32.partialorder %v4236_v47, 8.507059e+37  ;;  %v7448_v8 = vor.u32 %v8431_v26, %v7445_v31  ;;  %v8430_v47 = vld [vmem:[#allocation13 + $0x144] sm:$0xf0]  ;;  %v7501_v26 = vld [vmem:[#allocation13 + $0x1c8] sm:$0xf0] }
 0xc37   :  { %v4102_v34 = vpack.c.bf16 %v4101_v29, %v4101_v29  ;;  %4503 = vmatpush.bf16.msrb.mxu1 %v7464_v17  ;;  %v7444_v29 = vor.u32 %v8432_v28, %v7443_v41  ;;  %v7404_v17 = vor.u32 %v8422_v9, %v7403_v27  ;;  %v8445_v28 = vld [vmem:[#allocation13 + $0x1c4] sm:$0xf]  ;;  %v8460_v9 = vld [vmem:[#allocation16 + $0xb8] sm:$0xff] }
 0xc38   :  { %v7504_v31 = vor.u32 %v8445_v28, %v7501_v26  ;;  %v8459_v26 = vld [vmem:[#allocation16 + $0xb0] sm:$0xff] }
 0xc39   :  { %7396 = vmatmul.msk.bf16.vlgmr.msrb.gmra.mxu3 %vm2345_vm2, %v4102_v34  ;;  %4479 = vmatpush.bf16.msra.mxu0 %v7444_v29  ;;  %v8443_v29 = vld [vmem:[#allocation13 + $0x1b4] sm:$0xf] }
 0xc3a   :  { %v8667_v35 = vpop.eup %8666 }
 0xc3b   :  { %v4228_v36 = vmul.f32 %v8667_v35, %v4226_v30  ;;  %v4015_v20 = vpop.xlane.xlu1 %4014  ;;  %vm4233_vm12 = vweird.f32 %v8667_v35  ;;  %v7523_v30 = vld [vmem:[#allocation13 + $0x1f0] sm:$0xf] }
 0xc3c   :  { %8668 = vrcp.f32 %v4015_v20  ;;  %vm4234_vm4 = vmor %vm4232_vm1, %vm4233_vm12  ;;  %v4027_v33 = vand.u32 2147483648, %v4015_v20  ;;  %v4025_v57 = vand.u32 2147483647, %v4015_v20  ;;  %vm4021_vm7 = vweird.f32 %v4015_v20 }
 0xc3d   :  { %v4229_v43 = vsub.f32 1.0, %v4228_v36  ;;  %v7524_v34 = vor.u32 %v8452_v39, %v7523_v30  ;;  %v7525_v36 = vld [vmem:[#allocation13 + $0x1f8] sm:$0xf0]  ;;  %v7491_v30 = vld [vmem:[#allocation13 + $0x1b0] sm:$0xf] }
 0xc3e   :  { %v4028_v58 = vor.u32 1.1754944e-38, %v4027_v33  ;;  %vm4026_vm9 = vcmp.eq.f32.partialorder %v4025_v57, 8.507059e+37  ;;  %v8444_v39 = vld [vmem:[#allocation13 + $0x1b4] sm:$0xf0] }
 0xc3f   :  { %v4230_v44 = vmul.f32 %v8667_v35, %v4229_v43 }
 0xc41   :  { %v4231_v48 = vadd.f32 %v8667_v35, %v4230_v44  ;;  %v7435_v44 = vld [vmem:[#allocation13 + $0x140] sm:$0xf] }
 0xc42   :  { %v8669_v10 = vpop.eup %8668 }
 0xc43   :  { %v4235_v50 = vsel %vm4234_vm4, %v8667_v35, %v4231_v48  ;;  %v4017_v51 = vmul.f32 %v8669_v10, %v4015_v20  ;;  %v4155_v54 = vpop.xlane.xlu1 %4154  ;;  %vm4022_vm6 = vweird.f32 %v8669_v10  ;;  %v8451_v35 = vld [vmem:[#allocation13 + $0x1f4] sm:$0xf] }
 0xc44   :  { %v4240_v22 = vsel %vm4237_vm5, %v4239_v49, %v4235_v50  ;;  %8670 = vrcp.f32 %v4155_v54  ;;  %vm4023_vm8 = vmor %vm4021_vm7, %vm4022_vm6  ;;  %v4167_v14 = vand.u32 2147483648, %v4155_v54  ;;  %vm4161_vm14 = vweird.f32 %v4155_v54  ;;  %v8429_v49 = vld [vmem:[#allocation13 + $0x144] sm:$0xf]  ;;  %v7437_v50 = vld [vmem:[#allocation13 + $0x148] sm:$0xf0] }
 0xc45   :  { %v4241_v55 = vmul.f32 %v8659_v1, %v4240_v22  ;;  %v4018_v32 = vsub.f32 1.0, %v4017_v51  ;;  %v4165_v12 = vand.u32 2147483647, %v4155_v54  ;;  %v7528_v48 = vor.u32 %v8451_v35, %v7525_v36  ;;  %v8450_v51 = vld [vmem:[#allocation13 + $0x1e4] sm:$0xf0] }
 0xc46   :  { %v4168_v18 = vor.u32 1.1754944e-38, %v4167_v14  ;;  %v8449_v22 = vld [vmem:[#allocation13 + $0x1e4] sm:$0xf]  ;;  %v7440_v57 = vor.u32 %v8429_v49, %v7437_v50  ;;  %v7419_v14 = vld [vmem:[#allocation13 + $0x120] sm:$0xf] }
 0xc47   :  { %v4242_v23 = vpack.c.bf16 %v4241_v55, %v4241_v55  ;;  %v4019_v56 = vmul.f32 %v8669_v10, %v4018_v32  ;;  %vm4166_vm15 = vcmp.eq.f32.partialorder %v4165_v12, 8.507059e+37  ;;  %4516 = vmatpush.bf16.msrb.mxu3 %v7528_v48  ;;  %v7517_v55 = vld [vmem:[#allocation13 + $0x1e8] sm:$0xf0]  ;;  %v7436_v32 = vor.u32 %v8430_v47, %v7435_v44  ;;  %v8426_v12 = vld [vmem:[#allocation13 + $0x124] sm:$0xf0] }
 0xc48   :  { %v7520_v33 = vor.u32 %v8449_v22, %v7517_v55  ;;  %v7493_v35 = vld [vmem:[#allocation13 + $0x1b8] sm:$0xf0]  ;;  %v7483_v36 = vld [vmem:[#allocation13 + $0x1a0] sm:$0xf]  ;;  %v8441_v44 = vld [vmem:[#allocation13 + $0x1a4] sm:$0xf] }
 0xc49   :  { %v4020_v38 = vadd.f32 %v8669_v10, %v4019_v56  ;;  %7400 = vmatmul.msk.bf16.vlgmr.msra.gmra.mxu3 %vm2345_vm2, %v4242_v23  ;;  %v7507_v23 = vld [vmem:[#allocation13 + $0x1d0] sm:$0xf]  ;;  %v8448_v56 = vld [vmem:[#allocation13 + $0x1d4] sm:$0xf0]  ;;  %4480 = vmatpush.bf16.msra.mxu0 %v7436_v32  ;;  %v7485_v47 = vld [vmem:[#allocation13 + $0x1a8] sm:$0xf0] }
 0xc4a   :  { %v8671_v42 = vpop.eup %8670  ;;  %v7475_v49 = vld [vmem:[#allocation13 + $0x190] sm:$0xf]  ;;  %v8440_v50 = vld [vmem:[#allocation13 + $0x194] sm:$0xf0]  ;;  %v7467_v32 = vld [vmem:[#allocation13 + $0x180] sm:$0xf] }
 0xc4b   :  { %v4024_v60 = vsel %vm4023_vm8, %v8669_v10, %v4020_v38  ;;  %v4157_v5 = vmul.f32 %v8671_v42, %v4155_v54  ;;  %vm4162_vm10 = vweird.f32 %v8671_v42  ;;  %v7515_v10 = vld [vmem:[#allocation13 + $0x1e0] sm:$0xf]  ;;  %v7427_v38 = vld [vmem:[#allocation13 + $0x130] sm:$0xf]  ;;  %4517 = vmatpush.bf16.msrb.mxu3 %v7520_v33  ;;  %v7476_v22 = vor.u32 %v8440_v50, %v7475_v49  ;;  %v8438_v33 = vld [vmem:[#allocation13 + $0x184] sm:$0xf0] }
 0xc4c   :  { %v4029_v61 = vsel %vm4026_vm9, %v4028_v58, %v4024_v60  ;;  %vm4163_vm13 = vmor %vm4161_vm14, %vm4162_vm10  ;;  %v7516_v54 = vor.u32 %v8450_v51, %v7515_v10  ;;  %v8447_v58 = vld [vmem:[#allocation13 + $0x1d4] sm:$0xf]  ;;  %v7488_v10 = vor.u32 %v8441_v44, %v7485_v47  ;;  %v8454_v44 = vld [vmem:[#allocation16 + $0x88] sm:$0xff]  ;;  %vm5731_vm8 = vcmask 1045508  }
 0xc4d   :  { %v4030_v13 = vmul.f32 %v10773_v4, %v4029_v61  ;;  %v4158_v62 = vsub.f32 1.0, %v4157_v5  ;;  %v8427_v60 = vld [vmem:[#allocation13 + $0x134] sm:$0xf]  ;;  %v7429_v5 = vld [vmem:[#allocation13 + $0x138] sm:$0xf0]  ;;  %v7508_v61 = vor.u32 %v8448_v56, %v7507_v23  ;;  %v7468_v56 = vor.u32 %v8438_v33, %v7467_v32  ;;  %v8462_v47 = vld [vmem:[#allocation16 + $0xc8] sm:$0xff] }
 0xc4e   :  { %v8439_v51 = vld [vmem:[#allocation13 + $0x194] sm:$0xf]  ;;  %v8437_v23 = vld [vmem:[#allocation13 + $0x184] sm:$0xf]  ;;  %v8484_v50 = vld [vmem:[#allocation19 + $0xf4] sm:$0xf0] }
 0xc4f   :  { %v4031_v63 = vpack.c.bf16 %v4030_v13, %v4030_v13  ;;  %v4159_v0 = vmul.f32 %v8671_v42, %v4158_v62  ;;  %v7509_v13 = vld [vmem:[#allocation13 + $0x1d8] sm:$0xf0]  ;;  %v7651_v49 = vld [vmem:[#allocation19 + $0xf0] sm:$0xf]  ;;  %v7643_v32 = vld [vmem:[#allocation19 + $0xe0] sm:$0xf] }
 0xc50   :  { %v7512_v62 = vor.u32 %v8447_v58, %v7509_v13  ;;  %v8482_v33 = vld [vmem:[#allocation19 + $0xe4] sm:$0xf0]  ;;  %vm5733_vm9 = vcmask 1043456   ;;  %vm5739_vm10 = vcmask 650242  }
 0xc51   :  { %v4160_v59 = vadd.f32 %v8671_v42, %v4159_v0  ;;  %7394 = vmatmul.msk.bf16.vlgmr.msra.gmra.mxu2 %vm2345_vm2, %v4031_v63  ;;  %vm5740_vm14 = vmor %vm5739_vm10, %vm2844_vm3 }
 0xc52   :  { %4490 = vmatpush.bf16.msra.mxu2 %v7524_v34  ;;  %4518 = vmatpush.bf16.msrb.mxu3 %v7512_v62  ;;  %v7492_v34 = vor.u32 %v8444_v39, %v7491_v30  ;;  %v8458_v30 = vld [vmem:[#allocation16 + $0xa8] sm:$0xff] }
 0xc53   :  { %v4164_v19 = vsel %vm4163_vm13, %v8671_v42, %v4160_v59  ;;  %v8428_v42 = vld [vmem:[#allocation13 + $0x134] sm:$0xf0]  ;;  %v7432_v59 = vor.u32 %v8427_v60, %v7429_v5  ;;  %v8466_v39 = vld [vmem:[#allocation16 + $0xe8] sm:$0xff] }
 0xc54   :  { %v4169_v1 = vsel %vm4166_vm15, %v4168_v18, %v4164_v19  ;;  %v7428_v63 = vor.u32 %v8428_v42, %v7427_v38  ;;  %v8425_v19 = vld [vmem:[#allocation13 + $0x124] sm:$0xf]  ;;  %v7421_v18 = vld [vmem:[#allocation13 + $0x128] sm:$0xf0] }
 0xc55   :  { %v4170_v46 = vmul.f32 %v10779_v52, %v4169_v1  ;;  %v7453_v52 = vld [vmem:[#allocation13 + $0x168] sm:$0xf0]  ;;  %v7420_v1 = vor.u32 %v8426_v12, %v7419_v14  ;;  %v4311_v14 = vld [vmem:[#allocation15 + $0x2] sm:$0x3] }
 0xc56   :  { %v7456_v25 = vor.u32 %v8433_v21, %v7453_v52  ;;  %4491 = vmatpush.bf16.msra.mxu2 %v7516_v54  ;;  %4481 = vmatpush.bf16.msra.mxu0 %v7428_v63  ;;  %v8446_v21 = vld [vmem:[#allocation13 + $0x1c4] sm:$0xf0]  ;;  %v8421_v52 = vld [vmem:[#allocation13 + $0x104] sm:$0xf]  ;;  %v7477_v54 = vld [vmem:[#allocation13 + $0x198] sm:$0xf0] }
 0xc57   :  { %v4171_v37 = vpack.c.bf16 %v4170_v46, %v4170_v46  ;;  %v7424_v46 = vor.u32 %v8425_v19, %v7421_v18  ;;  %v7408_v41 = vor.u32 %v8421_v52, %v7405_v24  ;;  %4519 = vmatpush.bf16.msrb.mxu3 %v7504_v31  ;;  %v7480_v55 = vor.u32 %v8439_v51, %v7477_v54  ;;  %v8467_v31 = vld [vmem:[#allocation16 + $0xf0] sm:$0xff] }
 0xc58   :  { %4504 = vmatpush.bf16.msrb.mxu1 %v7456_v25  ;;  %v7500_v25 = vor.u32 %v8446_v21, %v7499_v16  ;;  %v4313_v12 = vperm.slane %v4311_v14, 0  ;;  %v4314_v19 = vperm.slane %v4311_v14, 1  ;;  %v8468_v16 = vld [vmem:[#allocation16 + $0xf8] sm:$0xff]  ;;  %v8478_v14 = vld [vmem:[#allocation19 + $0xc4] sm:$0xf0] }
 0xc59   :  { %v8483_v51 = vld [vmem:[#allocation19 + $0xf4] sm:$0xf] }
 0xc5a   :  { %4492 = vmatpush.bf16.msra.mxu2 %v7508_v61  ;;  %4482 = vmatpush.bf16.msra.mxu0 %v7420_v1 }
 0xc5c   :  { %4505 = vmatpush.bf16.msrb.mxu1 %v7448_v8  ;;  %v7496_v8 = vor.u32 %v8443_v29, %v7493_v35  ;;  %v8457_v29 = vld [vmem:[#allocation16 + $0xa0] sm:$0xff]  ;;  %v8456_v35 = vld [vmem:[#allocation16 + $0x98] sm:$0xff] }
 0xc5e   :  { %4493 = vmatpush.bf16.msra.mxu2 %v7500_v25  ;;  %4520 = vmatpush.bf16.msrb.mxu3 %v7496_v8  ;;  %v8463_v8 = vld [vmem:[#allocation16 + $0xd0] sm:$0xff] }
 0xc60   :  { %4506 = vmatpush.bf16.msrb.mxu1 %v7440_v57  ;;  %v7469_v57 = vld [vmem:[#allocation13 + $0x188] sm:$0xf0] }
 0xc61   :  { %7398 = vmatmul.msk.bf16.vlgmr.msrb.gmra.mxu2 %vm2345_vm2, %v4171_v37  ;;  %v7411_v37 = vld [vmem:[#allocation13 + $0x110] sm:$0xf]  ;;  %v7472_v38 = vor.u32 %v8437_v23, %v7469_v57  ;;  %v8481_v57 = vld [vmem:[#allocation19 + $0xe4] sm:$0xf] }
 0xc62   :  { %4494 = vmatpush.bf16.msra.mxu2 %v7492_v34  ;;  %4521 = vmatpush.bf16.msrb.mxu3 %v7488_v10  ;;  %v8465_v34 = vld [vmem:[#allocation16 + $0xe0] sm:$0xff] }
 0xc63   :  { %v8461_v10 = vld [vmem:[#allocation16 + $0xc0] sm:$0xff] }
 0xc64   :  { %4507 = vmatpush.bf16.msrb.mxu1 %v7432_v59 }
 0xc66   :  { %4522 = vmatpush.bf16.msrb.mxu3 %v7480_v55  ;;  %v7653_v55 = vld [vmem:[#allocation19 + $0xf8] sm:$0xf0] }
 0xc68   :  { %4508 = vmatpush.bf16.msrb.mxu1 %v7424_v46 }
 0xc6a   :  { %4523 = vmatpush.bf16.msrb.mxu3 %v7472_v38  ;;  %v7645_v38 = vld [vmem:[#allocation19 + $0xe8] sm:$0xf0] }
 0xcbc   :  { %v4121_v3 = vpop.f32.mrf.mxu3 }
 0xcbd   :  { %4266 = vrot.lane.b32.xlu0 %v4121_v3, %s9087_s0  ;;  %v8424_v3 = vld [vmem:[#allocation13 + $0x114] sm:$0xf0] }
 0xcbe   :  { %v7412_v6 = vor.u32 %v8424_v3, %v7411_v37 }
 0xcc0   :  { %4483 = vmatpush.bf16.msra.mxu0 %v7412_v6 }
 0xcc4   :  { %v4123_v4 = vpop.f32.mrf.mxu3  ;;  %4484 = vmatpush.bf16.msra.mxu0 %v7404_v17 }
 0xcc5   :  { %v8423_v4 = vld [vmem:[#allocation13 + $0x114] sm:$0xf] }
 0xcc8   :  { %4715 = vmatpush.bf16.msrb.mxu0 %v8460_v9 }
 0xccc   :  { %v4261_v15 = vpop.f32.mrf.mxu3  ;;  %4716 = vmatpush.bf16.msrb.mxu0 %v8459_v26 }
 0xccd   :  { %4270 = vrot.lane.b32.xlu1 %v4261_v15, %s9087_s0  ;;  %v7413_v15 = vld [vmem:[#allocation13 + $0x118] sm:$0xf0] }
 0xcce   :  { %v7416_v7 = vor.u32 %v8423_v4, %v7413_v15 }
 0xcd0   :  { %4509 = vmatpush.bf16.msrb.mxu1 %v7416_v7  ;;  %4717 = vmatpush.bf16.msrb.mxu0 %v8458_v30 }
 0xcd4   :  { %v10793_v20 = vpop.f32.mrf.mxu2  ;;  %v4263_v43 = vpop.f32.mrf.mxu3  ;;  %4510 = vmatpush.bf16.msrb.mxu1 %v7408_v41  ;;  %4718 = vmatpush.bf16.msrb.mxu0 %v8457_v29 }
 0xcd5   :  { %v8442_v43 = vld [vmem:[#allocation13 + $0x1a4] sm:$0xf0] }
 0xcd6   :  { %v7484_v48 = vor.u32 %v8442_v43, %v7483_v36  ;;  %v8464_v36 = vld [vmem:[#allocation16 + $0xd8] sm:$0xff]  ;;  %v8455_v43 = vld [vmem:[#allocation16 + $0x90] sm:$0xff] }
 0xcd8   :  { %4495 = vmatpush.bf16.msra.mxu2 %v7484_v48  ;;  %4719 = vmatpush.bf16.msrb.mxu0 %v8456_v35  ;;  %v8453_v48 = vld [vmem:[#allocation16 + $0x80] sm:$0xff] }
 0xcdc   :  { %v4050_v0 = vpop.f32.mrf.mxu2  ;;  %4496 = vmatpush.bf16.msra.mxu2 %v7476_v22  ;;  %4720 = vmatpush.bf16.msrb.mxu0 %v8455_v43  ;;  %v7652_v22 = vor.u32 %v8484_v50, %v7651_v49  ;;  %v7613_v49 = vld [vmem:[#allocation19 + $0xa8] sm:$0xf0] }
 0xcde   :  { %4847 = vmatpush.bf16.msra.mxu1 %v7652_v22  ;;  %v7605_v22 = vld [vmem:[#allocation19 + $0x98] sm:$0xf0] }
 0xce0   :  { %4497 = vmatpush.bf16.msra.mxu2 %v7468_v56  ;;  %4721 = vmatpush.bf16.msrb.mxu0 %v8454_v44  ;;  %v7656_v56 = vor.u32 %v8483_v51, %v7653_v55  ;;  %v7611_v44 = vld [vmem:[#allocation19 + $0xa0] sm:$0xf]  ;;  %v7603_v51 = vld [vmem:[#allocation19 + $0x90] sm:$0xf] }
 0xce2   :  { %4860 = vmatpush.bf16.msra.mxu3 %v7656_v56 }
 0xce4   :  { %v4188_v53 = vpop.f32.mrf.mxu2  ;;  %4728 = vmatpush.bf16.msrb.mxu2 %v8468_v16  ;;  %4722 = vmatpush.bf16.msrb.mxu0 %v8453_v48  ;;  %v8473_v48 = vld [vmem:[#allocation19 + $0xa4] sm:$0xf] }
 0xce5   :  { %v7616_v50 = vor.u32 %v8473_v48, %v7613_v49 }
 0xce8   :  { %4729 = vmatpush.bf16.msrb.mxu2 %v8467_v31 }
 0xcec   :  { %v4190_v40 = vpop.f32.mrf.mxu2  ;;  %4730 = vmatpush.bf16.msrb.mxu2 %v8466_v39 }
 0xcf0   :  { %4731 = vmatpush.bf16.msrb.mxu2 %v8465_v34 }
 0xcf4   :  { %4732 = vmatpush.bf16.msrb.mxu2 %v8464_v36 }
 0xcf8   :  { %4733 = vmatpush.bf16.msrb.mxu2 %v8463_v8 }
 0xcfc   :  { %4734 = vmatpush.bf16.msrb.mxu2 %v8462_v47  ;;  %v8474_v47 = vld [vmem:[#allocation19 + $0xa4] sm:$0xf0] }
 0xd00   :  { %4735 = vmatpush.bf16.msrb.mxu2 %v8461_v10  ;;  %v7612_v10 = vor.u32 %v8474_v47, %v7611_v44 }
 0xd2f   :  { %v4267_v42 = vpop.permute.xlu0 %4266 }
 0xd30   :  { %v4273_v58 = vsel %vm2297_vm11, %v10793_v20, %v4267_v42  ;;  %v7644_v42 = vor.u32 %v8482_v33, %v7643_v32  ;;  %v7595_v32 = vld [vmem:[#allocation19 + $0x80] sm:$0xf]  ;;  %v8470_v33 = vld [vmem:[#allocation19 + $0x84] sm:$0xf0] }
 0xd31   :  { %v4308_v60 = vpack.c.bf16 %v4273_v58, %v4273_v58  ;;  %v7596_v56 = vor.u32 %v8470_v33, %v7595_v32 }
 0xd32   :  { %4848 = vmatpush.bf16.msra.mxu1 %v7644_v42 }
 0xd33   :  { %4485 = vmatmul.bf16.vlgmr.msra.gmra.mxu0 %v4308_v60  ;;  %4511 = vmatmul.bf16.vlgmr.msrb.gmra.mxu1 %v4308_v60  ;;  %v7648_v60 = vor.u32 %v8481_v57, %v7645_v38  ;;  %v7597_v57 = vld [vmem:[#allocation19 + $0x88] sm:$0xf0] }
 0xd35   :  { %4861 = vmatpush.bf16.msra.mxu3 %v7648_v60 }
 0xd3f   :  { %v4271_v5 = vpop.permute.xlu1 %4270 }
 0xd40   :  { %v4274_v61 = vsel %vm2297_vm11, %v4188_v53, %v4271_v5  ;;  %v7635_v5 = vld [vmem:[#allocation19 + $0xd0] sm:$0xf] }
 0xd41   :  { %v4309_v13 = vpack.c.bf16 %v4274_v61, %v4274_v61  ;;  %v8480_v61 = vld [vmem:[#allocation19 + $0xd4] sm:$0xf0] }
 0xd43   :  { %4498 = vmatmul.bf16.vlgmr.msra.gmra.mxu2 %v4309_v13  ;;  %4524 = vmatmul.bf16.vlgmr.msrb.gmra.mxu3 %v4309_v13  ;;  %v8479_v13 = vld [vmem:[#allocation19 + $0xd4] sm:$0xf] }
 0xdb0   :  { %v4486_v62 = vpop.f32.mrf.mxu0  ;;  %v4512_v63 = vpop.f32.mrf.mxu1 }
 0xdb1   :  { %v4487_v18 = vadd.f32 %v4486_v62, %v4313_v12  ;;  %v4513_v1 = vadd.f32 %v4512_v63, %v4314_v19  ;;  %v7637_v62 = vld [vmem:[#allocation19 + $0xd8] sm:$0xf0]  ;;  %v7636_v63 = vor.u32 %v8480_v61, %v7635_v5  ;;  %v8477_v12 = vld [vmem:[#allocation19 + $0xc4] sm:$0xf]  ;;  %v7629_v19 = vld [vmem:[#allocation19 + $0xc8] sm:$0xf0] }
 0xdb3   :  { %4849 = vmatpush.bf16.msra.mxu1 %v7636_v63 }
 0xdb8   :  { %v4488_v0 = vpop.f32.mrf.mxu0  ;;  %v4514_v59 = vpop.f32.mrf.mxu1 }
 0xdb9   :  { %v7640_v0 = vor.u32 %v8479_v13, %v7637_v62  ;;  %v7627_v59 = vld [vmem:[#allocation19 + $0xc0] sm:$0xf] }
 0xdbb   :  { %4862 = vmatpush.bf16.msra.mxu3 %v7640_v0 }
 0xdc6   :  { %v4499_v46 = vpop.f32.mrf.mxu2  ;;  %v4525_v20 = vpop.f32.mrf.mxu3 }
 0xdc7   :  { %v4500_v37 = vadd.f32 %v4499_v46, %v4487_v18  ;;  %v4526_v3 = vadd.f32 %v4525_v20, %v4513_v1  ;;  %v7628_v18 = vor.u32 %v8478_v14, %v7627_v59  ;;  %v7632_v46 = vor.u32 %v8477_v12, %v7629_v19  ;;  %v7619_v20 = vld [vmem:[#allocation19 + $0xb0] sm:$0xf]  ;;  %v4761_v59 = vld [vmem:[#allocation21 + $0x2] sm:$0x3] }
 0xdc8   :  { %v4763_v14 = vperm.slane %v4761_v59, 0 }
 0xdc9   :  { %v4531_v4 = vadd.f32 %v4500_v37, %v10548_v2  ;;  %v4532_v15 = vadd.f32 %v4526_v3, %v10550_v45  ;;  %v8476_v37 = vld [vmem:[#allocation19 + $0xb4] sm:$0xf0]  ;;  %4850 = vmatpush.bf16.msra.mxu1 %v7628_v18  ;;  %4863 = vmatpush.bf16.msra.mxu3 %v7632_v46  ;;  %v4764_v18 = vperm.slane %v4761_v59, 1 }
 0xdca   :  { %v8524_v59 = vld [vmem:[%s11475_s18 + $0x134] sm:$0xf0] }
 0xdcb   :  { %v4533_v6 = vsel %vm2844_vm3, %v4531_v4, 0.0  ;;  %v4534_v53 = vsel %vm2844_vm3, %v4532_v15, 0.0 }
 0xdcc   :  { %v4535_v7 = vadd.f32 %v4534_v53, %v4533_v6  ;;  %v10814_v6 = vld [vmem:[#allocation22 + $0x8] sm:$0xff] }
 0xdcd   :  { %v4563_v9 = vperm.slane %v10814_v6, 0  ;;  %v4564_v16 = vperm.slane %v10814_v6, 4 }
 0xdce   :  { %v4501_v40 = vpop.f32.mrf.mxu2  ;;  %v4527_v27 = vpop.f32.mrf.mxu3  ;;  %4536 = vadd.xlane.f32.xlu2 %v4535_v7  ;;  %v7620_v7 = vor.u32 %v8476_v37, %v7619_v20 }
 0xdd0   :  { %4851 = vmatpush.bf16.msra.mxu1 %v7620_v7 }
 0xdd4   :  { %4852 = vmatpush.bf16.msra.mxu1 %v7612_v10 }
 0xe41   :  { %v4537_v17 = vpop.xlane.xlu2 %4536 }
 0xe42   :  { %v4538_v21 = vmul.f32 %v4537_v17, %v10099_v11 }
 0xe44   :  { %v10803_v52 = vsub.f32 %v4531_v4, %v4538_v21  ;;  %v10805_v2 = vsub.f32 %v4532_v15, %v4538_v21  ;;  %v8475_v4 = vld [vmem:[#allocation19 + $0xb4] sm:$0xf]  ;;  %v7621_v15 = vld [vmem:[#allocation19 + $0xb8] sm:$0xf0]  ;;  %v4571_v21 = vperm.slane %v10814_v6, 1 }
 0xe45   :  { %v7624_v40 = vor.u32 %v8475_v4, %v7621_v15 }
 0xe46   :  { %v4541_v45 = vmul.f32 %v10803_v52, %v10803_v52  ;;  %v4542_v24 = vmul.f32 %v10805_v2, %v10805_v2  ;;  %v4575_v26 = vperm.slane %v4571_v21, 1 }
 0xe47   :  { %4864 = vmatpush.bf16.msra.mxu3 %v7624_v40 }
 0xe48   :  { %v4543_v25 = vsel %vm2844_vm3, %v4541_v45, 0.0  ;;  %v4544_v41 = vsel %vm2844_vm3, %v4542_v24, 0.0  ;;  %v4572_v45 = vperm.slane %v10814_v6, 5 }
 0xe49   :  { %v4545_v28 = vadd.f32 %v4544_v41, %v4543_v25  ;;  %v4567_v25 = vperm.slane %v4563_v9, 0  ;;  %v4568_v41 = vperm.slane %v4564_v16, 0 }
 0xe4a   :  { %v4576_v31 = vperm.slane %v4572_v45, 1 }
 0xe4b   :  { %4546 = vadd.xlane.f32.xlu0 %v4545_v28  ;;  %4865 = vmatpush.bf16.msra.mxu3 %v7616_v50 }
 0xebe   :  { %v4547_v54 = vpop.xlane.xlu0 %4546 }
 0xebf   :  { %v4548_v23 = vmul.f32 %v4547_v54, %v10099_v11  ;;  %v8471_v54 = vld [vmem:[#allocation19 + $0x94] sm:$0xf] }
 0xec0   :  { %v7608_v55 = vor.u32 %v8471_v54, %v7605_v22 }
 0xec1   :  { %v4549_v58 = vadd.f32 1e-05, %v4548_v23  ;;  %v8469_v23 = vld [vmem:[#allocation19 + $0x84] sm:$0xf] }
 0xec2   :  { %4866 = vmatpush.bf16.msra.mxu3 %v7608_v55  ;;  %v7600_v38 = vor.u32 %v8469_v23, %v7597_v57  ;;  %v7827_v23 = vld [vmem:[%s11475_s18 + $0x150] sm:$0xf] }
 0xec3   :  { %8672 = vrsqrt.f32 %v4549_v58  ;;  %vm4556_vm2 = vweird.f32 %v4549_v58  ;;  %v8019_v57 = vld [vmem:[%s11475_s18 + $0x2d0] sm:$0xf] }
 0xec6   :  { %4867 = vmatpush.bf16.msra.mxu3 %v7600_v38 }
 0xec9   :  { %v8673_v1 = vpop.eup %8672 }
 0xeca   :  { %v4551_v3 = vmul.f32 %v8673_v1, %v4549_v58  ;;  %vm4557_vm11 = vweird.f32 %v8673_v1  ;;  %v8613_v58 = vld [vmem:[#allocation18 + $0x1] ss:$0 sm:$0xff] }
 0xecb   :  { %vm4558_vm0 = vmor %vm4556_vm2, %vm4557_vm11 }
 0xecc   :  { %v4552_v53 = vmul.f32 %v8673_v1, %v4551_v3 }
 0xece   :  { %v4553_v27 = vmul.f32 0.5, %v4552_v53 }
 0xed0   :  { %v4554_v17 = vsub.f32 1.5, %v4553_v27 }
 0xed2   :  { %v4555_v24 = vmul.f32 %v8673_v1, %v4554_v17 }
 0xed4   :  { %v4559_v28 = vsel %vm4558_vm0, %v8673_v1, %v4555_v24 }
 0xed5   :  { %v4560_v30 = vmul.f32 %v4559_v28, %v10803_v52  ;;  %v4561_v39 = vmul.f32 %v4559_v28, %v10805_v2  ;;  %v8472_v52 = vld [vmem:[#allocation19 + $0x94] sm:$0xf0] }
 0xed6   :  { %v7604_v2 = vor.u32 %v8472_v52, %v7603_v51 }
 0xed7   :  { %v4569_v29 = vmul.f32 %v4567_v25, %v4560_v30  ;;  %v4570_v34 = vmul.f32 %v4568_v41, %v4561_v39 }
 0xed8   :  { %4853 = vmatpush.bf16.msra.mxu1 %v7604_v2 }
 0xed9   :  { %v4577_v35 = vadd.f32 %v4575_v26, %v4569_v29  ;;  %v4578_v36 = vadd.f32 %v4576_v31, %v4570_v34  ;;  %v4904_v34 = vperm.slane %v10814_v6, 2 }
 0xedb   :  { %v4612_v43 = vpack.c.bf16 %v4577_v35, %v4577_v35  ;;  %v4613_v8 = vpack.c.bf16 %v4578_v36, %v4578_v36  ;;  %v4908_v47 = vperm.slane %v4904_v34, 2  ;;  %v7949_v34 = vld [vmem:[%s11475_s18 + $0x258] sm:$0xf0] }
 0xedc   :  { %4854 = vmatpush.bf16.msra.mxu1 %v7596_v56  ;;  %v8530_v56 = vld [vmem:[%s11475_s18 + $0x164] sm:$0xf0] }
 0xedd   :  { %4723 = vmatmul.bf16.vlgmr.msrb.gmra.mxu0 %v4612_v43  ;;  %4736 = vmatmul.bf16.vlgmr.msrb.gmra.mxu2 %v4613_v8  ;;  %v4912_v43 = vperm.slane %v10814_v6, 3  ;;  %v4913_v8 = vperm.slane %v10814_v6, 7  ;;  %v7828_v38 = vor.u32 %v8530_v56, %v7827_v23  ;;  %v7899_v23 = vld [vmem:[%s11475_s18 + $0x1e0] sm:$0xf] }
 0xedf   :  { %v4916_v51 = vperm.slane %v4912_v43, 3  ;;  %v4917_v52 = vperm.slane %v4913_v8, 3  ;;  %5558 = vmatpush.bf16.msra.mxu0 %v7828_v38  ;;  %v7731_v8 = vld [vmem:[%s11475_s18 + $0x90] sm:$0xf]  ;;  %v8497_v38 = vld [vmem:[%s11475_s18 + $0x64] sm:$0xf] }
 0xf5a   :  { %v4724_v42 = vpop.f32.mrf.mxu0 }
 0xf5b   :  { %v4725_v60 = vadd.f32 %v8613_v58, %v4724_v42  ;;  %v8578_v42 = vld [vmem:[%s11475_s18 + $0x2e4] sm:$0xf0]  ;;  %v8527_v58 = vld [vmem:[%s11475_s18 + $0x154] sm:$0xf] }
 0xf60   :  { %v4737_v5 = vpop.f32.mrf.mxu2 }
 0xf61   :  { %v4738_v61 = vadd.f32 %v4737_v5, %v4725_v60  ;;  %v7829_v60 = vld [vmem:[%s11475_s18 + $0x168] sm:$0xf0]  ;;  %v8020_v5 = vor.u32 %v8578_v42, %v8019_v57  ;;  %v8548_v57 = vld [vmem:[%s11475_s18 + $0x1f4] sm:$0xf0]  ;;  %v7709_v42 = vld [vmem:[%s11475_s18 + $0x78] sm:$0xf0] }
 0xf62   :  { %v4726_v13 = vpop.f32.mrf.mxu0 }
 0xf63   :  { %v4741_v62 = vmax.f32 %v4738_v61, 0.0  ;;  %v7832_v61 = vor.u32 %v8527_v58, %v7829_v60  ;;  %v8575_v13 = vld [vmem:[%s11475_s18 + $0x2d4] sm:$0xf]  ;;  %5571 = vmatpush.bf16.msra.mxu2 %v8020_v5  ;;  %v8545_v58 = vld [vmem:[%s11475_s18 + $0x1e4] sm:$0xf] }
 0xf64   :  { %v7901_v60 = vld [vmem:[%s11475_s18 + $0x1f8] sm:$0xf0] }
 0xf65   :  { %v4759_v63 = vpack.c.bf16 %v4741_v62, %v4741_v62  ;;  %v8021_v62 = vld [vmem:[%s11475_s18 + $0x2e8] sm:$0xf0]  ;;  %5584 = vmatpush.bf16.msrb.mxu1 %v7832_v61  ;;  %v7900_v61 = vor.u32 %v8548_v57, %v7899_v23  ;;  %v7813_v23 = vld [vmem:[%s11475_s18 + $0x140] sm:$0xf0] }
 0xf66   :  { %v8005_v57 = vld [vmem:[%s11475_s18 + $0x2c0] sm:$0xf0] }
 0xf67   :  { %4855 = vmatmul.bf16.vlgmr.msra.gmra.mxu1 %v4759_v63  ;;  %4868 = vmatmul.bf16.vlgmr.msra.gmra.mxu3 %v4759_v63  ;;  %v7803_v63 = vld [vmem:[%s11475_s18 + $0x120] sm:$0xf] }
 0xf68   :  { %v4739_v0 = vpop.f32.mrf.mxu2 }
 0xf69   :  { %v8024_v0 = vor.u32 %v8575_v13, %v8021_v62  ;;  %v7712_v13 = vor.u32 %v8497_v38, %v7709_v42  ;;  %v7683_v62 = vld [vmem:[%s11475_s18 + $0x30] sm:$0xf] }
 0xf6b   :  { %5597 = vmatpush.bf16.msrb.mxu3 %v8024_v0  ;;  %v7875_v0 = vld [vmem:[%s11475_s18 + $0x1b0] sm:$0xf] }
 0xfe4   :  { %v4856_v12 = vpop.f32.mrf.mxu1 }
 0xfe5   :  { %v4857_v19 = vadd.f32 %v4856_v12, %v4763_v14  ;;  %v7995_v14 = vld [vmem:[%s11475_s18 + $0x2a0] sm:$0xf]  ;;  %v8572_v12 = vld [vmem:[%s11475_s18 + $0x2b4] sm:$0xf0] }
 0xfe7   :  { %v4873_v46 = vadd.f32 %v4857_v19, %v4577_v35  ;;  %v4905_v35 = vperm.slane %v10814_v6, 6  ;;  %v7804_v19 = vor.u32 %v8524_v59, %v7803_v63  ;;  %v8494_v63 = vld [vmem:[%s11475_s18 + $0x44] sm:$0xf0]  ;;  %v7904_v59 = vor.u32 %v8545_v58, %v7901_v60  ;;  %v7787_v58 = vld [vmem:[%s11475_s18 + $0xf8] sm:$0xf] }
 0xfe8   :  { %v8519_v60 = vld [vmem:[%s11475_s18 + $0x10c] sm:$0xf0] }
 0xfe9   :  { %v4875_v4 = vsel %vm2844_vm3, %v4873_v46, 0.0  ;;  %v4909_v48 = vperm.slane %v4905_v35, 2  ;;  %5559 = vmatpush.bf16.msra.mxu0 %v7804_v19  ;;  %v7685_v19 = vld [vmem:[%s11475_s18 + $0x48] sm:$0xf0] }
 0xfea   :  { %v4869_v1 = vpop.f32.mrf.mxu3 }
 0xfeb   :  { %v4870_v20 = vadd.f32 %v4869_v1, %v4764_v18  ;;  %v7996_v18 = vor.u32 %v8572_v12, %v7995_v14  ;;  %v8521_v1 = vld [vmem:[%s11475_s18 + $0x124] sm:$0xf]  ;;  %v8542_v14 = vld [vmem:[%s11475_s18 + $0x1c4] sm:$0xf0]  ;;  %v8491_v12 = vld [vmem:[%s11475_s18 + $0x34] sm:$0xf] }
 0xfec   :  { %v4858_v37 = vpop.f32.mrf.mxu1 }
 0xfed   :  { %v4874_v3 = vadd.f32 %v4870_v20, %v4578_v36  ;;  %v8569_v20 = vld [vmem:[%s11475_s18 + $0x2a4] sm:$0xf]  ;;  %5572 = vmatpush.bf16.msra.mxu2 %v7996_v18 }
 0xfef   :  { %v4876_v15 = vsel %vm2844_vm3, %v4874_v3, 0.0 }
 0xff0   :  { %v4877_v53 = vadd.f32 %v4876_v15, %v4875_v4  ;;  %v7779_v4 = vld [vmem:[%s11475_s18 + $0xf0] sm:$0xf]  ;;  %v8518_v15 = vld [vmem:[%s11475_s18 + $0x104] sm:$0xf0] }
 0xff2   :  { %v4871_v7 = vpop.f32.mrf.mxu3  ;;  %4878 = vadd.xlane.f32.xlu1 %v4877_v53 }
 0xff3   :  { %v7971_v7 = vld [vmem:[%s11475_s18 + $0x270] sm:$0xf] }
0x1065   :  { %v4879_v40 = vpop.xlane.xlu1 %4878 }
0x1066   :  { %v4880_v27 = vmul.f32 %v4879_v40, %v10099_v11  ;;  %v8566_v40 = vld [vmem:[%s11475_s18 + $0x284] sm:$0xf0] }
0x1068   :  { %v4881_v9 = vsub.f32 %v4873_v46, %v4880_v27  ;;  %v4882_v16 = vsub.f32 %v4874_v3, %v4880_v27  ;;  %v7805_v46 = vld [vmem:[%s11475_s18 + $0x138] sm:$0xf0]  ;;  %v8515_v27 = vld [vmem:[%s11475_s18 + $0xf4] sm:$0xf] }
0x1069   :  { %v7808_v37 = vor.u32 %v8521_v1, %v7805_v46  ;;  %v7997_v3 = vld [vmem:[%s11475_s18 + $0x2b8] sm:$0xf0]  ;;  %v8539_v1 = vld [vmem:[%s11475_s18 + $0x1b4] sm:$0xf]  ;;  %v7877_v46 = vld [vmem:[%s11475_s18 + $0x1c8] sm:$0xf0] }
0x106a   :  { %v4883_v17 = vmul.f32 %v4881_v9, %v4881_v9  ;;  %v4884_v21 = vmul.f32 %v4882_v16, %v4882_v16  ;;  %v8000_v53 = vor.u32 %v8569_v20, %v7997_v3  ;;  %v7876_v3 = vor.u32 %v8542_v14, %v7875_v0  ;;  %v8564_v14 = vld [vmem:[%s11475_s18 + $0x27c] sm:$0xf] }
0x106b   :  { %5585 = vmatpush.bf16.msrb.mxu1 %v7808_v37  ;;  %v7684_v37 = vor.u32 %v8494_v63, %v7683_v62  ;;  %v8516_v62 = vld [vmem:[%s11475_s18 + $0xfc] sm:$0xf]  ;;  %v7789_v63 = vld [vmem:[%s11475_s18 + $0x110] sm:$0xf0] }
0x106c   :  { %v4885_v45 = vsel %vm2844_vm3, %v4883_v17, 0.0  ;;  %v4886_v24 = vsel %vm2844_vm3, %v4884_v21, 0.0  ;;  %v8563_v17 = vld [vmem:[%s11475_s18 + $0x274] sm:$0xf]  ;;  %v7973_v21 = vld [vmem:[%s11475_s18 + $0x288] sm:$0xf0]  ;;  %5598 = vmatpush.bf16.msrb.mxu3 %v8000_v53 }
0x106d   :  { %v4887_v25 = vadd.f32 %v4886_v24, %v4885_v45  ;;  %v7972_v45 = vor.u32 %v8566_v40, %v7971_v7  ;;  %v7880_v7 = vor.u32 %v8539_v1, %v7877_v46  ;;  %v8513_v1 = vld [vmem:[%s11475_s18 + $0xdc] sm:$0xf0]  ;;  %v7955_v46 = vld [vmem:[%s11475_s18 + $0x248] sm:$0xf] }
0x106f   :  { %4888 = vadd.xlane.f32.xlu2 %v4887_v25  ;;  %v7755_v25 = vld [vmem:[%s11475_s18 + $0xc0] sm:$0xf]  ;;  %5573 = vmatpush.bf16.msra.mxu2 %v7972_v45 }
0x10e2   :  { %v4889_v41 = vpop.xlane.xlu2 %4888 }
0x10e3   :  { %v4890_v28 = vmul.f32 %v4889_v41, %v10099_v11  ;;  %v8512_v41 = vld [vmem:[%s11475_s18 + $0xd4] sm:$0xf0] }
0x10e4   :  { %v7756_v35 = vor.u32 %v8512_v41, %v7755_v25  ;;  %v8485_v25 = vld [vmem:[%s11475_s18 + $0x4] sm:$0xf]  ;;  %v7661_v41 = vld [vmem:[%s11475_s18 + $0x18] sm:$0xf0] }
0x10e5   :  { %v4891_v26 = vadd.f32 1e-05, %v4890_v28  ;;  %v7947_v28 = vld [vmem:[%s11475_s18 + $0x240] sm:$0xf] }
0x10e7   :  { %8674 = vrsqrt.f32 %v4891_v26  ;;  %vm4898_vm1 = vweird.f32 %v4891_v26 }
0x10ed   :  { %v8675_v31 = vpop.eup %8674 }
0x10ee   :  { %v4893_v30 = vmul.f32 %v8675_v31, %v4891_v26  ;;  %vm4899_vm12 = vweird.f32 %v8675_v31  ;;  %v7976_v26 = vor.u32 %v8563_v17, %v7973_v21  ;;  %v8488_v17 = vld [vmem:[%s11475_s18 + $0x14] sm:$0xf0]  ;;  %v7851_v21 = vld [vmem:[%s11475_s18 + $0x180] sm:$0xf] }
0x10ef   :  { %vm4900_vm4 = vmor %vm4898_vm1, %vm4899_vm12 }
0x10f0   :  { %v4894_v39 = vmul.f32 %v8675_v31, %v4893_v30  ;;  %v8509_v30 = vld [vmem:[%s11475_s18 + $0xc4] sm:$0xf]  ;;  %5599 = vmatpush.bf16.msrb.mxu3 %v7976_v26  ;;  %v7664_v26 = vor.u32 %v8485_v25, %v7661_v41  ;;  %v7741_v25 = vld [vmem:[%s11475_s18 + $0xb0] sm:$0xf0] }
0x10f2   :  { %v4895_v29 = vmul.f32 0.5, %v4894_v39  ;;  %v7757_v39 = vld [vmem:[%s11475_s18 + $0xd8] sm:$0xf0] }
0x10f3   :  { %v7760_v43 = vor.u32 %v8509_v30, %v7757_v39  ;;  %v7853_v30 = vld [vmem:[%s11475_s18 + $0x198] sm:$0xf0]  ;;  %v7835_v39 = vld [vmem:[%s11475_s18 + $0x158] sm:$0xf] }
0x10f4   :  { %v4896_v36 = vsub.f32 1.5, %v4895_v29  ;;  %v8557_v29 = vld [vmem:[%s11475_s18 + $0x244] sm:$0xf] }
0x10f6   :  { %v4897_v44 = vmul.f32 %v8675_v31, %v4896_v36 }
0x10f8   :  { %v4901_v10 = vsel %vm4900_vm4, %v8675_v31, %v4897_v44  ;;  %v8560_v31 = vld [vmem:[%s11475_s18 + $0x254] sm:$0xf0]  ;;  %v8506_v44 = vld [vmem:[%s11475_s18 + $0xa4] sm:$0xf0] }
0x10f9   :  { %v4902_v49 = vmul.f32 %v4901_v10, %v4881_v9  ;;  %v4903_v50 = vmul.f32 %v4901_v10, %v4882_v16  ;;  %v7780_v9 = vor.u32 %v8518_v15, %v7779_v4  ;;  %v7781_v16 = vld [vmem:[%s11475_s18 + $0x108] sm:$0xf0]  ;;  %v7948_v36 = vor.u32 %v8560_v31, %v7947_v28  ;;  %v8554_v10 = vld [vmem:[%s11475_s18 + $0x224] sm:$0xf0]  ;;  %v8533_v31 = vld [vmem:[%s11475_s18 + $0x184] sm:$0xf] }
0x10fa   :  { %v7784_v24 = vor.u32 %v8515_v27, %v7781_v16  ;;  %v7688_v4 = vor.u32 %v8491_v12, %v7685_v19  ;;  %v7981_v12 = vld [vmem:[%s11475_s18 + $0x290] sm:$0xf0] }
0x10fb   :  { %v4910_v54 = vmul.f32 %v4908_v47, %v4902_v49  ;;  %v4911_v2 = vmul.f32 %v4909_v48, %v4903_v50  ;;  %5560 = vmatpush.bf16.msra.mxu0 %v7780_v9  ;;  %v7923_v47 = vld [vmem:[%s11475_s18 + $0x210] sm:$0xf]  ;;  %v7952_v48 = vor.u32 %v8557_v29, %v7949_v34  ;;  %v8503_v49 = vld [vmem:[%s11475_s18 + $0x94] sm:$0xf]  ;;  %v7733_v50 = vld [vmem:[%s11475_s18 + $0xa8] sm:$0xf0]  ;;  %5574 = vmatpush.bf16.msra.mxu2 %v7948_v36 }
0x10fc   :  { %5586 = vmatpush.bf16.msrb.mxu1 %v7784_v24  ;;  %v8536_v24 = vld [vmem:[%s11475_s18 + $0x194] sm:$0xf0]  ;;  %v7856_v29 = vor.u32 %v8533_v31, %v7853_v30  ;;  %v8531_v34 = vld [vmem:[%s11475_s18 + $0x16c] sm:$0xf0]  ;;  %v7984_v19 = vor.u32 %v8564_v14, %v7981_v12  ;;  %v7933_v31 = vld [vmem:[%s11475_s18 + $0x230] sm:$0xf0] }
0x10fd   :  { %v10832_v22 = vadd.f32 %v4916_v51, %v4910_v54  ;;  %v10834_v55 = vadd.f32 %v4917_v52, %v4911_v2  ;;  %v8551_v51 = vld [vmem:[%s11475_s18 + $0x214] sm:$0xf]  ;;  %v7925_v52 = vld [vmem:[%s11475_s18 + $0x228] sm:$0xf0]  ;;  %v7732_v54 = vor.u32 %v8506_v44, %v7731_v8  ;;  %v7924_v2 = vor.u32 %v8554_v10, %v7923_v47  ;;  %5600 = vmatpush.bf16.msrb.mxu3 %v7952_v48  ;;  %v8579_v36 = vld [vmem:[%s11475_s18 + $0x2ec] sm:$0xf0] }
0x10fe   :  { %v7928_v56 = vor.u32 %v8551_v51, %v7925_v52  ;;  %v7852_v28 = vor.u32 %v8536_v24, %v7851_v21  ;;  %v8528_v44 = vld [vmem:[%s11475_s18 + $0x15c] sm:$0xf]  ;;  %v7837_v47 = vld [vmem:[%s11475_s18 + $0x170] sm:$0xf0]  ;;  %v8525_v51 = vld [vmem:[%s11475_s18 + $0x13c] sm:$0xf0] }
0x10ff   :  { %v4923_v32 = vsel %vm2844_vm3, %v10832_v22, 0.0  ;;  %v4924_v6 = vsel %vm2844_vm3, %v10834_v55, 0.0  ;;  %5561 = vmatpush.bf16.msra.mxu0 %v7756_v35  ;;  %5575 = vmatpush.bf16.msra.mxu2 %v7924_v2  ;;  %v8027_v35 = vld [vmem:[%s11475_s18 + $0x2d8] sm:$0xf]  ;;  %v8576_v48 = vld [vmem:[%s11475_s18 + $0x2dc] sm:$0xf]  ;;  %v7840_v10 = vor.u32 %v8528_v44, %v7837_v47 }
0x1100   :  { %v4925_v33 = vadd.f32 %v4924_v6, %v4923_v32  ;;  %5587 = vmatpush.bf16.msrb.mxu1 %v7760_v43  ;;  %v7736_v32 = vor.u32 %v8503_v49, %v7733_v50  ;;  %v7707_v6 = vld [vmem:[%s11475_s18 + $0x60] sm:$0xf]  ;;  %v7836_v43 = vor.u32 %v8531_v34, %v7835_v39  ;;  %v8028_v8 = vor.u32 %v8579_v36, %v8027_v35  ;;  %v8029_v49 = vld [vmem:[%s11475_s18 + $0x2f0] sm:$0xf0]  ;;  %v7811_v50 = vld [vmem:[%s11475_s18 + $0x128] sm:$0xf] }
0x1101   :  { %5601 = vmatpush.bf16.msrb.mxu3 %v7928_v56  ;;  %v8032_v52 = vor.u32 %v8576_v48, %v8029_v49  ;;  %v8003_v2 = vld [vmem:[%s11475_s18 + $0x2a8] sm:$0xf]  ;;  %v8570_v56 = vld [vmem:[%s11475_s18 + $0x2ac] sm:$0xf]  ;;  %v8504_v24 = vld [vmem:[%s11475_s18 + $0x9c] sm:$0xf] }
0x1102   :  { %4926 = vadd.xlane.f32.xlu0 %v4925_v33  ;;  %v8500_v33 = vld [vmem:[%s11475_s18 + $0x74] sm:$0xf0]  ;;  %v8008_v42 = vor.u32 %v8570_v56, %v8005_v57  ;;  %v7715_v39 = vld [vmem:[%s11475_s18 + $0x68] sm:$0xf]  ;;  %v8549_v36 = vld [vmem:[%s11475_s18 + $0x1fc] sm:$0xf0] }
0x1103   :  { %5562 = vmatpush.bf16.msra.mxu0 %v7732_v54  ;;  %v7708_v5 = vor.u32 %v8500_v33, %v7707_v6  ;;  %5576 = vmatpush.bf16.msra.mxu2 %v7900_v61  ;;  %v7812_v54 = vor.u32 %v8525_v51, %v7811_v50  ;;  %v8522_v6 = vld [vmem:[%s11475_s18 + $0x12c] sm:$0xf]  ;;  %v7788_v61 = vor.u32 %v8519_v60, %v7787_v58  ;;  %v7907_v34 = vld [vmem:[%s11475_s18 + $0x1e8] sm:$0xf]  ;;  %v7691_v50 = vld [vmem:[%s11475_s18 + $0x38] sm:$0xf] }
0x1104   :  { %5588 = vmatpush.bf16.msrb.mxu1 %v7736_v32  ;;  %v8573_v32 = vld [vmem:[%s11475_s18 + $0x2bc] sm:$0xf0]  ;;  %v7816_v38 = vor.u32 %v8522_v6, %v7813_v23  ;;  %v7908_v44 = vor.u32 %v8549_v36, %v7907_v34  ;;  %v8546_v48 = vld [vmem:[%s11475_s18 + $0x1ec] sm:$0xf]  ;;  %v8495_v51 = vld [vmem:[%s11475_s18 + $0x4c] sm:$0xf0] }
0x1105   :  { %5602 = vmatpush.bf16.msrb.mxu3 %v7904_v59  ;;  %v8004_v33 = vor.u32 %v8573_v32, %v8003_v2  ;;  %v7792_v59 = vor.u32 %v8516_v62, %v7789_v63  ;;  %v8543_v2 = vld [vmem:[%s11475_s18 + $0x1cc] sm:$0xf0]  ;;  %v8492_v32 = vld [vmem:[%s11475_s18 + $0x3c] sm:$0xf]  ;;  %v7693_v6 = vld [vmem:[%s11475_s18 + $0x50] sm:$0xf0] }
0x1106   :  { %v7696_v23 = vor.u32 %v8492_v32, %v7693_v6  ;;  %v8540_v56 = vld [vmem:[%s11475_s18 + $0x1bc] sm:$0xf]  ;;  %v7885_v57 = vld [vmem:[%s11475_s18 + $0x1d0] sm:$0xf0]  ;;  %v8489_v58 = vld [vmem:[%s11475_s18 + $0x1c] sm:$0xf0] }
0x1107   :  { %5563 = vmatpush.bf16.msra.mxu0 %v7708_v5  ;;  %5577 = vmatpush.bf16.msra.mxu2 %v7876_v3  ;;  %v7979_v5 = vld [vmem:[%s11475_s18 + $0x278] sm:$0xf]  ;;  %v8510_v3 = vld [vmem:[%s11475_s18 + $0xcc] sm:$0xf]  ;;  %v7859_v60 = vld [vmem:[%s11475_s18 + $0x188] sm:$0xf] }
0x1108   :  { %5589 = vmatpush.bf16.msrb.mxu1 %v7712_v13  ;;  %v8567_v13 = vld [vmem:[%s11475_s18 + $0x28c] sm:$0xf0]  ;;  %v7669_v62 = vld [vmem:[%s11475_s18 + $0x20] sm:$0xf0]  ;;  %v8534_v14 = vld [vmem:[%s11475_s18 + $0x18c] sm:$0xf] }
0x1109   :  { %5603 = vmatpush.bf16.msrb.mxu3 %v7880_v7  ;;  %v7980_v0 = vor.u32 %v8567_v13, %v7979_v5  ;;  %v8486_v13 = vld [vmem:[%s11475_s18 + $0xc] sm:$0xf]  ;;  %v7861_v12 = vld [vmem:[%s11475_s18 + $0x1a0] sm:$0xf0]  ;;  %v7795_v6 = vld [vmem:[%s11475_s18 + $0x100] sm:$0xf] }
0x110b   :  { %5564 = vmatpush.bf16.msra.mxu0 %v7684_v37  ;;  %5578 = vmatpush.bf16.msra.mxu2 %v7852_v28  ;;  %v8561_v37 = vld [vmem:[%s11475_s18 + $0x25c] sm:$0xf0]  ;;  %v7744_v28 = vor.u32 %v8504_v24, %v7741_v25 }
0x110c   :  { %5590 = vmatpush.bf16.msrb.mxu1 %v7688_v4  ;;  %v7765_v4 = vld [vmem:[%s11475_s18 + $0xe0] sm:$0xf0]  ;;  %v7956_v7 = vor.u32 %v8561_v37, %v7955_v46  ;;  %v7843_v25 = vld [vmem:[%s11475_s18 + $0x160] sm:$0xf] }
0x110d   :  { %5604 = vmatpush.bf16.msrb.mxu3 %v7856_v29  ;;  %v8501_v29 = vld [vmem:[%s11475_s18 + $0x7c] sm:$0xf0] }
0x110e   :  { %v7716_v35 = vor.u32 %v8501_v29, %v7715_v39  ;;  %v8577_v39 = vld [vmem:[%s11475_s18 + $0x2e4] sm:$0xf]  ;;  %v8037_v29 = vld [vmem:[%s11475_s18 + $0x2f8] sm:$0xf0] }
0x110f   :  { %5623 = vmatpush.bf16.msrb.mxu2 %v8028_v8  ;;  %v7717_v8 = vld [vmem:[%s11475_s18 + $0x80] sm:$0xf0] }
0x1110   :  { %5591 = vmatpush.bf16.msrb.mxu1 %v7664_v26  ;;  %v8552_v26 = vld [vmem:[%s11475_s18 + $0x21c] sm:$0xf] }
0x1111   :  { %5649 = vmatpush.bf16.msra.mxu3 %v8032_v52  ;;  %v7936_v30 = vor.u32 %v8552_v26, %v7933_v31  ;;  %v7883_v52 = vld [vmem:[%s11475_s18 + $0x1b8] sm:$0xf] }
0x1113   :  { %5624 = vmatpush.bf16.msrb.mxu2 %v8004_v33  ;;  %v7884_v33 = vor.u32 %v8543_v2, %v7883_v52  ;;  %v8571_v52 = vld [vmem:[%s11475_s18 + $0x2b4] sm:$0xf] }
0x1114   :  { %5636 = vmatpush.bf16.msra.mxu1 %v7840_v10  ;;  %v7909_v10 = vld [vmem:[%s11475_s18 + $0x200] sm:$0xf0] }
0x1115   :  { %5650 = vmatpush.bf16.msra.mxu3 %v8008_v42  ;;  %v7912_v49 = vor.u32 %v8546_v48, %v7909_v10  ;;  %v7667_v42 = vld [vmem:[%s11475_s18 + $0x8] sm:$0xf]  ;;  %v8040_v48 = vor.u32 %v8577_v39, %v8037_v29  ;;  %v8011_v10 = vld [vmem:[%s11475_s18 + $0x2b0] sm:$0xf] }
0x1116   :  { %v7668_v5 = vor.u32 %v8489_v58, %v7667_v42  ;;  %v8517_v42 = vld [vmem:[%s11475_s18 + $0x104] sm:$0xf]  ;;  %v7797_v58 = vld [vmem:[%s11475_s18 + $0x118] sm:$0xf0] }
0x1117   :  { %5625 = vmatpush.bf16.msrb.mxu2 %v7980_v0 }
0x1118   :  { %5637 = vmatpush.bf16.msra.mxu1 %v7816_v38  ;;  %v7888_v38 = vor.u32 %v8540_v56, %v7885_v57  ;;  %v7987_v57 = vld [vmem:[%s11475_s18 + $0x280] sm:$0xf] }
0x1119   :  { %5651 = vmatpush.bf16.msra.mxu3 %v7984_v19 }
0x111b   :  { %5626 = vmatpush.bf16.msrb.mxu2 %v7956_v7 }
0x111c   :  { %5638 = vmatpush.bf16.msra.mxu1 %v7792_v59  ;;  %v7672_v59 = vor.u32 %v8486_v13, %v7669_v62  ;;  %v7771_v62 = vld [vmem:[%s11475_s18 + $0xd0] sm:$0xf] }
0x1175   :  { %v4927_v18 = vpop.xlane.xlu0 %4926 }
0x1176   :  { %v4928_v20 = vmul.f32 %v4927_v18, %v10099_v11  ;;  %v7763_v18 = vld [vmem:[%s11475_s18 + $0xc8] sm:$0xf] }
0x1178   :  { %v11010_v15 = vsub.f32 %v10832_v22, %v4928_v20  ;;  %v11013_v53 = vsub.f32 %v10834_v55, %v4928_v20  ;;  %v7659_v55 = vld [vmem:[%s11475_s18] sm:$0xf]  ;;  %v7764_v20 = vor.u32 %v8513_v1, %v7763_v18  ;;  %v7864_v18 = vor.u32 %v8534_v14, %v7861_v12  ;;  %v7963_v14 = vld [vmem:[%s11475_s18 + $0x250] sm:$0xf]  ;;  %v8562_v12 = vld [vmem:[%s11475_s18 + $0x264] sm:$0xf0] }
0x1179   :  { %v7660_v45 = vor.u32 %v8488_v17, %v7659_v55  ;;  %v8507_v55 = vld [vmem:[%s11475_s18 + $0xac] sm:$0xf0]  ;;  %v7931_v17 = vld [vmem:[%s11475_s18 + $0x218] sm:$0xf] }
0x117a   :  { %v4931_v40 = vmul.f32 %v11010_v15, %v11010_v15  ;;  %v4932_v27 = vmul.f32 %v11013_v53, %v11013_v53 }
0x117b   :  { %5565 = vmatpush.bf16.msra.mxu0 %v7660_v45  ;;  %v8555_v45 = vld [vmem:[%s11475_s18 + $0x22c] sm:$0xf0] }
0x117c   :  { %v4933_v9 = vsel %vm2844_vm3, %v4931_v40, 0.0  ;;  %v4934_v16 = vsel %vm2844_vm3, %v4932_v27, 0.0  ;;  %v7768_v40 = vor.u32 %v8510_v3, %v7765_v4  ;;  %v8558_v27 = vld [vmem:[%s11475_s18 + $0x24c] sm:$0xf]  ;;  %v7932_v41 = vor.u32 %v8555_v45, %v7931_v17 }
0x117d   :  { %v4935_v22 = vadd.f32 %v4934_v16, %v4933_v9  ;;  %v7957_v9 = vld [vmem:[%s11475_s18 + $0x260] sm:$0xf0]  ;;  %v4920_v4 = vld [vmem:[#allocation24] ss:$2 sm:$0x3] }
0x117e   :  { %v7960_v16 = vor.u32 %v8558_v27, %v7957_v9  ;;  %5639 = vmatpush.bf16.msra.mxu1 %v7768_v40  ;;  %5627 = vmatpush.bf16.msrb.mxu2 %v7932_v41  ;;  %v4922_v40 = vld [vmem:[#allocation24 + $0x1] ss:$2 sm:$0x3]  ;;  %v4953_v9 = vperm.slane %v4920_v4, 0 }
0x117f   :  { %4936 = vadd.xlane.f32.xlu2 %v4935_v22  ;;  %5610 = vmatpush.bf16.msrb.mxu0 %v7836_v43  ;;  %v7739_v22 = vld [vmem:[%s11475_s18 + $0x98] sm:$0xf]  ;;  %v8498_v43 = vld [vmem:[%s11475_s18 + $0x6c] sm:$0xf] }
0x1180   :  { %v7740_v21 = vor.u32 %v8507_v55, %v7739_v22  ;;  %5652 = vmatpush.bf16.msra.mxu3 %v7960_v16  ;;  %v7720_v47 = vor.u32 %v8498_v43, %v7717_v8  ;;  %v4960_v22 = vperm.slane %v4922_v40, 0  ;;  %v4961_v55 = vperm.slane %v4922_v40, 1  ;;  %v8532_v41 = vld [vmem:[%s11475_s18 + $0x174] sm:$0xf0]  ;;  %v7819_v8 = vld [vmem:[%s11475_s18 + $0x130] sm:$0xf] }
0x1181   :  { %v7844_v36 = vor.u32 %v8532_v41, %v7843_v25 }
0x1182   :  { %5640 = vmatpush.bf16.msra.mxu1 %v7744_v28  ;;  %5628 = vmatpush.bf16.msrb.mxu2 %v7908_v44  ;;  %v8035_v28 = vld [vmem:[%s11475_s18 + $0x2e0] sm:$0xf]  ;;  %v8526_v44 = vld [vmem:[%s11475_s18 + $0x144] sm:$0xf0] }
0x1183   :  { %5611 = vmatpush.bf16.msrb.mxu0 %v7812_v54  ;;  %v7692_v54 = vor.u32 %v8495_v51, %v7691_v50  ;;  %v8523_v50 = vld [vmem:[%s11475_s18 + $0x134] sm:$0xf]  ;;  %v7821_v51 = vld [vmem:[%s11475_s18 + $0x148] sm:$0xf0]  ;;  %v7820_v2 = vor.u32 %v8526_v44, %v7819_v8 }
0x1184   :  { %5653 = vmatpush.bf16.msra.mxu3 %v7936_v30  ;;  %v7845_v30 = vld [vmem:[%s11475_s18 + $0x178] sm:$0xf0] }
0x1186   :  { %5641 = vmatpush.bf16.msra.mxu1 %v7720_v47  ;;  %5629 = vmatpush.bf16.msrb.mxu2 %v7884_v33  ;;  %v8520_v33 = vld [vmem:[%s11475_s18 + $0x114] sm:$0xf0] }
0x1187   :  { %5612 = vmatpush.bf16.msrb.mxu0 %v7788_v61  ;;  %v8537_v61 = vld [vmem:[%s11475_s18 + $0x19c] sm:$0xf0] }
0x1188   :  { %5654 = vmatpush.bf16.msra.mxu3 %v7912_v49  ;;  %v7860_v0 = vor.u32 %v8537_v61, %v7859_v60  ;;  %v8574_v49 = vld [vmem:[%s11475_s18 + $0x2c4] sm:$0xf0]  ;;  %v8565_v60 = vld [vmem:[%s11475_s18 + $0x284] sm:$0xf]  ;;  %v7796_v61 = vor.u32 %v8520_v33, %v7795_v6 }
0x1189   :  { %v8012_v32 = vor.u32 %v8574_v49, %v8011_v10  ;;  %v8493_v10 = vld [vmem:[%s11475_s18 + $0x44] sm:$0xf]  ;;  %v7701_v49 = vld [vmem:[%s11475_s18 + $0x58] sm:$0xf0] }
0x118a   :  { %5642 = vmatpush.bf16.msra.mxu1 %v7696_v23  ;;  %5630 = vmatpush.bf16.msrb.mxu2 %v7860_v0  ;;  %v7824_v23 = vor.u32 %v8523_v50, %v7821_v51  ;;  %v7800_v0 = vor.u32 %v8517_v42, %v7797_v58  ;;  %v8541_v50 = vld [vmem:[%s11475_s18 + $0x1c4] sm:$0xf]  ;;  %v7893_v51 = vld [vmem:[%s11475_s18 + $0x1d8] sm:$0xf0]  ;;  %v7704_v6 = vor.u32 %v8493_v10, %v7701_v49  ;;  %v8535_v42 = vld [vmem:[%s11475_s18 + $0x194] sm:$0xf] }
0x118b   :  { %5613 = vmatpush.bf16.msrb.mxu0 %v7764_v20  ;;  %v7896_v33 = vor.u32 %v8541_v50, %v7893_v51  ;;  %v7869_v58 = vld [vmem:[%s11475_s18 + $0x1a8] sm:$0xf0] }
0x118c   :  { %5655 = vmatpush.bf16.msra.mxu3 %v7888_v38  ;;  %v8568_v38 = vld [vmem:[%s11475_s18 + $0x294] sm:$0xf0] }
0x118d   :  { %v7988_v13 = vor.u32 %v8568_v38, %v7987_v57  ;;  %v8487_v57 = vld [vmem:[%s11475_s18 + $0x14] sm:$0xf]  ;;  %v7677_v38 = vld [vmem:[%s11475_s18 + $0x28] sm:$0xf0] }
0x118e   :  { %5643 = vmatpush.bf16.msra.mxu1 %v7672_v59 }
0x118f   :  { %5614 = vmatpush.bf16.msrb.mxu0 %v7740_v21 }
0x1190   :  { %5656 = vmatpush.bf16.msra.mxu3 %v7864_v18  ;;  %v7773_v18 = vld [vmem:[%s11475_s18 + $0xe8] sm:$0xf0] }
0x1193   :  { %5615 = vmatpush.bf16.msrb.mxu0 %v7716_v35 }
0x1197   :  { %5616 = vmatpush.bf16.msrb.mxu0 %v7692_v54  ;;  %v8013_v54 = vld [vmem:[%s11475_s18 + $0x2c8] sm:$0xf0] }
0x1198   :  { %v8016_v56 = vor.u32 %v8571_v52, %v8013_v54 }
0x119b   :  { %5617 = vmatpush.bf16.msrb.mxu0 %v7668_v5  ;;  %v7989_v5 = vld [vmem:[%s11475_s18 + $0x298] sm:$0xf0] }
0x119c   :  { %v7992_v59 = vor.u32 %v8565_v60, %v7989_v5 }
0x11f2   :  { %v4937_v63 = vpop.xlane.xlu2 %4936 }
0x11f3   :  { %v4938_v19 = vmul.f32 %v4937_v63, %v10099_v11  ;;  %v4954_v11 = vperm.slane %v4920_v4, 1  ;;  %v8514_v63 = vld [vmem:[%s11475_s18 + $0xe4] sm:$0xf0]  ;;  %v8508_v4 = vld [vmem:[%s11475_s18 + $0xb4] sm:$0xf0] }
0x11f5   :  { %v4939_v1 = vadd.f32 1e-05, %v4938_v19  ;;  %v8511_v19 = vld [vmem:[%s11475_s18 + $0xd4] sm:$0xf] }
0x11f7   :  { %8676 = vrsqrt.f32 %v4939_v1  ;;  %vm4946_vm6 = vweird.f32 %v4939_v1 }
0x11fd   :  { %v8677_v46 = vpop.eup %8676 }
0x11fe   :  { %v4941_v20 = vmul.f32 %v8677_v46, %v4939_v1  ;;  %vm4947_vm5 = vweird.f32 %v8677_v46  ;;  %v8559_v1 = vld [vmem:[%s11475_s18 + $0x254] sm:$0xf] }
0x11ff   :  { %vm4948_vm7 = vmor %vm4946_vm6, %vm4947_vm5 }
0x1200   :  { %v4942_v37 = vmul.f32 %v8677_v46, %v4941_v20  ;;  %v7772_v20 = vor.u32 %v8514_v63, %v7771_v62 }
0x1202   :  { %v4943_v3 = vmul.f32 0.5, %v4942_v37  ;;  %v7964_v37 = vor.u32 %v8562_v12, %v7963_v14  ;;  %v5064_v12 = vld [vmem:[#allocation25] sm:$0x3f] }
0x1204   :  { %v4944_v7 = vsub.f32 1.5, %v4943_v3  ;;  %v7747_v3 = vld [vmem:[%s11475_s18 + $0xa0] sm:$0xf] }
0x1206   :  { %v4945_v27 = vmul.f32 %v8677_v46, %v4944_v7  ;;  %v7776_v7 = vor.u32 %v8511_v19, %v7773_v18  ;;  %v5067_v18 = vperm.slane %v5064_v12, 1 }
0x1208   :  { %v4949_v16 = vsel %vm4948_vm7, %v8677_v46, %v4945_v27  ;;  %v7965_v46 = vld [vmem:[%s11475_s18 + $0x268] sm:$0xf0]  ;;  %v7939_v27 = vld [vmem:[%s11475_s18 + $0x220] sm:$0xf] }
0x1209   :  { %v4950_v17 = vmul.f32 %v4949_v16, %v11010_v15  ;;  %v4951_v21 = vmul.f32 %v4949_v16, %v11013_v53  ;;  %v8580_v15 = vld [vmem:[%s11475_s18 + $0x2f4] sm:$0xf0]  ;;  %v8529_v53 = vld [vmem:[%s11475_s18 + $0x164] sm:$0xf]  ;;  %v7968_v40 = vor.u32 %v8559_v1, %v7965_v46  ;;  %v7749_v16 = vld [vmem:[%s11475_s18 + $0xb8] sm:$0xf0] }
0x120a   :  { %v8036_v43 = vor.u32 %v8580_v15, %v8035_v28  ;;  %v7848_v47 = vor.u32 %v8529_v53, %v7845_v30  ;;  %v7915_v28 = vld [vmem:[%s11475_s18 + $0x1f0] sm:$0xf]  ;;  %v8550_v15 = vld [vmem:[%s11475_s18 + $0x204] sm:$0xf0]  ;;  %v8499_v53 = vld [vmem:[%s11475_s18 + $0x74] sm:$0xf] }
0x120b   :  { %v4957_v45 = vmul.f32 %v4953_v9, %v4950_v17  ;;  %v4958_v24 = vmul.f32 %v4954_v11, %v4951_v21  ;;  %v8556_v9 = vld [vmem:[%s11475_s18 + $0x234] sm:$0xf0]  ;;  %v8505_v11 = vld [vmem:[%s11475_s18 + $0xa4] sm:$0xf]  ;;  %v7748_v17 = vor.u32 %v8508_v4, %v7747_v3  ;;  %v7917_v30 = vld [vmem:[%s11475_s18 + $0x208] sm:$0xf0]  ;;  %v7916_v29 = vor.u32 %v8550_v15, %v7915_v28 }
0x120c   :  { %v7940_v21 = vor.u32 %v8556_v9, %v7939_v27  ;;  %v7752_v25 = vor.u32 %v8505_v11, %v7749_v16  ;;  %v5068_v3 = vperm.slane %v5064_v12, 2  ;;  %v5069_v27 = vperm.slane %v5064_v12, 3 }
0x120d   :  { %v4964_v26 = vadd.f32 %v4960_v22, %v4957_v45  ;;  %v4965_v31 = vadd.f32 %v4961_v55, %v4958_v24  ;;  %v8553_v22 = vld [vmem:[%s11475_s18 + $0x224] sm:$0xf]  ;;  %v7941_v55 = vld [vmem:[%s11475_s18 + $0x238] sm:$0xf0]  ;;  %v7723_v45 = vld [vmem:[%s11475_s18 + $0x70] sm:$0xf] }
0x120e   :  { %v8502_v24 = vld [vmem:[%s11475_s18 + $0x84] sm:$0xf0]  ;;  %v7944_v41 = vor.u32 %v8553_v22, %v7941_v55 }
0x120f   :  { %v11264_v34 = vpack.c.bf16 %v4964_v26, %v4964_v26  ;;  %v11266_v35 = vpack.c.bf16 %v4965_v31, %v4965_v31  ;;  %v7725_v26 = vld [vmem:[%s11475_s18 + $0x88] sm:$0xf0]  ;;  %v8547_v31 = vld [vmem:[%s11475_s18 + $0x1f4] sm:$0xf]  ;;  %v7724_v39 = vor.u32 %v8502_v24, %v7723_v45 }
0x1210   :  { %v7728_v8 = vor.u32 %v8499_v53, %v7725_v26  ;;  %v7920_v44 = vor.u32 %v8547_v31, %v7917_v30 }
0x1211   :  { %5566 = vmatmul.bf16.vlgmr.msra.gmra.mxu0 %v11264_v34  ;;  %5579 = vmatmul.bf16.vlgmr.msra.gmra.mxu2 %v11266_v35 }
0x1212   :  { %5592 = vmatmul.bf16.vlgmr.msrb.gmra.mxu1 %v11264_v34  ;;  %5605 = vmatmul.bf16.vlgmr.msrb.gmra.mxu3 %v11266_v35 }
0x1213   :  { %5662 = vmatpush.bf16.msra.mxu0 %v7844_v36  ;;  %5675 = vmatpush.bf16.msra.mxu2 %v8036_v43  ;;  %v7699_v36 = vld [vmem:[%s11475_s18 + $0x40] sm:$0xf]  ;;  %v8496_v43 = vld [vmem:[%s11475_s18 + $0x54] sm:$0xf0] }
0x1214   :  { %5688 = vmatpush.bf16.msrb.mxu1 %v7848_v47  ;;  %5701 = vmatpush.bf16.msrb.mxu3 %v8040_v48  ;;  %v7891_v47 = vld [vmem:[%s11475_s18 + $0x1c0] sm:$0xf]  ;;  %v8544_v48 = vld [vmem:[%s11475_s18 + $0x1d4] sm:$0xf0]  ;;  %v7700_v52 = vor.u32 %v8496_v43, %v7699_v36 }
0x1215   :  { %v7892_v54 = vor.u32 %v8544_v48, %v7891_v47  ;;  %v5071_v47 = vperm.slane %v5064_v12, 5 }
0x1217   :  { %5663 = vmatpush.bf16.msra.mxu0 %v7820_v2  ;;  %5676 = vmatpush.bf16.msra.mxu2 %v8012_v32  ;;  %v7675_v2 = vld [vmem:[%s11475_s18 + $0x10] sm:$0xf]  ;;  %v8490_v32 = vld [vmem:[%s11475_s18 + $0x24] sm:$0xf0] }
0x1218   :  { %5689 = vmatpush.bf16.msrb.mxu1 %v7824_v23  ;;  %5702 = vmatpush.bf16.msrb.mxu3 %v8016_v56  ;;  %v7867_v23 = vld [vmem:[%s11475_s18 + $0x190] sm:$0xf]  ;;  %v8538_v56 = vld [vmem:[%s11475_s18 + $0x1a4] sm:$0xf0]  ;;  %v7676_v60 = vor.u32 %v8490_v32, %v7675_v2 }
0x1219   :  { %v7868_v5 = vor.u32 %v8538_v56, %v7867_v23 }
0x121b   :  { %5664 = vmatpush.bf16.msra.mxu0 %v7796_v61  ;;  %5677 = vmatpush.bf16.msra.mxu2 %v7988_v13  ;;  %v7680_v61 = vor.u32 %v8487_v57, %v7677_v38  ;;  %v7872_v13 = vor.u32 %v8535_v42, %v7869_v58 }
0x121c   :  { %5690 = vmatpush.bf16.msrb.mxu1 %v7800_v0  ;;  %5703 = vmatpush.bf16.msrb.mxu3 %v7992_v59 }
0x121f   :  { %5665 = vmatpush.bf16.msra.mxu0 %v7772_v20  ;;  %5678 = vmatpush.bf16.msra.mxu2 %v7964_v37 }
0x1220   :  { %5691 = vmatpush.bf16.msrb.mxu1 %v7776_v7  ;;  %5704 = vmatpush.bf16.msrb.mxu3 %v7968_v40  ;;  %v5066_v7 = vperm.slane %v5064_v12, 0 }
0x1221   :  { %5618 = vmatmul.bf16.vlgmr.msrb.gmra.mxu0 %v11264_v34  ;;  %5631 = vmatmul.bf16.vlgmr.msrb.gmra.mxu2 %v11266_v35 }
0x1222   :  { %5644 = vmatmul.bf16.vlgmr.msra.gmra.mxu1 %v11264_v34  ;;  %5657 = vmatmul.bf16.vlgmr.msra.gmra.mxu3 %v11266_v35 }
0x1223   :  { %5666 = vmatpush.bf16.msra.mxu0 %v7748_v17  ;;  %5679 = vmatpush.bf16.msra.mxu2 %v7940_v21 }
0x1224   :  { %5692 = vmatpush.bf16.msrb.mxu1 %v7752_v25  ;;  %5705 = vmatpush.bf16.msrb.mxu3 %v7944_v41 }
0x1227   :  { %5667 = vmatpush.bf16.msra.mxu0 %v7724_v39  ;;  %5680 = vmatpush.bf16.msra.mxu2 %v7916_v29 }
0x1228   :  { %5693 = vmatpush.bf16.msrb.mxu1 %v7728_v8  ;;  %5706 = vmatpush.bf16.msrb.mxu3 %v7920_v44  ;;  %v5070_v44 = vperm.slane %v5064_v12, 4 }
0x122b   :  { %5668 = vmatpush.bf16.msra.mxu0 %v7700_v52  ;;  %5681 = vmatpush.bf16.msra.mxu2 %v7892_v54 }
0x122c   :  { %5694 = vmatpush.bf16.msrb.mxu1 %v7704_v6  ;;  %5707 = vmatpush.bf16.msrb.mxu3 %v7896_v33 }
0x122f   :  { %5669 = vmatpush.bf16.msra.mxu0 %v7676_v60  ;;  %5682 = vmatpush.bf16.msra.mxu2 %v7868_v5 }
0x1230   :  { %5695 = vmatpush.bf16.msrb.mxu1 %v7680_v61  ;;  %5708 = vmatpush.bf16.msrb.mxu3 %v7872_v13 }
0x1232   :  { %5670 = vmatmul.bf16.vlgmr.msra.gmra.mxu0 %v11264_v34  ;;  %5683 = vmatmul.bf16.vlgmr.msra.gmra.mxu2 %v11266_v35 }
0x1233   :  { %5696 = vmatmul.bf16.vlgmr.msrb.gmra.mxu1 %v11264_v34  ;;  %5709 = vmatmul.bf16.vlgmr.msrb.gmra.mxu3 %v11266_v35 }
0x128e   :  { %v5567_v62 = vpop.f32.mrf.mxu0 }
0x128f   :  { %v5593_v63 = vpop.f32.mrf.mxu1  ;;  %v5568_v9 = vadd.f32 %v5567_v62, %v5066_v7 }
0x1290   :  { %v5594_v20 = vadd.f32 %v5593_v63, %v5067_v18 }
0x1294   :  { %v5580_v0 = vpop.f32.mrf.mxu2 }
0x1295   :  { %v5606_v59 = vpop.f32.mrf.mxu3  ;;  %v5581_v17 = vadd.f32 %v5580_v0, %v5568_v9 }
0x1296   :  { %v5569_v14 = vpop.f32.mrf.mxu0  ;;  %v5607_v40 = vadd.f32 %v5606_v59, %v5594_v20 }
0x1297   :  { %v5595_v19 = vpop.f32.mrf.mxu1  ;;  %v5714_v53 = vmax.f32 %v5581_v17, 0.0 }
0x1298   :  { %v5715_v35 = vmax.f32 %v5607_v40, 0.0 }
0x129a   :  { %v5726_v41 = vrot.slane %v5715_v35, 6 }
0x129c   :  { %v5582_v1 = vpop.f32.mrf.mxu2  ;;  %v5730_v31 = vsel %vm2844_vm3, %v5714_v53, %v5726_v41 }
0x129d   :  { %v5608_v46 = vpop.f32.mrf.mxu3 }
0x129e   :  { %v5619_v37 = vpop.f32.mrf.mxu0 }
0x129f   :  { %v5645_v4 = vpop.f32.mrf.mxu1  ;;  %v5620_v34 = vadd.f32 %v5619_v37, %v5068_v3 }
0x12a0   :  { %v5646_v11 = vadd.f32 %v5645_v4, %v5069_v27 }
0x12a4   :  { %v5632_v16 = vpop.f32.mrf.mxu2 }
0x12a5   :  { %v5633_v22 = vadd.f32 %v5632_v16, %v5620_v34  ;;  %v5658_v55 = vpop.f32.mrf.mxu3 }
0x12a6   :  { %v5659_v21 = vadd.f32 %v5658_v55, %v5646_v11  ;;  %v5621_v45 = vpop.f32.mrf.mxu0 }
0x12a7   :  { %v5716_v24 = vmax.f32 %v5633_v22, 0.0  ;;  %v5647_v25 = vpop.f32.mrf.mxu1 }
0x12a8   :  { %v5717_v28 = vmax.f32 %v5659_v21, 0.0 }
0x12a9   :  { %v5727_v15 = vrot.slane %v5716_v24, 4 }
0x12aa   :  { %v5728_v26 = vrot.slane %v5717_v28, 2 }
0x12ac   :  { %v5732_v30 = vsel %vm5731_vm8, %v5727_v15, %v5728_v26  ;;  %v5634_v39 = vpop.f32.mrf.mxu2 }
0x12ad   :  { %v5734_v29 = vsel %vm5733_vm9, %v5730_v31, %v5732_v30  ;;  %v5660_v36 = vpop.f32.mrf.mxu3 }
0x12ae   :  { %5738 = vst [vmem:[%s11477_s20] sm:$0xff] %v5734_v29 }
0x12af   :  { %v5671_v43 = vpop.f32.mrf.mxu0 }
0x12b0   :  { %v5697_v8 = vpop.f32.mrf.mxu1  ;;  %v5672_v48 = vadd.f32 %v5671_v43, %v5070_v44 }
0x12b1   :  { %v5698_v10 = vadd.f32 %v5697_v8, %v5071_v47 }
0x12b5   :  { %v5684_v49 = vpop.f32.mrf.mxu2 }
0x12b6   :  { %v5710_v50 = vpop.f32.mrf.mxu3  ;;  %v5685_v51 = vadd.f32 %v5684_v49, %v5672_v48 }
0x12b7   :  { %v5711_v52 = vadd.f32 %v5710_v50, %v5698_v10  ;;  %v5673_v54 = vpop.f32.mrf.mxu0 }
0x12b8   :  { %v5699_v2 = vpop.f32.mrf.mxu1  ;;  %v5718_v6 = vmax.f32 %v5685_v51, 0.0 }
0x12b9   :  { %v5719_v32 = vmax.f32 %v5711_v52, 0.0 }
0x12bb   :  { %v5729_v33 = vrot.slane %v5719_v32, 6 }
0x12bd   :  { %v5735_v23 = vsel %vm2844_vm3, %v5718_v6, %v5729_v33  ;;  %v5686_v56 = vpop.f32.mrf.mxu2 }
0x12be   :  { %5741 = vst.msk [vmem:[%s11477_s20 + $0x8] sm:$0xf] %vm5740_vm14, %v5735_v23  ;;  %v5712_v57 = vpop.f32.mrf.mxu3 }
0x12bf   :  { %5746 = vsyncpa [#allocation3], 1 }
0x12c0   :  { %5747 = vsyncpa [#allocation5], 1 }
0x12c1   :  { %5748 = vsyncpa [#allocation8], 1 }
0x12c2   :  { %5749 = vsyncpa [#allocation11], 1 }
0x12c3   :  { %5750 = vsyncpa [#allocation14], 1 }
0x12c4   :  { %5751 = vsyncpa [#allocation17], 1 }
0x12c5   :  { %5752 = vsyncpa [#allocation20], 1 }
0x12c6   :  { %5753 = vsyncpa [#allocation23], 1 }
0x12c7   :  { %5754 = vsyncpa [#allocation26], 1 }

</bundles_post_ra>
